<compile_context>
chip_gen: v7x
topology: tpu7x:2x2x1
jax: 0.10.0
libtpu: 0.0.40
codegen_flags: <defaults>
</compile_context>

<pallas_src>
import functools
import math

import jax
import jax.numpy as jnp
import numpy as np
from jax import lax
from jax.experimental import pallas as pl
from jax.experimental.pallas import tpu as pltpu


def _int_pow(base, expnt, nbits):
    """Elementwise base**expnt for integer expnt in [0, 2**nbits), broadcasting.

    Binary exponentiation: only VALU selects/multiplies, no EUP exp/log, so
    building the decay tables does not saturate the single EUP slot.
    """
    out = None
    cur = base
    for b in range(nbits):
        bit = (expnt >> b) & 1
        factor = jnp.where(bit == 1, cur, jnp.ones_like(cur))
        out = factor if out is None else out * factor
        if b + 1 < nbits:
            cur = cur * cur
    return out


def _mhema_kernel(x_ref, alpha_ref, delta_ref, beta_ref, gamma_ref, omega_ref,
                  out_ref, k_scr, cdec_scr, din_scr, qpT_scr, h_scr, *, batch):
    """One (channel-block, time-block) grid step of the chunked EMA.

    x_ref/out_ref : (Dd, C*B, T) f32  rows = (chunk, batch), lanes = in-chunk time
    alpha..gamma  : (Dd, N) f32 ;  omega_ref : (Dd, 1) f32
    k_scr   : (Dd, T, T) bf16  within-chunk causal Toeplitz kernel (cached)
    cdec_scr: (N, Dd, T) f32   coef_n * q_n**(j+1)   (carried state -> output)
    din_scr : (N, Dd, T) f32   q_n**(T-1-i)          (input -> new state)
    qpT_scr : (N, Dd, 1) f32   q_n**T                (state decay per chunk)
    h_scr   : (N, Dd, B) f32   carried EMA state
    """
    Dd, rows, T = x_ref.shape
    C = rows // batch
    N = alpha_ref.shape[1]
    scale = math.sqrt(1.0 / N)
    nbits = T.bit_length()

    # ---- once per channel block: coefficients + cached decay tables ---------
    @pl.when(pl.program_id(1) == 0)
    def _init():
        alpha = jax.nn.sigmoid(alpha_ref[...])                   # (Dd, N)
        delta = jax.nn.sigmoid(delta_ref[...])
        q = 1.0 - alpha * delta                                  # in (0, 1)
        coef = alpha * beta_ref[...] * gamma_ref[...] * scale    # (Dd, N)

        s_in = lax.broadcasted_iota(jnp.int32, (T, T), 0)        # input pos i
        t_out = lax.broadcasted_iota(jnp.int32, (T, T), 1)       # output pos j
        rel = t_out - s_in
        relc = jnp.maximum(rel, 0)
        t_row = lax.broadcasted_iota(jnp.int32, (1, T), 1)       # 0..T-1

        kmat = jnp.zeros((Dd, T, T), jnp.float32)
        for n in range(N):
            qn = q[:, n][:, None]                                # (Dd, 1)
            cn = coef[:, n][:, None]                             # (Dd, 1)
            # within-chunk kernel  K[d, i, j] += c_n * q_n**(j-i)  (j >= i)
            kmat = kmat + cn[:, :, None] * _int_pow(
                qn[:, :, None], relc[None, :, :], nbits)
            cdec_scr[n] = cn * qn * _int_pow(qn, t_row, nbits)   # c q**(j+1)
            pw_in = _int_pow(qn, (T - 1) - t_row, nbits)         # q**(T-1-i)
            din_scr[n] = pw_in
            qpT_scr[n] = qn * pw_in[:, 0:1]                      # q**T
        kmat = jnp.where(rel[None, :, :] >= 0, kmat, 0.0)
        k_scr[...] = kmat.astype(k_scr.dtype)
        h_scr[...] = jnp.zeros_like(h_scr)

    # ---- every step: within-chunk convolution for all chunks on the MXU -----
    x = x_ref[...]                                               # (Dd, C*B, T)
    intra = jnp.einsum('dmi,dij->dmj', x.astype(jnp.bfloat16), k_scr[...],
                       preferred_element_type=jnp.float32)       # f32 accumulate

    omega = omega_ref[...][:, :, None]                           # (Dd, 1, 1)
    cdec = [cdec_scr[n][:, None, :] for n in range(N)]           # (Dd, 1, T)
    din = [din_scr[n][:, None, :] for n in range(N)]             # (Dd, 1, T)
    qpT = [qpT_scr[n] for n in range(N)]                         # (Dd, 1)
    h = [h_scr[n] for n in range(N)]                             # (Dd, B)

    # Sequential pass over the chunks of this time block: add the carried-state
    # contribution (rank-N, VALU only) and advance the EMA state.
    for c in range(C):
        r0, r1 = c * batch, (c + 1) * batch
        x_c = x[:, r0:r1, :]                                     # (Dd, B, T)
        y_c = intra[:, r0:r1, :] + omega * x_c                   # conv + residual
        for n in range(N):
            y_c = y_c + cdec[n] * h[n][:, :, None]
        out_ref[:, r0:r1, :] = jax.nn.silu(y_c).astype(out_ref.dtype)
        for n in range(N):
            z = jnp.sum(x_c * din[n], axis=-1)                   # (Dd, B)
            h[n] = qpT[n] * h[n] + z

    for n in range(N):
        h_scr[n] = h[n]


def _pick_block_d(embed_dim, target=64):
    """Largest divisor of embed_dim <= target that keeps blocks 8-aligned."""
    for cand in range(min(embed_dim, target), 0, -1):
        if embed_dim % cand == 0 and (cand % 8 == 0 or cand == embed_dim):
            return cand
    return embed_dim


def _pick_chunk(seq_len, max_chunk=128):
    """Within-chunk length T: largest divisor of seq_len <= max_chunk."""
    for cand in range(min(seq_len, max_chunk), 1, -1):
        if seq_len % cand == 0:
            return cand
    return seq_len


def _pick_chunks_per_step(n_chunks, batch, target_rows=128):
    """Chunks handled per grid step (MXU M dim = chunks_per_step * batch)."""
    legal = [c for c in range(1, n_chunks + 1)
             if n_chunks % c == 0 and (c == n_chunks or (c * batch) % 8 == 0)]
    fitting = [c for c in legal if c * batch <= target_rows]
    return max(fitting) if fitting else min(legal)


def multi_head_ema_forward(x, params, *, block_d=None, chunk=None,
                           chunks_per_step=None):
    """MultiHeadEMA forward.  x: (L, B, D) float32 (Time x Batch x Channel)."""
    L, B, D = x.shape
    N = params['alpha'].shape[1]

    T = _pick_chunk(L) if chunk is None else chunk
    assert L % T == 0, "chunk length must divide the sequence length"
    n_chunks = L // T
    C = (_pick_chunks_per_step(n_chunks, B) if chunks_per_step is None
         else chunks_per_step)
    assert n_chunks % C == 0
    assert C == n_chunks or (C * B) % 8 == 0, \
        "chunks_per_step * batch must be a multiple of 8 (TPU sublane tiling)"
    Dd = _pick_block_d(D) if block_d is None else block_d
    assert D % Dd == 0

    # Layout plumbing (XLA side): (L, B, D) -> (D, n_chunks*B, T): time on the
    # lane axis, rows = (chunk, batch) so each tile's sublane dim is C*B.
    x_r = x.reshape(n_chunks, T, B, D).astype(jnp.float32)
    x_r = jnp.transpose(x_r, (3, 0, 2, 1)).reshape(D, n_chunks * B, T)

    alpha = params['alpha'][:, :, 0].astype(jnp.float32)         # (D, N)
    delta = params['delta'][:, :, 0].astype(jnp.float32)
    beta = params['beta'][:, :, 0].astype(jnp.float32)
    gamma = params['gamma'].astype(jnp.float32)
    omega = params['omega'][:, None].astype(jnp.float32)         # (D, 1)

    def dn_spec():
        return pl.BlockSpec((Dd, N), lambda i, j: (i, 0))

    out_r = pl.pallas_call(
        functools.partial(_mhema_kernel, batch=B),
        out_shape=jax.ShapeDtypeStruct((D, n_chunks * B, T), jnp.float32),
        grid=(D // Dd, n_chunks // C),
        in_specs=[
            pl.BlockSpec((Dd, C * B, T), lambda i, j: (i, j, 0)),  # x
            dn_spec(),                                             # alpha
            dn_spec(),                                             # delta
            dn_spec(),                                             # beta
            dn_spec(),                                             # gamma
            pl.BlockSpec((Dd, 1), lambda i, j: (i, 0)),            # omega
        ],
        out_specs=pl.BlockSpec((Dd, C * B, T), lambda i, j: (i, j, 0)),
        scratch_shapes=[
            pltpu.VMEM((Dd, T, T), jnp.bfloat16),   # within-chunk Toeplitz K
            pltpu.VMEM((N, Dd, T), jnp.float32),    # coef * q**(j+1)
            pltpu.VMEM((N, Dd, T), jnp.float32),    # q**(T-1-i)
            pltpu.VMEM((N, Dd, 1), jnp.float32),    # q**T
            pltpu.VMEM((N, Dd, B), jnp.float32),    # carried EMA state
        ],
        compiler_params=pltpu.CompilerParams(
            dimension_semantics=("parallel", "arbitrary"),
            vmem_limit_bytes=48 * 1024 * 1024),
    )(x_r, alpha, delta, beta, gamma, omega)

    # (D, n_chunks*B, T) -> (L, B, D)
    out = out_r.reshape(D, n_chunks, B, T)
    return jnp.transpose(out, (1, 3, 2, 0)).reshape(L, B, D)


def init_params(key, embed_dim, ndim=2, bidirectional=False):
    """Deterministic parameter init mirroring MultiHeadEMA.reset_parameters."""
    kernel_dim = 2 * embed_dim if bidirectional else embed_dim
    k1, k2, k3, k4, k5 = jax.random.split(key, 5)
    alpha = 0.2 * jax.random.normal(k1, (kernel_dim, ndim, 1), jnp.float32)
    delta = 0.2 * jax.random.normal(k2, (kernel_dim, ndim, 1), jnp.float32)
    val = jnp.ones((ndim, 1), jnp.float32)
    if ndim > 1:
        val = val.at[1::2].set(-1.0)
    beta = 0.02 * jax.random.normal(k3, (kernel_dim, ndim, 1), jnp.float32) + val
    gamma = jax.random.normal(k4, (kernel_dim, ndim), jnp.float32)
    omega = jax.random.normal(k5, (embed_dim,), jnp.float32)
    return dict(alpha=alpha, delta=delta, beta=beta, gamma=gamma, omega=omega)


def _reference_forward(x, params, ndim):
    """Pure-JAX replica of the torch forward (FFT path) for validation."""
    L, B, D = x.shape
    scale = math.sqrt(1.0 / ndim)
    alpha = jax.nn.sigmoid(params['alpha'])
    delta = jax.nn.sigmoid(params['delta'])
    q = 1.0 - alpha * delta
    p = alpha * params['beta']
    vander = jnp.arange(L, dtype=jnp.float32).reshape(1, 1, L) * jnp.log(q)
    kern = p * jnp.exp(vander)                                   # (D, N, L)
    k = jnp.einsum('dnl,dn->dl', kern, params['gamma'] * scale)  # (D, L)

    residual = x * params['omega']
    xp = jnp.transpose(x, (1, 2, 0))                             # (B, D, L)
    fft_len = 2 * L
    k_f = jnp.fft.rfft(k, n=fft_len)
    x_f = jnp.fft.rfft(xp, n=fft_len)
    out = jnp.fft.irfft(x_f * k_f, n=fft_len)[..., :L]           # (B, D, L)
    out = jnp.transpose(out, (2, 0, 1)) + residual               # (L, B, D)
    return jax.nn.silu(out)


if __name__ == "__main__":
    key = jax.random.PRNGKey(0)
    pkey, xkey, pkey2, xkey2 = jax.random.split(key, 4)

    # 1) Module-default small shape: seq=8, batch=2, embed_dim=32, ndim=2.
    L, B, D, N = 8, 2, 32, 2
    params = init_params(pkey, D, ndim=N, bidirectional=False)
    x = jax.random.normal(xkey, (L, B, D), jnp.float32)
    out = jax.block_until_ready(multi_head_ema_forward(x, params))
    ref = _reference_forward(x, params, N)
    np.testing.assert_allclose(np.asarray(out), np.asarray(ref),
                               rtol=2e-2, atol=3e-2)

    # 2) Longer sequence exercising multiple chunks per grid step (MXU M =
    #    chunks*batch), the bf16 matmul, and the cross-time-block state carry.
    L2 = 64
    params2 = init_params(pkey2, D, ndim=N, bidirectional=False)
    x2 = jax.random.normal(xkey2, (L2, B, D), jnp.float32)
    out2 = jax.block_until_ready(
        multi_head_ema_forward(x2, params2, chunk=8, chunks_per_step=4))
    ref2 = _reference_forward(x2, params2, N)
    np.testing.assert_allclose(np.asarray(out2), np.asarray(ref2),
                               rtol=2e-2, atol=3e-2)

    print("KERNEL_OK")
</pallas_src>

<mosaic_0001>
module attributes {stable_mosaic.version = 11 : i64} {
  func.func @_mhema_kernel(%arg0: i32, %arg1: i32, %arg2: memref<32x2x8xf32, #tpu.memory_space<vmem>>, %arg3: memref<32x2xf32, #tpu.memory_space<vmem>>, %arg4: memref<32x2xf32, #tpu.memory_space<vmem>>, %arg5: memref<32x2xf32, #tpu.memory_space<vmem>>, %arg6: memref<32x2xf32, #tpu.memory_space<vmem>>, %arg7: memref<32x1xf32, #tpu.memory_space<vmem>>, %arg8: memref<32x2x8xf32, #tpu.memory_space<vmem>>, %arg9: memref<32x8x8xbf16, #tpu.memory_space<vmem>>, %arg10: memref<2x32x8xf32, #tpu.memory_space<vmem>>, %arg11: memref<2x32x8xf32, #tpu.memory_space<vmem>>, %arg12: memref<2x32x1xf32, #tpu.memory_space<vmem>>, %arg13: memref<2x32x2xf32, #tpu.memory_space<vmem>>) attributes {dimension_semantics = [#tpu.dimension_semantics<parallel>, #tpu.dimension_semantics<arbitrary>], iteration_bounds = array<i64: 1, 1>, scalar_prefetch = 0 : i64, scratch_operands = 5 : i64, tpu.core_type = #tpu.core_type<tc>, window_params = [{transform_indices = @transform_0, window_bounds = array<i64: 32, 2, 8>}, {transform_indices = @transform_1, window_bounds = array<i64: 32, 2>}, {transform_indices = @transform_2, window_bounds = array<i64: 32, 2>}, {transform_indices = @transform_3, window_bounds = array<i64: 32, 2>}, {transform_indices = @transform_4, window_bounds = array<i64: 32, 2>}, {transform_indices = @transform_5, window_bounds = array<i64: 32, 1>}, {transform_indices = @transform_6, window_bounds = array<i64: 32, 2, 8>}]} {
    %c0_i32 = arith.constant 0 : i32
    %0 = arith.cmpi eq, %arg1, %c0_i32 : i32
    %1 = arith.extui %0 : i1 to i32
    %c0_i32_0 = arith.constant 0 : i32
    %2 = arith.cmpi ne, %1, %c0_i32_0 : i32
    scf.if %2 {
      %c0_43 = arith.constant 0 : index
      %c0_44 = arith.constant 0 : index
      %67 = vector.load %arg3[%c0_43, %c0_44] : memref<32x2xf32, #tpu.memory_space<vmem>>, vector<32x2xf32>
      %68 = arith.negf %67 : vector<32x2xf32>
      %69 = math.exp %68 : vector<32x2xf32>
      %cst_45 = arith.constant 1.000000e+00 : f32
      %70 = vector.broadcast %cst_45 : f32 to vector<32x2xf32>
      %71 = arith.addf %70, %69 : vector<32x2xf32>
      %72 = arith.divf %70, %71 : vector<32x2xf32>
      %c0_46 = arith.constant 0 : index
      %c0_47 = arith.constant 0 : index
      %73 = vector.load %arg4[%c0_46, %c0_47] : memref<32x2xf32, #tpu.memory_space<vmem>>, vector<32x2xf32>
      %74 = arith.negf %73 : vector<32x2xf32>
      %75 = math.exp %74 : vector<32x2xf32>
      %cst_48 = arith.constant 1.000000e+00 : f32
      %76 = vector.broadcast %cst_48 : f32 to vector<32x2xf32>
      %77 = arith.addf %76, %75 : vector<32x2xf32>
      %78 = arith.divf %76, %77 : vector<32x2xf32>
      %79 = arith.mulf %72, %78 : vector<32x2xf32>
      %cst_49 = arith.constant 1.000000e+00 : f32
      %80 = vector.broadcast %cst_49 : f32 to vector<32x2xf32>
      %81 = arith.subf %80, %79 : vector<32x2xf32>
      %c0_50 = arith.constant 0 : index
      %c0_51 = arith.constant 0 : index
      %82 = vector.load %arg5[%c0_50, %c0_51] : memref<32x2xf32, #tpu.memory_space<vmem>>, vector<32x2xf32>
      %83 = arith.mulf %72, %82 : vector<32x2xf32>
      %c0_52 = arith.constant 0 : index
      %c0_53 = arith.constant 0 : index
      %84 = vector.load %arg6[%c0_52, %c0_53] : memref<32x2xf32, #tpu.memory_space<vmem>>, vector<32x2xf32>
      %85 = arith.mulf %83, %84 : vector<32x2xf32>
      %cst_54 = arith.constant 0.707106769 : f32
      %86 = vector.broadcast %cst_54 : f32 to vector<32x2xf32>
      %87 = arith.mulf %85, %86 : vector<32x2xf32>
      %88 = tpu.iota {dimensions = array<i32: 0>} : vector<8x8xi32>
      %89 = tpu.iota {dimensions = array<i32: 1>} : vector<8x8xi32>
      %90 = arith.subi %89, %88 : vector<8x8xi32>
      %c0_i32_55 = arith.constant 0 : i32
      %91 = vector.broadcast %c0_i32_55 : i32 to vector<8x8xi32>
      %92 = arith.maxsi %90, %91 : vector<8x8xi32>
      %93 = tpu.iota {dimensions = array<i32: 1>} : vector<1x8xi32>
      %cst_56 = arith.constant 0.000000e+00 : f32
      %94 = vector.broadcast %cst_56 : f32 to vector<32x8x8xf32>
      %95 = vector.extract_strided_slice %81 {offsets = [0, 0], sizes = [32, 1], strides = [1, 1]} : vector<32x2xf32> to vector<32x1xf32>
      %96 = vector.shape_cast %95 : vector<32x1xf32> to vector<32xf32>
      %97 = vector.shape_cast %96 : vector<32xf32> to vector<32x1xf32>
      %98 = vector.extract_strided_slice %87 {offsets = [0, 0], sizes = [32, 1], strides = [1, 1]} : vector<32x2xf32> to vector<32x1xf32>
      %99 = vector.shape_cast %98 : vector<32x1xf32> to vector<32xf32>
      %100 = vector.shape_cast %99 : vector<32xf32> to vector<32x1xf32>
      %101 = vector.shape_cast %100 : vector<32x1xf32> to vector<32x1x1xf32>
      %102 = vector.shape_cast %97 : vector<32x1xf32> to vector<32x1x1xf32>
      %103 = vector.shape_cast %92 : vector<8x8xi32> to vector<1x8x8xi32>
      %c0_i32_57 = arith.constant 0 : i32
      %104 = vector.broadcast %c0_i32_57 : i32 to vector<1x8x8xi32>
      %105 = arith.shrsi %103, %104 : vector<1x8x8xi32>
      %c1_i32 = arith.constant 1 : i32
      %106 = vector.broadcast %c1_i32 : i32 to vector<1x8x8xi32>
      %107 = arith.andi %105, %106 : vector<1x8x8xi32>
      %c1_i32_58 = arith.constant 1 : i32
      %108 = vector.broadcast %c1_i32_58 : i32 to vector<1x8x8xi32>
      %109 = arith.cmpi eq, %107, %108 : vector<1x8x8xi32>
      %cst_59 = arith.constant 1.000000e+00 : f32
      %110 = vector.broadcast %cst_59 : f32 to vector<32x1x1xf32>
      %111 = vector.shape_cast %109 : vector<1x8x8xi1> to vector<1x8x8xi1>
      %112 = vector.broadcast %111 : vector<1x8x8xi1> to vector<32x8x8xi1>
      %113 = vector.shape_cast %102 : vector<32x1x1xf32> to vector<32x1x1xf32>
      %114 = vector.broadcast %113 : vector<32x1x1xf32> to vector<32x8x8xf32>
      %115 = vector.shape_cast %110 : vector<32x1x1xf32> to vector<32x1x1xf32>
      %116 = vector.broadcast %115 : vector<32x1x1xf32> to vector<32x8x8xf32>
      %117 = arith.select %112, %114, %116 : vector<32x8x8xi1>, vector<32x8x8xf32>
      %118 = arith.mulf %102, %102 : vector<32x1x1xf32>
      %c1_i32_60 = arith.constant 1 : i32
      %119 = vector.broadcast %c1_i32_60 : i32 to vector<1x8x8xi32>
      %120 = arith.shrsi %103, %119 : vector<1x8x8xi32>
      %c1_i32_61 = arith.constant 1 : i32
      %121 = vector.broadcast %c1_i32_61 : i32 to vector<1x8x8xi32>
      %122 = arith.andi %120, %121 : vector<1x8x8xi32>
      %c1_i32_62 = arith.constant 1 : i32
      %123 = vector.broadcast %c1_i32_62 : i32 to vector<1x8x8xi32>
      %124 = arith.cmpi eq, %122, %123 : vector<1x8x8xi32>
      %cst_63 = arith.constant 1.000000e+00 : f32
      %125 = vector.broadcast %cst_63 : f32 to vector<32x1x1xf32>
      %126 = vector.shape_cast %124 : vector<1x8x8xi1> to vector<1x8x8xi1>
      %127 = vector.broadcast %126 : vector<1x8x8xi1> to vector<32x8x8xi1>
      %128 = vector.shape_cast %118 : vector<32x1x1xf32> to vector<32x1x1xf32>
      %129 = vector.broadcast %128 : vector<32x1x1xf32> to vector<32x8x8xf32>
      %130 = vector.shape_cast %125 : vector<32x1x1xf32> to vector<32x1x1xf32>
      %131 = vector.broadcast %130 : vector<32x1x1xf32> to vector<32x8x8xf32>
      %132 = arith.select %127, %129, %131 : vector<32x8x8xi1>, vector<32x8x8xf32>
      %133 = arith.mulf %117, %132 : vector<32x8x8xf32>
      %134 = arith.mulf %118, %118 : vector<32x1x1xf32>
      %c2_i32 = arith.constant 2 : i32
      %135 = vector.broadcast %c2_i32 : i32 to vector<1x8x8xi32>
      %136 = arith.shrsi %103, %135 : vector<1x8x8xi32>
      %c1_i32_64 = arith.constant 1 : i32
      %137 = vector.broadcast %c1_i32_64 : i32 to vector<1x8x8xi32>
      %138 = arith.andi %136, %137 : vector<1x8x8xi32>
      %c1_i32_65 = arith.constant 1 : i32
      %139 = vector.broadcast %c1_i32_65 : i32 to vector<1x8x8xi32>
      %140 = arith.cmpi eq, %138, %139 : vector<1x8x8xi32>
      %cst_66 = arith.constant 1.000000e+00 : f32
      %141 = vector.broadcast %cst_66 : f32 to vector<32x1x1xf32>
      %142 = vector.shape_cast %140 : vector<1x8x8xi1> to vector<1x8x8xi1>
      %143 = vector.broadcast %142 : vector<1x8x8xi1> to vector<32x8x8xi1>
      %144 = vector.shape_cast %134 : vector<32x1x1xf32> to vector<32x1x1xf32>
      %145 = vector.broadcast %144 : vector<32x1x1xf32> to vector<32x8x8xf32>
      %146 = vector.shape_cast %141 : vector<32x1x1xf32> to vector<32x1x1xf32>
      %147 = vector.broadcast %146 : vector<32x1x1xf32> to vector<32x8x8xf32>
      %148 = arith.select %143, %145, %147 : vector<32x8x8xi1>, vector<32x8x8xf32>
      %149 = arith.mulf %133, %148 : vector<32x8x8xf32>
      %150 = arith.mulf %134, %134 : vector<32x1x1xf32>
      %c3_i32 = arith.constant 3 : i32
      %151 = vector.broadcast %c3_i32 : i32 to vector<1x8x8xi32>
      %152 = arith.shrsi %103, %151 : vector<1x8x8xi32>
      %c1_i32_67 = arith.constant 1 : i32
      %153 = vector.broadcast %c1_i32_67 : i32 to vector<1x8x8xi32>
      %154 = arith.andi %152, %153 : vector<1x8x8xi32>
      %c1_i32_68 = arith.constant 1 : i32
      %155 = vector.broadcast %c1_i32_68 : i32 to vector<1x8x8xi32>
      %156 = arith.cmpi eq, %154, %155 : vector<1x8x8xi32>
      %cst_69 = arith.constant 1.000000e+00 : f32
      %157 = vector.broadcast %cst_69 : f32 to vector<32x1x1xf32>
      %158 = vector.shape_cast %156 : vector<1x8x8xi1> to vector<1x8x8xi1>
      %159 = vector.broadcast %158 : vector<1x8x8xi1> to vector<32x8x8xi1>
      %160 = vector.shape_cast %150 : vector<32x1x1xf32> to vector<32x1x1xf32>
      %161 = vector.broadcast %160 : vector<32x1x1xf32> to vector<32x8x8xf32>
      %162 = vector.shape_cast %157 : vector<32x1x1xf32> to vector<32x1x1xf32>
      %163 = vector.broadcast %162 : vector<32x1x1xf32> to vector<32x8x8xf32>
      %164 = arith.select %159, %161, %163 : vector<32x8x8xi1>, vector<32x8x8xf32>
      %165 = arith.mulf %149, %164 : vector<32x8x8xf32>
      %166 = vector.broadcast %101 : vector<32x1x1xf32> to vector<32x8x8xf32>
      %167 = arith.mulf %166, %165 : vector<32x8x8xf32>
      %168 = arith.addf %94, %167 : vector<32x8x8xf32>
      %169 = arith.mulf %100, %97 : vector<32x1xf32>
      %c0_i32_70 = arith.constant 0 : i32
      %170 = vector.broadcast %c0_i32_70 : i32 to vector<1x8xi32>
      %171 = arith.shrsi %93, %170 : vector<1x8xi32>
      %c1_i32_71 = arith.constant 1 : i32
      %172 = vector.broadcast %c1_i32_71 : i32 to vector<1x8xi32>
      %173 = arith.andi %171, %172 : vector<1x8xi32>
      %c1_i32_72 = arith.constant 1 : i32
      %174 = vector.broadcast %c1_i32_72 : i32 to vector<1x8xi32>
      %175 = arith.cmpi eq, %173, %174 : vector<1x8xi32>
      %cst_73 = arith.constant 1.000000e+00 : f32
      %176 = vector.broadcast %cst_73 : f32 to vector<32x1xf32>
      %177 = vector.shape_cast %175 : vector<1x8xi1> to vector<1x8xi1>
      %178 = vector.broadcast %177 : vector<1x8xi1> to vector<32x8xi1>
      %179 = vector.shape_cast %97 : vector<32x1xf32> to vector<32x1xf32>
      %180 = vector.broadcast %179 : vector<32x1xf32> to vector<32x8xf32>
      %181 = vector.shape_cast %176 : vector<32x1xf32> to vector<32x1xf32>
      %182 = vector.broadcast %181 : vector<32x1xf32> to vector<32x8xf32>
      %183 = arith.select %178, %180, %182 : vector<32x8xi1>, vector<32x8xf32>
      %184 = arith.mulf %97, %97 : vector<32x1xf32>
      %c1_i32_74 = arith.constant 1 : i32
      %185 = vector.broadcast %c1_i32_74 : i32 to vector<1x8xi32>
      %186 = arith.shrsi %93, %185 : vector<1x8xi32>
      %c1_i32_75 = arith.constant 1 : i32
      %187 = vector.broadcast %c1_i32_75 : i32 to vector<1x8xi32>
      %188 = arith.andi %186, %187 : vector<1x8xi32>
      %c1_i32_76 = arith.constant 1 : i32
      %189 = vector.broadcast %c1_i32_76 : i32 to vector<1x8xi32>
      %190 = arith.cmpi eq, %188, %189 : vector<1x8xi32>
      %cst_77 = arith.constant 1.000000e+00 : f32
      %191 = vector.broadcast %cst_77 : f32 to vector<32x1xf32>
      %192 = vector.shape_cast %190 : vector<1x8xi1> to vector<1x8xi1>
      %193 = vector.broadcast %192 : vector<1x8xi1> to vector<32x8xi1>
      %194 = vector.shape_cast %184 : vector<32x1xf32> to vector<32x1xf32>
      %195 = vector.broadcast %194 : vector<32x1xf32> to vector<32x8xf32>
      %196 = vector.shape_cast %191 : vector<32x1xf32> to vector<32x1xf32>
      %197 = vector.broadcast %196 : vector<32x1xf32> to vector<32x8xf32>
      %198 = arith.select %193, %195, %197 : vector<32x8xi1>, vector<32x8xf32>
      %199 = arith.mulf %183, %198 : vector<32x8xf32>
      %200 = arith.mulf %184, %184 : vector<32x1xf32>
      %c2_i32_78 = arith.constant 2 : i32
      %201 = vector.broadcast %c2_i32_78 : i32 to vector<1x8xi32>
      %202 = arith.shrsi %93, %201 : vector<1x8xi32>
      %c1_i32_79 = arith.constant 1 : i32
      %203 = vector.broadcast %c1_i32_79 : i32 to vector<1x8xi32>
      %204 = arith.andi %202, %203 : vector<1x8xi32>
      %c1_i32_80 = arith.constant 1 : i32
      %205 = vector.broadcast %c1_i32_80 : i32 to vector<1x8xi32>
      %206 = arith.cmpi eq, %204, %205 : vector<1x8xi32>
      %cst_81 = arith.constant 1.000000e+00 : f32
      %207 = vector.broadcast %cst_81 : f32 to vector<32x1xf32>
      %208 = vector.shape_cast %206 : vector<1x8xi1> to vector<1x8xi1>
      %209 = vector.broadcast %208 : vector<1x8xi1> to vector<32x8xi1>
      %210 = vector.shape_cast %200 : vector<32x1xf32> to vector<32x1xf32>
      %211 = vector.broadcast %210 : vector<32x1xf32> to vector<32x8xf32>
      %212 = vector.shape_cast %207 : vector<32x1xf32> to vector<32x1xf32>
      %213 = vector.broadcast %212 : vector<32x1xf32> to vector<32x8xf32>
      %214 = arith.select %209, %211, %213 : vector<32x8xi1>, vector<32x8xf32>
      %215 = arith.mulf %199, %214 : vector<32x8xf32>
      %216 = arith.mulf %200, %200 : vector<32x1xf32>
      %c3_i32_82 = arith.constant 3 : i32
      %217 = vector.broadcast %c3_i32_82 : i32 to vector<1x8xi32>
      %218 = arith.shrsi %93, %217 : vector<1x8xi32>
      %c1_i32_83 = arith.constant 1 : i32
      %219 = vector.broadcast %c1_i32_83 : i32 to vector<1x8xi32>
      %220 = arith.andi %218, %219 : vector<1x8xi32>
      %c1_i32_84 = arith.constant 1 : i32
      %221 = vector.broadcast %c1_i32_84 : i32 to vector<1x8xi32>
      %222 = arith.cmpi eq, %220, %221 : vector<1x8xi32>
      %cst_85 = arith.constant 1.000000e+00 : f32
      %223 = vector.broadcast %cst_85 : f32 to vector<32x1xf32>
      %224 = vector.shape_cast %222 : vector<1x8xi1> to vector<1x8xi1>
      %225 = vector.broadcast %224 : vector<1x8xi1> to vector<32x8xi1>
      %226 = vector.shape_cast %216 : vector<32x1xf32> to vector<32x1xf32>
      %227 = vector.broadcast %226 : vector<32x1xf32> to vector<32x8xf32>
      %228 = vector.shape_cast %223 : vector<32x1xf32> to vector<32x1xf32>
      %229 = vector.broadcast %228 : vector<32x1xf32> to vector<32x8xf32>
      %230 = arith.select %225, %227, %229 : vector<32x8xi1>, vector<32x8xf32>
      %231 = arith.mulf %215, %230 : vector<32x8xf32>
      %232 = vector.broadcast %169 : vector<32x1xf32> to vector<32x8xf32>
      %233 = arith.mulf %232, %231 : vector<32x8xf32>
      %c0_86 = arith.constant 0 : index
      %c0_87 = arith.constant 0 : index
      %c0_88 = arith.constant 0 : index
      %234 = vector.load %arg10[%c0_86, %c0_87, %c0_88] : memref<2x32x8xf32, #tpu.memory_space<vmem>>, vector<1x32x8xf32>
      %235 = vector.shape_cast %234 : vector<1x32x8xf32> to vector<32x8xf32>
      %236 = vector.shape_cast %233 : vector<32x8xf32> to vector<1x32x8xf32>
      tpu.vector_store %arg10[%c0_86, %c0_87, %c0_88], %236 {strides = array<i32>} : memref<2x32x8xf32, #tpu.memory_space<vmem>>, vector<1x32x8xf32>,
      %c7_i32 = arith.constant 7 : i32
      %237 = vector.broadcast %c7_i32 : i32 to vector<1x8xi32>
      %238 = arith.subi %237, %93 : vector<1x8xi32>
      %c0_i32_89 = arith.constant 0 : i32
      %239 = vector.broadcast %c0_i32_89 : i32 to vector<1x8xi32>
      %240 = arith.shrsi %238, %239 : vector<1x8xi32>
      %c1_i32_90 = arith.constant 1 : i32
      %241 = vector.broadcast %c1_i32_90 : i32 to vector<1x8xi32>
      %242 = arith.andi %240, %241 : vector<1x8xi32>
      %c1_i32_91 = arith.constant 1 : i32
      %243 = vector.broadcast %c1_i32_91 : i32 to vector<1x8xi32>
      %244 = arith.cmpi eq, %242, %243 : vector<1x8xi32>
      %cst_92 = arith.constant 1.000000e+00 : f32
      %245 = vector.broadcast %cst_92 : f32 to vector<32x1xf32>
      %246 = vector.shape_cast %244 : vector<1x8xi1> to vector<1x8xi1>
      %247 = vector.broadcast %246 : vector<1x8xi1> to vector<32x8xi1>
      %248 = vector.shape_cast %97 : vector<32x1xf32> to vector<32x1xf32>
      %249 = vector.broadcast %248 : vector<32x1xf32> to vector<32x8xf32>
      %250 = vector.shape_cast %245 : vector<32x1xf32> to vector<32x1xf32>
      %251 = vector.broadcast %250 : vector<32x1xf32> to vector<32x8xf32>
      %252 = arith.select %247, %249, %251 : vector<32x8xi1>, vector<32x8xf32>
      %253 = arith.mulf %97, %97 : vector<32x1xf32>
      %c1_i32_93 = arith.constant 1 : i32
      %254 = vector.broadcast %c1_i32_93 : i32 to vector<1x8xi32>
      %255 = arith.shrsi %238, %254 : vector<1x8xi32>
      %c1_i32_94 = arith.constant 1 : i32
      %256 = vector.broadcast %c1_i32_94 : i32 to vector<1x8xi32>
      %257 = arith.andi %255, %256 : vector<1x8xi32>
      %c1_i32_95 = arith.constant 1 : i32
      %258 = vector.broadcast %c1_i32_95 : i32 to vector<1x8xi32>
      %259 = arith.cmpi eq, %257, %258 : vector<1x8xi32>
      %cst_96 = arith.constant 1.000000e+00 : f32
      %260 = vector.broadcast %cst_96 : f32 to vector<32x1xf32>
      %261 = vector.shape_cast %259 : vector<1x8xi1> to vector<1x8xi1>
      %262 = vector.broadcast %261 : vector<1x8xi1> to vector<32x8xi1>
      %263 = vector.shape_cast %253 : vector<32x1xf32> to vector<32x1xf32>
      %264 = vector.broadcast %263 : vector<32x1xf32> to vector<32x8xf32>
      %265 = vector.shape_cast %260 : vector<32x1xf32> to vector<32x1xf32>
      %266 = vector.broadcast %265 : vector<32x1xf32> to vector<32x8xf32>
      %267 = arith.select %262, %264, %266 : vector<32x8xi1>, vector<32x8xf32>
      %268 = arith.mulf %252, %267 : vector<32x8xf32>
      %269 = arith.mulf %253, %253 : vector<32x1xf32>
      %c2_i32_97 = arith.constant 2 : i32
      %270 = vector.broadcast %c2_i32_97 : i32 to vector<1x8xi32>
      %271 = arith.shrsi %238, %270 : vector<1x8xi32>
      %c1_i32_98 = arith.constant 1 : i32
      %272 = vector.broadcast %c1_i32_98 : i32 to vector<1x8xi32>
      %273 = arith.andi %271, %272 : vector<1x8xi32>
      %c1_i32_99 = arith.constant 1 : i32
      %274 = vector.broadcast %c1_i32_99 : i32 to vector<1x8xi32>
      %275 = arith.cmpi eq, %273, %274 : vector<1x8xi32>
      %cst_100 = arith.constant 1.000000e+00 : f32
      %276 = vector.broadcast %cst_100 : f32 to vector<32x1xf32>
      %277 = vector.shape_cast %275 : vector<1x8xi1> to vector<1x8xi1>
      %278 = vector.broadcast %277 : vector<1x8xi1> to vector<32x8xi1>
      %279 = vector.shape_cast %269 : vector<32x1xf32> to vector<32x1xf32>
      %280 = vector.broadcast %279 : vector<32x1xf32> to vector<32x8xf32>
      %281 = vector.shape_cast %276 : vector<32x1xf32> to vector<32x1xf32>
      %282 = vector.broadcast %281 : vector<32x1xf32> to vector<32x8xf32>
      %283 = arith.select %278, %280, %282 : vector<32x8xi1>, vector<32x8xf32>
      %284 = arith.mulf %268, %283 : vector<32x8xf32>
      %285 = arith.mulf %269, %269 : vector<32x1xf32>
      %c3_i32_101 = arith.constant 3 : i32
      %286 = vector.broadcast %c3_i32_101 : i32 to vector<1x8xi32>
      %287 = arith.shrsi %238, %286 : vector<1x8xi32>
      %c1_i32_102 = arith.constant 1 : i32
      %288 = vector.broadcast %c1_i32_102 : i32 to vector<1x8xi32>
      %289 = arith.andi %287, %288 : vector<1x8xi32>
      %c1_i32_103 = arith.constant 1 : i32
      %290 = vector.broadcast %c1_i32_103 : i32 to vector<1x8xi32>
      %291 = arith.cmpi eq, %289, %290 : vector<1x8xi32>
      %cst_104 = arith.constant 1.000000e+00 : f32
      %292 = vector.broadcast %cst_104 : f32 to vector<32x1xf32>
      %293 = vector.shape_cast %291 : vector<1x8xi1> to vector<1x8xi1>
      %294 = vector.broadcast %293 : vector<1x8xi1> to vector<32x8xi1>
      %295 = vector.shape_cast %285 : vector<32x1xf32> to vector<32x1xf32>
      %296 = vector.broadcast %295 : vector<32x1xf32> to vector<32x8xf32>
      %297 = vector.shape_cast %292 : vector<32x1xf32> to vector<32x1xf32>
      %298 = vector.broadcast %297 : vector<32x1xf32> to vector<32x8xf32>
      %299 = arith.select %294, %296, %298 : vector<32x8xi1>, vector<32x8xf32>
      %300 = arith.mulf %284, %299 : vector<32x8xf32>
      %c0_105 = arith.constant 0 : index
      %c0_106 = arith.constant 0 : index
      %c0_107 = arith.constant 0 : index
      %301 = vector.load %arg11[%c0_105, %c0_106, %c0_107] : memref<2x32x8xf32, #tpu.memory_space<vmem>>, vector<1x32x8xf32>
      %302 = vector.shape_cast %301 : vector<1x32x8xf32> to vector<32x8xf32>
      %303 = vector.shape_cast %300 : vector<32x8xf32> to vector<1x32x8xf32>
      tpu.vector_store %arg11[%c0_105, %c0_106, %c0_107], %303 {strides = array<i32>} : memref<2x32x8xf32, #tpu.memory_space<vmem>>, vector<1x32x8xf32>,
      %304 = vector.extract_strided_slice %300 {offsets = [0, 0], sizes = [32, 1], strides = [1, 1]} : vector<32x8xf32> to vector<32x1xf32>
      %305 = arith.mulf %97, %304 : vector<32x1xf32>
      %c0_108 = arith.constant 0 : index
      %c0_109 = arith.constant 0 : index
      %c0_110 = arith.constant 0 : index
      %306 = vector.load %arg12[%c0_108, %c0_109, %c0_110] : memref<2x32x1xf32, #tpu.memory_space<vmem>>, vector<1x32x1xf32>
      %307 = vector.shape_cast %306 : vector<1x32x1xf32> to vector<32x1xf32>
      %308 = vector.shape_cast %305 : vector<32x1xf32> to vector<1x32x1xf32>
      tpu.vector_store %arg12[%c0_108, %c0_109, %c0_110], %308 {strides = array<i32>} : memref<2x32x1xf32, #tpu.memory_space<vmem>>, vector<1x32x1xf32>,
      %309 = vector.extract_strided_slice %81 {offsets = [0, 1], sizes = [32, 1], strides = [1, 1]} : vector<32x2xf32> to vector<32x1xf32>
      %310 = vector.shape_cast %309 : vector<32x1xf32> to vector<32xf32>
      %311 = vector.shape_cast %310 : vector<32xf32> to vector<32x1xf32>
      %312 = vector.extract_strided_slice %87 {offsets = [0, 1], sizes = [32, 1], strides = [1, 1]} : vector<32x2xf32> to vector<32x1xf32>
      %313 = vector.shape_cast %312 : vector<32x1xf32> to vector<32xf32>
      %314 = vector.shape_cast %313 : vector<32xf32> to vector<32x1xf32>
      %315 = vector.shape_cast %314 : vector<32x1xf32> to vector<32x1x1xf32>
      %316 = vector.shape_cast %311 : vector<32x1xf32> to vector<32x1x1xf32>
      %317 = vector.shape_cast %92 : vector<8x8xi32> to vector<1x8x8xi32>
      %c0_i32_111 = arith.constant 0 : i32
      %318 = vector.broadcast %c0_i32_111 : i32 to vector<1x8x8xi32>
      %319 = arith.shrsi %317, %318 : vector<1x8x8xi32>
      %c1_i32_112 = arith.constant 1 : i32
      %320 = vector.broadcast %c1_i32_112 : i32 to vector<1x8x8xi32>
      %321 = arith.andi %319, %320 : vector<1x8x8xi32>
      %c1_i32_113 = arith.constant 1 : i32
      %322 = vector.broadcast %c1_i32_113 : i32 to vector<1x8x8xi32>
      %323 = arith.cmpi eq, %321, %322 : vector<1x8x8xi32>
      %cst_114 = arith.constant 1.000000e+00 : f32
      %324 = vector.broadcast %cst_114 : f32 to vector<32x1x1xf32>
      %325 = vector.shape_cast %323 : vector<1x8x8xi1> to vector<1x8x8xi1>
      %326 = vector.broadcast %325 : vector<1x8x8xi1> to vector<32x8x8xi1>
      %327 = vector.shape_cast %316 : vector<32x1x1xf32> to vector<32x1x1xf32>
      %328 = vector.broadcast %327 : vector<32x1x1xf32> to vector<32x8x8xf32>
      %329 = vector.shape_cast %324 : vector<32x1x1xf32> to vector<32x1x1xf32>
      %330 = vector.broadcast %329 : vector<32x1x1xf32> to vector<32x8x8xf32>
      %331 = arith.select %326, %328, %330 : vector<32x8x8xi1>, vector<32x8x8xf32>
      %332 = arith.mulf %316, %316 : vector<32x1x1xf32>
      %c1_i32_115 = arith.constant 1 : i32
      %333 = vector.broadcast %c1_i32_115 : i32 to vector<1x8x8xi32>
      %334 = arith.shrsi %317, %333 : vector<1x8x8xi32>
      %c1_i32_116 = arith.constant 1 : i32
      %335 = vector.broadcast %c1_i32_116 : i32 to vector<1x8x8xi32>
      %336 = arith.andi %334, %335 : vector<1x8x8xi32>
      %c1_i32_117 = arith.constant 1 : i32
      %337 = vector.broadcast %c1_i32_117 : i32 to vector<1x8x8xi32>
      %338 = arith.cmpi eq, %336, %337 : vector<1x8x8xi32>
      %cst_118 = arith.constant 1.000000e+00 : f32
      %339 = vector.broadcast %cst_118 : f32 to vector<32x1x1xf32>
      %340 = vector.shape_cast %338 : vector<1x8x8xi1> to vector<1x8x8xi1>
      %341 = vector.broadcast %340 : vector<1x8x8xi1> to vector<32x8x8xi1>
      %342 = vector.shape_cast %332 : vector<32x1x1xf32> to vector<32x1x1xf32>
      %343 = vector.broadcast %342 : vector<32x1x1xf32> to vector<32x8x8xf32>
      %344 = vector.shape_cast %339 : vector<32x1x1xf32> to vector<32x1x1xf32>
      %345 = vector.broadcast %344 : vector<32x1x1xf32> to vector<32x8x8xf32>
      %346 = arith.select %341, %343, %345 : vector<32x8x8xi1>, vector<32x8x8xf32>
      %347 = arith.mulf %331, %346 : vector<32x8x8xf32>
      %348 = arith.mulf %332, %332 : vector<32x1x1xf32>
      %c2_i32_119 = arith.constant 2 : i32
      %349 = vector.broadcast %c2_i32_119 : i32 to vector<1x8x8xi32>
      %350 = arith.shrsi %317, %349 : vector<1x8x8xi32>
      %c1_i32_120 = arith.constant 1 : i32
      %351 = vector.broadcast %c1_i32_120 : i32 to vector<1x8x8xi32>
      %352 = arith.andi %350, %351 : vector<1x8x8xi32>
      %c1_i32_121 = arith.constant 1 : i32
      %353 = vector.broadcast %c1_i32_121 : i32 to vector<1x8x8xi32>
      %354 = arith.cmpi eq, %352, %353 : vector<1x8x8xi32>
      %cst_122 = arith.constant 1.000000e+00 : f32
      %355 = vector.broadcast %cst_122 : f32 to vector<32x1x1xf32>
      %356 = vector.shape_cast %354 : vector<1x8x8xi1> to vector<1x8x8xi1>
      %357 = vector.broadcast %356 : vector<1x8x8xi1> to vector<32x8x8xi1>
      %358 = vector.shape_cast %348 : vector<32x1x1xf32> to vector<32x1x1xf32>
      %359 = vector.broadcast %358 : vector<32x1x1xf32> to vector<32x8x8xf32>
      %360 = vector.shape_cast %355 : vector<32x1x1xf32> to vector<32x1x1xf32>
      %361 = vector.broadcast %360 : vector<32x1x1xf32> to vector<32x8x8xf32>
      %362 = arith.select %357, %359, %361 : vector<32x8x8xi1>, vector<32x8x8xf32>
      %363 = arith.mulf %347, %362 : vector<32x8x8xf32>
      %364 = arith.mulf %348, %348 : vector<32x1x1xf32>
      %c3_i32_123 = arith.constant 3 : i32
      %365 = vector.broadcast %c3_i32_123 : i32 to vector<1x8x8xi32>
      %366 = arith.shrsi %317, %365 : vector<1x8x8xi32>
      %c1_i32_124 = arith.constant 1 : i32
      %367 = vector.broadcast %c1_i32_124 : i32 to vector<1x8x8xi32>
      %368 = arith.andi %366, %367 : vector<1x8x8xi32>
      %c1_i32_125 = arith.constant 1 : i32
      %369 = vector.broadcast %c1_i32_125 : i32 to vector<1x8x8xi32>
      %370 = arith.cmpi eq, %368, %369 : vector<1x8x8xi32>
      %cst_126 = arith.constant 1.000000e+00 : f32
      %371 = vector.broadcast %cst_126 : f32 to vector<32x1x1xf32>
      %372 = vector.shape_cast %370 : vector<1x8x8xi1> to vector<1x8x8xi1>
      %373 = vector.broadcast %372 : vector<1x8x8xi1> to vector<32x8x8xi1>
      %374 = vector.shape_cast %364 : vector<32x1x1xf32> to vector<32x1x1xf32>
      %375 = vector.broadcast %374 : vector<32x1x1xf32> to vector<32x8x8xf32>
      %376 = vector.shape_cast %371 : vector<32x1x1xf32> to vector<32x1x1xf32>
      %377 = vector.broadcast %376 : vector<32x1x1xf32> to vector<32x8x8xf32>
      %378 = arith.select %373, %375, %377 : vector<32x8x8xi1>, vector<32x8x8xf32>
      %379 = arith.mulf %363, %378 : vector<32x8x8xf32>
      %380 = vector.broadcast %315 : vector<32x1x1xf32> to vector<32x8x8xf32>
      %381 = arith.mulf %380, %379 : vector<32x8x8xf32>
      %382 = arith.addf %168, %381 : vector<32x8x8xf32>
      %383 = arith.mulf %314, %311 : vector<32x1xf32>
      %c0_i32_127 = arith.constant 0 : i32
      %384 = vector.broadcast %c0_i32_127 : i32 to vector<1x8xi32>
      %385 = arith.shrsi %93, %384 : vector<1x8xi32>
      %c1_i32_128 = arith.constant 1 : i32
      %386 = vector.broadcast %c1_i32_128 : i32 to vector<1x8xi32>
      %387 = arith.andi %385, %386 : vector<1x8xi32>
      %c1_i32_129 = arith.constant 1 : i32
      %388 = vector.broadcast %c1_i32_129 : i32 to vector<1x8xi32>
      %389 = arith.cmpi eq, %387, %388 : vector<1x8xi32>
      %cst_130 = arith.constant 1.000000e+00 : f32
      %390 = vector.broadcast %cst_130 : f32 to vector<32x1xf32>
      %391 = vector.shape_cast %389 : vector<1x8xi1> to vector<1x8xi1>
      %392 = vector.broadcast %391 : vector<1x8xi1> to vector<32x8xi1>
      %393 = vector.shape_cast %311 : vector<32x1xf32> to vector<32x1xf32>
      %394 = vector.broadcast %393 : vector<32x1xf32> to vector<32x8xf32>
      %395 = vector.shape_cast %390 : vector<32x1xf32> to vector<32x1xf32>
      %396 = vector.broadcast %395 : vector<32x1xf32> to vector<32x8xf32>
      %397 = arith.select %392, %394, %396 : vector<32x8xi1>, vector<32x8xf32>
      %398 = arith.mulf %311, %311 : vector<32x1xf32>
      %c1_i32_131 = arith.constant 1 : i32
      %399 = vector.broadcast %c1_i32_131 : i32 to vector<1x8xi32>
      %400 = arith.shrsi %93, %399 : vector<1x8xi32>
      %c1_i32_132 = arith.constant 1 : i32
      %401 = vector.broadcast %c1_i32_132 : i32 to vector<1x8xi32>
      %402 = arith.andi %400, %401 : vector<1x8xi32>
      %c1_i32_133 = arith.constant 1 : i32
      %403 = vector.broadcast %c1_i32_133 : i32 to vector<1x8xi32>
      %404 = arith.cmpi eq, %402, %403 : vector<1x8xi32>
      %cst_134 = arith.constant 1.000000e+00 : f32
      %405 = vector.broadcast %cst_134 : f32 to vector<32x1xf32>
      %406 = vector.shape_cast %404 : vector<1x8xi1> to vector<1x8xi1>
      %407 = vector.broadcast %406 : vector<1x8xi1> to vector<32x8xi1>
      %408 = vector.shape_cast %398 : vector<32x1xf32> to vector<32x1xf32>
      %409 = vector.broadcast %408 : vector<32x1xf32> to vector<32x8xf32>
      %410 = vector.shape_cast %405 : vector<32x1xf32> to vector<32x1xf32>
      %411 = vector.broadcast %410 : vector<32x1xf32> to vector<32x8xf32>
      %412 = arith.select %407, %409, %411 : vector<32x8xi1>, vector<32x8xf32>
      %413 = arith.mulf %397, %412 : vector<32x8xf32>
      %414 = arith.mulf %398, %398 : vector<32x1xf32>
      %c2_i32_135 = arith.constant 2 : i32
      %415 = vector.broadcast %c2_i32_135 : i32 to vector<1x8xi32>
      %416 = arith.shrsi %93, %415 : vector<1x8xi32>
      %c1_i32_136 = arith.constant 1 : i32
      %417 = vector.broadcast %c1_i32_136 : i32 to vector<1x8xi32>
      %418 = arith.andi %416, %417 : vector<1x8xi32>
      %c1_i32_137 = arith.constant 1 : i32
      %419 = vector.broadcast %c1_i32_137 : i32 to vector<1x8xi32>
      %420 = arith.cmpi eq, %418, %419 : vector<1x8xi32>
      %cst_138 = arith.constant 1.000000e+00 : f32
      %421 = vector.broadcast %cst_138 : f32 to vector<32x1xf32>
      %422 = vector.shape_cast %420 : vector<1x8xi1> to vector<1x8xi1>
      %423 = vector.broadcast %422 : vector<1x8xi1> to vector<32x8xi1>
      %424 = vector.shape_cast %414 : vector<32x1xf32> to vector<32x1xf32>
      %425 = vector.broadcast %424 : vector<32x1xf32> to vector<32x8xf32>
      %426 = vector.shape_cast %421 : vector<32x1xf32> to vector<32x1xf32>
      %427 = vector.broadcast %426 : vector<32x1xf32> to vector<32x8xf32>
      %428 = arith.select %423, %425, %427 : vector<32x8xi1>, vector<32x8xf32>
      %429 = arith.mulf %413, %428 : vector<32x8xf32>
      %430 = arith.mulf %414, %414 : vector<32x1xf32>
      %c3_i32_139 = arith.constant 3 : i32
      %431 = vector.broadcast %c3_i32_139 : i32 to vector<1x8xi32>
      %432 = arith.shrsi %93, %431 : vector<1x8xi32>
      %c1_i32_140 = arith.constant 1 : i32
      %433 = vector.broadcast %c1_i32_140 : i32 to vector<1x8xi32>
      %434 = arith.andi %432, %433 : vector<1x8xi32>
      %c1_i32_141 = arith.constant 1 : i32
      %435 = vector.broadcast %c1_i32_141 : i32 to vector<1x8xi32>
      %436 = arith.cmpi eq, %434, %435 : vector<1x8xi32>
      %cst_142 = arith.constant 1.000000e+00 : f32
      %437 = vector.broadcast %cst_142 : f32 to vector<32x1xf32>
      %438 = vector.shape_cast %436 : vector<1x8xi1> to vector<1x8xi1>
      %439 = vector.broadcast %438 : vector<1x8xi1> to vector<32x8xi1>
      %440 = vector.shape_cast %430 : vector<32x1xf32> to vector<32x1xf32>
      %441 = vector.broadcast %440 : vector<32x1xf32> to vector<32x8xf32>
      %442 = vector.shape_cast %437 : vector<32x1xf32> to vector<32x1xf32>
      %443 = vector.broadcast %442 : vector<32x1xf32> to vector<32x8xf32>
      %444 = arith.select %439, %441, %443 : vector<32x8xi1>, vector<32x8xf32>
      %445 = arith.mulf %429, %444 : vector<32x8xf32>
      %446 = vector.broadcast %383 : vector<32x1xf32> to vector<32x8xf32>
      %447 = arith.mulf %446, %445 : vector<32x8xf32>
      %c1_143 = arith.constant 1 : index
      %c0_144 = arith.constant 0 : index
      %c0_145 = arith.constant 0 : index
      %448 = vector.load %arg10[%c1_143, %c0_144, %c0_145] : memref<2x32x8xf32, #tpu.memory_space<vmem>>, vector<1x32x8xf32>
      %449 = vector.shape_cast %448 : vector<1x32x8xf32> to vector<32x8xf32>
      %450 = vector.shape_cast %447 : vector<32x8xf32> to vector<1x32x8xf32>
      tpu.vector_store %arg10[%c1_143, %c0_144, %c0_145], %450 {strides = array<i32>} : memref<2x32x8xf32, #tpu.memory_space<vmem>>, vector<1x32x8xf32>,
      %c7_i32_146 = arith.constant 7 : i32
      %451 = vector.broadcast %c7_i32_146 : i32 to vector<1x8xi32>
      %452 = arith.subi %451, %93 : vector<1x8xi32>
      %c0_i32_147 = arith.constant 0 : i32
      %453 = vector.broadcast %c0_i32_147 : i32 to vector<1x8xi32>
      %454 = arith.shrsi %452, %453 : vector<1x8xi32>
      %c1_i32_148 = arith.constant 1 : i32
      %455 = vector.broadcast %c1_i32_148 : i32 to vector<1x8xi32>
      %456 = arith.andi %454, %455 : vector<1x8xi32>
      %c1_i32_149 = arith.constant 1 : i32
      %457 = vector.broadcast %c1_i32_149 : i32 to vector<1x8xi32>
      %458 = arith.cmpi eq, %456, %457 : vector<1x8xi32>
      %cst_150 = arith.constant 1.000000e+00 : f32
      %459 = vector.broadcast %cst_150 : f32 to vector<32x1xf32>
      %460 = vector.shape_cast %458 : vector<1x8xi1> to vector<1x8xi1>
      %461 = vector.broadcast %460 : vector<1x8xi1> to vector<32x8xi1>
      %462 = vector.shape_cast %311 : vector<32x1xf32> to vector<32x1xf32>
      %463 = vector.broadcast %462 : vector<32x1xf32> to vector<32x8xf32>
      %464 = vector.shape_cast %459 : vector<32x1xf32> to vector<32x1xf32>
      %465 = vector.broadcast %464 : vector<32x1xf32> to vector<32x8xf32>
      %466 = arith.select %461, %463, %465 : vector<32x8xi1>, vector<32x8xf32>
      %467 = arith.mulf %311, %311 : vector<32x1xf32>
      %c1_i32_151 = arith.constant 1 : i32
      %468 = vector.broadcast %c1_i32_151 : i32 to vector<1x8xi32>
      %469 = arith.shrsi %452, %468 : vector<1x8xi32>
      %c1_i32_152 = arith.constant 1 : i32
      %470 = vector.broadcast %c1_i32_152 : i32 to vector<1x8xi32>
      %471 = arith.andi %469, %470 : vector<1x8xi32>
      %c1_i32_153 = arith.constant 1 : i32
      %472 = vector.broadcast %c1_i32_153 : i32 to vector<1x8xi32>
      %473 = arith.cmpi eq, %471, %472 : vector<1x8xi32>
      %cst_154 = arith.constant 1.000000e+00 : f32
      %474 = vector.broadcast %cst_154 : f32 to vector<32x1xf32>
      %475 = vector.shape_cast %473 : vector<1x8xi1> to vector<1x8xi1>
      %476 = vector.broadcast %475 : vector<1x8xi1> to vector<32x8xi1>
      %477 = vector.shape_cast %467 : vector<32x1xf32> to vector<32x1xf32>
      %478 = vector.broadcast %477 : vector<32x1xf32> to vector<32x8xf32>
      %479 = vector.shape_cast %474 : vector<32x1xf32> to vector<32x1xf32>
      %480 = vector.broadcast %479 : vector<32x1xf32> to vector<32x8xf32>
      %481 = arith.select %476, %478, %480 : vector<32x8xi1>, vector<32x8xf32>
      %482 = arith.mulf %466, %481 : vector<32x8xf32>
      %483 = arith.mulf %467, %467 : vector<32x1xf32>
      %c2_i32_155 = arith.constant 2 : i32
      %484 = vector.broadcast %c2_i32_155 : i32 to vector<1x8xi32>
      %485 = arith.shrsi %452, %484 : vector<1x8xi32>
      %c1_i32_156 = arith.constant 1 : i32
      %486 = vector.broadcast %c1_i32_156 : i32 to vector<1x8xi32>
      %487 = arith.andi %485, %486 : vector<1x8xi32>
      %c1_i32_157 = arith.constant 1 : i32
      %488 = vector.broadcast %c1_i32_157 : i32 to vector<1x8xi32>
      %489 = arith.cmpi eq, %487, %488 : vector<1x8xi32>
      %cst_158 = arith.constant 1.000000e+00 : f32
      %490 = vector.broadcast %cst_158 : f32 to vector<32x1xf32>
      %491 = vector.shape_cast %489 : vector<1x8xi1> to vector<1x8xi1>
      %492 = vector.broadcast %491 : vector<1x8xi1> to vector<32x8xi1>
      %493 = vector.shape_cast %483 : vector<32x1xf32> to vector<32x1xf32>
      %494 = vector.broadcast %493 : vector<32x1xf32> to vector<32x8xf32>
      %495 = vector.shape_cast %490 : vector<32x1xf32> to vector<32x1xf32>
      %496 = vector.broadcast %495 : vector<32x1xf32> to vector<32x8xf32>
      %497 = arith.select %492, %494, %496 : vector<32x8xi1>, vector<32x8xf32>
      %498 = arith.mulf %482, %497 : vector<32x8xf32>
      %499 = arith.mulf %483, %483 : vector<32x1xf32>
      %c3_i32_159 = arith.constant 3 : i32
      %500 = vector.broadcast %c3_i32_159 : i32 to vector<1x8xi32>
      %501 = arith.shrsi %452, %500 : vector<1x8xi32>
      %c1_i32_160 = arith.constant 1 : i32
      %502 = vector.broadcast %c1_i32_160 : i32 to vector<1x8xi32>
      %503 = arith.andi %501, %502 : vector<1x8xi32>
      %c1_i32_161 = arith.constant 1 : i32
      %504 = vector.broadcast %c1_i32_161 : i32 to vector<1x8xi32>
      %505 = arith.cmpi eq, %503, %504 : vector<1x8xi32>
      %cst_162 = arith.constant 1.000000e+00 : f32
      %506 = vector.broadcast %cst_162 : f32 to vector<32x1xf32>
      %507 = vector.shape_cast %505 : vector<1x8xi1> to vector<1x8xi1>
      %508 = vector.broadcast %507 : vector<1x8xi1> to vector<32x8xi1>
      %509 = vector.shape_cast %499 : vector<32x1xf32> to vector<32x1xf32>
      %510 = vector.broadcast %509 : vector<32x1xf32> to vector<32x8xf32>
      %511 = vector.shape_cast %506 : vector<32x1xf32> to vector<32x1xf32>
      %512 = vector.broadcast %511 : vector<32x1xf32> to vector<32x8xf32>
      %513 = arith.select %508, %510, %512 : vector<32x8xi1>, vector<32x8xf32>
      %514 = arith.mulf %498, %513 : vector<32x8xf32>
      %c1_163 = arith.constant 1 : index
      %c0_164 = arith.constant 0 : index
      %c0_165 = arith.constant 0 : index
      %515 = vector.load %arg11[%c1_163, %c0_164, %c0_165] : memref<2x32x8xf32, #tpu.memory_space<vmem>>, vector<1x32x8xf32>
      %516 = vector.shape_cast %515 : vector<1x32x8xf32> to vector<32x8xf32>
      %517 = vector.shape_cast %514 : vector<32x8xf32> to vector<1x32x8xf32>
      tpu.vector_store %arg11[%c1_163, %c0_164, %c0_165], %517 {strides = array<i32>} : memref<2x32x8xf32, #tpu.memory_space<vmem>>, vector<1x32x8xf32>,
      %518 = vector.extract_strided_slice %514 {offsets = [0, 0], sizes = [32, 1], strides = [1, 1]} : vector<32x8xf32> to vector<32x1xf32>
      %519 = arith.mulf %311, %518 : vector<32x1xf32>
      %c1_166 = arith.constant 1 : index
      %c0_167 = arith.constant 0 : index
      %c0_168 = arith.constant 0 : index
      %520 = vector.load %arg12[%c1_166, %c0_167, %c0_168] : memref<2x32x1xf32, #tpu.memory_space<vmem>>, vector<1x32x1xf32>
      %521 = vector.shape_cast %520 : vector<1x32x1xf32> to vector<32x1xf32>
      %522 = vector.shape_cast %519 : vector<32x1xf32> to vector<1x32x1xf32>
      tpu.vector_store %arg12[%c1_166, %c0_167, %c0_168], %522 {strides = array<i32>} : memref<2x32x1xf32, #tpu.memory_space<vmem>>, vector<1x32x1xf32>,
      %523 = vector.shape_cast %90 : vector<8x8xi32> to vector<1x8x8xi32>
      %c0_i32_169 = arith.constant 0 : i32
      %524 = vector.broadcast %c0_i32_169 : i32 to vector<1x8x8xi32>
      %525 = arith.cmpi sge, %523, %524 : vector<1x8x8xi32>
      %cst_170 = arith.constant 0.000000e+00 : f32
      %526 = vector.shape_cast %525 : vector<1x8x8xi1> to vector<1x8x8xi1>
      %527 = vector.broadcast %526 : vector<1x8x8xi1> to vector<32x8x8xi1>
      %528 = vector.broadcast %cst_170 : f32 to vector<32x8x8xf32>
      %529 = arith.select %527, %382, %528 : vector<32x8x8xi1>, vector<32x8x8xf32>
      %530 = arith.truncf %529 : vector<32x8x8xf32> to vector<32x8x8xbf16>
      %c0_171 = arith.constant 0 : index
      %c0_172 = arith.constant 0 : index
      %c0_173 = arith.constant 0 : index
      %531 = vector.load %arg9[%c0_171, %c0_172, %c0_173] : memref<32x8x8xbf16, #tpu.memory_space<vmem>>, vector<32x8x8xbf16>
      tpu.vector_store %arg9[%c0_171, %c0_172, %c0_173], %530 {strides = array<i32>} : memref<32x8x8xbf16, #tpu.memory_space<vmem>>, vector<32x8x8xbf16>,
      %cst_174 = arith.constant 0.000000e+00 : f32
      %532 = vector.broadcast %cst_174 : f32 to vector<2x32x2xf32>
      %c0_175 = arith.constant 0 : index
      %c0_176 = arith.constant 0 : index
      %c0_177 = arith.constant 0 : index
      %533 = vector.load %arg13[%c0_175, %c0_176, %c0_177] : memref<2x32x2xf32, #tpu.memory_space<vmem>>, vector<2x32x2xf32>
      tpu.vector_store %arg13[%c0_175, %c0_176, %c0_177], %532 {strides = array<i32>} : memref<2x32x2xf32, #tpu.memory_space<vmem>>, vector<2x32x2xf32>,
    } else {
    }
    %c0 = arith.constant 0 : index
    %c0_1 = arith.constant 0 : index
    %c0_2 = arith.constant 0 : index
    %3 = vector.load %arg2[%c0, %c0_1, %c0_2] : memref<32x2x8xf32, #tpu.memory_space<vmem>>, vector<32x2x8xf32>
    %4 = arith.truncf %3 : vector<32x2x8xf32> to vector<32x2x8xbf16>
    %c0_3 = arith.constant 0 : index
    %c0_4 = arith.constant 0 : index
    %c0_5 = arith.constant 0 : index
    %5 = vector.load %arg9[%c0_3, %c0_4, %c0_5] : memref<32x8x8xbf16, #tpu.memory_space<vmem>>, vector<32x8x8xbf16>
    "tpu.trace_start"() <{level = 10 : i32, message = "dmi,dij->dmj"}> : () -> ()
    %cst = arith.constant dense<0.000000e+00> : vector<32x2x8xf32>
    %6 = tpu.matmul %4, %5, %cst {dimension_numbers = #tpu.dot_dimension_numbers<[2], [1], [1], [2], [0, 0, 0, 1, 1, 2], [0], [0]>} : vector<32x2x8xbf16>, vector<32x8x8xbf16>, vector<32x2x8xf32> -> vector<32x2x8xf32>
    "tpu.trace_stop"() : () -> ()
    %c0_6 = arith.constant 0 : index
    %c0_7 = arith.constant 0 : index
    %7 = vector.load %arg7[%c0_6, %c0_7] : memref<32x1xf32, #tpu.memory_space<vmem>>, vector<32x1xf32>
    %8 = vector.shape_cast %7 : vector<32x1xf32> to vector<32x1x1xf32>
    %c0_8 = arith.constant 0 : index
    %c0_9 = arith.constant 0 : index
    %c0_10 = arith.constant 0 : index
    %9 = vector.load %arg10[%c0_8, %c0_9, %c0_10] : memref<2x32x8xf32, #tpu.memory_space<vmem>>, vector<1x32x8xf32>
    %10 = vector.shape_cast %9 : vector<1x32x8xf32> to vector<32x8xf32>
    %11 = vector.shape_cast %10 : vector<32x8xf32> to vector<32x1x8xf32>
    %c1 = arith.constant 1 : index
    %c0_11 = arith.constant 0 : index
    %c0_12 = arith.constant 0 : index
    %12 = vector.load %arg10[%c1, %c0_11, %c0_12] : memref<2x32x8xf32, #tpu.memory_space<vmem>>, vector<1x32x8xf32>
    %13 = vector.shape_cast %12 : vector<1x32x8xf32> to vector<32x8xf32>
    %14 = vector.shape_cast %13 : vector<32x8xf32> to vector<32x1x8xf32>
    %c0_13 = arith.constant 0 : index
    %c0_14 = arith.constant 0 : index
    %c0_15 = arith.constant 0 : index
    %15 = vector.load %arg11[%c0_13, %c0_14, %c0_15] : memref<2x32x8xf32, #tpu.memory_space<vmem>>, vector<1x32x8xf32>
    %16 = vector.shape_cast %15 : vector<1x32x8xf32> to vector<32x8xf32>
    %17 = vector.shape_cast %16 : vector<32x8xf32> to vector<32x1x8xf32>
    %c1_16 = arith.constant 1 : index
    %c0_17 = arith.constant 0 : index
    %c0_18 = arith.constant 0 : index
    %18 = vector.load %arg11[%c1_16, %c0_17, %c0_18] : memref<2x32x8xf32, #tpu.memory_space<vmem>>, vector<1x32x8xf32>
    %19 = vector.shape_cast %18 : vector<1x32x8xf32> to vector<32x8xf32>
    %20 = vector.shape_cast %19 : vector<32x8xf32> to vector<32x1x8xf32>
    %c0_19 = arith.constant 0 : index
    %c0_20 = arith.constant 0 : index
    %c0_21 = arith.constant 0 : index
    %21 = vector.load %arg12[%c0_19, %c0_20, %c0_21] : memref<2x32x1xf32, #tpu.memory_space<vmem>>, vector<1x32x1xf32>
    %22 = vector.shape_cast %21 : vector<1x32x1xf32> to vector<32x1xf32>
    %c1_22 = arith.constant 1 : index
    %c0_23 = arith.constant 0 : index
    %c0_24 = arith.constant 0 : index
    %23 = vector.load %arg12[%c1_22, %c0_23, %c0_24] : memref<2x32x1xf32, #tpu.memory_space<vmem>>, vector<1x32x1xf32>
    %24 = vector.shape_cast %23 : vector<1x32x1xf32> to vector<32x1xf32>
    %c0_25 = arith.constant 0 : index
    %c0_26 = arith.constant 0 : index
    %c0_27 = arith.constant 0 : index
    %25 = vector.load %arg13[%c0_25, %c0_26, %c0_27] : memref<2x32x2xf32, #tpu.memory_space<vmem>>, vector<1x32x2xf32>
    %26 = vector.shape_cast %25 : vector<1x32x2xf32> to vector<32x2xf32>
    %c1_28 = arith.constant 1 : index
    %c0_29 = arith.constant 0 : index
    %c0_30 = arith.constant 0 : index
    %27 = vector.load %arg13[%c1_28, %c0_29, %c0_30] : memref<2x32x2xf32, #tpu.memory_space<vmem>>, vector<1x32x2xf32>
    %28 = vector.shape_cast %27 : vector<1x32x2xf32> to vector<32x2xf32>
    %29 = vector.broadcast %8 : vector<32x1x1xf32> to vector<32x2x8xf32>
    %30 = arith.mulf %29, %3 : vector<32x2x8xf32>
    %31 = arith.addf %6, %30 : vector<32x2x8xf32>
    %32 = vector.shape_cast %26 : vector<32x2xf32> to vector<32x2x1xf32>
    %33 = vector.broadcast %11 : vector<32x1x8xf32> to vector<32x2x8xf32>
    %34 = vector.broadcast %32 : vector<32x2x1xf32> to vector<32x2x8xf32>
    %35 = arith.mulf %33, %34 : vector<32x2x8xf32>
    %36 = arith.addf %31, %35 : vector<32x2x8xf32>
    %37 = vector.shape_cast %28 : vector<32x2xf32> to vector<32x2x1xf32>
    %38 = vector.broadcast %14 : vector<32x1x8xf32> to vector<32x2x8xf32>
    %39 = vector.broadcast %37 : vector<32x2x1xf32> to vector<32x2x8xf32>
    %40 = arith.mulf %38, %39 : vector<32x2x8xf32>
    %41 = arith.addf %36, %40 : vector<32x2x8xf32>
    %42 = arith.negf %41 : vector<32x2x8xf32>
    %43 = math.exp %42 : vector<32x2x8xf32>
    %cst_31 = arith.constant 1.000000e+00 : f32
    %44 = vector.broadcast %cst_31 : f32 to vector<32x2x8xf32>
    %45 = arith.addf %44, %43 : vector<32x2x8xf32>
    %46 = arith.divf %44, %45 : vector<32x2x8xf32>
    %47 = arith.mulf %41, %46 : vector<32x2x8xf32>
    %c0_32 = arith.constant 0 : index
    %c0_33 = arith.constant 0 : index
    %c0_34 = arith.constant 0 : index
    %48 = vector.load %arg8[%c0_32, %c0_33, %c0_34] : memref<32x2x8xf32, #tpu.memory_space<vmem>>, vector<32x2x8xf32>
    tpu.vector_store %arg8[%c0_32, %c0_33, %c0_34], %47 {strides = array<i32>} : memref<32x2x8xf32, #tpu.memory_space<vmem>>, vector<32x2x8xf32>,
    %49 = vector.broadcast %17 : vector<32x1x8xf32> to vector<32x2x8xf32>
    %50 = arith.mulf %3, %49 : vector<32x2x8xf32>
    %cst_35 = arith.constant dense<0.000000e+00> : vector<32x2xf32>
    %51 = vector.multi_reduction <add>, %50, %cst_35 [2] : vector<32x2x8xf32> to vector<32x2xf32>
    %52 = vector.broadcast %22 : vector<32x1xf32> to vector<32x2xf32>
    %53 = arith.mulf %52, %26 : vector<32x2xf32>
    %54 = arith.addf %53, %51 : vector<32x2xf32>
    %55 = vector.broadcast %20 : vector<32x1x8xf32> to vector<32x2x8xf32>
    %56 = arith.mulf %3, %55 : vector<32x2x8xf32>
    %cst_36 = arith.constant dense<0.000000e+00> : vector<32x2xf32>
    %57 = vector.multi_reduction <add>, %56, %cst_36 [2] : vector<32x2x8xf32> to vector<32x2xf32>
    %58 = vector.broadcast %24 : vector<32x1xf32> to vector<32x2xf32>
    %59 = arith.mulf %58, %28 : vector<32x2xf32>
    %60 = arith.addf %59, %57 : vector<32x2xf32>
    %c0_37 = arith.constant 0 : index
    %c0_38 = arith.constant 0 : index
    %c0_39 = arith.constant 0 : index
    %61 = vector.load %arg13[%c0_37, %c0_38, %c0_39] : memref<2x32x2xf32, #tpu.memory_space<vmem>>, vector<1x32x2xf32>
    %62 = vector.shape_cast %61 : vector<1x32x2xf32> to vector<32x2xf32>
    %63 = vector.shape_cast %54 : vector<32x2xf32> to vector<1x32x2xf32>
    tpu.vector_store %arg13[%c0_37, %c0_38, %c0_39], %63 {strides = array<i32>} : memref<2x32x2xf32, #tpu.memory_space<vmem>>, vector<1x32x2xf32>,
    %c1_40 = arith.constant 1 : index
    %c0_41 = arith.constant 0 : index
    %c0_42 = arith.constant 0 : index
    %64 = vector.load %arg13[%c1_40, %c0_41, %c0_42] : memref<2x32x2xf32, #tpu.memory_space<vmem>>, vector<1x32x2xf32>
    %65 = vector.shape_cast %64 : vector<1x32x2xf32> to vector<32x2xf32>
    %66 = vector.shape_cast %60 : vector<32x2xf32> to vector<1x32x2xf32>
    tpu.vector_store %arg13[%c1_40, %c0_41, %c0_42], %66 {strides = array<i32>} : memref<2x32x2xf32, #tpu.memory_space<vmem>>, vector<1x32x2xf32>,
    return
  }
  func.func @transform_0(%arg0: i32, %arg1: i32) -> (i32, i32, i32) {
    %c0_i32 = arith.constant 0 : i32
    %c0_i32_0 = arith.constant 0 : i32
    return %arg0, %arg1, %c0_i32 : i32, i32, i32
  }
  func.func @transform_1(%arg0: i32, %arg1: i32) -> (i32, i32) {
    %c0_i32 = arith.constant 0 : i32
    %c0_i32_0 = arith.constant 0 : i32
    return %arg0, %c0_i32 : i32, i32
  }
  func.func @transform_2(%arg0: i32, %arg1: i32) -> (i32, i32) {
    %c0_i32 = arith.constant 0 : i32
    %c0_i32_0 = arith.constant 0 : i32
    return %arg0, %c0_i32 : i32, i32
  }
  func.func @transform_3(%arg0: i32, %arg1: i32) -> (i32, i32) {
    %c0_i32 = arith.constant 0 : i32
    %c0_i32_0 = arith.constant 0 : i32
    return %arg0, %c0_i32 : i32, i32
  }
  func.func @transform_4(%arg0: i32, %arg1: i32) -> (i32, i32) {
    %c0_i32 = arith.constant 0 : i32
    %c0_i32_0 = arith.constant 0 : i32
    return %arg0, %c0_i32 : i32, i32
  }
  func.func @transform_5(%arg0: i32, %arg1: i32) -> (i32, i32) {
    %c0_i32 = arith.constant 0 : i32
    %c0_i32_0 = arith.constant 0 : i32
    return %arg0, %c0_i32 : i32, i32
  }
  func.func @transform_6(%arg0: i32, %arg1: i32) -> (i32, i32, i32) {
    %c0_i32 = arith.constant 0 : i32
    %c0_i32_0 = arith.constant 0 : i32
    return %arg0, %arg1, %c0_i32 : i32, i32, i32
  }
}

</mosaic_0001>

<bundles_post_ra>
// kernel: tpu_custom_call.1
= control target key start
LH: loop header
LB: loop body
LE: loop exit
PB: predicated region body
PF: predicated region fallthrough
CT: control target
= control target key end

     0   :  { %v14813_v0 = vmov 1   ;;  %v14814_v3 = vmov 0   ;;  %v14816_v26 = vlaneseq  ;;  %v9452_v27 = vmov 1966171168   ;;  %s9455_s27 = smov 1   ;;  %s9456_s28 = smov 127   ;;  %s14806_s1 = inlined_call_operand.vmem [shape: f32[32,2], index: 1, kind: input, shape index: {}]   ;;  %s14807_s2 = inlined_call_operand.vmem [shape: f32[32,2], index: 2, kind: input, shape index: {}]   ;;  %s14808_s3 = inlined_call_operand.vmem [shape: f32[32,2], index: 3, kind: input, shape index: {}]   ;;  %s14809_s4 = inlined_call_operand.vmem [shape: f32[32,2], index: 4, kind: input, shape index: {}]   ;;  %s14810_s0 = inlined_call_operand.vmem [shape: f32[32,2,8], index: 0, kind: input, shape index: {}]   ;;  %s14811_s5 = inlined_call_operand.vmem [shape: f32[32,1], index: 5, kind: input, shape index: {}]   ;;  %s14812_s6 = inlined_call_operand.vmem [shape: f32[32,2,8], index: 6, kind: output, shape index: {}]  }
   0x1   :  { %9212 = vset.pattern.permute.xlu0 %v14813_v0  ;;  %v28_v1 = vld [vmem:[%s14806_s1] sm:$0xff]  ;;  %9211 = vset.pattern.permute.xlu1 %v14814_v3  ;;  %v29_v4 = vld [vmem:[%s14806_s1 + $0x8] sm:$0xff]  ;;  %v30_v10 = vld [vmem:[%s14806_s1 + $0x10] sm:$0xff]  ;;  %v125_v28 = vunpack.c.l.s4 %v9452_v27  ;;  %vm14860_vm5 = vmmov 0   ;;  %vm3745_vm7 = vcmask 60416   ;;  %vm2493_vm15 = vcmask 64512  }
   0x2   :  { %v56_v2 = vld [vmem:[%s14807_s2] sm:$0xff]  ;;  %v8876_v5 = vmul.f32 -1.442695, %v28_v1  ;;  %v57_v7 = vld [vmem:[%s14807_s2 + $0x8] sm:$0xff]  ;;  %v8877_v8 = vmul.f32 -1.442695, %v29_v4 }
   0x3   :  { %v8880_v6 = vmul.f32 -1.442695, %v56_v2  ;;  %v8881_v9 = vmul.f32 -1.442695, %v57_v7  ;;  %v58_v11 = vld [vmem:[%s14807_s2 + $0x10] sm:$0xff]  ;;  %v31_v29 = vld [vmem:[%s14806_s1 + $0x18] sm:$0xff]  ;;  %v126_v31 = vunpack.c.0.s8 %v125_v28 }
   0x4   :  { %9227 = vpow2.f32 %v8876_v5  ;;  %v8878_v12 = vmul.f32 -1.442695, %v30_v10  ;;  %v8882_v13 = vmul.f32 -1.442695, %v58_v11  ;;  %v9516_v30 = vshrl.u32 %v14816_v26, 7  ;;  %v59_v32 = vld [vmem:[%s14807_s2 + $0x18] sm:$0xff] }
   0x5   :  { %9229 = vpow2.f32 %v8880_v6  ;;  %v8879_v34 = vmul.f32 -1.442695, %v31_v29  ;;  %v8883_v36 = vmul.f32 -1.442695, %v59_v32 }
   0x6   :  { %9231 = vpow2.f32 %v8877_v8  ;;  %14960 = vst [vmem:[#allocation7_spill] sm:$0xff] %v9516_v30  ;;  %v9527_v39 = vsub.s32 %v126_v31, %v9516_v30  ;;  %v9535_v45 = vsub.s32 0, %v9516_v30 }
   0x7   :  { %9233 = vpow2.f32 %v8881_v9 }
   0x8   :  { %9235 = vpow2.f32 %v8878_v12  ;;  %14961 = vst [vmem:[#allocation8_spill] sm:$0xff] %v9527_v39  ;;  %14963 = vst [vmem:[#allocation10_spill] sm:$0xff] %v9535_v45 }
   0x9   :  { %9237 = vpow2.f32 %v8882_v13 }
   0xe   :  { %v9228_v14 = vpop.eup %9227 }
   0xf   :  { %v9230_v15 = vpop.eup %9229  ;;  %v44_v16 = vadd.f32 1.0, %v9228_v14 }
  0x10   :  { %v9232_v17 = vpop.eup %9231  ;;  %v72_v18 = vadd.f32 1.0, %v9230_v15 }
  0x11   :  { %v9234_v19 = vpop.eup %9233  ;;  %9239 = vrcp.f32 %v44_v16  ;;  %v45_v20 = vadd.f32 1.0, %v9232_v17 }
  0x12   :  { %v9236_v21 = vpop.eup %9235  ;;  %9241 = vrcp.f32 %v72_v18  ;;  %v73_v22 = vadd.f32 1.0, %v9234_v19 }
  0x13   :  { %v9238_v23 = vpop.eup %9237  ;;  %9243 = vrcp.f32 %v45_v20  ;;  %v46_v24 = vadd.f32 1.0, %v9236_v21 }
  0x14   :  { %9245 = vrcp.f32 %v73_v22  ;;  %v74_v25 = vadd.f32 1.0, %v9238_v23 }
  0x15   :  { %9247 = vrcp.f32 %v46_v24 }
  0x16   :  { %9249 = vrcp.f32 %v74_v25 }
  0x17   :  { %9251 = vpow2.f32 %v8879_v34 }
  0x18   :  { %9253 = vpow2.f32 %v8883_v36 }
  0x1b   :  { %v9521_v33 = vpop.eup %9239 }
  0x1c   :  { %v9242_v35 = vpop.eup %9241 }
  0x1d   :  { %v9523_v37 = vpop.eup %9243  ;;  %v84_v38 = vmul.f32 %v9242_v35, %v9521_v33 }
  0x1e   :  { %v9246_v40 = vpop.eup %9245 }
  0x1f   :  { %v9529_v41 = vpop.eup %9247  ;;  %v9531_v42 = vsub.f32 1.0, %v84_v38  ;;  %v85_v43 = vmul.f32 %v9246_v40, %v9523_v37 }
  0x20   :  { %v9250_v44 = vpop.eup %9249 }
  0x21   :  { %14962 = vst [vmem:[#allocation9_spill] sm:$0xff] %v9531_v42  ;;  %v330_v46 = vrot.slane %v9531_v42, %v9527_v39  ;;  %v9539_v47 = vsub.f32 1.0, %v85_v43  ;;  %v323_v48 = vcombine.high %v9531_v42, %v9531_v42  ;;  %v86_v49 = vmul.f32 %v9250_v44, %v9529_v41  ;;  %v9252_v4 = vpop.eup %9251 }
  0x22   :  { %v9254_v7 = vpop.eup %9253  ;;  %v47_v13 = vadd.f32 1.0, %v9252_v4 }
  0x23   :  { %14964 = vst [vmem:[#allocation11_spill] sm:$0xff] %v9539_v47  ;;  %v9545_v50 = vrot.slane %v330_v46, %v9527_v39  ;;  %v338_v51 = vcombine.high %v330_v46, %v330_v46  ;;  %v9549_v52 = vrot.slane %v9539_v47, %v9527_v39  ;;  %v9552_v53 = vrot.slane %v323_v48, %v9527_v39 }
  0x24   :  { %v9554_v54 = vsub.f32 1.0, %v86_v49  ;;  %v372_v11 = vcombine.high %v9539_v47, %v9539_v47  ;;  %v75_v14 = vadd.f32 1.0, %v9254_v7  ;;  %9255 = vrcp.f32 %v47_v13 }
  0x25   :  { %14965 = vst [vmem:[#allocation12_spill] sm:$0xff] %v9545_v50  ;;  %v9558_v55 = vrot.slane %v9545_v50, %v9535_v45  ;;  %v9562_v56 = vcombine.high %v9545_v50, %v9545_v50  ;;  %v9565_v57 = vrot.slane %v338_v51, %v9527_v39  ;;  %v387_v58 = vcombine.high %v9549_v52, %v9549_v52 }
  0x26   :  { %14966 = vst [vmem:[#allocation13_spill] sm:$0xff] %v9554_v54  ;;  %v339_v59 = vcombine.high %v9552_v53, %v9552_v53  ;;  %v9573_v60 = vrot.slane %v9554_v54, %v9527_v39  ;;  %v9613_v16 = vrot.slane %v372_v11, %v9527_v39  ;;  %9257 = vrcp.f32 %v75_v14 }
  0x27   :  { %2560 = vperm.xlu0 %9212, %v9558_v55   ;;  %v9578_v61 = vrot.slane %v9562_v56, %v9535_v45  ;;  %v9582_v62 = vcombine.high %v9565_v57, %v9565_v57  ;;  %v9585_v63 = vrot.slane %v387_v58, %v9527_v39  ;;  %v421_v19 = vcombine.high %v9554_v54, %v9554_v54 }
  0x28   :  { %14967 = vst [vmem:[#allocation14_spill] sm:$0xff] %v9573_v60  ;;  %v9588_v1 = vrot.slane %v339_v59, %v9527_v39  ;;  %v436_v2 = vcombine.high %v9573_v60, %v9573_v60  ;;  %14968 = vst [vmem:[#allocation15_spill] sm:$0xff] %v9613_v16  ;;  %v388_v18 = vcombine.high %v9613_v16, %v9613_v16 }
  0x29   :  { %692 = vperm.xlu1 %9211, %v9578_v61   ;;  %v570_v5 = vrot.slane %v9582_v62, %v9535_v45  ;;  %v594_v6 = vrot.slane %v9585_v63, %v9535_v45  ;;  %v9617_v17 = vcombine.high %v9585_v63, %v9585_v63  ;;  %v9629_v22 = vrot.slane %v421_v19, %v9527_v39 }
  0x2a   :  { %v9598_v8 = vrot.slane %v436_v2, %v9527_v39  ;;  %v578_v9 = vrot.slane %v9588_v1, %v9535_v45  ;;  %v9604_v10 = vcombine.high %v9588_v1, %v9588_v1  ;;  %v9626_v21 = vrot.slane %v388_v18, %v9527_v39 }
  0x2b   :  { %2572 = vperm.xlu0 %9212, %v570_v5   ;;  %v602_v20 = vrot.slane %v9617_v17, %v9535_v45  ;;  %14969 = vst [vmem:[#allocation16_spill] sm:$0xff] %v9629_v22  ;;  %v437_v29 = vcombine.high %v9629_v22, %v9629_v22  ;;  %v9700_v11 = vmul.f32 %v9565_v57, %v9565_v57 }
  0x2c   :  { %v626_v12 = vrot.slane %v9598_v8, %v9535_v45  ;;  %v586_v15 = vrot.slane %v9604_v10, %v9535_v45  ;;  %v610_v24 = vrot.slane %v9626_v21, %v9535_v45  ;;  %v9637_v25 = vcombine.high %v9626_v21, %v9626_v21 }
  0x2d   :  { %720 = vperm.xlu1 %9211, %v594_v6   ;;  %v9641_v28 = vcombine.high %v9598_v8, %v9598_v8  ;;  %v9651_v35 = vrot.slane %v437_v29, %v9527_v39  ;;  %v9706_v13 = vmul.f32 %v9582_v62, %v9582_v62  ;;  %v9718_v19 = vmul.f32 %v9604_v10, %v9604_v10 }
  0x2e   :  { %v9631_v23 = vpop.eup %9255  ;;  %v618_v31 = vrot.slane %v9637_v25, %v9535_v45  ;;  %v9742_v29 = vmul.f32 %v9637_v25, %v9637_v25 }
  0x2f   :  { %2580 = vperm.xlu0 %9212, %v578_v9   ;;  %v634_v34 = vrot.slane %v9641_v28, %v9535_v45  ;;  %v642_v38 = vrot.slane %v9651_v35, %v9535_v45  ;;  %v9663_v43 = vcombine.high %v9651_v35, %v9651_v35  ;;  %v927_v14 = vrot.slane %v9706_v13, %v9535_v45 }
  0x30   :  { %v9258_v27 = vpop.eup %9257  ;;  %v943_v62 = vrot.slane %v9718_v19, %v9535_v45 }
  0x31   :  { %752 = vperm.xlu1 %9211, %v626_v12   ;;  %v87_v32 = vmul.f32 %v9258_v27, %v9631_v23  ;;  %v650_v48 = vrot.slane %v9663_v43, %v9535_v45  ;;  %v9736_v27 = vmul.f32 %v9626_v21, %v9626_v21 }
  0x33   :  { %2588 = vperm.xlu0 %9212, %v586_v15   ;;  %v9653_v36 = vsub.f32 1.0, %v87_v32  ;;  %v9754_v32 = vmul.f32 %v9641_v28, %v9641_v28 }
  0x35   :  { %696 = vperm.xlu1 %9211, %v570_v5   ;;  %14970 = vst [vmem:[#allocation17_spill] sm:$0xff] %v9653_v36  ;;  %v9659_v40 = vrot.slane %v9653_v36, %v9527_v39  ;;  %v470_v46 = vcombine.high %v9653_v36, %v9653_v36  ;;  %v991_v25 = vrot.slane %v9754_v32, %v9535_v45 }
  0x37   :  { %2596 = vperm.xlu0 %9212, %v594_v6   ;;  %14971 = vst [vmem:[#allocation18_spill] sm:$0xff] %v9659_v40  ;;  %v485_v44 = vcombine.high %v9659_v40, %v9659_v40  ;;  %v9675_v51 = vrot.slane %v470_v46, %v9527_v39 }
  0x39   :  { %704 = vperm.xlu1 %9211, %v578_v9   ;;  %v9672_v49 = vrot.slane %v485_v44, %v9527_v39  ;;  %14972 = vst [vmem:[#allocation19_spill] sm:$0xff] %v9675_v51  ;;  %v486_v2 = vcombine.high %v9675_v51, %v9675_v51 }
  0x3b   :  { %2604 = vperm.xlu0 %9212, %v602_v20   ;;  %v658_v58 = vrot.slane %v9672_v49, %v9535_v45  ;;  %v9681_v59 = vcombine.high %v9672_v49, %v9672_v49  ;;  %v9688_v5 = vrot.slane %v486_v2, %v9527_v39  ;;  %v9772_v44 = vmul.f32 %v9672_v49, %v9672_v49 }
  0x3c   :  { %v9796_v2 = vmul.f32 %v9700_v11, %v9700_v11 }
  0x3d   :  { %728 = vperm.xlu1 %9211, %v602_v20   ;;  %v666_v4 = vrot.slane %v9681_v59, %v9535_v45  ;;  %v674_v6 = vrot.slane %v9688_v5, %v9535_v45  ;;  %v9694_v7 = vcombine.high %v9688_v5, %v9688_v5  ;;  %v9724_v20 = vmul.f32 %v9585_v63, %v9585_v63 }
  0x3e   :  { %v967_v63 = vrot.slane %v9736_v27, %v9535_v45  ;;  %v9778_v46 = vmul.f32 %v9681_v59, %v9681_v59 }
  0x3f   :  { %2612 = vperm.xlu0 %9212, %v610_v24   ;;  %v682_v9 = vrot.slane %v9694_v7, %v9535_v45 }
  0x41   :  { %736 = vperm.xlu1 %9211, %v610_v24   ;;  %v9730_v24 = vmul.f32 %v9617_v17, %v9617_v17  ;;  %v975_v17 = vrot.slane %v9742_v29, %v9535_v45 }
  0x43   :  { %2620 = vperm.xlu0 %9212, %v618_v31   ;;  %v959_v10 = vrot.slane %v9730_v24, %v9535_v45 }
  0x45   :  { %760 = vperm.xlu1 %9211, %v634_v34  }
  0x47   :  { %2628 = vperm.xlu0 %9212, %v626_v12   ;;  %v919_v12 = vrot.slane %v9700_v11, %v9535_v45 }
  0x49   :  { %768 = vperm.xlu1 %9211, %v642_v38  }
  0x4b   :  { %2636 = vperm.xlu0 %9212, %v634_v34   ;;  %v9760_v34 = vmul.f32 %v9651_v35, %v9651_v35  ;;  %v1015_v35 = vrot.slane %v9772_v44, %v9535_v45 }
  0x4d   :  { %712 = vperm.xlu1 %9211, %v586_v15   ;;  %v9712_v15 = vmul.f32 %v9588_v1, %v9588_v1  ;;  %v951_v1 = vrot.slane %v9724_v20, %v9535_v45 }
  0x4f   :  { %2644 = vperm.xlu0 %9212, %v642_v38   ;;  %v935_v18 = vrot.slane %v9712_v15, %v9535_v45  ;;  %v9766_v38 = vmul.f32 %v9663_v43, %v9663_v43  ;;  %v1023_v43 = vrot.slane %v9778_v46, %v9535_v45 }
  0x51   :  { %744 = vperm.xlu1 %9211, %v618_v31   ;;  %v9748_v31 = vmul.f32 %v9598_v8, %v9598_v8  ;;  %v999_v8 = vrot.slane %v9760_v34, %v9535_v45  ;;  %v1007_v28 = vrot.slane %v9766_v38, %v9535_v45 }
  0x53   :  { %2652 = vperm.xlu0 %9212, %v650_v48   ;;  %v983_v21 = vrot.slane %v9748_v31, %v9535_v45 }
  0x55   :  { %776 = vperm.xlu1 %9211, %v650_v48   ;;  %v9784_v48 = vmul.f32 %v9688_v5, %v9688_v5  ;;  %v9802_v5 = vmul.f32 %v9706_v13, %v9706_v13 }
  0x57   :  { %2660 = vperm.xlu0 %9212, %v658_v58   ;;  %v1031_v49 = vrot.slane %v9784_v48, %v9535_v45 }
  0x59   :  { %784 = vperm.xlu1 %9211, %v658_v58   ;;  %v9790_v58 = vmul.f32 %v9694_v7, %v9694_v7  ;;  %v1316_v7 = vrot.slane %v9802_v5, %v9535_v45 }
  0x5b   :  { %2668 = vperm.xlu0 %9212, %v666_v4   ;;  %v1039_v59 = vrot.slane %v9790_v58, %v9535_v45 }
  0x5d   :  { %792 = vperm.xlu1 %9211, %v666_v4   ;;  %v1308_v4 = vrot.slane %v9796_v2, %v9535_v45 }
  0x5f   :  { %2676 = vperm.xlu0 %9212, %v674_v6  }
  0x61   :  { %800 = vperm.xlu1 %9211, %v674_v6  }
  0x63   :  { %2684 = vperm.xlu0 %9212, %v682_v9  }
  0x65   :  { %808 = vperm.xlu1 %9211, %v682_v9   ;;  %v9810_v9 = vmul.f32 %v9712_v15, %v9712_v15 }
  0x67   :  { %2724 = vperm.xlu0 %9212, %v919_v12   ;;  %v1324_v13 = vrot.slane %v9810_v9, %v9535_v45 }
  0x69   :  { %1045 = vperm.xlu1 %9211, %v919_v12  }
  0x6b   :  { %2732 = vperm.xlu0 %9212, %v927_v14  }
  0x6d   :  { %1053 = vperm.xlu1 %9211, %v927_v14   ;;  %v9820_v14 = vmul.f32 %v9718_v19, %v9718_v19 }
  0x6f   :  { %2740 = vperm.xlu0 %9212, %v935_v18   ;;  %v1332_v15 = vrot.slane %v9820_v14, %v9535_v45 }
  0x71   :  { %1061 = vperm.xlu1 %9211, %v935_v18  }
  0x73   :  { %2748 = vperm.xlu0 %9212, %v943_v62  }
  0x75   :  { %1069 = vperm.xlu1 %9211, %v943_v62  }
  0x77   :  { %2756 = vperm.xlu0 %9212, %v951_v1  }
  0x79   :  { %1077 = vperm.xlu1 %9211, %v951_v1   ;;  %v9830_v1 = vmul.f32 %v9724_v20, %v9724_v20 }
  0x7b   :  { %2764 = vperm.xlu0 %9212, %v959_v10   ;;  %v1340_v19 = vrot.slane %v9830_v1, %v9535_v45 }
  0x7d   :  { %1085 = vperm.xlu1 %9211, %v959_v10  }
  0x7f   :  { %2772 = vperm.xlu0 %9212, %v967_v63  }
  0x81   :  { %1093 = vperm.xlu1 %9211, %v967_v63  }
  0x83   :  { %2780 = vperm.xlu0 %9212, %v975_v17  }
  0x85   :  { %1101 = vperm.xlu1 %9211, %v975_v17   ;;  %v9840_v17 = vmul.f32 %v9730_v24, %v9730_v24 }
  0x87   :  { %2788 = vperm.xlu0 %9212, %v983_v21   ;;  %v1348_v20 = vrot.slane %v9840_v17, %v9535_v45 }
  0x89   :  { %1109 = vperm.xlu1 %9211, %v983_v21  }
  0x8b   :  { %2796 = vperm.xlu0 %9212, %v991_v25  }
  0x8d   :  { %1117 = vperm.xlu1 %9211, %v991_v25  }
  0x8f   :  { %2804 = vperm.xlu0 %9212, %v999_v8  }
  0x91   :  { %1125 = vperm.xlu1 %9211, %v999_v8   ;;  %v9850_v8 = vmul.f32 %v9736_v27, %v9736_v27 }
  0x93   :  { %2812 = vperm.xlu0 %9212, %v1007_v28   ;;  %v1356_v24 = vrot.slane %v9850_v8, %v9535_v45 }
  0x95   :  { %1133 = vperm.xlu1 %9211, %v1007_v28  }
  0x97   :  { %2820 = vperm.xlu0 %9212, %v1015_v35  }
  0x99   :  { %1141 = vperm.xlu1 %9211, %v1015_v35  }
  0x9b   :  { %2828 = vperm.xlu0 %9212, %v1023_v43  }
  0x9d   :  { %1149 = vperm.xlu1 %9211, %v1023_v43   ;;  %v9860_v43 = vmul.f32 %v9742_v29, %v9742_v29 }
  0x9f   :  { %2836 = vperm.xlu0 %9212, %v1031_v49   ;;  %v1364_v27 = vrot.slane %v9860_v43, %v9535_v45 }
  0xa1   :  { %1157 = vperm.xlu1 %9211, %v1031_v49  }
  0xa3   :  { %2844 = vperm.xlu0 %9212, %v1039_v59  }
  0xa5   :  { %1165 = vperm.xlu1 %9211, %v1039_v59  }
  0xa6   :  { %v9804_v6 = vpop.permute.xlu0 %2560 }
  0xa7   :  { %14973 = vst [vmem:[#allocation20_spill] sm:$0xff] %v9804_v6  ;;  %2916 = vperm.xlu0 %9212, %v1308_v4  }
  0xa8   :  { %v9812_v11 = vpop.permute.xlu1 %692 }
  0xa9   :  { %14974 = vst [vmem:[#allocation21_spill] sm:$0xff] %v9812_v11  ;;  %1434 = vperm.xlu1 %9211, %v1308_v4   ;;  %v9870_v4 = vmul.f32 %v9748_v31, %v9748_v31 }
  0xaa   :  { %v9814_v12 = vpop.permute.xlu0 %2572 }
  0xab   :  { %2924 = vperm.xlu0 %9212, %v1316_v7   ;;  %v1372_v29 = vrot.slane %v9870_v4, %v9535_v45 }
  0xac   :  { %v9822_v18 = vpop.permute.xlu1 %720 }
  0xad   :  { %1442 = vperm.xlu1 %9211, %v1316_v7  }
  0xae   :  { %v9824_v62 = vpop.permute.xlu0 %2580 }
  0xaf   :  { %2932 = vperm.xlu0 %9212, %v1324_v13  }
  0xb0   :  { %v9832_v10 = vpop.permute.xlu1 %752 }
  0xb1   :  { %1450 = vperm.xlu1 %9211, %v1324_v13  }
  0xb2   :  { %v9834_v63 = vpop.permute.xlu0 %2588 }
  0xb3   :  { %2940 = vperm.xlu0 %9212, %v1332_v15  }
  0xb4   :  { %v9842_v21 = vpop.permute.xlu1 %696 }
  0xb5   :  { %1458 = vperm.xlu1 %9211, %v1332_v15   ;;  %v9880_v15 = vmul.f32 %v9754_v32, %v9754_v32 }
  0xb6   :  { %v9844_v25 = vpop.permute.xlu0 %2596 }
  0xb7   :  { %2948 = vperm.xlu0 %9212, %v1340_v19   ;;  %v1380_v31 = vrot.slane %v9880_v15, %v9535_v45 }
  0xb8   :  { %v9852_v28 = vpop.permute.xlu1 %704 }
  0xb9   :  { %1466 = vperm.xlu1 %9211, %v1340_v19  }
  0xba   :  { %v9854_v35 = vpop.permute.xlu0 %2604 }
  0xbb   :  { %2956 = vperm.xlu0 %9212, %v1348_v20  }
  0xbc   :  { %v9862_v49 = vpop.permute.xlu1 %728 }
  0xbd   :  { %1474 = vperm.xlu1 %9211, %v1348_v20  }
  0xbe   :  { %v9864_v59 = vpop.permute.xlu0 %2612 }
  0xbf   :  { %2964 = vperm.xlu0 %9212, %v1356_v24  }
  0xc0   :  { %v9872_v7 = vpop.permute.xlu1 %736 }
  0xc1   :  { %1482 = vperm.xlu1 %9211, %v1356_v24   ;;  %v9890_v24 = vmul.f32 %v9760_v34, %v9760_v34 }
  0xc2   :  { %v9874_v13 = vpop.permute.xlu0 %2620 }
  0xc3   :  { %2972 = vperm.xlu0 %9212, %v1364_v27   ;;  %v1388_v32 = vrot.slane %v9890_v24, %v9535_v45 }
  0xc4   :  { %v9882_v19 = vpop.permute.xlu1 %760 }
  0xc5   :  { %1490 = vperm.xlu1 %9211, %v1364_v27   ;;  %v9900_v27 = vmul.f32 %v9766_v38, %v9766_v38 }
  0xc6   :  { %v9884_v20 = vpop.permute.xlu0 %2628 }
  0xc7   :  { %2980 = vperm.xlu0 %9212, %v1372_v29   ;;  %v1396_v34 = vrot.slane %v9900_v27, %v9535_v45 }
  0xc8   :  { %v9892_v0 = vpop.permute.xlu1 %768 }
  0xc9   :  { %1498 = vperm.xlu1 %9211, %v1372_v29   ;;  %v9910_v29 = vmul.f32 %v9772_v44, %v9772_v44 }
  0xca   :  { %v9894_v3 = vpop.permute.xlu0 %2636 }
  0xcb   :  { %2988 = vperm.xlu0 %9212, %v1380_v31   ;;  %v1404_v38 = vrot.slane %v9910_v29, %v9535_v45 }
  0xcc   :  { %v9902_v26 = vpop.permute.xlu1 %712 }
  0xcd   :  { %1506 = vperm.xlu1 %9211, %v1380_v31   ;;  %v9920_v31 = vmul.f32 %v9778_v46, %v9778_v46 }
  0xce   :  { %v9904_v11 = vpop.permute.xlu0 %2644 }
  0xcf   :  { %2996 = vperm.xlu0 %9212, %v1388_v32   ;;  %v1412_v44 = vrot.slane %v9920_v31, %v9535_v45 }
  0xd0   :  { %v9912_v6 = vpop.permute.xlu1 %744 }
  0xd1   :  { %1514 = vperm.xlu1 %9211, %v1388_v32   ;;  %v9930_v32 = vmul.f32 %v9784_v48, %v9784_v48 }
  0xd2   :  { %v9914_v54 = vpop.permute.xlu0 %2652 }
  0xd3   :  { %3004 = vperm.xlu0 %9212, %v1396_v34   ;;  %v1420_v46 = vrot.slane %v9930_v32, %v9535_v45 }
  0xd4   :  { %v9922_v42 = vpop.permute.xlu1 %776 }
  0xd5   :  { %1522 = vperm.xlu1 %9211, %v1396_v34   ;;  %v9940_v34 = vmul.f32 %v9790_v58, %v9790_v58  ;;  %v1624_v58 = vmul.f32 %v9802_v5, %v9802_v5  ;;  %v1628_v5 = vmul.f32 %v9820_v14, %v9820_v14  ;;  %v1632_v14 = vmul.f32 %v9840_v17, %v9840_v17 }
  0xd6   :  { %v9924_v50 = vpop.permute.xlu0 %2660  ;;  %v1636_v17 = vmul.f32 %v9860_v43, %v9860_v43  ;;  %v1640_v43 = vmul.f32 %v9880_v15, %v9880_v15  ;;  %v92_v15 = vld [vmem:[%s14808_s3] sm:$0xff] }
  0xd7   :  { %3012 = vperm.xlu0 %9212, %v1404_v38   ;;  %v1428_v48 = vrot.slane %v9940_v34, %v9535_v45 }
  0xd8   :  { %v9932_v51 = vpop.permute.xlu1 %784 }
  0xd9   :  { %14975 = vst [vmem:[#allocation22_spill] sm:$0xff] %v9932_v51  ;;  %1530 = vperm.xlu1 %9211, %v1404_v38   ;;  %v1622_v38 = vmul.f32 %v9796_v2, %v9796_v2  ;;  %v1626_v51 = vmul.f32 %v9810_v9, %v9810_v9  ;;  %v1705_v2 = vrot.slane %v1624_v58, %v9535_v45 }
  0xda   :  { %v9934_v40 = vpop.permute.xlu0 %2668  ;;  %v1630_v9 = vmul.f32 %v9830_v1, %v9830_v1  ;;  %v1721_v58 = vrot.slane %v1628_v5, %v9535_v45  ;;  %v1634_v1 = vmul.f32 %v9850_v8, %v9850_v8  ;;  %v1737_v5 = vrot.slane %v1632_v14, %v9535_v45 }
  0xdb   :  { %14976 = vst [vmem:[#allocation23_spill] sm:$0xff] %v9934_v40  ;;  %3020 = vperm.xlu0 %9212, %v1412_v44   ;;  %v1638_v8 = vmul.f32 %v9870_v4, %v9870_v4  ;;  %v1753_v14 = vrot.slane %v1636_v17, %v9535_v45  ;;  %v1642_v4 = vmul.f32 %v9890_v24, %v9890_v24 }
  0xdc   :  { %v9942_v22 = vpop.permute.xlu1 %792  ;;  %v1769_v17 = vrot.slane %v1640_v43, %v9535_v45  ;;  %v96_v24 = vmul.f32 %v9521_v33, %v92_v15  ;;  %v100_v43 = vld [vmem:[%s14809_s4] sm:$0xff] }
  0xdd   :  { %14977 = vst [vmem:[#allocation24_spill] sm:$0xff] %v9942_v22  ;;  %1538 = vperm.xlu1 %9211, %v1412_v44   ;;  %v1697_v44 = vrot.slane %v1622_v38, %v9535_v45  ;;  %v1713_v38 = vrot.slane %v1626_v51, %v9535_v45  ;;  %v1729_v51 = vrot.slane %v1630_v9, %v9535_v45 }
  0xde   :  { %v9944_v60 = vpop.permute.xlu0 %2676  ;;  %v1745_v9 = vrot.slane %v1634_v1, %v9535_v45  ;;  %v1761_v1 = vrot.slane %v1638_v8, %v9535_v45  ;;  %v1644_v8 = vmul.f32 %v9900_v27, %v9900_v27 }
  0xdf   :  { %14978 = vst [vmem:[#allocation25_spill] sm:$0xff] %v9944_v60  ;;  %3028 = vperm.xlu0 %9212, %v1420_v46  }
  0xe0   :  { %v9950_v16 = vpop.permute.xlu1 %800  ;;  %v1785_v27 = vrot.slane %v1644_v8, %v9535_v45  ;;  %v1650_v8 = vmul.f32 %v9930_v32, %v9930_v32 }
  0xe1   :  { %14979 = vst [vmem:[#allocation26_spill] sm:$0xff] %v9950_v16  ;;  %1546 = vperm.xlu1 %9211, %v1420_v46  }
  0xe2   :  { %v9952_v40 = vpop.permute.xlu0 %2684  ;;  %v1809_v32 = vrot.slane %v1650_v8, %v9535_v45 }
  0xe3   :  { %14980 = vst [vmem:[#allocation27_spill] sm:$0xff] %v9952_v40  ;;  %3036 = vperm.xlu0 %9212, %v1428_v48  }
  0xe4   :  { %v9957_v22 = vpop.permute.xlu1 %808 }
  0xe5   :  { %14981 = vst [vmem:[#allocation28_spill] sm:$0xff] %v9957_v22  ;;  %1554 = vperm.xlu1 %9211, %v1428_v48  }
  0xe6   :  { %v9959_v60 = vpop.permute.xlu0 %2724 }
  0xe7   :  { %14982 = vst [vmem:[#allocation29_spill] sm:$0xff] %v9959_v60  ;;  %3108 = vperm.xlu0 %9212, %v1697_v44  }
  0xe8   :  { %v9964_v46 = vpop.permute.xlu1 %1045 }
  0xe9   :  { %14983 = vst [vmem:[#allocation30_spill] sm:$0xff] %v9964_v46  ;;  %1823 = vperm.xlu1 %9211, %v1697_v44  }
  0xea   :  { %v9966_v40 = vpop.permute.xlu0 %2732 }
  0xeb   :  { %3116 = vperm.xlu0 %9212, %v1705_v2  }
  0xec   :  { %v9971_v48 = vpop.permute.xlu1 %1053 }
  0xed   :  { %1831 = vperm.xlu1 %9211, %v1705_v2  }
  0xee   :  { %v9973_v60 = vpop.permute.xlu0 %2740 }
  0xef   :  { %3124 = vperm.xlu0 %9212, %v1713_v38  }
  0xf0   :  { %v9978_v44 = vpop.permute.xlu1 %1061 }
  0xf1   :  { %1839 = vperm.xlu1 %9211, %v1713_v38  }
  0xf2   :  { %v9980_v46 = vpop.permute.xlu0 %2748 }
  0xf3   :  { %14984 = vst [vmem:[#allocation31_spill] sm:$0xff] %v9980_v46  ;;  %3132 = vperm.xlu0 %9212, %v1721_v58  }
  0xf4   :  { %v9985_v2 = vpop.permute.xlu1 %1069 }
  0xf5   :  { %1847 = vperm.xlu1 %9211, %v1721_v58  }
  0xf6   :  { %v9987_v22 = vpop.permute.xlu0 %2756 }
  0xf7   :  { %14985 = vst [vmem:[#allocation32_spill] sm:$0xff] %v9987_v22  ;;  %3140 = vperm.xlu0 %9212, %v1729_v51  }
  0xf8   :  { %v9992_v38 = vpop.permute.xlu1 %1077 }
  0xf9   :  { %1855 = vperm.xlu1 %9211, %v1729_v51  }
  0xfa   :  { %v9994_v46 = vpop.permute.xlu0 %2764 }
  0xfb   :  { %14986 = vst [vmem:[#allocation33_spill] sm:$0xff] %v9994_v46  ;;  %3148 = vperm.xlu0 %9212, %v1737_v5  }
  0xfc   :  { %v9999_v58 = vpop.permute.xlu1 %1085 }
  0xfd   :  { %1863 = vperm.xlu1 %9211, %v1737_v5  }
  0xfe   :  { %v10001_v22 = vpop.permute.xlu0 %2772 }
  0xff   :  { %14987 = vst [vmem:[#allocation34_spill] sm:$0xff] %v10001_v22  ;;  %3156 = vperm.xlu0 %9212, %v1745_v9  }
 0x100   :  { %v10006_v51 = vpop.permute.xlu1 %1093 }
 0x101   :  { %1871 = vperm.xlu1 %9211, %v1745_v9  }
 0x102   :  { %v10008_v46 = vpop.permute.xlu0 %2780 }
 0x103   :  { %14988 = vst [vmem:[#allocation35_spill] sm:$0xff] %v10008_v46  ;;  %3164 = vperm.xlu0 %9212, %v1753_v14  }
 0x104   :  { %v10013_v5 = vpop.permute.xlu1 %1101 }
 0x105   :  { %14989 = vst [vmem:[#allocation36_spill] sm:$0xff] %v10013_v5  ;;  %1879 = vperm.xlu1 %9211, %v1753_v14   ;;  %v1777_v14 = vrot.slane %v1642_v4, %v9535_v45  ;;  %v1648_v4 = vmul.f32 %v9920_v31, %v9920_v31 }
 0x106   :  { %v10015_v22 = vpop.permute.xlu0 %2788 }
 0x107   :  { %14990 = vst [vmem:[#allocation37_spill] sm:$0xff] %v10015_v22  ;;  %3172 = vperm.xlu0 %9212, %v1761_v1  }
 0x108   :  { %v10020_v9 = vpop.permute.xlu1 %1109 }
 0x109   :  { %14991 = vst [vmem:[#allocation38_spill] sm:$0xff] %v10020_v9  ;;  %1887 = vperm.xlu1 %9211, %v1761_v1   ;;  %v1646_v1 = vmul.f32 %v9910_v29, %v9910_v29 }
 0x10a   :  { %v10025_v46 = vpop.permute.xlu0 %2796 }
 0x10b   :  { %14992 = vst [vmem:[#allocation39_spill] sm:$0xff] %v10025_v46  ;;  %3180 = vperm.xlu0 %9212, %v1769_v17   ;;  %v104_v46 = vmul.f32 %v100_v43, %v96_v24  ;;  %v1652_v43 = vmul.f32 %v9940_v34, %v9940_v34 }
 0x10c   :  { %v10031_v22 = vpop.permute.xlu1 %1117 }
 0x10d   :  { %1895 = vperm.xlu1 %9211, %v1769_v17   ;;  %v1793_v17 = vrot.slane %v1646_v1, %v9535_v45  ;;  %v10048_v15 = vmul.f32 0.70710677, %v104_v46  ;;  %v93_v46 = vld [vmem:[%s14808_s3 + $0x8] sm:$0xff]  ;;  %v1817_v8 = vrot.slane %v1652_v43, %v9535_v45 }
 0x10e   :  { %v10036_v9 = vpop.permute.xlu0 %2804 }
 0x10f   :  { %14993 = vst [vmem:[#allocation40_spill] sm:$0xff] %v10036_v9  ;;  %3188 = vperm.xlu0 %9212, %v1777_v14   ;;  %14994 = vst [vmem:[#allocation41_spill] sm:$0xff] %v10048_v15  ;;  %v10059_v24 = vrot.slane %v10048_v15, %v9527_v39 }
 0x110   :  { %v10041_v5 = vpop.permute.xlu1 %1125 }
 0x111   :  { %1903 = vperm.xlu1 %9211, %v1777_v14   ;;  %v1801_v14 = vrot.slane %v1648_v4, %v9535_v45  ;;  %14997 = vst [vmem:[#allocation44_spill] sm:$0xff] %v10059_v24  ;;  %v123_v4 = vcombine.high %v10048_v15, %v10048_v15 }
 0x112   :  { %v10043_v33 = vpop.permute.xlu0 %2812 }
 0x113   :  { %3196 = vperm.xlu0 %9212, %v1785_v27  }
 0x114   :  { %v10050_v9 = vpop.permute.xlu1 %1133 }
 0x115   :  { %14995 = vst [vmem:[#allocation42_spill] sm:$0xff] %v10050_v9  ;;  %1911 = vperm.xlu1 %9211, %v1785_v27   ;;  %v138_v27 = vcombine.high %v10059_v24, %v10059_v24  ;;  %v10086_v24 = vrot.slane %v123_v4, %v9527_v39 }
 0x116   :  { %v10052_v29 = vpop.permute.xlu0 %2820 }
 0x117   :  { %14996 = vst [vmem:[#allocation43_spill] sm:$0xff] %v10052_v29  ;;  %3204 = vperm.xlu0 %9212, %v1793_v17   ;;  %15002 = vst [vmem:[#allocation49_spill] sm:$0xff] %v10086_v24 }
 0x118   :  { %v10061_v31 = vpop.permute.xlu1 %1141 }
 0x119   :  { %14998 = vst [vmem:[#allocation45_spill] sm:$0xff] %v10061_v31  ;;  %1919 = vperm.xlu1 %9211, %v1793_v17   ;;  %v97_v31 = vmul.f32 %v9523_v37, %v93_v46  ;;  %v101_v17 = vld [vmem:[%s14809_s4 + $0x8] sm:$0xff] }
 0x11a   :  { %v10068_v1 = vpop.permute.xlu0 %2828 }
 0x11b   :  { %14999 = vst [vmem:[#allocation46_spill] sm:$0xff] %v10068_v1  ;;  %3212 = vperm.xlu0 %9212, %v1801_v14   ;;  %v160_v1 = vrot.slane %v138_v27, %v9527_v39  ;;  %v105_v15 = vmul.f32 %v101_v17, %v97_v31 }
 0x11c   :  { %v10076_v29 = vpop.permute.xlu1 %1149 }
 0x11d   :  { %15000 = vst [vmem:[#allocation47_spill] sm:$0xff] %v10076_v29  ;;  %1927 = vperm.xlu1 %9211, %v1801_v14   ;;  %v2017_v46 = vrot.slane %v160_v1, %v9535_v45  ;;  %v170_v14 = vcombine.high %v160_v1, %v160_v1  ;;  %v10095_v29 = vmul.f32 0.70710677, %v105_v15  ;;  %v94_v15 = vld [vmem:[%s14808_s3 + $0x10] sm:$0xff] }
 0x11e   :  { %v10081_v34 = vpop.permute.xlu0 %2836 }
 0x11f   :  { %15001 = vst [vmem:[#allocation48_spill] sm:$0xff] %v10081_v34  ;;  %3220 = vperm.xlu0 %9212, %v1809_v32   ;;  %v139_v34 = vcombine.high %v10086_v24, %v10086_v24  ;;  %v2025_v31 = vrot.slane %v170_v14, %v9535_v45  ;;  %v10105_v4 = vrot.slane %v10095_v29, %v9527_v39 }
 0x120   :  { %v10088_v9 = vpop.permute.xlu1 %1157 }
 0x121   :  { %15003 = vst [vmem:[#allocation50_spill] sm:$0xff] %v10088_v9  ;;  %1935 = vperm.xlu1 %9211, %v1809_v32   ;;  %v167_v32 = vrot.slane %v139_v34, %v9527_v39  ;;  %15007 = vst [vmem:[#allocation54_spill] sm:$0xff] %v10105_v4  ;;  %v187_v24 = vcombine.high %v10105_v4, %v10105_v4 }
 0x122   :  { %v10090_v37 = vpop.permute.xlu0 %2844 }
 0x123   :  { %15004 = vst [vmem:[#allocation51_spill] sm:$0xff] %v10090_v37  ;;  %3228 = vperm.xlu0 %9212, %v1817_v8   ;;  %v2033_v14 = vrot.slane %v167_v32, %v9535_v45  ;;  %v171_v34 = vcombine.high %v167_v32, %v167_v32  ;;  %v209_v9 = vrot.slane %v187_v24, %v9527_v39 }
 0x124   :  { %v10097_v43 = vpop.permute.xlu1 %1165 }
 0x125   :  { %15005 = vst [vmem:[#allocation52_spill] sm:$0xff] %v10097_v43  ;;  %1943 = vperm.xlu1 %9211, %v1817_v8   ;;  %v172_v8 = vcombine.high %v10095_v29, %v10095_v29  ;;  %v2041_v32 = vrot.slane %v171_v34, %v9535_v45 }
 0x126   :  { %v10099_v27 = vpop.permute.xlu0 %2916 }
 0x127   :  { %15006 = vst [vmem:[#allocation53_spill] sm:$0xff] %v10099_v27  ;;  %3300 = vperm.xlu0 %9212, %v2017_v46   ;;  %v98_v27 = vmul.f32 %v9529_v41, %v94_v15  ;;  %v10128_v37 = vrot.slane %v172_v8, %v9527_v39 }
 0x128   :  { %v10107_v1 = vpop.permute.xlu1 %1434 }
 0x129   :  { %15008 = vst [vmem:[#allocation55_spill] sm:$0xff] %v10107_v1  ;;  %2143 = vperm.xlu1 %9211, %v2017_v46   ;;  %v102_v46 = vld [vmem:[%s14809_s4 + $0x10] sm:$0xff]  ;;  %15012 = vst [vmem:[#allocation59_spill] sm:$0xff] %v10128_v37  ;;  %v188_v15 = vcombine.high %v10128_v37, %v10128_v37 }
 0x12a   :  { %v10112_v17 = vpop.permute.xlu0 %2924  ;;  %v106_v4 = vmul.f32 %v102_v46, %v98_v27 }
 0x12b   :  { %15009 = vst [vmem:[#allocation56_spill] sm:$0xff] %v10112_v17  ;;  %3308 = vperm.xlu0 %9212, %v2025_v31   ;;  %v216_v24 = vrot.slane %v188_v15, %v9527_v39 }
 0x12c   :  { %v10120_v1 = vpop.permute.xlu1 %1442  ;;  %v10139_v8 = vmul.f32 0.70710677, %v106_v4 }
 0x12d   :  { %15010 = vst [vmem:[#allocation57_spill] sm:$0xff] %v10120_v1  ;;  %2151 = vperm.xlu1 %9211, %v2025_v31   ;;  %v2049_v31 = vrot.slane %v209_v9, %v9535_v45  ;;  %v220_v15 = vcombine.high %v216_v24, %v216_v24 }
 0x12e   :  { %v10125_v43 = vpop.permute.xlu0 %2932  ;;  %15014 = vst [vmem:[#allocation61_spill] sm:$0xff] %v10139_v8  ;;  %v221_v37 = vcombine.high %v10139_v8, %v10139_v8 }
 0x12f   :  { %15011 = vst [vmem:[#allocation58_spill] sm:$0xff] %v10125_v43  ;;  %3316 = vperm.xlu0 %9212, %v2033_v14   ;;  %v219_v43 = vcombine.high %v209_v9, %v209_v9  ;;  %v95_v9 = vld [vmem:[%s14808_s3 + $0x18] sm:$0xff] }
 0x130   :  { %v10132_v17 = vpop.permute.xlu1 %1450 }
 0x131   :  { %2159 = vperm.xlu1 %9211, %v2033_v14   ;;  %v2057_v27 = vrot.slane %v219_v43, %v9535_v45  ;;  %v10149_v14 = vrot.slane %v10139_v8, %v9527_v39 }
 0x132   :  { %v10134_v41 = vpop.permute.xlu0 %2940 }
 0x133   :  { %15013 = vst [vmem:[#allocation60_spill] sm:$0xff] %v10134_v41  ;;  %3324 = vperm.xlu0 %9212, %v2041_v32   ;;  %15017 = vst [vmem:[#allocation64_spill] sm:$0xff] %v10149_v14  ;;  %v236_v43 = vcombine.high %v10149_v14, %v10149_v14  ;;  %v10174_v14 = vrot.slane %v221_v37, %v9527_v39 }
 0x134   :  { %v10141_v1 = vpop.permute.xlu1 %1458 }
 0x135   :  { %15015 = vst [vmem:[#allocation62_spill] sm:$0xff] %v10141_v1  ;;  %2167 = vperm.xlu1 %9211, %v2041_v32   ;;  %v2065_v32 = vrot.slane %v216_v24, %v9535_v45  ;;  %v2073_v24 = vrot.slane %v220_v15, %v9535_v45  ;;  %v258_v1 = vrot.slane %v236_v43, %v9527_v39  ;;  %15022 = vst [vmem:[#allocation69_spill] sm:$0xff] %v10174_v14 }
 0x136   :  { %v10143_v34 = vpop.permute.xlu0 %2948 }
 0x137   :  { %15016 = vst [vmem:[#allocation63_spill] sm:$0xff] %v10143_v34  ;;  %3332 = vperm.xlu0 %9212, %v2049_v31   ;;  %v99_v34 = vmul.f32 %v9631_v23, %v95_v9  ;;  %v2081_v9 = vrot.slane %v258_v1, %v9535_v45 }
 0x138   :  { %v10151_v46 = vpop.permute.xlu1 %1466 }
 0x139   :  { %15018 = vst [vmem:[#allocation65_spill] sm:$0xff] %v10151_v46  ;;  %2175 = vperm.xlu1 %9211, %v2049_v31   ;;  %v103_v31 = vld [vmem:[%s14809_s4 + $0x18] sm:$0xff] }
 0x13a   :  { %v10156_v4 = vpop.permute.xlu0 %2956  ;;  %v107_v8 = vmul.f32 %v103_v31, %v99_v34 }
 0x13b   :  { %15019 = vst [vmem:[#allocation66_spill] sm:$0xff] %v10156_v4  ;;  %3340 = vperm.xlu0 %9212, %v2057_v27  }
 0x13c   :  { %v10164_v46 = vpop.permute.xlu1 %1474 }
 0x13d   :  { %15020 = vst [vmem:[#allocation67_spill] sm:$0xff] %v10164_v46  ;;  %2183 = vperm.xlu1 %9211, %v2057_v27   ;;  %v268_v27 = vcombine.high %v258_v1, %v258_v1  ;;  %v10183_v46 = vmul.f32 0.70710677, %v107_v8 }
 0x13e   :  { %v10169_v4 = vpop.permute.xlu0 %2964 }
 0x13f   :  { %15021 = vst [vmem:[#allocation68_spill] sm:$0xff] %v10169_v4  ;;  %3348 = vperm.xlu0 %9212, %v2065_v32   ;;  %v237_v4 = vcombine.high %v10174_v14, %v10174_v14  ;;  %v2089_v34 = vrot.slane %v268_v27, %v9535_v45  ;;  %v10193_v43 = vrot.slane %v10183_v46, %v9527_v39 }
 0x140   :  { %v10176_v41 = vpop.permute.xlu1 %1482  ;;  %v270_v27 = vcombine.high %v10183_v46, %v10183_v46 }
 0x141   :  { %15023 = vst [vmem:[#allocation70_spill] sm:$0xff] %v10176_v41  ;;  %2191 = vperm.xlu1 %9211, %v2065_v32   ;;  %v265_v32 = vrot.slane %v237_v4, %v9527_v39  ;;  %15027 = vst [vmem:[#allocation74_spill] sm:$0xff] %v10193_v43  ;;  %v285_v14 = vcombine.high %v10193_v43, %v10193_v43 }
 0x142   :  { %v10178_v23 = vpop.permute.xlu0 %2972 }
 0x143   :  { %15024 = vst [vmem:[#allocation71_spill] sm:$0xff] %v10178_v23  ;;  %3356 = vperm.xlu0 %9212, %v2073_v24   ;;  %v2097_v8 = vrot.slane %v265_v32, %v9535_v45 }
 0x144   :  { %v10185_v15 = vpop.permute.xlu1 %1490 }
 0x145   :  { %15025 = vst [vmem:[#allocation72_spill] sm:$0xff] %v10185_v15  ;;  %2199 = vperm.xlu1 %9211, %v2073_v24   ;;  %v269_v24 = vcombine.high %v265_v32, %v265_v32 }
 0x146   :  { %v10187_v37 = vpop.permute.xlu0 %2980 }
 0x147   :  { %15026 = vst [vmem:[#allocation73_spill] sm:$0xff] %v10187_v37  ;;  %3364 = vperm.xlu0 %9212, %v2081_v9  }
 0x148   :  { %v10195_v1 = vpop.permute.xlu1 %1498 }
 0x149   :  { %15028 = vst [vmem:[#allocation75_spill] sm:$0xff] %v10195_v1  ;;  %2207 = vperm.xlu1 %9211, %v2081_v9   ;;  %v2105_v9 = vrot.slane %v269_v24, %v9535_v45  ;;  %v10211_v1 = vrot.slane %v270_v27, %v9527_v39 }
 0x14a   :  { %v10197_v31 = vpop.permute.xlu0 %2988 }
 0x14b   :  { %15029 = vst [vmem:[#allocation76_spill] sm:$0xff] %v10197_v31  ;;  %3372 = vperm.xlu0 %9212, %v2089_v34   ;;  %v307_v31 = vrot.slane %v285_v14, %v9527_v39  ;;  %15032 = vst [vmem:[#allocation79_spill] sm:$0xff] %v10211_v1 }
 0x14c   :  { %v10204_v4 = vpop.permute.xlu1 %1506 }
 0x14d   :  { %15030 = vst [vmem:[#allocation77_spill] sm:$0xff] %v10204_v4  ;;  %2215 = vperm.xlu1 %9211, %v2089_v34   ;;  %v2113_v15 = vrot.slane %v307_v31, %v9535_v45  ;;  %v317_v4 = vcombine.high %v307_v31, %v307_v31  ;;  %v286_v34 = vcombine.high %v10211_v1, %v10211_v1 }
 0x14e   :  { %v10206_v37 = vpop.permute.xlu0 %2996 }
 0x14f   :  { %15031 = vst [vmem:[#allocation78_spill] sm:$0xff] %v10206_v37  ;;  %3380 = vperm.xlu0 %9212, %v2097_v8   ;;  %v2121_v14 = vrot.slane %v317_v4, %v9535_v45  ;;  %v314_v27 = vrot.slane %v286_v34, %v9527_v39 }
 0x150   :  { %v10213_v32 = vpop.permute.xlu1 %1514 }
 0x151   :  { %15033 = vst [vmem:[#allocation80_spill] sm:$0xff] %v10213_v32  ;;  %2223 = vperm.xlu1 %9211, %v2097_v8   ;;  %v2129_v31 = vrot.slane %v314_v27, %v9535_v45  ;;  %v318_v32 = vcombine.high %v314_v27, %v314_v27 }
 0x152   :  { %v10215_v43 = vpop.permute.xlu0 %3004 }
 0x153   :  { %15034 = vst [vmem:[#allocation81_spill] sm:$0xff] %v10215_v43  ;;  %3388 = vperm.xlu0 %9212, %v2105_v9  }
 0x154   :  { %v10220_v37 = vpop.permute.xlu1 %1522 }
 0x155   :  { %15035 = vst [vmem:[#allocation82_spill] sm:$0xff] %v10220_v37  ;;  %2231 = vperm.xlu1 %9211, %v2105_v9  }
 0x156   :  { %v10222_v24 = vpop.permute.xlu0 %3012 }
 0x157   :  { %15036 = vst [vmem:[#allocation83_spill] sm:$0xff] %v10222_v24  ;;  %3396 = vperm.xlu0 %9212, %v2113_v15   ;;  %v2137_v24 = vrot.slane %v318_v32, %v9535_v45  ;;  %v2359_v32 = vmul.f32 %v9539_v47, %v9539_v47 }
 0x158   :  { %v10226_v8 = vpop.permute.xlu1 %1530 }
 0x159   :  { %15037 = vst [vmem:[#allocation84_spill] sm:$0xff] %v10226_v8  ;;  %2239 = vperm.xlu1 %9211, %v2113_v15  }
 0x15a   :  { %v10228_v43 = vpop.permute.xlu0 %3020 }
 0x15b   :  { %15038 = vst [vmem:[#allocation85_spill] sm:$0xff] %v10228_v43  ;;  %3404 = vperm.xlu0 %9212, %v2121_v14  }
 0x15c   :  { %v10231_v1 = vpop.permute.xlu1 %1538 }
 0x15d   :  { %15039 = vst [vmem:[#allocation86_spill] sm:$0xff] %v10231_v1  ;;  %2247 = vperm.xlu1 %9211, %v2121_v14  }
 0x15e   :  { %v10233_v9 = vpop.permute.xlu0 %3028 }
 0x15f   :  { %15040 = vst [vmem:[#allocation87_spill] sm:$0xff] %v10233_v9  ;;  %3412 = vperm.xlu0 %9212, %v2129_v31  }
 0x160   :  { %v10236_v4 = vpop.permute.xlu1 %1546 }
 0x161   :  { %15041 = vst [vmem:[#allocation88_spill] sm:$0xff] %v10236_v4  ;;  %2255 = vperm.xlu1 %9211, %v2129_v31  }
 0x162   :  { %v10238_v34 = vpop.permute.xlu0 %3036 }
 0x163   :  { %15042 = vst [vmem:[#allocation89_spill] sm:$0xff] %v10238_v34  ;;  %3420 = vperm.xlu0 %9212, %v2137_v24   ;;  %v2396_v34 = vmul.f32 %v2359_v32, %v2359_v32 }
 0x164   :  { %v10240_v15 = vpop.permute.xlu1 %1554 }
 0x165   :  { %15043 = vst [vmem:[#allocation90_spill] sm:$0xff] %v10240_v15  ;;  %2263 = vperm.xlu1 %9211, %v2137_v24   ;;  %v2433_v23 = vmul.f32 %v2396_v34, %v2396_v34 }
 0x166   :  { %v10242_v43 = vpop.permute.xlu0 %3108 }
 0x167   :  { %15044 = vst [vmem:[#allocation91_spill] sm:$0xff] %v10242_v43  ;;  %3492 = vperm.xlu0 %9212, %v9539_v47   ;;  %v2361_v43 = vmul.f32 %v9653_v36, %v9653_v36 }
 0x168   :  { %v10245_v27 = vpop.permute.xlu1 %1823 }
 0x169   :  { %15045 = vst [vmem:[#allocation92_spill] sm:$0xff] %v10245_v27  ;;  %2343 = vperm.xlu1 %9211, %v9539_v47   ;;  %v2398_v1 = vmul.f32 %v2361_v43, %v2361_v43 }
 0x16a   :  { %v10248_v14 = vpop.permute.xlu0 %3116 }
 0x16b   :  { %3500 = vperm.xlu0 %9212, %v9653_v36  }
 0x16c   :  { %v10253_v31 = vpop.permute.xlu1 %1831 }
 0x16d   :  { %2351 = vperm.xlu1 %9211, %v9653_v36  }
 0x16e   :  { %v10256_v24 = vpop.permute.xlu0 %3124 }
 0x16f   :  { %3512 = vperm.xlu0 %9212, %v2359_v32  }
 0x170   :  { %v10260_v27 = vpop.permute.xlu1 %1839 }
 0x171   :  { %15046 = vst [vmem:[#allocation93_spill] sm:$0xff] %v10260_v27  ;;  %2374 = vperm.xlu1 %9211, %v2359_v32   ;;  %v15051_v27 = vlaneseq }
 0x172   :  { %v10262_v15 = vpop.permute.xlu0 %3132 }
 0x173   :  { %15047 = vst [vmem:[#allocation94_spill] sm:$0xff] %v10262_v15  ;;  %3520 = vperm.xlu0 %9212, %v2361_v43   ;;  %v10275_v15 = vand.u32 127, %v15051_v27 }
 0x174   :  { %v10264_v4 = vpop.permute.xlu1 %1847 }
 0x175   :  { %15048 = vst [vmem:[#allocation95_spill] sm:$0xff] %v10264_v4  ;;  %2384 = vperm.xlu1 %9211, %v2361_v43   ;;  %15052 = vst [vmem:[#allocation98_spill] sm:$0xff] %v10275_v15  ;;  %v2435_v4 = vmul.f32 %v2398_v1, %v2398_v1  ;;  %v10283_v43 = vsub.s32 %v10275_v15, %v9516_v30 }
 0x176   :  { %v10266_v9 = vpop.permute.xlu0 %3140 }
 0x177   :  { %15049 = vst [vmem:[#allocation96_spill] sm:$0xff] %v10266_v9  ;;  %3536 = vperm.xlu0 %9212, %v2396_v34   ;;  %15054 = vst [vmem:[#allocation100_spill] sm:$0xff] %v10283_v43  ;;  %vm117_vm0 = vcmp.gt.s32.totalorder %v10283_v43, 0  ;;  %vm3678_vm6 = vcmp.ge.s32.totalorder %v10283_v43, 0 }
 0x178   :  { %v10268_v8 = vpop.permute.xlu1 %1855  ;;  %v10297_v30 = vsel %vm117_vm0, %v10283_v43, 0 }
 0x179   :  { %2411 = vperm.xlu1 %9211, %v2396_v34   ;;  %v2331_v34 = vmul.f32 %v10095_v29, %v9539_v47  ;;  %v875_v15 = vshra.s32 %v10297_v30, 1 }
 0x17a   :  { %v10270_v37 = vpop.permute.xlu0 %3148 }
 0x17b   :  { %15050 = vst [vmem:[#allocation97_spill] sm:$0xff] %v10270_v37  ;;  %3544 = vperm.xlu0 %9212, %v2398_v1  }
 0x17c   :  { %v10272_v41 = vpop.permute.xlu1 %1863 }
 0x17d   :  { %2421 = vperm.xlu1 %9211, %v2398_v1   ;;  %v2333_v1 = vmul.f32 %v10183_v46, %v9653_v36  ;;  %v1264_v46 = vshra.s32 %v10297_v30, 2 }
 0x17e   :  { %v10277_v32 = vpop.permute.xlu0 %3156 }
 0x17f   :  { %15053 = vst [vmem:[#allocation99_spill] sm:$0xff] %v10277_v32  ;;  %3560 = vperm.xlu0 %9212, %v2433_v23  }
 0x180   :  { %v10279_v9 = vpop.permute.xlu1 %1871 }
 0x181   :  { %2448 = vperm.xlu1 %9211, %v2433_v23  }
 0x182   :  { %v10285_v37 = vpop.permute.xlu0 %3164 }
 0x183   :  { %3568 = vperm.xlu0 %9212, %v2435_v4  }
 0x184   :  { %v10289_v27 = vpop.permute.xlu1 %1879 }
 0x185   :  { %15055 = vst [vmem:[#allocation101_spill] sm:$0xff] %v10289_v27  ;;  %2458 = vperm.xlu1 %9211, %v2435_v4   ;;  %v551_v4 = vand.u32 1, %v10297_v30  ;;  %v15061_v27 = vmov 0  }
 0x186   :  { %v10292_v32 = vpop.permute.xlu0 %3172 }
 0x187   :  { %15056 = vst [vmem:[#allocation102_spill] sm:$0xff] %v10292_v32  ;;  %3584 = vperm.xlu0 %9212, %v2331_v34   ;;  %v10307_v32 = vand.u32 1, %v875_v15  ;;  %v10324_v15 = vmul.f32 %v9562_v56, %v9562_v56  ;;  %vm10326_vm1 = vcmp.eq.s32.totalorder %v551_v4, 1  ;;  %v10341_v4 = vand.u32 1, %v1264_v46 }
 0x188   :  { %v10299_v23 = vpop.permute.xlu1 %1887  ;;  %v2692_v56 = vsel %vm10326_vm1, %v9824_v62, 1.0  ;;  %v816_v46 = vsel %vm10326_vm1, %v9852_v28, 1.0  ;;  %v15075_v28 = vld [vmem:[#allocation22_spill] sm:$0xff] }
 0x189   :  { %15057 = vst [vmem:[#allocation103_spill] sm:$0xff] %v10299_v23  ;;  %2476 = vperm.xlu1 %9211, %v2331_v34   ;;  %v562_v23 = vrot.slane %v9565_v57, %v9535_v45  ;;  %15064 = vst [vmem:[#allocation109_spill] sm:$0xff] %v10324_v15  ;;  %vm877_vm2 = vcmp.eq.s32.totalorder %v10307_v32, 1  ;;  %v15067_v57 = vmov 1   ;;  %vm1266_vm3 = vcmp.eq.s32.totalorder %v10341_v4, 1 }
 0x18a   :  { %v10302_v29 = vpop.permute.xlu0 %3180  ;;  %15068 = vst [vmem:[#allocation110_spill] sm:$0xff] %v10341_v4 }
 0x18b   :  { %15058 = vst [vmem:[#allocation104_spill] sm:$0xff] %v10302_v29  ;;  %3592 = vperm.xlu0 %9212, %v2333_v1   ;;  %v1177_v29 = vsel %vm877_vm2, %v9992_v38, 1.0 }
 0x18c   :  { %v10304_v47 = vpop.permute.xlu1 %1895 }
 0x18d   :  { %15059 = vst [vmem:[#allocation105_spill] sm:$0xff] %v10304_v47  ;;  %2486 = vperm.xlu1 %9211, %v2333_v1   ;;  %v10320_v47 = vrot.slane %v9552_v53, %v9527_v39  ;;  %v814_v53 = vsel %vm10326_vm1, %v9842_v21, 1.0 }
 0x18e   :  { %v10310_v36 = vpop.permute.xlu0 %3188 }
 0x18f   :  { %15060 = vst [vmem:[#allocation106_spill] sm:$0xff] %v10310_v36  ;;  %9214 = vset.pattern.permute.xlu0 %v15061_v27  ;;  %15063 = vst [vmem:[#allocation108_spill] sm:$0xff] %v10320_v47  ;;  %v10369_v21 = vcombine.high %v10320_v47, %v10320_v47 }
 0x190   :  { %684 = vperm.xlu0 %9214, %v9558_v55   ;;  %v10316_v34 = vpop.permute.xlu1 %1903  ;;  %v2690_v55 = vsel %vm10326_vm1, %v9814_v12, 1.0  ;;  %v2694_v12 = vsel %vm10326_vm1, %v9834_v63, 1.0  ;;  %v574_v63 = vrot.slane %v10320_v47, %v9535_v45 }
 0x191   :  { %15062 = vst [vmem:[#allocation107_spill] sm:$0xff] %v10316_v34  ;;  %9213 = vset.pattern.permute.xlu1 %v15067_v57  ;;  %15071 = vst [vmem:[#allocation113_spill] sm:$0xff] %v10369_v21  ;;  %v1653_v57 = vshra.s32 %v10297_v30, 3  ;;  %v582_v62 = vrot.slane %v10369_v21, %v9535_v45  ;;  %v2850_v30 = vsel %vm877_vm2, %v9966_v40, 1.0  ;;  %v1173_v40 = vsel %vm877_vm2, %v9978_v44, 1.0  ;;  %v15084_v44 = vld [vmem:[#allocation28_spill] sm:$0xff] }
 0x192   :  { %v10343_v27 = vpop.permute.xlu0 %3196  ;;  %2564 = vperm.xlu1 %9213, %v562_v23  }
 0x193   :  { %15069 = vst [vmem:[#allocation111_spill] sm:$0xff] %v10343_v27 }
 0x194   :  { %688 = vperm.xlu0 %9214, %v562_v23   ;;  %v10363_v27 = vpop.permute.xlu1 %1911  ;;  %v1171_v23 = vsel %vm877_vm2, %v9971_v48, 1.0  ;;  %v10457_v48 = vand.u32 1, %v1653_v57 }
 0x195   :  { %15070 = vst [vmem:[#allocation112_spill] sm:$0xff] %v10363_v27  ;;  %v818_v27 = vsel %vm10326_vm1, %v9902_v26, 1.0 }
 0x196   :  { %v10395_v47 = vpop.permute.xlu0 %3204  ;;  %2568 = vperm.xlu1 %9213, %v9578_v61   ;;  %v2852_v61 = vsel %vm877_vm2, %v9973_v60, 1.0  ;;  %15081 = vst [vmem:[#allocation117_spill] sm:$0xff] %v10457_v48  ;;  %vm1655_vm4 = vcmp.eq.s32.totalorder %v10457_v48, 1 }
 0x197   :  { %15072 = vst [vmem:[#allocation114_spill] sm:$0xff] %v10395_v47  ;;  %v10420_v47 = vrot.slane %v9549_v52, %v9527_v39  ;;  %v10476_v16 = vmul.f32 %v2852_v61, %v2692_v56  ;;  %v10493_v56 = vmul.f32 %v1173_v40, %v816_v46 }
 0x198   :  { %700 = vperm.xlu0 %9214, %v574_v63   ;;  %v10414_v26 = vpop.permute.xlu1 %1919 }
 0x199   :  { %15073 = vst [vmem:[#allocation115_spill] sm:$0xff] %v10414_v26  ;;  %15074 = vst [vmem:[#allocation116_spill] sm:$0xff] %v10420_v47  ;;  %v15082_v26 = vld [vmem:[#allocation31_spill] sm:$0xff]  ;;  %v590_v34 = vrot.slane %v10420_v47, %v9535_v45  ;;  %v10471_v52 = vcombine.high %v10420_v47, %v10420_v47  ;;  %v15086_v47 = vld [vmem:[#allocation33_spill] sm:$0xff] }
 0x19a   :  { %v10446_v36 = vpop.permute.xlu0 %3212  ;;  %2576 = vperm.xlu1 %9213, %v574_v63   ;;  %v2854_v60 = vsel %vm877_vm2, %v15082_v26, 1.0  ;;  %v1175_v63 = vsel %vm877_vm2, %v9985_v2, 1.0  ;;  %v1203_v26 = vmul.f32 %v1171_v23, %v814_v53  ;;  %v15085_v2 = vld [vmem:[#allocation32_spill] sm:$0xff]  ;;  %v2858_v15 = vsel %vm877_vm2, %v15086_v47, 1.0 }
 0x19b   :  { %15079 = vst [vmem:[#allocation22_spill] sm:$0xff] %v10446_v36  ;;  %v2882_v36 = vmul.f32 %v2850_v30, %v2690_v55  ;;  %v1179_v55 = vsel %vm877_vm2, %v9999_v58, 1.0  ;;  %v10495_v23 = vmul.f32 %v2854_v60, %v2694_v12  ;;  %v10497_v61 = vmul.f32 %v1175_v63, %v818_v27  ;;  %v15087_v30 = vld [vmem:[#allocation34_spill] sm:$0xff]  ;;  %v15088_v58 = vld [vmem:[#allocation35_spill] sm:$0xff] }
 0x19c   :  { %708 = vperm.xlu0 %9214, %v582_v62   ;;  %v10465_v21 = vpop.permute.xlu1 %1927  ;;  %v2860_v38 = vsel %vm877_vm2, %v15087_v30, 1.0  ;;  %v1181_v47 = vsel %vm877_vm2, %v10006_v51, 1.0  ;;  %v598_v27 = vrot.slane %v10471_v52, %v9535_v45  ;;  %v15089_v12 = vld [vmem:[#allocation15_spill] sm:$0xff]  ;;  %v15091_v60 = vsel %vm10326_vm1, %v9844_v25, 1.0  ;;  %v15095_v25 = vld [vmem:[#allocation36_spill] sm:$0xff] }
 0x19d   :  { %15083 = vst [vmem:[#allocation31_spill] sm:$0xff] %v10465_v21  ;;  %v2856_v21 = vsel %vm877_vm2, %v15085_v2, 1.0  ;;  %v10515_v40 = vrot.slane %v15089_v12, %v9527_v39  ;;  %v15092_v51 = vsel %vm10326_vm1, %v9822_v18, 1.0  ;;  %v15093_v30 = vsel %vm10326_vm1, %v9854_v35, 1.0 }
 0x19e   :  { %v10491_v53 = vpop.permute.xlu0 %3220  ;;  %2584 = vperm.xlu1 %9213, %v582_v62   ;;  %v2862_v62 = vsel %vm877_vm2, %v15088_v58, 1.0  ;;  %v10521_v63 = vmul.f32 %v2856_v21, %v15091_v60  ;;  %v10527_v2 = vmul.f32 %v1177_v29, %v15092_v51  ;;  %v10533_v58 = vmul.f32 %v2858_v15, %v15093_v30  ;;  %v15096_v60 = vld [vmem:[#allocation37_spill] sm:$0xff]  ;;  %v15097_v29 = vld [vmem:[#allocation38_spill] sm:$0xff]  ;;  %v15098_v15 = vld [vmem:[#allocation39_spill] sm:$0xff] }
 0x19f   :  { %15090 = vst [vmem:[#allocation28_spill] sm:$0xff] %v10515_v40  ;;  %v15094_v12 = vsel %vm10326_vm1, %v9862_v49, 1.0  ;;  %v1183_v21 = vsel %vm877_vm2, %v15095_v25, 1.0  ;;  %v2864_v18 = vsel %vm877_vm2, %v15096_v60, 1.0  ;;  %v1185_v35 = vsel %vm877_vm2, %v15097_v29, 1.0 }
 0x1a0   :  { %716 = vperm.xlu0 %9214, %v590_v34   ;;  %v10509_v46 = vpop.permute.xlu1 %1935  ;;  %v10539_v57 = vmul.f32 %v1179_v55, %v15094_v12  ;;  %v2866_v51 = vsel %vm877_vm2, %v15098_v15, 1.0  ;;  %v15099_v49 = vsel %vm10326_vm1, %v9864_v59, 1.0  ;;  %v15100_v12 = vsel %vm10326_vm1, %v9872_v7, 1.0  ;;  %v15102_v15 = vld [vmem:[#allocation40_spill] sm:$0xff] }
 0x1a1   :  { %v10559_v55 = vmul.f32 %v2860_v38, %v15099_v49  ;;  %v10565_v25 = vmul.f32 %v1181_v47, %v15100_v12  ;;  %v15101_v60 = vsel %vm10326_vm1, %v9874_v13, 1.0  ;;  %v2868_v59 = vsel %vm877_vm2, %v15102_v15, 1.0 }
 0x1a2   :  { %v10553_v30 = vpop.permute.xlu0 %3228  ;;  %2592 = vperm.xlu1 %9213, %v590_v34   ;;  %v10571_v29 = vmul.f32 %v2862_v62, %v15101_v60  ;;  %v1187_v34 = vsel %vm877_vm2, %v10031_v22, 1.0  ;;  %v1189_v7 = vsel %vm877_vm2, %v10041_v5, 1.0  ;;  %v606_v13 = vrot.slane %v10515_v40, %v9535_v45 }
 0x1a3   :  { %v10588_v47 = vcombine.high %v10515_v40, %v10515_v40  ;;  %v15103_v22 = vsel %vm10326_vm1, %v9912_v6, 1.0  ;;  %v15104_v5 = vsel %vm10326_vm1, %v9884_v20, 1.0  ;;  %v15105_v12 = vsel %vm10326_vm1, %v9832_v10, 1.0 }
 0x1a4   :  { %724 = vperm.xlu0 %9214, %v598_v27   ;;  %v10582_v38 = vpop.permute.xlu1 %1943  ;;  %v10594_v62 = vmul.f32 %v1183_v21, %v15103_v22  ;;  %v10600_v49 = vmul.f32 %v2864_v18, %v15104_v5  ;;  %v10606_v60 = vmul.f32 %v1185_v35, %v15105_v12  ;;  %v15106_v15 = vsel %vm10326_vm1, %v9894_v3, 1.0  ;;  %v15108_v18 = vld [vmem:[#allocation56_spill] sm:$0xff]  ;;  %v15109_v35 = vld [vmem:[#allocation57_spill] sm:$0xff]  ;;  %v15113_v5 = vld [vmem:[#allocation42_spill] sm:$0xff] }
 0x1a5   :  { %v10612_v40 = vmul.f32 %v2866_v51, %v15106_v15  ;;  %v15107_v6 = vsel %vm10326_vm1, %v9882_v19, 1.0  ;;  %v2870_v20 = vsel %vm877_vm2, %v10043_v33, 1.0  ;;  %v3042_v10 = vsel %vm1266_vm3, %v15108_v18, 1.0  ;;  %v15114_v15 = vld [vmem:[#allocation14_spill] sm:$0xff] }
 0x1a6   :  { %v10618_v21 = vmul.f32 %v1187_v34, %v15107_v6  ;;  %v1560_v3 = vsel %vm1266_vm3, %v15109_v35, 1.0  ;;  %v10629_v51 = vpop.permute.xlu0 %3300  ;;  %2600 = vperm.xlu1 %9213, %v598_v27   ;;  %v15111_v19 = vsel %vm10326_vm1, %v9904_v11, 1.0  ;;  %v15112_v33 = vsel %vm10326_vm1, %v9892_v0, 1.0  ;;  %v15115_v27 = vld [vmem:[#allocation58_spill] sm:$0xff] }
 0x1a7   :  { %15110 = vst [vmem:[#allocation32_spill] sm:$0xff] %v10629_v51  ;;  %v10635_v34 = vmul.f32 %v2868_v59, %v15111_v19  ;;  %v10641_v22 = vmul.f32 %v1189_v7, %v15112_v33  ;;  %v1191_v12 = vsel %vm877_vm2, %v15113_v5, 1.0  ;;  %v10648_v6 = vrot.slane %v15114_v15, %v9527_v39 }
 0x1a8   :  { %v3044_v11 = vsel %vm1266_vm3, %v15115_v27, 1.0  ;;  %v3234_v59 = vsel %vm1655_vm4, %v10248_v14, 1.0  ;;  %v1949_v0 = vsel %vm1655_vm4, %v10253_v31, 1.0  ;;  %732 = vperm.xlu0 %9214, %v606_v13   ;;  %v10659_v7 = vpop.permute.xlu1 %2143  ;;  %v614_v18 = vrot.slane %v10588_v47, %v9535_v45  ;;  %v15119_v31 = vld [vmem:[#allocation43_spill] sm:$0xff] }
 0x1a9   :  { %15116 = vst [vmem:[#allocation33_spill] sm:$0xff] %v10659_v7  ;;  %v15117_v35 = vsel %vm10326_vm1, %v9914_v54, 1.0  ;;  %v3074_v33 = vmul.f32 %v3042_v10, %v2882_v36  ;;  %v1592_v5 = vmul.f32 %v1560_v3, %v1203_v26  ;;  %v15118_v14 = vsel %vm10326_vm1, %v9922_v42, 1.0  ;;  %v15121_v3 = vld [vmem:[#allocation60_spill] sm:$0xff] }
 0x1aa   :  { %v10667_v19 = vmul.f32 %v2870_v20, %v15117_v35  ;;  %v10673_v15 = vmul.f32 %v1191_v12, %v15118_v14  ;;  %v2872_v27 = vsel %vm877_vm2, %v15119_v31, 1.0  ;;  %v1562_v7 = vsel %vm1266_vm3, %v10132_v17, 1.0  ;;  %v3309_v51 = vpop.permute.xlu0 %3308  ;;  %2608 = vperm.xlu1 %9213, %v606_v13   ;;  %v15122_v12 = vld [vmem:[#allocation93_spill] sm:$0xff] }
 0x1ab   :  { %v10683_v54 = vcombine.high %v10648_v6, %v10648_v6  ;;  %v14857_v36 = vmov 0.0   ;;  %v3076_v42 = vmul.f32 %v3044_v11, %v10476_v16  ;;  %v3266_v26 = vmul.f32 %v3234_v59, %v3074_v33  ;;  %v15123_v59 = vld [vmem:[#allocation62_spill] sm:$0xff] }
 0x1ac   :  { %9018 = vmatprep.subr.bf16.mxu1 %v14857_v36  ;;  %v1981_v20 = vmul.f32 %v1949_v0, %v1592_v5  ;;  %v622_v10 = vrot.slane %v10648_v6, %v9535_v45  ;;  %9012 = vmatprep.subr.bf16.mxu0 %v14857_v36  ;;  %v3046_v17 = vsel %vm1266_vm3, %v15121_v3, 1.0  ;;  %v3236_v13 = vsel %vm1655_vm4, %v10256_v24, 1.0  ;;  %v2152_v16 = vpop.permute.xlu1 %2151 }
 0x1ad   :  { %15120 = vst [vmem:[#allocation34_spill] sm:$0xff] %v10683_v54  ;;  %v1951_v35 = vsel %vm1655_vm4, %v15122_v12, 1.0  ;;  %740 = vperm.xlu0 %9214, %v614_v18   ;;  %v1594_v11 = vmul.f32 %v1562_v7, %v10493_v56  ;;  %v1564_v0 = vsel %vm1266_vm3, %v15123_v59, 1.0  ;;  %v3426_v33 = vmul.f32 %v3309_v51, %v3266_v26  ;;  %9020 = vmatprep.mubr.msk.bf16.mxu1 %vm14860_vm5, %v14857_v36  ;;  %v15124_v7 = vld [vmem:[#allocation16_spill] sm:$0xff]  ;;  %v15125_v12 = vld [vmem:[#allocation63_spill] sm:$0xff]  ;;  %v15126_v59 = vld [vmem:[#allocation94_spill] sm:$0xff] }
 0x1ae   :  { %v2269_v5 = vmul.f32 %v2152_v16, %v1981_v20  ;;  %9014 = vmatprep.mubr.msk.bf16.mxu0 %vm14860_vm5, %v14857_v36  ;;  %v3317_v24 = vpop.permute.xlu0 %3316  ;;  %2616 = vperm.xlu1 %9213, %v614_v18   ;;  %v630_v56 = vrot.slane %v10683_v54, %v9535_v45  ;;  %v10712_v14 = vrot.slane %v15124_v7, %v9527_v39  ;;  %v3048_v16 = vsel %vm1266_vm3, %v15125_v12, 1.0  ;;  %v15127_v36 = vld [vmem:[#allocation95_spill] sm:$0xff]  ;;  %v15131_v12 = vld [vmem:[#allocation96_spill] sm:$0xff] }
 0x1af   :  { %v3078_v51 = vmul.f32 %v3046_v17, %v10495_v23  ;;  %v3268_v31 = vmul.f32 %v3236_v13, %v3076_v42  ;;  %v1983_v26 = vmul.f32 %v1951_v35, %v1594_v11  ;;  %v1596_v3 = vmul.f32 %v1564_v0, %v10497_v61  ;;  %v15128_v23 = vld [vmem:[#allocation65_spill] sm:$0xff] }
 0x1b0   :  { %v3458_v20 = vadd.f32 %v3426_v33, %v2269_v5  ;;  %v3238_v18 = vsel %vm1655_vm4, %v15126_v59, 1.0  ;;  %v1953_v7 = vsel %vm1655_vm4, %v15127_v36, 1.0  ;;  %v2160_v54 = vpop.permute.xlu1 %2159  ;;  %v1566_v42 = vsel %vm1266_vm3, %v15128_v23, 1.0 }
 0x1b1   :  { %748 = vperm.xlu0 %9214, %v622_v10   ;;  %v3428_v17 = vmul.f32 %v3317_v24, %v3268_v31  ;;  %v2271_v13 = vmul.f32 %v2160_v54, %v1983_v26  ;;  %v15129_v35 = vsel %vm10326_vm1, %v9924_v50, 1.0  ;;  %v638_v36 = vrot.slane %v10712_v14, %v9535_v45  ;;  %v15130_v50 = vld [vmem:[#allocation66_spill] sm:$0xff] }
 0x1b2   :  { %v3684_v61 = vsel %vm3678_vm6, %v3458_v20, 0.0  ;;  %v10734_v11 = vmul.f32 %v2872_v27, %v15129_v35  ;;  %v3325_v33 = vpop.permute.xlu0 %3324  ;;  %2624 = vperm.xlu1 %9213, %v622_v10   ;;  %v10740_v5 = vcombine.high %v10712_v14, %v10712_v14  ;;  %v3080_v20 = vmul.f32 %v3048_v16, %v10521_v63 }
 0x1b3   :  { %v3716_v0 = vpack.c.bf16 %v3684_v61, %v3684_v61  ;;  %v3270_v24 = vmul.f32 %v3238_v18, %v3078_v51  ;;  %v1985_v54 = vmul.f32 %v1953_v7, %v1596_v3  ;;  %v3460_v31 = vadd.f32 %v3428_v17, %v2271_v13  ;;  %v15132_v51 = vld [vmem:[#allocation67_spill] sm:$0xff]  ;;  %v15133_v7 = vld [vmem:[#allocation45_spill] sm:$0xff]  ;;  %v15134_v17 = vld [vmem:[#allocation18_spill] sm:$0xff] }
 0x1b4   :  { %v1598_v26 = vmul.f32 %v1566_v42, %v10527_v2  ;;  %v3050_v27 = vsel %vm1266_vm3, %v15130_v50, 1.0  ;;  %v3240_v10 = vsel %vm1655_vm4, %v15131_v12, 1.0  ;;  %v1955_v59 = vsel %vm1655_vm4, %v10268_v8, 1.0  ;;  %v2168_v63 = vpop.permute.xlu1 %2167  ;;  %v15136_v12 = vld [vmem:[#allocation97_spill] sm:$0xff] }
 0x1b5   :  { %3749 = vst.msk [vmem:[#allocation2 + $0xc] sm:$0xf] %vm3745_vm7, %v3716_v0  ;;  %756 = vperm.xlu0 %9214, %v630_v56   ;;  %v1568_v2 = vsel %vm1266_vm3, %v15132_v51, 1.0  ;;  %v3686_v3 = vsel %vm3678_vm6, %v3460_v31, 0.0  ;;  %v3430_v16 = vmul.f32 %v3325_v33, %v3270_v24  ;;  %v2273_v18 = vmul.f32 %v2168_v63, %v1985_v54  ;;  %v15135_v54 = vld [vmem:[#allocation68_spill] sm:$0xff] }
 0x1b6   :  { %v1193_v23 = vsel %vm877_vm2, %v15133_v7, 1.0  ;;  %v3718_v42 = vpack.c.bf16 %v3686_v3, %v3686_v3  ;;  %v3333_v61 = vpop.permute.xlu0 %3332  ;;  %2632 = vperm.xlu1 %9213, %v630_v56   ;;  %v646_v8 = vrot.slane %v10740_v5, %v9535_v45  ;;  %v10766_v13 = vrot.slane %v15134_v17, %v9527_v39 }
 0x1b7   :  { %v3082_v35 = vmul.f32 %v3050_v27, %v10533_v58  ;;  %v3272_v0 = vmul.f32 %v3240_v10, %v3080_v20  ;;  %v1987_v31 = vmul.f32 %v1955_v59, %v1598_v26  ;;  %v3462_v33 = vadd.f32 %v3430_v16, %v2273_v18  ;;  %v15137_v20 = vld [vmem:[#allocation70_spill] sm:$0xff] }
 0x1b8   :  { %v1600_v24 = vmul.f32 %v1568_v2, %v10539_v57  ;;  %v3052_v50 = vsel %vm1266_vm3, %v15135_v54, 1.0  ;;  %v3242_v56 = vsel %vm1655_vm4, %v15136_v12, 1.0  ;;  %v1957_v63 = vsel %vm1655_vm4, %v10272_v41, 1.0  ;;  %3751 = vst.msk [vmem:[#allocation2 + $0x14] sm:$0xf] %vm3745_vm7, %v3718_v42  ;;  %v2176_v58 = vpop.permute.xlu1 %2175 }
 0x1b9   :  { %764 = vperm.xlu0 %9214, %v638_v36   ;;  %v1570_v57 = vsel %vm1266_vm3, %v15137_v20, 1.0  ;;  %v3688_v26 = vsel %vm3678_vm6, %v3462_v33, 0.0  ;;  %v3432_v27 = vmul.f32 %v3333_v61, %v3272_v0  ;;  %v2275_v10 = vmul.f32 %v2176_v58, %v1987_v31  ;;  %v15140_v0 = vld [vmem:[#allocation99_spill] sm:$0xff] }
 0x1ba   :  { %v15138_v59 = vsel %vm10326_vm1, %v15075_v28, 1.0  ;;  %v3720_v41 = vpack.c.bf16 %v3688_v26, %v3688_v26  ;;  %v3341_v2 = vpop.permute.xlu0 %3340  ;;  %2640 = vperm.xlu1 %9213, %v638_v36   ;;  %v654_v3 = vrot.slane %v10766_v13, %v9535_v45  ;;  %v10795_v16 = vcombine.high %v10766_v13, %v10766_v13  ;;  %v15139_v28 = vld [vmem:[#allocation71_spill] sm:$0xff] }
 0x1bb   :  { %v10789_v51 = vmul.f32 %v1193_v23, %v15138_v59  ;;  %v3084_v18 = vmul.f32 %v3052_v50, %v10559_v55  ;;  %v3274_v7 = vmul.f32 %v3242_v56, %v3082_v35  ;;  %v1989_v42 = vmul.f32 %v1957_v63, %v1600_v24  ;;  %v15141_v35 = vld [vmem:[#allocation72_spill] sm:$0xff]  ;;  %v15142_v50 = vld [vmem:[#allocation46_spill] sm:$0xff]  ;;  %v15143_v58 = vld [vmem:[#allocation19_spill] sm:$0xff] }
 0x1bc   :  { %v3464_v61 = vadd.f32 %v3432_v27, %v2275_v10  ;;  %v1602_v17 = vmul.f32 %v1570_v57, %v10565_v25  ;;  %v3054_v23 = vsel %vm1266_vm3, %v15139_v28, 1.0  ;;  %v3244_v36 = vsel %vm1655_vm4, %v15140_v0, 1.0  ;;  %3753 = vst.msk [vmem:[#allocation2 + $0x1c] sm:$0xf] %vm3745_vm7, %v3720_v41  ;;  %v2184_v55 = vpop.permute.xlu1 %2183  ;;  %v15144_v41 = vld [vmem:[#allocation73_spill] sm:$0xff] }
 0x1bd   :  { %v1959_v31 = vsel %vm1655_vm4, %v10279_v9, 1.0  ;;  %772 = vperm.xlu0 %9214, %v646_v8   ;;  %v1572_v25 = vsel %vm1266_vm3, %v15141_v35, 1.0  ;;  %v3434_v24 = vmul.f32 %v3341_v2, %v3274_v7  ;;  %v2277_v54 = vmul.f32 %v2184_v55, %v1989_v42  ;;  %v15145_v7 = vld [vmem:[#allocation101_spill] sm:$0xff] }
 0x1be   :  { %v3690_v33 = vsel %vm3678_vm6, %v3464_v61, 0.0  ;;  %v2874_v12 = vsel %vm877_vm2, %v15142_v50, 1.0  ;;  %v3349_v63 = vpop.permute.xlu0 %3348  ;;  %2648 = vperm.xlu1 %9213, %v646_v8   ;;  %v662_v9 = vrot.slane %v10795_v16, %v9535_v45  ;;  %v10821_v20 = vrot.slane %v15143_v58, %v9527_v39  ;;  %v15151_v58 = vld [vmem:[#allocation103_spill] sm:$0xff] }
 0x1bf   :  { %v3722_v56 = vpack.c.bf16 %v3690_v33, %v3690_v33  ;;  %v3086_v57 = vmul.f32 %v3054_v23, %v10571_v29  ;;  %v3276_v26 = vmul.f32 %v3244_v36, %v3084_v18  ;;  %v1991_v27 = vmul.f32 %v1959_v31, %v1602_v17  ;;  %v15146_v18 = vld [vmem:[#allocation75_spill] sm:$0xff] }
 0x1c0   :  { %v3466_v10 = vadd.f32 %v3434_v24, %v2277_v54  ;;  %v1604_v59 = vmul.f32 %v1572_v25, %v10594_v62  ;;  %v3056_v2 = vsel %vm1266_vm3, %v15144_v41, 1.0  ;;  %v3246_v8 = vsel %vm1655_vm4, %v10285_v37, 1.0  ;;  %v2192_v29 = vpop.permute.xlu1 %2191  ;;  %v15147_v37 = vld [vmem:[#allocation23_spill] sm:$0xff] }
 0x1c1   :  { %v1961_v42 = vsel %vm1655_vm4, %v15145_v7, 1.0  ;;  %3755 = vst.msk [vmem:[#allocation2 + $0x24] sm:$0xf] %vm3745_vm7, %v3722_v56  ;;  %780 = vperm.xlu0 %9214, %v654_v3   ;;  %v1574_v62 = vsel %vm1266_vm3, %v15146_v18, 1.0  ;;  %v3436_v17 = vmul.f32 %v3349_v63, %v3276_v26  ;;  %v2279_v28 = vmul.f32 %v2192_v29, %v1991_v27  ;;  %v15149_v56 = vld [vmem:[#allocation76_spill] sm:$0xff]  ;;  %v15150_v63 = vld [vmem:[#allocation102_spill] sm:$0xff] }
 0x1c2   :  { %v3692_v61 = vsel %vm3678_vm6, %v3466_v10, 0.0  ;;  %v15148_v23 = vsel %vm10326_vm1, %v15147_v37, 1.0  ;;  %v3357_v31 = vpop.permute.xlu0 %3356  ;;  %2656 = vperm.xlu1 %9213, %v654_v3   ;;  %v670_v55 = vrot.slane %v10821_v20, %v9535_v45  ;;  %v10850_v35 = vcombine.high %v10821_v20, %v10821_v20  ;;  %v15153_v41 = vld [vmem:[#allocation47_spill] sm:$0xff]  ;;  %v15154_v29 = vld [vmem:[#allocation12_spill] sm:$0xff] }
 0x1c3   :  { %v10844_v0 = vmul.f32 %v2874_v12, %v15148_v23  ;;  %v3724_v36 = vpack.c.bf16 %v3692_v61, %v3692_v61  ;;  %v3088_v25 = vmul.f32 %v3056_v2, %v10600_v49  ;;  %v3278_v33 = vmul.f32 %v3246_v8, %v3086_v57  ;;  %v15152_v57 = vld [vmem:[#allocation77_spill] sm:$0xff]  ;;  %v15155_v23 = vld [vmem:[#allocation78_spill] sm:$0xff] }
 0x1c4   :  { %v1993_v24 = vmul.f32 %v1961_v42, %v1604_v59  ;;  %v3468_v54 = vadd.f32 %v3436_v17, %v2279_v28  ;;  %v1606_v50 = vmul.f32 %v1574_v62, %v10606_v60  ;;  %v3058_v12 = vsel %vm1266_vm3, %v15149_v56, 1.0  ;;  %v2200_v49 = vpop.permute.xlu1 %2199 }
 0x1c5   :  { %v3248_v3 = vsel %vm1655_vm4, %v15150_v63, 1.0  ;;  %v1963_v26 = vsel %vm1655_vm4, %v15151_v58, 1.0  ;;  %3757 = vst.msk [vmem:[#allocation2 + $0x2c] sm:$0xf] %vm3745_vm7, %v3724_v36  ;;  %788 = vperm.xlu0 %9214, %v662_v9   ;;  %v1576_v60 = vsel %vm1266_vm3, %v15152_v57, 1.0  ;;  %v3438_v10 = vmul.f32 %v3357_v31, %v3278_v33  ;;  %v15156_v31 = vld [vmem:[#allocation104_spill] sm:$0xff] }
 0x1c6   :  { %v3694_v27 = vsel %vm3678_vm6, %v3468_v54, 0.0  ;;  %v2281_v59 = vmul.f32 %v2200_v49, %v1993_v24  ;;  %v1195_v2 = vsel %vm877_vm2, %v15153_v41, 1.0  ;;  %v3365_v7 = vpop.permute.xlu0 %3364  ;;  %2664 = vperm.xlu1 %9213, %v662_v9   ;;  %v678_v42 = vrot.slane %v10850_v35, %v9535_v45  ;;  %v15157_v33 = vld [vmem:[#allocation105_spill] sm:$0xff]  ;;  %v15161_v58 = vld [vmem:[#allocation48_spill] sm:$0xff] }
 0x1c7   :  { %v3726_v8 = vpack.c.bf16 %v3694_v27, %v3694_v27  ;;  %v10876_v18 = vmul.f32 %v15154_v29, %v15154_v29  ;;  %v3090_v62 = vmul.f32 %v3058_v12, %v10612_v40  ;;  %v3280_v61 = vmul.f32 %v3248_v3, %v3088_v25  ;;  %v15158_v25 = vld [vmem:[#allocation80_spill] sm:$0xff]  ;;  %v15163_v29 = vld [vmem:[#allocation106_spill] sm:$0xff] }
 0x1c8   :  { %v1995_v17 = vmul.f32 %v1963_v26, %v1606_v50  ;;  %v3470_v28 = vadd.f32 %v3438_v10, %v2281_v59  ;;  %v1608_v37 = vmul.f32 %v1576_v60, %v10618_v21  ;;  %v3060_v36 = vsel %vm1266_vm3, %v15155_v23, 1.0  ;;  %v2208_v40 = vpop.permute.xlu1 %2207  ;;  %v15159_v12 = vld [vmem:[#allocation24_spill] sm:$0xff] }
 0x1c9   :  { %v3250_v9 = vsel %vm1655_vm4, %v15156_v31, 1.0  ;;  %v1965_v24 = vsel %vm1655_vm4, %v15157_v33, 1.0  ;;  %3759 = vst.msk [vmem:[#allocation2 + $0x34] sm:$0xf] %vm3745_vm7, %v3726_v8  ;;  %796 = vperm.xlu0 %9214, %v670_v55   ;;  %v1578_v21 = vsel %vm1266_vm3, %v15158_v25, 1.0  ;;  %v3440_v50 = vmul.f32 %v3365_v7, %v3280_v61  ;;  %v15162_v7 = vld [vmem:[#allocation81_spill] sm:$0xff] }
 0x1ca   :  { %v3696_v54 = vsel %vm3678_vm6, %v3470_v28, 0.0  ;;  %v2283_v56 = vmul.f32 %v2208_v40, %v1995_v17  ;;  %v15160_v63 = vsel %vm10326_vm1, %v15159_v12, 1.0  ;;  %v2876_v26 = vsel %vm877_vm2, %v15161_v58, 1.0  ;;  %v3373_v57 = vpop.permute.xlu0 %3372  ;;  %2672 = vperm.xlu1 %9213, %v670_v55   ;;  %v15164_v17 = vld [vmem:[#allocation107_spill] sm:$0xff]  ;;  %v15168_v40 = vld [vmem:[#allocation109_spill] sm:$0xff] }
 0x1cb   :  { %v10899_v3 = vmul.f32 %v1195_v2, %v15160_v63  ;;  %v3728_v49 = vpack.c.bf16 %v3696_v54, %v3696_v54  ;;  %v915_v60 = vrot.slane %v10876_v18, %v9535_v45  ;;  %v3092_v27 = vmul.f32 %v3060_v36, %v10635_v34  ;;  %v15166_v36 = vld [vmem:[#allocation25_spill] sm:$0xff] }
 0x1cc   :  { %v3282_v10 = vmul.f32 %v3250_v9, %v3090_v62  ;;  %v1997_v59 = vmul.f32 %v1965_v24, %v1608_v37  ;;  %v3472_v41 = vadd.f32 %v3440_v50, %v2283_v56  ;;  %v1610_v8 = vmul.f32 %v1578_v21, %v10641_v22  ;;  %v2216_v34 = vpop.permute.xlu1 %2215  ;;  %v15165_v62 = vld [vmem:[#allocation82_spill] sm:$0xff]  ;;  %v15169_v21 = vld [vmem:[#allocation108_spill] sm:$0xff] }
 0x1cd   :  { %v3062_v2 = vsel %vm1266_vm3, %v15162_v7, 1.0  ;;  %v3252_v61 = vsel %vm1655_vm4, %v15163_v29, 1.0  ;;  %v1967_v55 = vsel %vm1655_vm4, %v15164_v17, 1.0  ;;  %3761 = vst.msk [vmem:[#allocation2 + $0x3c] sm:$0xf] %vm3745_vm7, %v3728_v49  ;;  %804 = vperm.xlu0 %9214, %v678_v42   ;;  %v1580_v22 = vsel %vm1266_vm3, %v15165_v62, 1.0 }
 0x1ce   :  { %v3698_v28 = vsel %vm3678_vm6, %v3472_v41, 0.0  ;;  %v3442_v37 = vmul.f32 %v3373_v57, %v3282_v10  ;;  %v2285_v23 = vmul.f32 %v2216_v34, %v1997_v59  ;;  %v15167_v31 = vsel %vm10326_vm1, %v15166_v36, 1.0  ;;  %v3381_v24 = vpop.permute.xlu0 %3380  ;;  %2680 = vperm.xlu1 %9213, %v678_v42   ;;  %v15170_v49 = vld [vmem:[#allocation83_spill] sm:$0xff]  ;;  %v15172_v10 = vld [vmem:[#allocation112_spill] sm:$0xff]  ;;  %v15175_v34 = vld [vmem:[#allocation113_spill] sm:$0xff] }
 0x1cf   :  { %v10927_v9 = vmul.f32 %v2876_v26, %v15167_v31  ;;  %v3730_v33 = vpack.c.bf16 %v3698_v28, %v3698_v28  ;;  %v923_v25 = vrot.slane %v15168_v40, %v9535_v45  ;;  %v10933_v54 = vmul.f32 %v15169_v21, %v15169_v21  ;;  %v15171_v57 = vld [vmem:[#allocation111_spill] sm:$0xff]  ;;  %v15176_v31 = vld [vmem:[#allocation85_spill] sm:$0xff] }
 0x1d0   :  { %v3094_v50 = vmul.f32 %v3062_v2, %v10667_v19  ;;  %v3284_v56 = vmul.f32 %v3252_v61, %v3092_v27  ;;  %v1999_v12 = vmul.f32 %v1967_v55, %v1610_v8  ;;  %v3474_v63 = vadd.f32 %v3442_v37, %v2285_v23  ;;  %v2224_v19 = vpop.permute.xlu1 %2223  ;;  %v15173_v27 = vld [vmem:[#allocation84_spill] sm:$0xff]  ;;  %v15174_v2 = vld [vmem:[#allocation50_spill] sm:$0xff]  ;;  %v15178_v21 = vld [vmem:[#allocation115_spill] sm:$0xff] }
 0x1d1   :  { %v1612_v58 = vmul.f32 %v1580_v22, %v10673_v15  ;;  %v3064_v26 = vsel %vm1266_vm3, %v15170_v49, 1.0  ;;  %v3254_v42 = vsel %vm1655_vm4, %v15171_v57, 1.0  ;;  %v1969_v59 = vsel %vm1655_vm4, %v15172_v10, 1.0  ;;  %3763 = vst.msk [vmem:[#allocation2 + $0x44] sm:$0xf] %vm3745_vm7, %v3730_v33  ;;  %1041 = vperm.xlu0 %9214, %v915_v60   ;;  %v15180_v49 = vld [vmem:[#allocation26_spill] sm:$0xff] }
 0x1d2   :  { %v1582_v15 = vsel %vm1266_vm3, %v15173_v27, 1.0  ;;  %v3700_v41 = vsel %vm3678_vm6, %v3474_v63, 0.0  ;;  %v3444_v8 = vmul.f32 %v3381_v24, %v3284_v56  ;;  %v2287_v7 = vmul.f32 %v2224_v19, %v1999_v12  ;;  %v3389_v17 = vpop.permute.xlu0 %3388  ;;  %2720 = vperm.xlu1 %9213, %v915_v60   ;;  %v15177_v24 = vld [vmem:[#allocation114_spill] sm:$0xff]  ;;  %v15182_v19 = vld [vmem:[#allocation116_spill] sm:$0xff] }
 0x1d3   :  { %v1197_v29 = vsel %vm877_vm2, %v15174_v2, 1.0  ;;  %v3732_v61 = vpack.c.bf16 %v3700_v41, %v3700_v41  ;;  %v931_v55 = vrot.slane %v10933_v54, %v9535_v45  ;;  %v10959_v62 = vmul.f32 %v15175_v34, %v15175_v34  ;;  %v15185_v34 = vld [vmem:[#allocation31_spill] sm:$0xff] }
 0x1d4   :  { %v3096_v22 = vmul.f32 %v3064_v26, %v10734_v11  ;;  %v3286_v28 = vmul.f32 %v3254_v42, %v3094_v50  ;;  %v2001_v37 = vmul.f32 %v1969_v59, %v1612_v58  ;;  %v3476_v23 = vadd.f32 %v3444_v8, %v2287_v7  ;;  %v2232_v11 = vpop.permute.xlu1 %2231  ;;  %v15179_v50 = vld [vmem:[#allocation86_spill] sm:$0xff] }
 0x1d5   :  { %v1614_v36 = vmul.f32 %v1582_v15, %v10789_v51  ;;  %v3066_v33 = vsel %vm1266_vm3, %v15176_v31, 1.0  ;;  %v3256_v60 = vsel %vm1655_vm4, %v15177_v24, 1.0  ;;  %v1971_v56 = vsel %vm1655_vm4, %v15178_v21, 1.0  ;;  %3765 = vst.msk [vmem:[#allocation2 + $0x4c] sm:$0xf] %vm3745_vm7, %v3732_v61  ;;  %1049 = vperm.xlu0 %9214, %v923_v25   ;;  %v15183_v61 = vld [vmem:[#allocation87_spill] sm:$0xff] }
 0x1d6   :  { %v1584_v51 = vsel %vm1266_vm3, %v15179_v50, 1.0  ;;  %v3702_v12 = vsel %vm3678_vm6, %v3476_v23, 0.0  ;;  %v3446_v63 = vmul.f32 %v3389_v17, %v3286_v28  ;;  %v2289_v58 = vmul.f32 %v2232_v11, %v2001_v37  ;;  %v3397_v10 = vpop.permute.xlu0 %3396  ;;  %2728 = vperm.xlu1 %9213, %v923_v25   ;;  %v15184_v17 = vld [vmem:[#allocation22_spill] sm:$0xff]  ;;  %v15187_v31 = vld [vmem:[#allocation51_spill] sm:$0xff]  ;;  %v15188_v24 = vld [vmem:[#allocation52_spill] sm:$0xff] }
 0x1d7   :  { %v15181_v26 = vsel %vm10326_vm1, %v15180_v49, 1.0  ;;  %v3734_v42 = vpack.c.bf16 %v3702_v12, %v3702_v12  ;;  %v939_v59 = vrot.slane %v10959_v62, %v9535_v45  ;;  %v10986_v27 = vmul.f32 %v15182_v19, %v15182_v19 }
 0x1d8   :  { %v1229_v57 = vmul.f32 %v1197_v29, %v15181_v26  ;;  %v3098_v15 = vmul.f32 %v3066_v33, %v10844_v0  ;;  %v3288_v41 = vmul.f32 %v3256_v60, %v3096_v22  ;;  %v2003_v8 = vmul.f32 %v1971_v56, %v1614_v36  ;;  %v2240_v0 = vpop.permute.xlu1 %2239  ;;  %v15186_v22 = vld [vmem:[#allocation88_spill] sm:$0xff] }
 0x1d9   :  { %v3478_v7 = vadd.f32 %v3446_v63, %v2289_v58  ;;  %v1616_v2 = vmul.f32 %v1584_v51, %v10899_v3  ;;  %v3068_v29 = vsel %vm1266_vm3, %v15183_v61, 1.0  ;;  %v3258_v25 = vsel %vm1655_vm4, %v15184_v17, 1.0  ;;  %3767 = vst.msk [vmem:[#allocation2 + $0x54] sm:$0xf] %vm3745_vm7, %v3734_v42  ;;  %1057 = vperm.xlu0 %9214, %v931_v55  }
 0x1da   :  { %v1973_v28 = vsel %vm1655_vm4, %v15185_v34, 1.0  ;;  %v1586_v3 = vsel %vm1266_vm3, %v15186_v22, 1.0  ;;  %v3448_v23 = vmul.f32 %v3397_v10, %v3288_v41  ;;  %v2291_v36 = vmul.f32 %v2240_v0, %v2003_v8  ;;  %v3405_v56 = vpop.permute.xlu0 %3404  ;;  %2736 = vperm.xlu1 %9213, %v931_v55   ;;  %v15189_v10 = vld [vmem:[#allocation89_spill] sm:$0xff] }
 0x1db   :  { %v3704_v37 = vsel %vm3678_vm6, %v3478_v7, 0.0  ;;  %v2878_v33 = vsel %vm877_vm2, %v15187_v31, 1.0  ;;  %v1199_v60 = vsel %vm877_vm2, %v15188_v24, 1.0  ;;  %v947_v11 = vrot.slane %v10986_v27, %v9535_v45  ;;  %v15193_v7 = vld [vmem:[#allocation90_spill] sm:$0xff] }
 0x1dc   :  { %v3736_v21 = vpack.c.bf16 %v3704_v37, %v3704_v37  ;;  %v3290_v50 = vmul.f32 %v3258_v25, %v3098_v15  ;;  %v2005_v51 = vmul.f32 %v1973_v28, %v1616_v2  ;;  %v3480_v12 = vadd.f32 %v3448_v23, %v2291_v36  ;;  %v2248_v42 = vpop.permute.xlu1 %2247 }
 0x1dd   :  { %v11015_v63 = vmul.f32 %v10471_v52, %v10471_v52  ;;  %v3100_v58 = vmul.f32 %v3068_v29, %v10927_v9  ;;  %v1618_v49 = vmul.f32 %v1586_v3, %v1229_v57  ;;  %v3260_v26 = vsel %vm1655_vm4, %v10491_v53, 1.0  ;;  %1065 = vperm.xlu0 %9214, %v939_v59   ;;  %v15190_v53 = vld [vmem:[#allocation27_spill] sm:$0xff] }
 0x1de   :  { %v1975_v55 = vsel %vm1655_vm4, %v10509_v46, 1.0  ;;  %3769 = vst.msk [vmem:[#allocation2 + $0x5c] sm:$0xf] %vm3745_vm7, %v3736_v21  ;;  %v3070_v52 = vsel %vm1266_vm3, %v15189_v10, 1.0  ;;  %v3706_v9 = vsel %vm3678_vm6, %v3480_v12, 0.0  ;;  %v3450_v57 = vmul.f32 %v3405_v56, %v3290_v50  ;;  %v3413_v29 = vpop.permute.xlu0 %3412  ;;  %2744 = vperm.xlu1 %9213, %v939_v59   ;;  %v15194_v59 = vld [vmem:[#allocation28_spill] sm:$0xff] }
 0x1df   :  { %v2293_v19 = vmul.f32 %v2248_v42, %v2005_v51  ;;  %v15191_v15 = vsel %vm10326_vm1, %v15190_v53, 1.0  ;;  %v15192_v46 = vsel %vm10326_vm1, %v15084_v44, 1.0  ;;  %v1588_v2 = vsel %vm1266_vm3, %v15193_v7, 1.0 }
 0x1e0   :  { %v2910_v41 = vmul.f32 %v2878_v33, %v15191_v15  ;;  %v1231_v8 = vmul.f32 %v1199_v60, %v15192_v46  ;;  %v3738_v61 = vpack.c.bf16 %v3706_v9, %v3706_v9  ;;  %v3292_v17 = vmul.f32 %v3260_v26, %v3100_v58  ;;  %v2256_v3 = vpop.permute.xlu1 %2255  ;;  %v15196_v46 = vld [vmem:[#allocation34_spill] sm:$0xff] }
 0x1e1   :  { %v2007_v25 = vmul.f32 %v1975_v55, %v1618_v49  ;;  %v3482_v34 = vadd.f32 %v3450_v57, %v2293_v19  ;;  %v955_v28 = vrot.slane %v11015_v63, %v9535_v45  ;;  %v3262_v22 = vsel %vm1655_vm4, %v10553_v30, 1.0  ;;  %1073 = vperm.xlu0 %9214, %v947_v11   ;;  %v15195_v19 = vld [vmem:[#allocation98_spill] sm:$0xff] }
 0x1e2   :  { %v3102_v0 = vmul.f32 %v3070_v52, %v2910_v41  ;;  %v1977_v44 = vsel %vm1655_vm4, %v10582_v38, 1.0  ;;  %3771 = vst.msk [vmem:[#allocation2 + $0x64] sm:$0xf] %vm3745_vm7, %v3738_v61  ;;  %v11052_v37 = vmul.f32 %v15194_v59, %v15194_v59  ;;  %v1620_v23 = vmul.f32 %v1588_v2, %v1231_v8  ;;  %v3421_v30 = vpop.permute.xlu0 %3420  ;;  %2752 = vperm.xlu1 %9213, %v947_v11  }
 0x1e3   :  { %v3708_v36 = vsel %vm3678_vm6, %v3482_v34, 0.0  ;;  %v3452_v31 = vmul.f32 %v3413_v29, %v3292_v17  ;;  %v2295_v33 = vmul.f32 %v2256_v3, %v2007_v25  ;;  %v11061_v51 = vmul.f32 %v10588_v47, %v10588_v47 }
 0x1e4   :  { %v3740_v24 = vpack.c.bf16 %v3708_v36, %v3708_v36  ;;  %v3294_v60 = vmul.f32 %v3262_v22, %v3102_v0  ;;  %v2009_v21 = vmul.f32 %v1977_v44, %v1620_v23  ;;  %v2264_v56 = vpop.permute.xlu1 %2263  ;;  %v963_v50 = vrot.slane %v11052_v37, %v9535_v45 }
 0x1e5   :  { %v3484_v38 = vadd.f32 %v3452_v31, %v2295_v33  ;;  %1081 = vperm.xlu0 %9214, %v955_v28   ;;  %v971_v10 = vrot.slane %v11061_v51, %v9535_v45  ;;  %v11074_v47 = vmul.f32 %v10648_v6, %v10648_v6  ;;  %v2498_v53 = vsub.s32 7, %v15195_v19 }
 0x1e6   :  { %3773 = vst.msk [vmem:[#allocation2 + $0x6c] sm:$0xf] %vm3745_vm7, %v3740_v24  ;;  %v3454_v58 = vmul.f32 %v3421_v30, %v3294_v60  ;;  %v2297_v49 = vmul.f32 %v2264_v56, %v2009_v21  ;;  %v11065_v26 = vpop.permute.xlu0 %3492  ;;  %2760 = vperm.xlu1 %9213, %v955_v28   ;;  %v11088_v6 = vmul.f32 %v15196_v46, %v15196_v46  ;;  %v2362_v2 = vshra.s32 %v15195_v19, 1 }
 0x1e7   :  { %v3710_v12 = vsel %vm3678_vm6, %v3484_v38, 0.0  ;;  %v979_v41 = vrot.slane %v11074_v47, %v9535_v45  ;;  %v2507_v8 = vshra.s32 %v2498_v53, 1  ;;  %v2399_v61 = vshra.s32 %v15195_v19, 2 }
 0x1e8   :  { %v3742_v11 = vpack.c.bf16 %v3710_v12, %v3710_v12  ;;  %v3486_v55 = vadd.f32 %v3454_v58, %v2297_v49  ;;  %v11068_v42 = vpop.permute.xlu1 %2343  ;;  %v987_v17 = vrot.slane %v11088_v6, %v9535_v45  ;;  %v2520_v25 = vshra.s32 %v2498_v53, 2 }
 0x1e9   :  { %1089 = vperm.xlu0 %9214, %v963_v50   ;;  %v11096_v34 = vmul.f32 %v10712_v14, %v10712_v14  ;;  %v2436_v28 = vshra.s32 %v15195_v19, 3  ;;  %v2533_v0 = vshra.s32 %v2498_v53, 3  ;;  %v11099_v22 = vand.u32 1, %v2507_v8 }
 0x1ea   :  { %3775 = vst.msk [vmem:[#allocation2 + $0x74] sm:$0xf] %vm3745_vm7, %v3742_v11  ;;  %v3712_v52 = vsel %vm3678_vm6, %v3486_v55, 0.0  ;;  %v11078_v57 = vpop.permute.xlu0 %3500  ;;  %2768 = vperm.xlu1 %9213, %v963_v50   ;;  %v2334_v3 = vand.u32 1, %v15195_v19  ;;  %v2499_v59 = vand.u32 1, %v2498_v53  ;;  %v11104_v23 = vand.u32 1, %v2362_v2 }
 0x1eb   :  { %v3744_v9 = vpack.c.bf16 %v3712_v52, %v3712_v52  ;;  %15197 = vst [vmem:[#allocation35_spill] sm:$0xff] %v11099_v22  ;;  %v11106_v36 = vand.u32 1, %v2399_v61  ;;  %v11110_v14 = vand.u32 1, %v2520_v25  ;;  %v995_v33 = vrot.slane %v11096_v34, %v9535_v45 }
 0x1ec   :  { %v11082_v15 = vpop.permute.xlu1 %2351  ;;  %15198 = vst [vmem:[#allocation15_spill] sm:$0xff] %v11104_v23  ;;  %v11116_v24 = vmul.f32 %v10740_v5, %v10740_v5  ;;  %v11118_v30 = vand.u32 1, %v2436_v28  ;;  %v11120_v60 = vand.u32 1, %v2533_v0  ;;  %v11124_v21 = vmul.f32 %v10766_v13, %v10766_v13 }
 0x1ed   :  { %3777 = vst.msk [vmem:[#allocation2 + $0x7c] sm:$0xf] %vm3745_vm7, %v3744_v9  ;;  %1097 = vperm.xlu0 %9214, %v971_v10   ;;  %15199 = vst [vmem:[#allocation36_spill] sm:$0xff] %v11106_v36  ;;  %vm2509_vm8 = vcmp.eq.s32.totalorder %v11099_v22, 1  ;;  %v11129_v56 = vmul.f32 %v10795_v16, %v10795_v16  ;;  %v11133_v5 = vmul.f32 %v10821_v20, %v10821_v20  ;;  %vm11135_vm9 = vcmp.eq.s32.totalorder %v2334_v3, 1 }
 0x1ee   :  { %v3513_v7 = vpop.permute.xlu0 %3512  ;;  %2776 = vperm.xlu1 %9213, %v971_v10   ;;  %15200 = vst [vmem:[#allocation37_spill] sm:$0xff] %v11110_v14  ;;  %15201 = vst [vmem:[#allocation38_spill] sm:$0xff] %v11118_v30  ;;  %v15203_v50 = vmov 0  ;;  %vm11139_vm10 = vcmp.eq.s32.totalorder %v2499_v59, 1  ;;  %v15206_v12 = vmov 0  ;;  %vm2364_vm11 = vcmp.eq.s32.totalorder %v11104_v23, 1 }
 0x1ef   :  { %15202 = vst [vmem:[#allocation39_spill] sm:$0xff] %v11120_v60  ;;  %v15204_v50 = vsel %vm11135_vm9, 4294967295, %v15203_v50  ;;  %v15207_v12 = vsel %vm11139_vm10, 4294967295, %v15206_v12  ;;  %vm14899_vm12 = vcmp.eq.s32.totalorder %v11106_v36, 1  ;;  %vm2522_vm13 = vcmp.eq.s32.totalorder %v11110_v14, 1 }
 0x1f0   :  { %v2375_v29 = vpop.permute.xlu1 %2374  ;;  %15205 = vst [vmem:[#allocation40_spill] sm:$0xff] %v15204_v50  ;;  %15208 = vst [vmem:[#allocation56_spill] sm:$0xff] %v15207_v12  ;;  %v1003_v16 = vrot.slane %v11116_v24, %v9535_v45  ;;  %vm14867_vm14 = vcmp.eq.s32.totalorder %v11118_v30, 1  ;;  %v3609_v20 = vsel %vm2509_vm8, %v3513_v7, 1.0  ;;  %vm2535_vm0 = vcmp.eq.s32.totalorder %v11120_v60, 1 }
 0x1f1   :  { %1105 = vperm.xlu0 %9214, %v979_v41   ;;  %v1011_v58 = vrot.slane %v11124_v21, %v9535_v45  ;;  %v3504_v49 = vsel %vm11135_vm9, %v11065_v26, 1.0  ;;  %v11159_v55 = vrot.slane %v11129_v56, %v9535_v45  ;;  %v11163_v10 = vrot.slane %v11133_v5, %v9535_v45  ;;  %v3862_v60 = vld [vmem:[#allocation2 + $0x2c] sm:$0xf] }
 0x1f2   :  { %v11101_v44 = vpop.permute.xlu0 %3520  ;;  %2784 = vperm.xlu1 %9213, %v979_v41   ;;  %v11167_v52 = vmul.f32 %v10850_v35, %v10850_v35  ;;  %v3605_v9 = vsel %vm11139_vm10, %v11065_v26, 1.0  ;;  %v2355_v19 = vsel %vm11135_vm9, %v11068_v42, 1.0  ;;  %v2513_v53 = vsel %vm2509_vm8, %v2375_v29, 1.0 }
 0x1f3   :  { %vm14866_vm5 = vcmask 7168   ;;  %v2504_v35 = vsel %vm11139_vm10, %v11068_v42, 1.0  ;;  %v3524_v46 = vsel %vm2364_vm11, %v3513_v7, 1.0  ;;  %v3613_v8 = vmul.f32 %v3609_v20, %v3605_v9 }
 0x1f4   :  { %v11108_v31 = vpop.permute.xlu1 %2384  ;;  %v2388_v26 = vsel %vm2364_vm11, %v2375_v29, 1.0  ;;  %v3506_v61 = vsel %vm11135_vm9, %v11078_v57, 1.0  ;;  %v3611_v42 = vsel %vm2509_vm8, %v11101_v44, 1.0  ;;  %v2506_v29 = vsel %vm11139_vm10, %v11082_v15, 1.0 }
 0x1f5   :  { %1113 = vperm.xlu0 %9214, %v987_v17   ;;  %v2517_v25 = vmul.f32 %v2513_v53, %v2504_v35  ;;  %v2515_v28 = vsel %vm2509_vm8, %v11108_v31, 1.0  ;;  %v2392_v59 = vmul.f32 %v2388_v26, %v2355_v19  ;;  %v11462_v30 = vmul.f32 %v11167_v52, %v11167_v52 }
 0x1f6   :  { %v3537_v38 = vpop.permute.xlu0 %3536  ;;  %2792 = vperm.xlu1 %9213, %v987_v17   ;;  %v3607_v17 = vsel %vm11139_vm10, %v11078_v57, 1.0  ;;  %v3528_v57 = vmul.f32 %v3524_v46, %v3504_v49  ;;  %v2519_v49 = vmul.f32 %v2515_v28, %v2506_v29  ;;  %v15209_v28 = vld [vmem:[#allocation11_spill] sm:$0xff] }
 0x1f7   :  { %v3617_v41 = vsel %vm2522_vm13, %v3537_v38, 1.0  ;;  %v3615_v9 = vmul.f32 %v3611_v42, %v3607_v17  ;;  %v3548_v12 = vsel %vm14899_vm12, %v3537_v38, 1.0 }
 0x1f8   :  { %v2412_v13 = vpop.permute.xlu1 %2411  ;;  %v3621_v0 = vmul.f32 %v3617_v41, %v3613_v8  ;;  %v3552_v42 = vmul.f32 %v3548_v12, %v3528_v57 }
 0x1f9   :  { %1121 = vperm.xlu0 %9214, %v995_v33   ;;  %v2526_v7 = vsel %vm2522_vm13, %v2412_v13, 1.0  ;;  %v2425_v46 = vsel %vm14899_vm12, %v2412_v13, 1.0 }
 0x1fa   :  { %v3545_v11 = vpop.permute.xlu0 %3544  ;;  %2800 = vperm.xlu1 %9213, %v995_v33   ;;  %v2530_v53 = vmul.f32 %v2526_v7, %v2517_v25 }
 0x1fb   :  { %v3619_v33 = vsel %vm2522_vm13, %v3545_v11, 1.0  ;;  %v3550_v7 = vsel %vm14899_vm12, %v3545_v11, 1.0 }
 0x1fc   :  { %v2422_v2 = vpop.permute.xlu1 %2421  ;;  %v3623_v38 = vmul.f32 %v3619_v33, %v3615_v9  ;;  %v2357_v33 = vsel %vm11135_vm9, %v11082_v15, 1.0 }
 0x1fd   :  { %1129 = vperm.xlu0 %9214, %v1003_v16   ;;  %v2528_v19 = vsel %vm2522_vm13, %v2422_v2, 1.0 }
 0x1fe   :  { %v3561_v3 = vpop.permute.xlu0 %3560  ;;  %2808 = vperm.xlu1 %9213, %v1003_v16   ;;  %v3526_v16 = vsel %vm2364_vm11, %v11101_v44, 1.0  ;;  %v2390_v44 = vsel %vm2364_vm11, %v11108_v31, 1.0  ;;  %v2532_v29 = vmul.f32 %v2528_v19, %v2519_v49 }
 0x1ff   :  { %v3625_v20 = vsel %vm2535_vm0, %v3561_v3, 1.0  ;;  %v3572_v8 = vsel %vm14867_vm14, %v3561_v3, 1.0  ;;  %v3530_v12 = vmul.f32 %v3526_v16, %v3506_v61  ;;  %v2429_v3 = vmul.f32 %v2425_v46, %v2392_v59 }
 0x200   :  { %v11209_v35 = vmul.f32 %v3625_v20, %v3621_v0  ;;  %v2449_v22 = vpop.permute.xlu1 %2448  ;;  %v3576_v57 = vmul.f32 %v3572_v8, %v3552_v42  ;;  %v2394_v9 = vmul.f32 %v2390_v44, %v2357_v33  ;;  %v1035_v46 = vrot.slane %v11167_v52, %v9535_v45 }
 0x201   :  { %1137 = vperm.xlu0 %9214, %v1011_v58   ;;  %v2539_v41 = vsel %vm2535_vm0, %v2449_v22, 1.0  ;;  %v2462_v25 = vsel %vm14867_vm14, %v2449_v22, 1.0  ;;  %v2427_v22 = vsel %vm14899_vm12, %v2422_v2, 1.0  ;;  %v15210_v2 = vld [vmem:[#allocation17_spill] sm:$0xff]  ;;  %vm3778_vm12 = vcmask 15360  }
 0x202   :  { %3634 = vst.msk [vmem:[#allocation4 + $0x28] sm:$0xff] %vm2493_vm15, %v11209_v35  ;;  %v2543_v26 = vmul.f32 %v2539_v41, %v2530_v53  ;;  %v3569_v17 = vpop.permute.xlu0 %3568  ;;  %2816 = vperm.xlu1 %9213, %v1011_v58   ;;  %v3554_v53 = vmul.f32 %v3550_v7, %v3530_v12  ;;  %v2466_v49 = vmul.f32 %v2462_v25, %v2429_v3 }
 0x203   :  { %v3627_v13 = vsel %vm2535_vm0, %v3569_v17, 1.0  ;;  %v3574_v20 = vsel %vm14867_vm14, %v3569_v17, 1.0  ;;  %v11268_v7 = vmul.f32 %v15168_v40, %v15168_v40  ;;  %v11280_v40 = vmul.f32 %v10933_v54, %v10933_v54 }
 0x204   :  { %2547 = vst.msk [vmem:[#allocation4 + $0x8] sm:$0xff] %vm2493_vm15, %v2543_v26  ;;  %v2551_v0 = vmul.f32 %v2543_v26, %v15209_v28  ;;  %v11235_v58 = vmul.f32 %v3627_v13, %v3623_v38  ;;  %v2459_v31 = vpop.permute.xlu1 %2458  ;;  %v2431_v38 = vmul.f32 %v2427_v22, %v2394_v9  ;;  %v3578_v26 = vmul.f32 %v3574_v20, %v3554_v53  ;;  %v15213_v20 = vld [vmem:[#allocation53_spill] sm:$0xff] }
 0x205   :  { %1145 = vperm.xlu0 %9214, %v11159_v55   ;;  %v2541_v11 = vsel %vm2535_vm0, %v2459_v31, 1.0  ;;  %v2464_v15 = vsel %vm14867_vm14, %v2459_v31, 1.0  ;;  %v1312_v25 = vrot.slane %v11268_v7, %v9535_v45  ;;  %v15211_v31 = vld [vmem:[#allocation29_spill] sm:$0xff]  ;;  %v3040_v54 = vsel %vm1266_vm3, %v15213_v20, 1.0 }
 0x206   :  { %2556 = vst.msk [vmem:[#allocation5 + $0x8] sm:$0xff] %vm14866_vm5, %v2551_v0  ;;  %v2545_v61 = vmul.f32 %v2541_v11, %v2532_v29  ;;  %v3585_v59 = vpop.permute.xlu0 %3584  ;;  %2824 = vperm.xlu1 %9213, %v11159_v55   ;;  %v11260_v55 = vmul.f32 %v10876_v18, %v10876_v18  ;;  %v2468_v42 = vmul.f32 %v2464_v15, %v2431_v38  ;;  %v2848_v12 = vsel %vm877_vm2, %v15211_v31, 1.0  ;;  %v15212_v11 = vld [vmem:[#allocation30_spill] sm:$0xff]  ;;  %v15214_v15 = vld [vmem:[#allocation55_spill] sm:$0xff] }
 0x207   :  { %3636 = vst.msk [vmem:[#allocation4 + $0x38] sm:$0xff] %vm2493_vm15, %v11235_v58  ;;  %v3596_v16 = vmul.f32 %v3585_v59, %v3576_v57  ;;  %v1169_v57 = vsel %vm877_vm2, %v15212_v11, 1.0  ;;  %v1320_v59 = vrot.slane %v11280_v40, %v9535_v45  ;;  %v11299_v9 = vmul.f32 %v10959_v62, %v10959_v62 }
 0x208   :  { %2549 = vst.msk [vmem:[#allocation4 + $0x18] sm:$0xff] %vm2493_vm15, %v2545_v61  ;;  %v2553_v19 = vmul.f32 %v2545_v61, %v15210_v2  ;;  %v2477_v41 = vpop.permute.xlu1 %2476  ;;  %v1304_v13 = vrot.slane %v11260_v55, %v9535_v45  ;;  %v11330_v11 = vmul.f32 %v11015_v63, %v11015_v63  ;;  %vm15220_vm14 = vmmov 0   ;;  %v3860_v2 = vld [vmem:[#allocation2 + $0x24] sm:$0xf] }
 0x209   :  { %1153 = vperm.xlu0 %9214, %v11163_v10   ;;  %3601 = vst.msk [vmem:[#allocation3 + $0x28] sm:$0xff] %vm2493_vm15, %v3596_v16  ;;  %v2490_v8 = vmul.f32 %v2477_v41, %v2466_v49  ;;  %v15215_v41 = vld [vmem:[#allocation91_spill] sm:$0xff]  ;;  %v1621_v52 = vmul.f32 %v11260_v55, %v11260_v55  ;;  %v1623_v23 = vmul.f32 %v11268_v7, %v11268_v7 }
 0x20a   :  { %2558 = vst.msk [vmem:[#allocation5 + $0x18] sm:$0xff] %vm14866_vm5, %v2553_v19  ;;  %v3593_v17 = vpop.permute.xlu0 %3592  ;;  %2832 = vperm.xlu1 %9213, %v11163_v10   ;;  %v1558_v19 = vsel %vm1266_vm3, %v15214_v15, 1.0  ;;  %vm5215_vm5 = vcmask 1043456   ;;  %v1625_v7 = vmul.f32 %v11280_v40, %v11280_v40 }
 0x20b   :  { %2495 = vst.msk [vmem:[#allocation3 + $0x8] sm:$0xff] %vm2493_vm15, %v2490_v8  ;;  %v3598_v44 = vmul.f32 %v3593_v17, %v3578_v26  ;;  %v15216_v17 = vld [vmem:[#allocation92_spill] sm:$0xff]  ;;  %v1693_v14 = vrot.slane %v1621_v52, %v9535_v45  ;;  %v5723_v55 = vsel %vm5215_vm5, %v3862_v60, 0  ;;  %v3798_v60 = vld [vmem:[%s14810_s0 + $0x16] sm:$0x3] }
 0x20c   :  { %v2487_v18 = vpop.permute.xlu1 %2486  ;;  %v1947_v62 = vsel %vm1655_vm4, %v15216_v17, 1.0 }
 0x20d   :  { %1161 = vperm.xlu0 %9214, %v1035_v46   ;;  %3603 = vst.msk [vmem:[#allocation3 + $0x38] sm:$0xff] %vm2493_vm15, %v3598_v44  ;;  %v2492_v29 = vmul.f32 %v2487_v18, %v2468_v42  ;;  %v1328_v44 = vrot.slane %v11299_v9, %v9535_v45  ;;  %v11318_v42 = vmul.f32 %v10986_v27, %v10986_v27 }
 0x20e   :  { %2840 = vperm.xlu1 %9213, %v1035_v46   ;;  %v3232_v46 = vsel %vm1655_vm4, %v15215_v41, 1.0 }
 0x20f   :  { %2497 = vst.msk [vmem:[#allocation3 + $0x18] sm:$0xff] %vm2493_vm15, %v2492_v29  ;;  %v11274_v10 = vpop.permute.xlu0 %684  ;;  %v15217_v29 = vld [vmem:[#allocation32_spill] sm:$0xff] }
 0x211   :  { %1430 = vperm.xlu0 %9214, %v1304_v13   ;;  %v2565_v0 = vpop.permute.xlu1 %2564 }
 0x212   :  { %v2688_v3 = vsel %vm10326_vm1, %v2565_v0, 1.0  ;;  %2912 = vperm.xlu1 %9213, %v1304_v13   ;;  %v15218_v0 = vld [vmem:[#allocation33_spill] sm:$0xff] }
 0x213   :  { %v2880_v33 = vmul.f32 %v2848_v12, %v2688_v3  ;;  %v689_v22 = vpop.permute.xlu0 %688  ;;  %v1336_v3 = vrot.slane %v11318_v42, %v9535_v45 }
 0x214   :  { %v812_v61 = vsel %vm10326_vm1, %v689_v22, 1.0 }
 0x215   :  { %1438 = vperm.xlu0 %9214, %v1312_v25   ;;  %v3072_v53 = vmul.f32 %v3040_v54, %v2880_v33  ;;  %v1201_v16 = vmul.f32 %v1169_v57, %v812_v61  ;;  %v11301_v49 = vpop.permute.xlu1 %2568  ;;  %v1344_v54 = vrot.slane %v11330_v11, %v9535_v45  ;;  %v11342_v61 = vmul.f32 %v11052_v37, %v11052_v37 }
 0x216   :  { %2920 = vperm.xlu1 %9213, %v1312_v25  }
 0x217   :  { %v3264_v38 = vmul.f32 %v3232_v46, %v3072_v53  ;;  %v1590_v8 = vmul.f32 %v1558_v19, %v1201_v16  ;;  %v11309_v26 = vpop.permute.xlu0 %700  ;;  %v1352_v53 = vrot.slane %v11342_v61, %v9535_v45  ;;  %v11353_v16 = vmul.f32 %v11061_v51, %v11061_v51  ;;  %v3788_v19 = vld [vmem:[%s14810_s0 + $0x2] sm:$0x3] }
 0x218   :  { %v11366_v46 = vmul.f32 %v11074_v47, %v11074_v47  ;;  %v3820_v17 = vpack.c.bf16 %v3788_v19, %v3788_v19  ;;  %v11378_v47 = vmul.f32 %v11088_v6, %v11088_v6 }
 0x219   :  { %1446 = vperm.xlu0 %9214, %v1320_v59   ;;  %v1979_v18 = vmul.f32 %v1947_v62, %v1590_v8  ;;  %v11320_v13 = vpop.permute.xlu1 %2576  ;;  %v3424_v25 = vmul.f32 %v15217_v29, %v3264_v38  ;;  %v1360_v41 = vrot.slane %v11353_v16, %v9535_v45 }
 0x21a   :  { %2928 = vperm.xlu1 %9213, %v1320_v59   ;;  %v1368_v29 = vrot.slane %v11366_v46, %v9535_v45  ;;  %v1376_v6 = vrot.slane %v11378_v47, %v9535_v45 }
 0x21b   :  { %v2267_v31 = vmul.f32 %v15218_v0, %v1979_v18  ;;  %v11324_v12 = vpop.permute.xlu0 %708  ;;  %v15219_v18 = vmov 0.0  }
 0x21d   :  { %1454 = vperm.xlu0 %9214, %v1328_v44   ;;  %v3456_v27 = vadd.f32 %v3424_v25, %v2267_v31  ;;  %v11332_v57 = vpop.permute.xlu1 %2584 }
 0x21e   :  { %2936 = vperm.xlu1 %9213, %v1328_v44   ;;  %v3854_v44 = vld [vmem:[#allocation2 + $0xc] sm:$0xf] }
 0x21f   :  { %v3682_v33 = vsel %vm3678_vm6, %v3456_v27, 0.0  ;;  %v11336_v22 = vpop.permute.xlu0 %716  ;;  %v5355_v0 = vsel %vm5215_vm5, %v3854_v44, 0  ;;  %v11396_v27 = vmul.f32 %v11096_v34, %v11096_v34  ;;  %v11424_v44 = vmul.f32 %v11124_v21, %v11124_v21 }
 0x220   :  { %v3714_v20 = vpack.c.bf16 %v3682_v33, %v3682_v33 }
 0x221   :  { %1462 = vperm.xlu0 %9214, %v1336_v3   ;;  %v11344_v63 = vpop.permute.xlu1 %2592  ;;  %v1384_v19 = vrot.slane %v11396_v27, %v9535_v45 }
 0x222   :  { %3747 = vst.msk [vmem:[#allocation2 + $0x4] sm:$0xf] %vm3745_vm7, %v3714_v20  ;;  %2944 = vperm.xlu1 %9213, %v1336_v3   ;;  %v3790_v3 = vld [vmem:[%s14810_s0 + $0x6] sm:$0x3] }
 0x223   :  { %v11347_v59 = vpop.permute.xlu0 %724  ;;  %v3822_v20 = vpack.c.bf16 %v3790_v3, %v3790_v3 }
 0x225   :  { %1470 = vperm.xlu0 %9214, %v1344_v54   ;;  %v11355_v15 = vpop.permute.xlu1 %2600 }
 0x226   :  { %2952 = vperm.xlu1 %9213, %v1344_v54  }
 0x227   :  { %v11357_v37 = vpop.permute.xlu0 %732 }
 0x229   :  { %1478 = vperm.xlu0 %9214, %v1352_v53   ;;  %v11368_v38 = vpop.permute.xlu1 %2608  ;;  %v3852_v51 = vld [vmem:[#allocation2 + $0x4] sm:$0xf] }
 0x22a   :  { %2960 = vperm.xlu1 %9213, %v1352_v53   ;;  %v5263_v8 = vsel %vm5215_vm5, %v3852_v51, 0  ;;  %v3856_v53 = vld [vmem:[#allocation2 + $0x14] sm:$0xf] }
 0x22b   :  { %9019 = vmatpush3.bf16.msra.mxu1 %v5263_v8  ;;  %v5447_v34 = vsel %vm5215_vm5, %v3856_v53, 0  ;;  %v11434_v53 = vmul.f32 %v11129_v56, %v11129_v56 }
 0x22c   :  { %v11371_v62 = vpop.permute.xlu0 %740  ;;  %9030 = vmatprep.subr.bf16.mxu1 %v15219_v18 }
 0x22d   :  { %1486 = vperm.xlu0 %9214, %v1360_v41   ;;  %v11380_v25 = vpop.permute.xlu1 %2616  ;;  %v1408_v56 = vrot.slane %v11434_v53, %v9535_v45 }
 0x22e   :  { %2968 = vperm.xlu1 %9213, %v1360_v41   ;;  %9021 = vmatmul.mubr.msk.bf16.vlgmr.msra.gmra.mrb[0].mxu1 %vm2493_vm15, %v3820_v17  ;;  %v11406_v41 = vmul.f32 %v11116_v24, %v11116_v24  ;;  %v3792_v17 = vld [vmem:[%s14810_s0 + $0xa] sm:$0x3] }
 0x22f   :  { %9031 = vmatpush3.bf16.msra.mxu1 %v5355_v0  ;;  %9032 = vmatprep.mubr.msk.bf16.mxu1 %vm15220_vm14, %v15219_v18  ;;  %v3824_v0 = vpack.c.bf16 %v3792_v17, %v3792_v17  ;;  %v3794_v17 = vld [vmem:[%s14810_s0 + $0xe] sm:$0x3] }
 0x230   :  { %v11384_v31 = vpop.permute.xlu0 %748  ;;  %9042 = vmatprep.subr.bf16.mxu1 %v15219_v18  ;;  %v1392_v24 = vrot.slane %v11406_v41, %v9535_v45 }
 0x231   :  { %1494 = vperm.xlu0 %9214, %v1368_v29   ;;  %v11398_v33 = vpop.permute.xlu1 %2624 }
 0x232   :  { %2976 = vperm.xlu1 %9213, %v1368_v29  }
 0x234   :  { %v11400_v54 = vpop.permute.xlu0 %756 }
 0x235   :  { %1502 = vperm.xlu0 %9214, %v1376_v6   ;;  %v11408_v51 = vpop.permute.xlu1 %2632 }
 0x236   :  { %2984 = vperm.xlu1 %9213, %v1376_v6   ;;  %9033 = vmatmul.mubr.msk.bf16.vlgmr.msra.gmra.mrb[4].mxu1 %vm2493_vm15, %v3822_v20  ;;  %v3858_v6 = vld [vmem:[#allocation2 + $0x1c] sm:$0xf]  ;;  %v1400_v20 = vrot.slane %v11424_v44, %v9535_v45 }
 0x237   :  { %9043 = vmatpush3.bf16.msra.mxu1 %v5447_v34  ;;  %9044 = vmatprep.mubr.msk.bf16.mxu1 %vm15220_vm14, %v15219_v18  ;;  %v5539_v21 = vsel %vm5215_vm5, %v3858_v6, 0  ;;  %v3826_v6 = vpack.c.bf16 %v3794_v17, %v3794_v17  ;;  %v1424_v17 = vrot.slane %v11462_v30, %v9535_v45 }
 0x238   :  { %v11412_v8 = vpop.permute.xlu0 %764  ;;  %9054 = vmatprep.subr.bf16.mxu1 %v15219_v18 }
 0x239   :  { %1510 = vperm.xlu0 %9214, %v1384_v19   ;;  %v11426_v29 = vpop.permute.xlu1 %2640 }
 0x23a   :  { %2992 = vperm.xlu1 %9213, %v1384_v19  }
 0x23c   :  { %v11428_v3 = vpop.permute.xlu0 %772 }
 0x23d   :  { %1518 = vperm.xlu0 %9214, %v1392_v24   ;;  %v11436_v34 = vpop.permute.xlu1 %2648 }
 0x23e   :  { %3000 = vperm.xlu1 %9213, %v1392_v24   ;;  %9045 = vmatmul.mubr.msk.bf16.vlgmr.msra.gmra.mrb[8].mxu1 %vm2493_vm15, %v3824_v0  ;;  %v11452_v24 = vmul.f32 %v11133_v5, %v11133_v5  ;;  %v5631_v5 = vsel %vm5215_vm5, %v3860_v2, 0  ;;  %v3796_v2 = vld [vmem:[%s14810_s0 + $0x12] sm:$0x3] }
 0x23f   :  { %9055 = vmatpush3.bf16.msra.mxu1 %v5539_v21  ;;  %9056 = vmatprep.mubr.msk.bf16.mxu1 %vm15220_vm14, %v15219_v18 }
 0x240   :  { %v11440_v19 = vpop.permute.xlu0 %780  ;;  %9066 = vmatprep.subr.bf16.mxu1 %v15219_v18  ;;  %v1416_v28 = vrot.slane %v11452_v24, %v9535_v45 }
 0x241   :  { %1526 = vperm.xlu0 %9214, %v1400_v20   ;;  %v11454_v0 = vpop.permute.xlu1 %2656 }
 0x242   :  { %15221 = vst [vmem:[#allocation57_spill] sm:$0xff] %v11454_v0  ;;  %3008 = vperm.xlu1 %9213, %v1400_v20  }
 0x244   :  { %v11456_v21 = vpop.permute.xlu0 %788 }
 0x245   :  { %15222 = vst [vmem:[#allocation42_spill] sm:$0xff] %v11456_v21  ;;  %1534 = vperm.xlu0 %9214, %v1408_v56   ;;  %v11464_v36 = vpop.permute.xlu1 %2664 }
 0x246   :  { %15223 = vst [vmem:[#allocation14_spill] sm:$0xff] %v11464_v36  ;;  %3016 = vperm.xlu1 %9213, %v1408_v56   ;;  %9057 = vmatmul.mubr.msk.bf16.vlgmr.msra.gmra.mrb[12].mxu1 %vm2493_vm15, %v3826_v6  ;;  %v3828_v6 = vpack.c.bf16 %v3796_v2, %v3796_v2 }
 0x247   :  { %9067 = vmatpush3.bf16.msra.mxu1 %v5631_v5  ;;  %9068 = vmatprep.mubr.msk.bf16.mxu1 %vm15220_vm14, %v15219_v18 }
 0x248   :  { %v11468_v20 = vpop.permute.xlu0 %796  ;;  %9078 = vmatprep.subr.bf16.mxu1 %v15219_v18 }
 0x249   :  { %15224 = vst [vmem:[#allocation58_spill] sm:$0xff] %v11468_v20  ;;  %1542 = vperm.xlu0 %9214, %v1416_v28   ;;  %v11477_v56 = vpop.permute.xlu1 %2672 }
 0x24a   :  { %15225 = vst [vmem:[#allocation43_spill] sm:$0xff] %v11477_v56  ;;  %3024 = vperm.xlu1 %9213, %v1416_v28   ;;  %v1701_v28 = vrot.slane %v1623_v23, %v9535_v45  ;;  %v1627_v23 = vmul.f32 %v11299_v9, %v11299_v9  ;;  %v1629_v9 = vmul.f32 %v11318_v42, %v11318_v42 }
 0x24c   :  { %v11482_v5 = vpop.permute.xlu0 %804 }
 0x24d   :  { %15226 = vst [vmem:[#allocation60_spill] sm:$0xff] %v11482_v5  ;;  %1550 = vperm.xlu0 %9214, %v1424_v17   ;;  %v11487_v50 = vpop.permute.xlu1 %2680 }
 0x24e   :  { %15227 = vst [vmem:[#allocation93_spill] sm:$0xff] %v11487_v50  ;;  %3032 = vperm.xlu1 %9213, %v1424_v17   ;;  %9069 = vmatmul.mubr.msk.bf16.vlgmr.msra.gmra.mrb[16].mxu1 %vm2493_vm15, %v3828_v6  ;;  %v3830_v17 = vpack.c.bf16 %v3798_v60, %v3798_v60  ;;  %v3864_v6 = vld [vmem:[#allocation2 + $0x34] sm:$0xf] }
 0x24f   :  { %9079 = vmatpush3.bf16.msra.mxu1 %v5723_v55  ;;  %9080 = vmatprep.mubr.msk.bf16.mxu1 %vm15220_vm14, %v15219_v18  ;;  %v1709_v55 = vrot.slane %v1625_v7, %v9535_v45  ;;  %v5815_v40 = vsel %vm5215_vm5, %v3864_v6, 0  ;;  %v3866_v6 = vld [vmem:[#allocation2 + $0x3c] sm:$0xf] }
 0x250   :  { %v11491_v43 = vpop.permute.xlu0 %1041  ;;  %9090 = vmatprep.subr.bf16.mxu1 %v15219_v18  ;;  %v5907_v42 = vsel %vm5215_vm5, %v3866_v6, 0  ;;  %v3868_v6 = vld [vmem:[#allocation2 + $0x44] sm:$0xf] }
 0x251   :  { %1819 = vperm.xlu0 %9214, %v1693_v14   ;;  %v11499_v52 = vpop.permute.xlu1 %2720 }
 0x252   :  { %3104 = vperm.xlu1 %9213, %v1693_v14   ;;  %v1717_v14 = vrot.slane %v1627_v23, %v9535_v45  ;;  %v1631_v23 = vmul.f32 %v11330_v11, %v11330_v11  ;;  %v1633_v11 = vmul.f32 %v11342_v61, %v11342_v61  ;;  %v5999_v61 = vsel %vm5215_vm5, %v3868_v6, 0  ;;  %v3870_v6 = vld [vmem:[#allocation2 + $0x4c] sm:$0xf] }
 0x254   :  { %v11504_v2 = vpop.permute.xlu0 %1049  ;;  %v15314_v20 = vld [vmem:[#allocation60_spill] sm:$0xff] }
 0x255   :  { %1827 = vperm.xlu0 %9214, %v1701_v28   ;;  %v11509_v50 = vpop.permute.xlu1 %2728 }
 0x256   :  { %3112 = vperm.xlu1 %9213, %v1701_v28   ;;  %9081 = vmatmul.mubr.msk.bf16.vlgmr.msra.gmra.mrb[20].mxu1 %vm2493_vm15, %v3830_v17  ;;  %v3800_v28 = vld [vmem:[%s14810_s0 + $0x1a] sm:$0x3] }
 0x257   :  { %9091 = vmatpush3.bf16.msra.mxu1 %v5815_v40  ;;  %9092 = vmatprep.mubr.msk.bf16.mxu1 %vm15220_vm14, %v15219_v18  ;;  %v3832_v60 = vpack.c.bf16 %v3800_v28, %v3800_v28  ;;  %v1725_v40 = vrot.slane %v1629_v9, %v9535_v45 }
 0x258   :  { %v11513_v48 = vpop.permute.xlu0 %1057  ;;  %9102 = vmatprep.subr.bf16.mxu1 %v15219_v18 }
 0x259   :  { %1835 = vperm.xlu0 %9214, %v1709_v55   ;;  %v11521_v7 = vpop.permute.xlu1 %2736 }
 0x25a   :  { %3120 = vperm.xlu1 %9213, %v1709_v55   ;;  %v1733_v55 = vrot.slane %v1631_v23, %v9535_v45  ;;  %v1635_v23 = vmul.f32 %v11353_v16, %v11353_v16 }
 0x25c   :  { %v11526_v17 = vpop.permute.xlu0 %1065  ;;  %v1749_v16 = vrot.slane %v1635_v23, %v9535_v45 }
 0x25d   :  { %1843 = vperm.xlu0 %9214, %v1717_v14   ;;  %v11531_v4 = vpop.permute.xlu1 %2744 }
 0x25e   :  { %3128 = vperm.xlu1 %9213, %v1717_v14   ;;  %9093 = vmatmul.mubr.msk.bf16.vlgmr.msra.gmra.mrb[24].mxu1 %vm2493_vm15, %v3832_v60  ;;  %v3802_v14 = vld [vmem:[%s14810_s0 + $0x1e] sm:$0x3] }
 0x25f   :  { %9103 = vmatpush3.bf16.msra.mxu1 %v5907_v42  ;;  %9104 = vmatprep.mubr.msk.bf16.mxu1 %vm15220_vm14, %v15219_v18  ;;  %v3834_v28 = vpack.c.bf16 %v3802_v14, %v3802_v14  ;;  %v1741_v42 = vrot.slane %v1633_v11, %v9535_v45 }
 0x260   :  { %v11535_v5 = vpop.permute.xlu0 %1073  ;;  %9114 = vmatprep.subr.bf16.mxu1 %v15219_v18 }
 0x261   :  { %15228 = vst [vmem:[#allocation62_spill] sm:$0xff] %v11535_v5  ;;  %1851 = vperm.xlu0 %9214, %v1725_v40   ;;  %v11543_v9 = vpop.permute.xlu1 %2752 }
 0x262   :  { %15229 = vst [vmem:[#allocation16_spill] sm:$0xff] %v11543_v9  ;;  %3136 = vperm.xlu1 %9213, %v1725_v40   ;;  %v3804_v40 = vld [vmem:[%s14810_s0 + $0x22] sm:$0x3] }
 0x263   :  { %v3836_v14 = vpack.c.bf16 %v3804_v40, %v3804_v40  ;;  %v1641_v40 = vmul.f32 %v11396_v27, %v11396_v27 }
 0x264   :  { %v11548_v60 = vpop.permute.xlu0 %1081 }
 0x265   :  { %1859 = vperm.xlu0 %9214, %v1733_v55   ;;  %v11553_v5 = vpop.permute.xlu1 %2760 }
 0x266   :  { %15230 = vst [vmem:[#allocation63_spill] sm:$0xff] %v11553_v5  ;;  %3144 = vperm.xlu1 %9213, %v1733_v55   ;;  %9105 = vmatmul.mubr.msk.bf16.vlgmr.msra.gmra.mrb[28].mxu1 %vm2493_vm15, %v3834_v28  ;;  %v1637_v55 = vmul.f32 %v11366_v46, %v11366_v46  ;;  %v6091_v46 = vsel %vm5215_vm5, %v3870_v6, 0  ;;  %v3872_v6 = vld [vmem:[#allocation2 + $0x54] sm:$0xf] }
 0x267   :  { %9115 = vmatpush3.bf16.msra.mxu1 %v5999_v61  ;;  %9116 = vmatprep.mubr.msk.bf16.mxu1 %vm15220_vm14, %v15219_v18  ;;  %v6183_v27 = vsel %vm5215_vm5, %v3872_v6, 0  ;;  %v3874_v6 = vld [vmem:[#allocation2 + $0x5c] sm:$0xf] }
 0x268   :  { %v11557_v9 = vpop.permute.xlu0 %1089  ;;  %9126 = vmatprep.subr.bf16.mxu1 %v15219_v18  ;;  %v1757_v61 = vrot.slane %v1637_v55, %v9535_v45  ;;  %v15315_v56 = vld [vmem:[#allocation62_spill] sm:$0xff] }
 0x269   :  { %15231 = vst [vmem:[#allocation94_spill] sm:$0xff] %v11557_v9  ;;  %1867 = vperm.xlu0 %9214, %v1741_v42   ;;  %v11568_v11 = vpop.permute.xlu1 %2768  ;;  %v1639_v9 = vmul.f32 %v11378_v47, %v11378_v47 }
 0x26a   :  { %3152 = vperm.xlu1 %9213, %v1741_v42   ;;  %v3806_v42 = vld [vmem:[%s14810_s0 + $0x26] sm:$0x3] }
 0x26b   :  { %v1765_v47 = vrot.slane %v1639_v9, %v9535_v45  ;;  %v3838_v55 = vpack.c.bf16 %v3806_v42, %v3806_v42  ;;  %v1645_v42 = vmul.f32 %v11424_v44, %v11424_v44  ;;  %v6275_v44 = vsel %vm5215_vm5, %v3874_v6, 0  ;;  %v3876_v6 = vld [vmem:[#allocation2 + $0x64] sm:$0xf] }
 0x26c   :  { %v11570_v28 = vpop.permute.xlu0 %1097 }
 0x26d   :  { %1875 = vperm.xlu0 %9214, %v1749_v16   ;;  %v11575_v5 = vpop.permute.xlu1 %2776 }
 0x26e   :  { %15232 = vst [vmem:[#allocation95_spill] sm:$0xff] %v11575_v5  ;;  %3160 = vperm.xlu1 %9213, %v1749_v16   ;;  %9117 = vmatmul.mubr.msk.bf16.vlgmr.msra.gmra.mrb[32].mxu1 %vm2493_vm15, %v3836_v14 }
 0x26f   :  { %9127 = vmatpush3.bf16.msra.mxu1 %v6091_v46  ;;  %9128 = vmatprep.mubr.msk.bf16.mxu1 %vm15220_vm14, %v15219_v18  ;;  %v1773_v46 = vrot.slane %v1641_v40, %v9535_v45 }
 0x270   :  { %v11579_v23 = vpop.permute.xlu0 %1105  ;;  %9138 = vmatprep.subr.bf16.mxu1 %v15219_v18 }
 0x271   :  { %15233 = vst [vmem:[#allocation65_spill] sm:$0xff] %v11579_v23  ;;  %1883 = vperm.xlu0 %9214, %v1757_v61   ;;  %v11590_v16 = vpop.permute.xlu1 %2784  ;;  %v1643_v23 = vmul.f32 %v11406_v41, %v11406_v41 }
 0x272   :  { %15234 = vst [vmem:[#allocation66_spill] sm:$0xff] %v11590_v16  ;;  %3168 = vperm.xlu1 %9213, %v1757_v61   ;;  %v3808_v61 = vld [vmem:[%s14810_s0 + $0x2a] sm:$0x3] }
 0x273   :  { %v1781_v41 = vrot.slane %v1643_v23, %v9535_v45  ;;  %v3840_v40 = vpack.c.bf16 %v3808_v61, %v3808_v61  ;;  %v1649_v61 = vmul.f32 %v11452_v24, %v11452_v24  ;;  %v6367_v24 = vsel %vm5215_vm5, %v3876_v6, 0 }
 0x274   :  { %v11592_v14 = vpop.permute.xlu0 %1113 }
 0x275   :  { %15235 = vst [vmem:[#allocation96_spill] sm:$0xff] %v11592_v14  ;;  %1891 = vperm.xlu0 %9214, %v1765_v47   ;;  %v11597_v5 = vpop.permute.xlu1 %2792 }
 0x276   :  { %15236 = vst [vmem:[#allocation67_spill] sm:$0xff] %v11597_v5  ;;  %3176 = vperm.xlu1 %9213, %v1765_v47   ;;  %9129 = vmatmul.mubr.msk.bf16.vlgmr.msra.gmra.mrb[36].mxu1 %vm2493_vm15, %v3838_v55 }
 0x277   :  { %9139 = vmatpush3.bf16.msra.mxu1 %v6183_v27  ;;  %9140 = vmatprep.mubr.msk.bf16.mxu1 %vm15220_vm14, %v15219_v18  ;;  %v1789_v27 = vrot.slane %v1645_v42, %v9535_v45 }
 0x278   :  { %v11601_v9 = vpop.permute.xlu0 %1121  ;;  %9150 = vmatprep.subr.bf16.mxu1 %v15219_v18 }
 0x279   :  { %15237 = vst [vmem:[#allocation45_spill] sm:$0xff] %v11601_v9  ;;  %1899 = vperm.xlu0 %9214, %v1773_v46   ;;  %v11612_v47 = vpop.permute.xlu1 %2800  ;;  %v1647_v9 = vmul.f32 %v11434_v53, %v11434_v53 }
 0x27a   :  { %15238 = vst [vmem:[#allocation18_spill] sm:$0xff] %v11612_v47  ;;  %3184 = vperm.xlu1 %9213, %v1773_v46   ;;  %v3810_v46 = vld [vmem:[%s14810_s0 + $0x2e] sm:$0x3] }
 0x27b   :  { %v1797_v53 = vrot.slane %v1647_v9, %v9535_v45  ;;  %v3842_v42 = vpack.c.bf16 %v3810_v46, %v3810_v46 }
 0x27c   :  { %v11614_v55 = vpop.permute.xlu0 %1129 }
 0x27d   :  { %15239 = vst [vmem:[#allocation68_spill] sm:$0xff] %v11614_v55  ;;  %1907 = vperm.xlu0 %9214, %v1781_v41   ;;  %v11619_v5 = vpop.permute.xlu1 %2808 }
 0x27e   :  { %15240 = vst [vmem:[#allocation97_spill] sm:$0xff] %v11619_v5  ;;  %3192 = vperm.xlu1 %9213, %v1781_v41   ;;  %9141 = vmatmul.mubr.msk.bf16.vlgmr.msra.gmra.mrb[40].mxu1 %vm2493_vm15, %v3840_v40 }
 0x27f   :  { %9151 = vmatpush3.bf16.msra.mxu1 %v6275_v44  ;;  %9152 = vmatprep.mubr.msk.bf16.mxu1 %vm15220_vm14, %v15219_v18  ;;  %v1805_v44 = vrot.slane %v1649_v61, %v9535_v45 }
 0x280   :  { %v11623_v23 = vpop.permute.xlu0 %1137  ;;  %9162 = vmatprep.subr.bf16.mxu1 %v15219_v18 }
 0x281   :  { %15241 = vst [vmem:[#allocation70_spill] sm:$0xff] %v11623_v23  ;;  %1915 = vperm.xlu0 %9214, %v1789_v27   ;;  %v11634_v41 = vpop.permute.xlu1 %2816  ;;  %v1651_v23 = vmul.f32 %v11462_v30, %v11462_v30  ;;  %v15246_v30 = vld [vmem:[#allocation44_spill] sm:$0xff] }
 0x282   :  { %15242 = vst [vmem:[#allocation71_spill] sm:$0xff] %v11634_v41  ;;  %3200 = vperm.xlu1 %9213, %v1789_v27   ;;  %v146_v46 = vrot.slane %v15246_v30, %v9527_v39 }
 0x283   :  { %v1813_v27 = vrot.slane %v1651_v23, %v9535_v45 }
 0x284   :  { %v11636_v40 = vpop.permute.xlu0 %1145  ;;  %v168_v23 = vcombine.high %v146_v46, %v146_v46 }
 0x285   :  { %15243 = vst [vmem:[#allocation99_spill] sm:$0xff] %v11636_v40  ;;  %1923 = vperm.xlu0 %9214, %v1797_v53   ;;  %v11641_v5 = vpop.permute.xlu1 %2824 }
 0x286   :  { %15244 = vst [vmem:[#allocation72_spill] sm:$0xff] %v11641_v5  ;;  %3208 = vperm.xlu1 %9213, %v1797_v53   ;;  %9153 = vmatmul.mubr.msk.bf16.vlgmr.msra.gmra.mrb[44].mxu1 %vm2493_vm15, %v3842_v42  ;;  %v3812_v53 = vld [vmem:[%s14810_s0 + $0x32] sm:$0x3] }
 0x287   :  { %9163 = vmatpush3.bf16.msra.mxu1 %v6367_v24  ;;  %9164 = vmatprep.mubr.msk.bf16.mxu1 %vm15220_vm14, %v15219_v18  ;;  %v3844_v42 = vpack.c.bf16 %v3812_v53, %v3812_v53  ;;  %v3878_v24 = vld [vmem:[#allocation2 + $0x6c] sm:$0xf] }
 0x288   :  { %v11645_v9 = vpop.permute.xlu0 %1153  ;;  %9174 = vmatprep.subr.bf16.mxu1 %v15219_v18  ;;  %v6459_v30 = vsel %vm5215_vm5, %v3878_v24, 0 }
 0x289   :  { %15245 = vst [vmem:[#allocation46_spill] sm:$0xff] %v11645_v9  ;;  %1931 = vperm.xlu0 %9214, %v1805_v44   ;;  %v11653_v61 = vpop.permute.xlu1 %2832  ;;  %v2013_v9 = vrot.slane %v146_v46, %v9535_v45  ;;  %v15250_v46 = vld [vmem:[#allocation49_spill] sm:$0xff] }
 0x28a   :  { %15247 = vst [vmem:[#allocation19_spill] sm:$0xff] %v11653_v61  ;;  %3216 = vperm.xlu1 %9213, %v1805_v44   ;;  %v2021_v44 = vrot.slane %v168_v23, %v9535_v45  ;;  %v153_v53 = vrot.slane %v15250_v46, %v9527_v39 }
 0x28c   :  { %v11658_v6 = vpop.permute.xlu0 %1161  ;;  %v169_v23 = vcombine.high %v153_v53, %v153_v53 }
 0x28d   :  { %15248 = vst [vmem:[#allocation73_spill] sm:$0xff] %v11658_v6  ;;  %1939 = vperm.xlu0 %9214, %v1813_v27   ;;  %v11661_v5 = vpop.permute.xlu1 %2840  ;;  %v2029_v6 = vrot.slane %v153_v53, %v9535_v45  ;;  %v15251_v53 = vld [vmem:[#allocation54_spill] sm:$0xff] }
 0x28e   :  { %15249 = vst [vmem:[#allocation101_spill] sm:$0xff] %v11661_v5  ;;  %3224 = vperm.xlu1 %9213, %v1813_v27   ;;  %9165 = vmatmul.mubr.msk.bf16.vlgmr.msra.gmra.mrb[48].mxu1 %vm2493_vm15, %v3844_v42  ;;  %v3814_v27 = vld [vmem:[%s14810_s0 + $0x36] sm:$0x3] }
 0x28f   :  { %9175 = vmatpush3.bf16.msra.mxu1 %v6459_v30  ;;  %9176 = vmatprep.mubr.msk.bf16.mxu1 %vm15220_vm14, %v15219_v18  ;;  %v3846_v42 = vpack.c.bf16 %v3814_v27, %v3814_v27  ;;  %v3880_v30 = vld [vmem:[#allocation2 + $0x74] sm:$0xf]  ;;  %v195_v27 = vrot.slane %v15251_v53, %v9527_v39 }
 0x290   :  { %v11665_v61 = vpop.permute.xlu0 %1430  ;;  %9186 = vmatprep.subr.bf16.mxu1 %v15219_v18  ;;  %v6551_v46 = vsel %vm5215_vm5, %v3880_v30, 0 }
 0x291   :  { %2139 = vperm.xlu0 %9214, %v2013_v9   ;;  %v11673_v5 = vpop.permute.xlu1 %2912  ;;  %v2045_v47 = vrot.slane %v195_v27, %v9535_v45 }
 0x292   :  { %3296 = vperm.xlu1 %9213, %v2013_v9   ;;  %v2037_v9 = vrot.slane %v169_v23, %v9535_v45  ;;  %v217_v23 = vcombine.high %v195_v27, %v195_v27 }
 0x294   :  { %v11678_v24 = vpop.permute.xlu0 %1438 }
 0x295   :  { %2147 = vperm.xlu0 %9214, %v2021_v44   ;;  %v11681_v40 = vpop.permute.xlu1 %2920 }
 0x296   :  { %3304 = vperm.xlu1 %9213, %v2021_v44   ;;  %9177 = vmatmul.mubr.msk.bf16.vlgmr.msra.gmra.mrb[52].mxu1 %vm2493_vm15, %v3846_v42  ;;  %v3816_v44 = vld [vmem:[%s14810_s0 + $0x3a] sm:$0x3] }
 0x297   :  { %9187 = vmatpush3.bf16.msra.mxu1 %v6551_v46  ;;  %9188 = vmatprep.mubr.msk.bf16.mxu1 %vm15220_vm14, %v15219_v18  ;;  %v3848_v42 = vpack.c.bf16 %v3816_v44, %v3816_v44  ;;  %v3882_v46 = vld [vmem:[#allocation2 + $0x7c] sm:$0xf]  ;;  %v15256_v44 = vld [vmem:[#allocation59_spill] sm:$0xff] }
 0x298   :  { %v11685_v41 = vpop.permute.xlu0 %1446  ;;  %9198 = vmatprep.subr.bf16.mxu1 %v15219_v18  ;;  %v6643_v53 = vsel %vm5215_vm5, %v3882_v46, 0 }
 0x299   :  { %2155 = vperm.xlu0 %9214, %v2029_v6   ;;  %v11693_v55 = vpop.permute.xlu1 %2928 }
 0x29a   :  { %15252 = vst [vmem:[#allocation75_spill] sm:$0xff] %v11693_v55  ;;  %3312 = vperm.xlu1 %9213, %v2029_v6   ;;  %v2053_v6 = vrot.slane %v217_v23, %v9535_v45 }
 0x29c   :  { %v11698_v30 = vpop.permute.xlu0 %1454 }
 0x29d   :  { %15253 = vst [vmem:[#allocation23_spill] sm:$0xff] %v11698_v30  ;;  %2163 = vperm.xlu0 %9214, %v2037_v9   ;;  %v11701_v14 = vpop.permute.xlu1 %2936  ;;  %v202_v30 = vrot.slane %v15256_v44, %v9527_v39 }
 0x29e   :  { %15254 = vst [vmem:[#allocation76_spill] sm:$0xff] %v11701_v14  ;;  %3320 = vperm.xlu1 %9213, %v2037_v9   ;;  %9189 = vmatmul.mubr.msk.bf16.vlgmr.msra.gmra.mrb[56].mxu1 %vm2493_vm15, %v3848_v42 }
 0x29f   :  { %9199 = vmatpush3.bf16.msra.mxu1 %v6643_v53  ;;  %9200 = vmatprep.mubr.msk.bf16.mxu1 %vm15220_vm14, %v15219_v18  ;;  %v2061_v42 = vrot.slane %v202_v30, %v9535_v45  ;;  %v218_v46 = vcombine.high %v202_v30, %v202_v30  ;;  %v15261_v18 = vld [vmem:[#allocation64_spill] sm:$0xff] }
 0x2a0   :  { %v11705_v16 = vpop.permute.xlu0 %1462  ;;  %v244_v44 = vrot.slane %v15261_v18, %v9527_v39 }
 0x2a1   :  { %15255 = vst [vmem:[#allocation102_spill] sm:$0xff] %v11705_v16  ;;  %2171 = vperm.xlu0 %9214, %v2045_v47   ;;  %v11712_v27 = vpop.permute.xlu1 %2944  ;;  %v2069_v23 = vrot.slane %v218_v46, %v9535_v45 }
 0x2a2   :  { %15257 = vst [vmem:[#allocation103_spill] sm:$0xff] %v11712_v27  ;;  %3328 = vperm.xlu1 %9213, %v2045_v47   ;;  %v266_v30 = vcombine.high %v244_v44, %v244_v44 }
 0x2a4   :  { %v11714_v9 = vpop.permute.xlu0 %1470  ;;  %v2085_v46 = vrot.slane %v266_v30, %v9535_v45 }
 0x2a5   :  { %15258 = vst [vmem:[#allocation77_spill] sm:$0xff] %v11714_v9  ;;  %2179 = vperm.xlu0 %9214, %v2053_v6   ;;  %v11717_v53 = vpop.permute.xlu1 %2952  ;;  %v2077_v9 = vrot.slane %v244_v44, %v9535_v45 }
 0x2a6   :  { %15259 = vst [vmem:[#allocation47_spill] sm:$0xff] %v11717_v53  ;;  %3336 = vperm.xlu1 %9213, %v2053_v6  }
 0x2a8   :  { %v11719_v16 = vpop.permute.xlu0 %1478 }
 0x2a9   :  { %15260 = vst [vmem:[#allocation12_spill] sm:$0xff] %v11719_v16  ;;  %2187 = vperm.xlu0 %9214, %v2061_v42   ;;  %v11724_v14 = vpop.permute.xlu1 %2960  ;;  %v15266_v16 = vld [vmem:[#allocation69_spill] sm:$0xff] }
 0x2aa   :  { %15262 = vst [vmem:[#allocation78_spill] sm:$0xff] %v11724_v14  ;;  %3344 = vperm.xlu1 %9213, %v2061_v42   ;;  %v251_v18 = vrot.slane %v15266_v16, %v9527_v39 }
 0x2ac   :  { %v11726_v47 = vpop.permute.xlu0 %1486  ;;  %v267_v44 = vcombine.high %v251_v18, %v251_v18 }
 0x2ad   :  { %15263 = vst [vmem:[#allocation104_spill] sm:$0xff] %v11726_v47  ;;  %2195 = vperm.xlu0 %9214, %v2069_v23   ;;  %v11729_v27 = vpop.permute.xlu1 %2968  ;;  %v2093_v47 = vrot.slane %v251_v18, %v9535_v45 }
 0x2ae   :  { %15264 = vst [vmem:[#allocation105_spill] sm:$0xff] %v11729_v27  ;;  %3352 = vperm.xlu1 %9213, %v2069_v23   ;;  %v2101_v30 = vrot.slane %v267_v44, %v9535_v45 }
 0x2b0   :  { %v11731_v6 = vpop.permute.xlu0 %1494 }
 0x2b1   :  { %15265 = vst [vmem:[#allocation80_spill] sm:$0xff] %v11731_v6  ;;  %2203 = vperm.xlu0 %9214, %v2077_v9   ;;  %v11736_v53 = vpop.permute.xlu1 %2976  ;;  %v15271_v6 = vld [vmem:[#allocation74_spill] sm:$0xff] }
 0x2b2   :  { %15267 = vst [vmem:[#allocation24_spill] sm:$0xff] %v11736_v53  ;;  %3360 = vperm.xlu1 %9213, %v2077_v9   ;;  %v293_v16 = vrot.slane %v15271_v6, %v9527_v39 }
 0x2b4   :  { %v11738_v42 = vpop.permute.xlu0 %1502  ;;  %v315_v18 = vcombine.high %v293_v16, %v293_v16 }
 0x2b5   :  { %15268 = vst [vmem:[#allocation48_spill] sm:$0xff] %v11738_v42  ;;  %2211 = vperm.xlu0 %9214, %v2085_v46   ;;  %v11741_v14 = vpop.permute.xlu1 %2984  ;;  %v2109_v42 = vrot.slane %v293_v16, %v9535_v45 }
 0x2b6   :  { %15269 = vst [vmem:[#allocation81_spill] sm:$0xff] %v11741_v14  ;;  %3368 = vperm.xlu1 %9213, %v2085_v46   ;;  %v2117_v44 = vrot.slane %v315_v18, %v9535_v45 }
 0x2b8   :  { %v11743_v23 = vpop.permute.xlu0 %1510 }
 0x2b9   :  { %15270 = vst [vmem:[#allocation106_spill] sm:$0xff] %v11743_v23  ;;  %2219 = vperm.xlu0 %9214, %v2093_v47   ;;  %v11748_v27 = vpop.permute.xlu1 %2992  ;;  %v15276_v23 = vld [vmem:[#allocation79_spill] sm:$0xff] }
 0x2ba   :  { %15272 = vst [vmem:[#allocation107_spill] sm:$0xff] %v11748_v27  ;;  %3376 = vperm.xlu1 %9213, %v2093_v47   ;;  %v300_v6 = vrot.slane %v15276_v23, %v9527_v39 }
 0x2bc   :  { %v11750_v9 = vpop.permute.xlu0 %1518  ;;  %v316_v16 = vcombine.high %v300_v6, %v300_v6 }
 0x2bd   :  { %15273 = vst [vmem:[#allocation82_spill] sm:$0xff] %v11750_v9  ;;  %2227 = vperm.xlu0 %9214, %v2101_v30   ;;  %v11753_v53 = vpop.permute.xlu1 %3000  ;;  %v2125_v9 = vrot.slane %v300_v6, %v9535_v45  ;;  %v15284_v6 = vld [vmem:[#allocation9_spill] sm:$0xff] }
 0x2be   :  { %15274 = vst [vmem:[#allocation25_spill] sm:$0xff] %v11753_v53  ;;  %3384 = vperm.xlu1 %9213, %v2101_v30   ;;  %v2133_v18 = vrot.slane %v316_v16, %v9535_v45  ;;  %v15286_v16 = vld [vmem:[#allocation13_spill] sm:$0xff] }
 0x2c0   :  { %v11755_v46 = vpop.permute.xlu0 %1526 }
 0x2c1   :  { %15275 = vst [vmem:[#allocation109_spill] sm:$0xff] %v11755_v46  ;;  %2235 = vperm.xlu0 %9214, %v2109_v42   ;;  %v11760_v14 = vpop.permute.xlu1 %3008 }
 0x2c2   :  { %15277 = vst [vmem:[#allocation108_spill] sm:$0xff] %v11760_v14  ;;  %3392 = vperm.xlu1 %9213, %v2109_v42  }
 0x2c4   :  { %v11762_v47 = vpop.permute.xlu0 %1534 }
 0x2c5   :  { %15278 = vst [vmem:[#allocation83_spill] sm:$0xff] %v11762_v47  ;;  %2243 = vperm.xlu0 %9214, %v2117_v44   ;;  %v11765_v27 = vpop.permute.xlu1 %3016 }
 0x2c6   :  { %15279 = vst [vmem:[#allocation111_spill] sm:$0xff] %v11765_v27  ;;  %3400 = vperm.xlu1 %9213, %v2117_v44  }
 0x2c8   :  { %v11767_v30 = vpop.permute.xlu0 %1542 }
 0x2c9   :  { %15280 = vst [vmem:[#allocation112_spill] sm:$0xff] %v11767_v30  ;;  %2251 = vperm.xlu0 %9214, %v2125_v9   ;;  %v11770_v46 = vpop.permute.xlu1 %3024 }
 0x2ca   :  { %15281 = vst [vmem:[#allocation84_spill] sm:$0xff] %v11770_v46  ;;  %3408 = vperm.xlu1 %9213, %v2125_v9   ;;  %v2358_v9 = vmul.f32 %v15284_v6, %v15284_v6 }
 0x2cc   :  { %v11772_v23 = vpop.permute.xlu0 %1550  ;;  %v2395_v30 = vmul.f32 %v2358_v9, %v2358_v9 }
 0x2cd   :  { %15282 = vst [vmem:[#allocation50_spill] sm:$0xff] %v11772_v23  ;;  %2259 = vperm.xlu0 %9214, %v2133_v18   ;;  %v11774_v42 = vpop.permute.xlu1 %3032 }
 0x2ce   :  { %15283 = vst [vmem:[#allocation113_spill] sm:$0xff] %v11774_v42  ;;  %3416 = vperm.xlu1 %9213, %v2133_v18   ;;  %v2360_v42 = vmul.f32 %v15286_v16, %v15286_v16 }
 0x2d0   :  { %v11776_v39 = vpop.permute.xlu0 %1819  ;;  %v2397_v53 = vmul.f32 %v2360_v42, %v2360_v42 }
 0x2d1   :  { %2339 = vperm.xlu0 %9214, %v15284_v6   ;;  %v11779_v27 = vpop.permute.xlu1 %3104 }
 0x2d2   :  { %3488 = vperm.xlu1 %9213, %v15284_v6  }
 0x2d4   :  { %v11782_v44 = vpop.permute.xlu0 %1827 }
 0x2d5   :  { %15285 = vst [vmem:[#allocation85_spill] sm:$0xff] %v11782_v44  ;;  %2347 = vperm.xlu0 %9214, %v15286_v16   ;;  %v11787_v45 = vpop.permute.xlu1 %3112 }
 0x2d6   :  { %15287 = vst [vmem:[#allocation114_spill] sm:$0xff] %v11787_v45  ;;  %3496 = vperm.xlu1 %9213, %v15286_v16   ;;  %v2432_v45 = vmul.f32 %v2395_v30, %v2395_v30 }
 0x2d8   :  { %v11790_v18 = vpop.permute.xlu0 %1835 }
 0x2d9   :  { %15288 = vst [vmem:[#allocation115_spill] sm:$0xff] %v11790_v18  ;;  %2369 = vperm.xlu0 %9214, %v2358_v9   ;;  %v11794_v23 = vpop.permute.xlu1 %3120 }
 0x2da   :  { %15289 = vst [vmem:[#allocation86_spill] sm:$0xff] %v11794_v23  ;;  %3508 = vperm.xlu1 %9213, %v2358_v9   ;;  %v2434_v9 = vmul.f32 %v2397_v53, %v2397_v53 }
 0x2dc   :  { %v11796_v46 = vpop.permute.xlu0 %1843 }
 0x2dd   :  { %15290 = vst [vmem:[#allocation26_spill] sm:$0xff] %v11796_v46  ;;  %2379 = vperm.xlu0 %9214, %v2360_v42   ;;  %v11798_v47 = vpop.permute.xlu1 %3128 }
 0x2de   :  { %15291 = vst [vmem:[#allocation116_spill] sm:$0xff] %v11798_v47  ;;  %3516 = vperm.xlu1 %9213, %v2360_v42   ;;  %v15298_v42 = vld [vmem:[#allocation41_spill] sm:$0xff] }
 0x2e0   :  { %v11800_v14 = vpop.permute.xlu0 %1851 }
 0x2e1   :  { %15292 = vst [vmem:[#allocation87_spill] sm:$0xff] %v11800_v14  ;;  %2406 = vperm.xlu0 %9214, %v2395_v30   ;;  %v11802_v55 = vpop.permute.xlu1 %3136 }
 0x2e2   :  { %15293 = vst [vmem:[#allocation22_spill] sm:$0xff] %v11802_v55  ;;  %3532 = vperm.xlu1 %9213, %v2395_v30   ;;  %v2330_v55 = vmul.f32 %v15298_v42, %v15284_v6  ;;  %v15304_v42 = vmov 0   ;;  %v15308_v6 = vld [vmem:[#allocation21_spill] sm:$0xff] }
 0x2e4   :  { %v11804_v18 = vpop.permute.xlu0 %1859 }
 0x2e5   :  { %15294 = vst [vmem:[#allocation31_spill] sm:$0xff] %v11804_v18  ;;  %2416 = vperm.xlu0 %9214, %v2397_v53   ;;  %v11806_v23 = vpop.permute.xlu1 %3144 }
 0x2e6   :  { %15295 = vst [vmem:[#allocation88_spill] sm:$0xff] %v11806_v23  ;;  %3540 = vperm.xlu1 %9213, %v2397_v53   ;;  %v15299_v23 = vld [vmem:[#allocation61_spill] sm:$0xff] }
 0x2e8   :  { %v11808_v46 = vpop.permute.xlu0 %1867 }
 0x2e9   :  { %15296 = vst [vmem:[#allocation51_spill] sm:$0xff] %v11808_v46  ;;  %2443 = vperm.xlu0 %9214, %v2432_v45   ;;  %v11810_v47 = vpop.permute.xlu1 %3152  ;;  %v2332_v46 = vmul.f32 %v15299_v23, %v15286_v16  ;;  %v15307_v16 = vld [vmem:[#allocation20_spill] sm:$0xff] }
 0x2ea   :  { %3556 = vperm.xlu1 %9213, %v2432_v45  }
 0x2ec   :  { %v11812_v14 = vpop.permute.xlu0 %1875 }
 0x2ed   :  { %15297 = vst [vmem:[#allocation52_spill] sm:$0xff] %v11812_v14  ;;  %2453 = vperm.xlu0 %9214, %v2434_v9   ;;  %v11816_v44 = vpop.permute.xlu1 %3160 }
 0x2ee   :  { %3564 = vperm.xlu1 %9213, %v2434_v9  }
 0x2f0   :  { %v11818_v30 = vpop.permute.xlu0 %1883 }
 0x2f1   :  { %2471 = vperm.xlu0 %9214, %v2330_v55   ;;  %v11822_v18 = vpop.permute.xlu1 %3168 }
 0x2f2   :  { %3580 = vperm.xlu1 %9213, %v2330_v55  }
 0x2f4   :  { %v11824_v53 = vpop.permute.xlu0 %1891 }
 0x2f5   :  { %15300 = vst [vmem:[#allocation89_spill] sm:$0xff] %v11824_v53  ;;  %2481 = vperm.xlu0 %9214, %v2332_v46   ;;  %v11826_v45 = vpop.permute.xlu1 %3176 }
 0x2f6   :  { %15301 = vst [vmem:[#allocation27_spill] sm:$0xff] %v11826_v45  ;;  %3588 = vperm.xlu1 %9213, %v2332_v46   ;;  %v2687_v46 = vsel %vm10326_vm1, %v15307_v16, 1.0  ;;  %v2691_v16 = vsel %vm10326_vm1, %v11320_v13, 1.0  ;;  %v821_v13 = vsel %vm10326_vm1, %v11347_v59, 1.0  ;;  %v2701_v59 = vsel %vm10326_vm1, %v11380_v25, 1.0 }
 0x2f7   :  { %v2851_v25 = vsel %vm877_vm2, %v11521_v7, 1.0  ;;  %v1176_v7 = vsel %vm877_vm2, %v15315_v56, 1.0  ;;  %v15317_v56 = vld [vmem:[#allocation63_spill] sm:$0xff] }
 0x2f8   :  { %v11828_v14 = vpop.permute.xlu0 %1899 }
 0x2f9   :  { %15302 = vst [vmem:[#allocation90_spill] sm:$0xff] %v11828_v14  ;;  %3643 = vrot.lane.b32.xlu0 %v11209_v35, %s9455_s27  ;;  %v11832_v9 = vpop.permute.xlu1 %3184  ;;  %v813_v14 = vsel %vm10326_vm1, %v15308_v6, 1.0  ;;  %v811_v35 = vsel %vm10326_vm1, %v11274_v10, 1.0  ;;  %v817_v6 = vsel %vm10326_vm1, %v11324_v12, 1.0  ;;  %v2693_v10 = vsel %vm10326_vm1, %v11332_v57, 1.0 }
 0x2fa   :  { %15303 = vst [vmem:[#allocation28_spill] sm:$0xff] %v11832_v9  ;;  %9215 = vset.pattern.permute.xlu1 %v15304_v42  ;;  %v2689_v42 = vsel %vm10326_vm1, %v11301_v49, 1.0  ;;  %v819_v49 = vsel %vm10326_vm1, %v11336_v22, 1.0  ;;  %v2697_v12 = vsel %vm10326_vm1, %v11355_v15, 1.0  ;;  %v823_v57 = vsel %vm10326_vm1, %v11357_v37, 1.0 }
 0x2fb   :  { %v2699_v22 = vsel %vm10326_vm1, %v11368_v38, 1.0  ;;  %v1168_v38 = vsel %vm877_vm2, %v11491_v43, 1.0  ;;  %v1170_v15 = vsel %vm877_vm2, %v11504_v2, 1.0  ;;  %v2849_v37 = vsel %vm877_vm2, %v11509_v50, 1.0 }
 0x2fc   :  { %v11835_v23 = vpop.permute.xlu0 %1907  ;;  %v1172_v43 = vsel %vm877_vm2, %v11513_v48, 1.0  ;;  %v1174_v2 = vsel %vm877_vm2, %v11526_v17, 1.0  ;;  %v2853_v50 = vsel %vm877_vm2, %v11531_v4, 1.0  ;;  %v841_v48 = vsel %vm10326_vm1, %v15314_v20, 1.0  ;;  %v15316_v17 = vld [vmem:[#allocation16_spill] sm:$0xff] }
 0x2fd   :  { %15305 = vst [vmem:[#allocation98_spill] sm:$0xff] %v11835_v23  ;;  %3647 = vrot.lane.b32.xlu0 %v11235_v58, %s9455_s27  ;;  %v11839_v55 = vpop.permute.xlu1 %3192  ;;  %v815_v58 = vsel %vm10326_vm1, %v11309_v26, 1.0  ;;  %v2695_v26 = vsel %vm10326_vm1, %v11344_v63, 1.0  ;;  %v825_v63 = vsel %vm10326_vm1, %v11371_v62, 1.0  ;;  %v2847_v62 = vsel %vm877_vm2, %v11499_v52, 1.0 }
 0x2fe   :  { %15306 = vst [vmem:[#allocation34_spill] sm:$0xff] %v11839_v55  ;;  %v1200_v36 = vmul.f32 %v1168_v38, %v811_v35  ;;  %v2879_v52 = vmul.f32 %v2847_v62, %v2687_v46  ;;  %v1202_v23 = vmul.f32 %v1170_v15, %v813_v14  ;;  %v2881_v9 = vmul.f32 %v2849_v37, %v2689_v42  ;;  %v15319_v15 = vld [vmem:[#allocation94_spill] sm:$0xff]  ;;  %v15320_v38 = vld [vmem:[#allocation95_spill] sm:$0xff] }
 0x2ff   :  { %v1204_v21 = vmul.f32 %v1172_v43, %v815_v58  ;;  %v2855_v0 = vsel %vm877_vm2, %v15316_v17, 1.0  ;;  %v11976_v45 = vmul.f32 %v1174_v2, %v817_v6  ;;  %v11978_v53 = vmul.f32 %v2853_v50, %v2693_v10 }
 0x300   :  { %v11859_v55 = vpop.permute.xlu0 %1915  ;;  %v1178_v46 = vsel %vm877_vm2, %v11548_v60, 1.0  ;;  %v11983_v35 = vmul.f32 %v1176_v7, %v819_v49  ;;  %v2857_v14 = vsel %vm877_vm2, %v15317_v56, 1.0  ;;  %v1557_v58 = vsel %vm1266_vm3, %v11665_v61, 1.0  ;;  %v15324_v56 = vld [vmem:[#allocation114_spill] sm:$0xff] }
 0x301   :  { %15309 = vst [vmem:[#allocation29_spill] sm:$0xff] %v11859_v55  ;;  %v11885_v55 = vpop.permute.xlu1 %3200  ;;  %v11996_v10 = vmul.f32 %v2855_v0, %v2695_v26  ;;  %v1180_v60 = vsel %vm877_vm2, %v15319_v15, 1.0  ;;  %v2859_v49 = vsel %vm877_vm2, %v11568_v11, 1.0  ;;  %v1182_v61 = vsel %vm877_vm2, %v11570_v28, 1.0 }
 0x302   :  { %15310 = vst [vmem:[#allocation30_spill] sm:$0xff] %v11885_v55  ;;  %v12007_v37 = vmul.f32 %v1178_v46, %v821_v13  ;;  %v1946_v26 = vsel %vm1655_vm4, %v11776_v39, 1.0  ;;  %v3231_v62 = vsel %vm1655_vm4, %v11779_v27, 1.0  ;;  %v12020_v11 = vmul.f32 %v2857_v14, %v2697_v12  ;;  %v15322_v12 = vld [vmem:[#allocation65_spill] sm:$0xff] }
 0x303   :  { %v1589_v43 = vmul.f32 %v1557_v58, %v1200_v36  ;;  %v1559_v13 = vsel %vm1266_vm3, %v11678_v24, 1.0  ;;  %v12025_v2 = vmul.f32 %v1180_v60, %v823_v57  ;;  %v12027_v50 = vmul.f32 %v2859_v49, %v2699_v22  ;;  %v15323_v22 = vld [vmem:[#allocation85_spill] sm:$0xff]  ;;  %v15325_v58 = vld [vmem:[#allocation75_spill] sm:$0xff]  ;;  %v15327_v49 = vld [vmem:[#allocation66_spill] sm:$0xff] }
 0x304   :  { %v11911_v55 = vpop.permute.xlu0 %1923  ;;  %v12029_v7 = vmul.f32 %v1182_v61, %v825_v63  ;;  %v3041_v39 = vsel %vm1266_vm3, %v11681_v40, 1.0  ;;  %v1184_v36 = vsel %vm877_vm2, %v15322_v12, 1.0  ;;  %v1591_v24 = vmul.f32 %v1559_v13, %v1202_v23 }
 0x305   :  { %15311 = vst [vmem:[#allocation53_spill] sm:$0xff] %v11911_v55  ;;  %v11937_v55 = vpop.permute.xlu1 %3208  ;;  %v1561_v57 = vsel %vm1266_vm3, %v11685_v41, 1.0  ;;  %v1948_v63 = vsel %vm1655_vm4, %v15323_v22, 1.0  ;;  %v3233_v40 = vsel %vm1655_vm4, %v15324_v56, 1.0  ;;  %v3073_v14 = vmul.f32 %v3041_v39, %v2881_v9 }
 0x306   :  { %15312 = vst [vmem:[#allocation55_spill] sm:$0xff] %v11937_v55  ;;  %v15326_v41 = vsel %vm10326_vm1, %v11384_v31, 1.0  ;;  %v2863_v61 = vsel %vm877_vm2, %v15327_v49, 1.0 }
 0x307   :  { %v12055_v60 = vmul.f32 %v1184_v36, %v15326_v41  ;;  %v3265_v13 = vmul.f32 %v3233_v40, %v3073_v14  ;;  %v15331_v36 = vld [vmem:[#allocation115_spill] sm:$0xff]  ;;  %v15335_v40 = vsel %vm10326_vm1, %v11398_v33, 1.0 }
 0x308   :  { %v11963_v55 = vpop.permute.xlu0 %1931  ;;  %v12084_v14 = vmul.f32 %v2863_v61, %v15335_v40 }
 0x309   :  { %15313 = vst [vmem:[#allocation91_spill] sm:$0xff] %v11963_v55  ;;  %v11974_v4 = vpop.permute.xlu1 %3216  ;;  %v2883_v55 = vmul.f32 %v2851_v25, %v2691_v16  ;;  %v3039_v16 = vsel %vm1266_vm3, %v11673_v5, 1.0  ;;  %v2861_v5 = vsel %vm877_vm2, %v15320_v38, 1.0  ;;  %v15328_v38 = vld [vmem:[#allocation96_spill] sm:$0xff] }
 0x30a   :  { %v3071_v28 = vmul.f32 %v3039_v16, %v2879_v52  ;;  %v12034_v17 = vmul.f32 %v2861_v5, %v2701_v59  ;;  %v1978_v52 = vmul.f32 %v1946_v26, %v1589_v43  ;;  %v3043_v16 = vsel %vm1266_vm3, %v15325_v58, 1.0  ;;  %v15329_v5 = vld [vmem:[#allocation67_spill] sm:$0xff] }
 0x30b   :  { %v1186_v9 = vsel %vm877_vm2, %v15328_v38, 1.0  ;;  %v2865_v26 = vsel %vm877_vm2, %v15329_v5, 1.0  ;;  %v1593_v43 = vmul.f32 %v1561_v57, %v1204_v21  ;;  %v3075_v31 = vmul.f32 %v3043_v16, %v2883_v55  ;;  %v15338_v38 = vld [vmem:[#allocation45_spill] sm:$0xff] }
 0x30c   :  { %v11994_v6 = vpop.permute.xlu0 %1939  ;;  %v3263_v46 = vmul.f32 %v3231_v62, %v3071_v28  ;;  %v1980_v28 = vmul.f32 %v1948_v63, %v1591_v24  ;;  %v15336_v58 = vsel %vm10326_vm1, %v11400_v54, 1.0  ;;  %v1188_v33 = vsel %vm877_vm2, %v15338_v38, 1.0  ;;  %v15347_v38 = vld [vmem:[#allocation87_spill] sm:$0xff] }
 0x30d   :  { %v12018_v25 = vpop.permute.xlu1 %3224  ;;  %v12090_v16 = vmul.f32 %v1186_v9, %v15336_v58  ;;  %v15339_v9 = vld [vmem:[#allocation26_spill] sm:$0xff]  ;;  %v1976_v20 = vsel %vm1655_vm4, %v11994_v6, 1.0 }
 0x310   :  { %v2140_v27 = vpop.permute.xlu0 %2139 }
 0x311   :  { %v3297_v59 = vpop.permute.xlu1 %3296  ;;  %v2266_v15 = vmul.f32 %v2140_v27, %v1978_v52  ;;  %v15330_v27 = vld [vmem:[#allocation23_spill] sm:$0xff]  ;;  %v1950_v52 = vsel %vm1655_vm4, %v15331_v36, 1.0 }
 0x312   :  { %v3423_v23 = vmul.f32 %v3297_v59, %v3263_v46  ;;  %v1563_v12 = vsel %vm1266_vm3, %v15330_v27, 1.0  ;;  %v15332_v46 = vld [vmem:[#allocation86_spill] sm:$0xff]  ;;  %v15333_v59 = vld [vmem:[#allocation76_spill] sm:$0xff]  ;;  %v1982_v61 = vmul.f32 %v1950_v52, %v1593_v43 }
 0x313   :  { %v3235_v22 = vsel %vm1655_vm4, %v15332_v46, 1.0  ;;  %v3045_v21 = vsel %vm1266_vm3, %v15333_v59, 1.0  ;;  %v15341_v27 = vld [vmem:[#allocation102_spill] sm:$0xff] }
 0x314   :  { %v2148_v62 = vpop.permute.xlu0 %2147  ;;  %v3455_v39 = vadd.f32 %v3423_v23, %v2266_v15  ;;  %v15337_v15 = vsel %vm10326_vm1, %v11408_v51, 1.0  ;;  %v3267_v5 = vmul.f32 %v3235_v22, %v3075_v31  ;;  %v3077_v54 = vmul.f32 %v3045_v21, %v11978_v53  ;;  %v15340_v51 = vld [vmem:[#allocation116_spill] sm:$0xff]  ;;  %v15343_v52 = vld [vmem:[#allocation18_spill] sm:$0xff]  ;;  %v15344_v22 = vld [vmem:[#allocation103_spill] sm:$0xff] }
 0x315   :  { %v3305_v56 = vpop.permute.xlu1 %3304  ;;  %v2268_v57 = vmul.f32 %v2148_v62, %v1980_v28  ;;  %v12096_v23 = vmul.f32 %v2865_v26, %v15337_v15  ;;  %v1595_v28 = vmul.f32 %v1563_v12, %v11976_v45  ;;  %v3237_v26 = vsel %vm1655_vm4, %v15340_v51, 1.0 }
 0x316   :  { %v3681_v55 = vsel %vm3678_vm6, %v3455_v39, 0.0  ;;  %v3425_v63 = vmul.f32 %v3305_v56, %v3265_v13  ;;  %v1952_v13 = vsel %vm1655_vm4, %v15339_v9, 1.0  ;;  %v1565_v43 = vsel %vm1266_vm3, %v15341_v27, 1.0 }
 0x317   :  { %v3713_v41 = vpack.c.bf16 %v3681_v55, %v3681_v55  ;;  %v15342_v12 = vsel %vm10326_vm1, %v11412_v8, 1.0  ;;  %v2867_v46 = vsel %vm877_vm2, %v15343_v52, 1.0  ;;  %v3047_v56 = vsel %vm1266_vm3, %v15344_v22, 1.0  ;;  %v15345_v55 = vld [vmem:[#allocation77_spill] sm:$0xff]  ;;  %v3787_v8 = vld [vmem:[%s14810_s0] sm:$0x3] }
 0x318   :  { %v2156_v49 = vpop.permute.xlu0 %2155  ;;  %v3457_v62 = vadd.f32 %v3425_v63, %v2268_v57  ;;  %v12119_v36 = vmul.f32 %v1188_v33, %v15342_v12  ;;  %v1567_v57 = vsel %vm1266_vm3, %v15345_v55, 1.0  ;;  %v1984_v63 = vmul.f32 %v1952_v13, %v1595_v28  ;;  %v15349_v13 = vld [vmem:[#allocation68_spill] sm:$0xff] }
 0x319   :  { %3746 = vst.msk [vmem:[#allocation2] sm:$0xf] %vm3745_vm7, %v3713_v41  ;;  %v3313_v39 = vpop.permute.xlu1 %3312  ;;  %v2270_v31 = vmul.f32 %v2156_v49, %v1982_v61  ;;  %v3269_v40 = vmul.f32 %v3237_v26, %v3077_v54  ;;  %v1597_v15 = vmul.f32 %v1565_v43, %v11983_v35  ;;  %v15346_v41 = vld [vmem:[#allocation47_spill] sm:$0xff]  ;;  %v1954_v33 = vsel %vm1655_vm4, %v15347_v38, 1.0  ;;  %v15348_v61 = vld [vmem:[#allocation22_spill] sm:$0xff]  ;;  %v15350_v52 = vld [vmem:[#allocation12_spill] sm:$0xff] }
 0x31a   :  { %v3683_v45 = vsel %vm3678_vm6, %v3457_v62, 0.0  ;;  %v3427_v53 = vmul.f32 %v3313_v39, %v3267_v5  ;;  %v3049_v49 = vsel %vm1266_vm3, %v15346_v41, 1.0  ;;  %v3239_v5 = vsel %vm1655_vm4, %v15348_v61, 1.0 }
 0x31b   :  { %v3715_v59 = vpack.c.bf16 %v3683_v45, %v3683_v45  ;;  %v3079_v28 = vmul.f32 %v3047_v56, %v11996_v10  ;;  %v1190_v51 = vsel %vm877_vm2, %v15349_v13, 1.0  ;;  %v1599_v26 = vmul.f32 %v1567_v57, %v12007_v37  ;;  %v15351_v56 = vld [vmem:[#allocation31_spill] sm:$0xff]  ;;  %v15353_v57 = vld [vmem:[#allocation78_spill] sm:$0xff] }
 0x31c   :  { %v2164_v21 = vpop.permute.xlu0 %2163  ;;  %v3459_v58 = vadd.f32 %v3427_v53, %v2270_v31  ;;  %v3819_v43 = vpack.c.bf16 %v3787_v8, %v3787_v8  ;;  %v3081_v45 = vmul.f32 %v3049_v49, %v12020_v11  ;;  %v1986_v31 = vmul.f32 %v1954_v33, %v1597_v15  ;;  %v15356_v33 = vld [vmem:[#allocation97_spill] sm:$0xff] }
 0x31d   :  { %3748 = vst.msk [vmem:[#allocation2 + $0x8] sm:$0xf] %vm3745_vm7, %v3715_v59  ;;  %v3321_v62 = vpop.permute.xlu1 %3320  ;;  %v2272_v54 = vmul.f32 %v2164_v21, %v1984_v63  ;;  %v3271_v53 = vmul.f32 %v3239_v5, %v3079_v28  ;;  %v1569_v22 = vsel %vm1266_vm3, %v15350_v52, 1.0  ;;  %v1956_v59 = vsel %vm1655_vm4, %v15351_v56, 1.0  ;;  %v15352_v21 = vld [vmem:[#allocation88_spill] sm:$0xff] }
 0x31e   :  { %v3685_v35 = vsel %vm3678_vm6, %v3459_v58, 0.0  ;;  %v3429_v9 = vmul.f32 %v3321_v62, %v3269_v40  ;;  %v3241_v37 = vsel %vm1655_vm4, %v15352_v21, 1.0  ;;  %v3051_v63 = vsel %vm1266_vm3, %v15353_v57, 1.0  ;;  %v15362_v21 = vld [vmem:[#allocation80_spill] sm:$0xff] }
 0x31f   :  { %v3717_v39 = vpack.c.bf16 %v3685_v35, %v3685_v35  ;;  %v15354_v15 = vsel %vm10326_vm1, %v11426_v29, 1.0  ;;  %v15355_v49 = vsel %vm10326_vm1, %v11428_v3, 1.0  ;;  %v2869_v61 = vsel %vm877_vm2, %v15356_v33, 1.0  ;;  %v3789_v3 = vld [vmem:[%s14810_s0 + $0x4] sm:$0x3] }
 0x320   :  { %v2172_v27 = vpop.permute.xlu0 %2171  ;;  %v3461_v12 = vadd.f32 %v3429_v9, %v2272_v54  ;;  %v3851_v10 = vld [vmem:[#allocation2] sm:$0xf]  ;;  %v12172_v41 = vmul.f32 %v2867_v46, %v15354_v15  ;;  %v12178_v38 = vmul.f32 %v1190_v51, %v15355_v49  ;;  %v15357_v28 = vmov 0.0  }
 0x321   :  { %3750 = vst.msk [vmem:[#allocation2 + $0x10] sm:$0xf] %vm3745_vm7, %v3717_v39  ;;  %v3329_v55 = vpop.permute.xlu1 %3328  ;;  %v5217_v11 = vsel %vm5215_vm5, %v3851_v10, 0  ;;  %v2274_v58 = vmul.f32 %v2172_v27, %v1986_v31  ;;  %v1601_v35 = vmul.f32 %v1569_v22, %v12025_v2  ;;  %v1988_v54 = vmul.f32 %v1956_v59, %v1599_v26  ;;  %v15358_v51 = vld [vmem:[#allocation51_spill] sm:$0xff] }
 0x322   :  { %v3687_v40 = vsel %vm3678_vm6, %v3461_v12, 0.0  ;;  %v3431_v8 = vmul.f32 %v3329_v55, %v3271_v53  ;;  %9013 = vmatpush3.bf16.msra.mxu0 %v5217_v11  ;;  %v3273_v29 = vmul.f32 %v3241_v37, %v3081_v45  ;;  %v3083_v13 = vmul.f32 %v3051_v63, %v12027_v50  ;;  %v15359_v45 = vld [vmem:[#allocation104_spill] sm:$0xff]  ;;  %3779 = vst.msk [vmem:[#allocation6] sm:$0xff] %vm3778_vm12, %v15357_v28 }
 0x323   :  { %v3719_v5 = vpack.c.bf16 %v3687_v40, %v3687_v40  ;;  %9024 = vmatprep.subr.bf16.mxu0 %v15357_v28  ;;  %v1958_v39 = vsel %vm1655_vm4, %v15358_v51, 1.0  ;;  %v3243_v27 = vsel %vm1655_vm4, %v11810_v47, 1.0  ;;  %v1571_v31 = vsel %vm1266_vm3, %v15359_v45, 1.0  ;;  %v15360_v47 = vld [vmem:[#allocation70_spill] sm:$0xff]  ;;  %v15363_v40 = vld [vmem:[#allocation24_spill] sm:$0xff]  ;;  %3780 = vst.msk [vmem:[#allocation6 + $0x8] sm:$0xff] %vm3778_vm12, %v15357_v28 }
 0x324   :  { %v2180_v62 = vpop.permute.xlu0 %2179  ;;  %v3463_v46 = vadd.f32 %v3431_v8, %v2274_v58  ;;  %v3853_v9 = vld [vmem:[#allocation2 + $0x8] sm:$0xf]  ;;  %v1192_v10 = vsel %vm877_vm2, %v15360_v47, 1.0  ;;  %v3821_v59 = vpack.c.bf16 %v3789_v3, %v3789_v3  ;;  %v1573_v37 = vsel %vm1266_vm3, %v15362_v21, 1.0  ;;  %3781 = vst.msk [vmem:[#allocation6 + $0x10] sm:$0xff] %vm3778_vm12, %v15357_v28  ;;  %3782 = vst.msk [vmem:[#allocation6 + $0x18] sm:$0xff] %vm3778_vm12, %v15357_v28 }
 0x325   :  { %3752 = vst.msk [vmem:[#allocation2 + $0x18] sm:$0xf] %vm3745_vm7, %v3719_v5  ;;  %v3337_v2 = vpop.permute.xlu1 %3336  ;;  %9015 = vmatmul.mubr.msk.bf16.vlgmr.msra.gmra.mrb[0].mxu0 %vm2493_vm15, %v3819_v43  ;;  %v5309_v26 = vsel %vm5215_vm5, %v3853_v9, 0  ;;  %v2276_v53 = vmul.f32 %v2180_v62, %v1988_v54  ;;  %v15361_v43 = vld [vmem:[#allocation105_spill] sm:$0xff]  ;;  %v1990_v55 = vmul.f32 %v1958_v39, %v1601_v35  ;;  %v3275_v11 = vmul.f32 %v3243_v27, %v3083_v13  ;;  %v15364_v8 = vld [vmem:[#allocation52_spill] sm:$0xff] }
 0x326   :  { %v3689_v50 = vsel %vm3678_vm6, %v3463_v46, 0.0  ;;  %v3433_v12 = vmul.f32 %v3337_v2, %v3273_v29  ;;  %9025 = vmatpush3.bf16.msra.mxu0 %v5309_v26  ;;  %9026 = vmatprep.mubr.msk.bf16.mxu0 %vm15220_vm14, %v15357_v28  ;;  %v3053_v52 = vsel %vm1266_vm3, %v15361_v43, 1.0  ;;  %v1603_v63 = vmul.f32 %v1571_v31, %v12029_v7  ;;  %v15368_v31 = vld [vmem:[#allocation81_spill] sm:$0xff]  ;;  %3783 = vst.msk [vmem:[#allocation6 + $0x20] sm:$0xff] %vm3778_vm12, %v15357_v28 }
 0x327   :  { %v3721_v22 = vpack.c.bf16 %v3689_v50, %v3689_v50  ;;  %9036 = vmatprep.subr.bf16.mxu0 %v15357_v28  ;;  %v3055_v58 = vsel %vm1266_vm3, %v15363_v40, 1.0  ;;  %v1960_v15 = vsel %vm1655_vm4, %v15364_v8, 1.0  ;;  %v3245_v49 = vsel %vm1655_vm4, %v11816_v44, 1.0  ;;  %v15372_v40 = vld [vmem:[#allocation89_spill] sm:$0xff]  ;;  %v15373_v8 = vld [vmem:[#allocation27_spill] sm:$0xff]  ;;  %3784 = vst.msk [vmem:[#allocation6 + $0x28] sm:$0xff] %vm3778_vm12, %v15357_v28 }
 0x328   :  { %v2188_v56 = vpop.permute.xlu0 %2187  ;;  %v3465_v57 = vadd.f32 %v3433_v12, %v2276_v53  ;;  %v3085_v5 = vmul.f32 %v3053_v52, %v12034_v17  ;;  %v3855_v54 = vld [vmem:[#allocation2 + $0x10] sm:$0xf]  ;;  %v15365_v29 = vsel %vm10326_vm1, %v11436_v34, 1.0  ;;  %v15366_v44 = vsel %vm10326_vm1, %v11440_v19, 1.0  ;;  %v3791_v34 = vld [vmem:[%s14810_s0 + $0x8] sm:$0x3] }
 0x329   :  { %3754 = vst.msk [vmem:[#allocation2 + $0x20] sm:$0xf] %vm3745_vm7, %v3721_v22  ;;  %v3345_v33 = vpop.permute.xlu1 %3344  ;;  %v2278_v62 = vmul.f32 %v2188_v56, %v1990_v55  ;;  %v12233_v46 = vmul.f32 %v2869_v61, %v15365_v29  ;;  %v12239_v9 = vmul.f32 %v1192_v10, %v15366_v44  ;;  %v1605_v17 = vmul.f32 %v1573_v37, %v12055_v60  ;;  %v15367_v61 = vld [vmem:[#allocation48_spill] sm:$0xff]  ;;  %v15370_v10 = vld [vmem:[#allocation99_spill] sm:$0xff]  ;;  %v15377_v44 = vld [vmem:[#allocation42_spill] sm:$0xff] }
 0x32a   :  { %v3691_v7 = vsel %vm3678_vm6, %v3465_v57, 0.0  ;;  %v3435_v35 = vmul.f32 %v3345_v33, %v3275_v11  ;;  %v3087_v51 = vmul.f32 %v3055_v58, %v12084_v14  ;;  %v1992_v39 = vmul.f32 %v1960_v15, %v1603_v63  ;;  %v15374_v33 = vld [vmem:[#allocation107_spill] sm:$0xff]  ;;  %3785 = vst.msk [vmem:[#allocation6 + $0x30] sm:$0xff] %vm3778_vm12, %v15357_v28  ;;  %3786 = vst.msk [vmem:[#allocation6 + $0x38] sm:$0xff] %vm3778_vm12, %v15357_v28 }
 0x32b   :  { %v3723_v3 = vpack.c.bf16 %v3691_v7, %v3691_v7  ;;  %v3277_v27 = vmul.f32 %v3245_v49, %v3085_v5  ;;  %v1575_v26 = vsel %vm1266_vm3, %v15367_v61, 1.0  ;;  %v1962_v19 = vsel %vm1655_vm4, %v11818_v30, 1.0  ;;  %v3793_v61 = vld [vmem:[%s14810_s0 + $0xc] sm:$0x3] }
 0x32c   :  { %v2196_v13 = vpop.permute.xlu0 %2195  ;;  %v3467_v2 = vadd.f32 %v3435_v35, %v2278_v62  ;;  %v3247_v60 = vsel %vm1655_vm4, %v11822_v18, 1.0  ;;  %v5401_v45 = vsel %vm5215_vm5, %v3855_v54, 0  ;;  %v3057_v50 = vsel %vm1266_vm3, %v15368_v31, 1.0  ;;  %v15369_v18 = vld [vmem:[#allocation71_spill] sm:$0xff]  ;;  %v3857_v62 = vld [vmem:[#allocation2 + $0x18] sm:$0xf] }
 0x32d   :  { %3756 = vst.msk [vmem:[#allocation2 + $0x28] sm:$0xf] %vm3745_vm7, %v3723_v3  ;;  %v3353_v14 = vpop.permute.xlu1 %3352  ;;  %9027 = vmatmul.mubr.msk.bf16.vlgmr.msra.gmra.mrb[4].mxu0 %vm2493_vm15, %v3821_v59  ;;  %v2280_v12 = vmul.f32 %v2196_v13, %v1992_v39  ;;  %v2871_v47 = vsel %vm877_vm2, %v15369_v18, 1.0  ;;  %v1194_v43 = vsel %vm877_vm2, %v15370_v10, 1.0  ;;  %v3823_v56 = vpack.c.bf16 %v3791_v34, %v3791_v34  ;;  %v15371_v59 = vld [vmem:[#allocation106_spill] sm:$0xff]  ;;  %v15375_v35 = vld [vmem:[#allocation57_spill] sm:$0xff] }
 0x32e   :  { %v3693_v53 = vsel %vm3678_vm6, %v3467_v2, 0.0  ;;  %v3437_v30 = vmul.f32 %v3353_v14, %v3277_v27  ;;  %9037 = vmatpush3.bf16.msra.mxu0 %v5401_v45  ;;  %9038 = vmatprep.mubr.msk.bf16.mxu0 %vm15220_vm14, %v15357_v28  ;;  %v1577_v21 = vsel %vm1266_vm3, %v15371_v59, 1.0  ;;  %v1994_v37 = vmul.f32 %v1962_v19, %v1605_v17  ;;  %v15379_v19 = vld [vmem:[#allocation90_spill] sm:$0xff]  ;;  %v15380_v14 = vld [vmem:[#allocation28_spill] sm:$0xff]  ;;  %v15383_v10 = vld [vmem:[#allocation25_spill] sm:$0xff] }
 0x32f   :  { %v3725_v52 = vpack.c.bf16 %v3693_v53, %v3693_v53  ;;  %9048 = vmatprep.subr.bf16.mxu0 %v15357_v28  ;;  %v3279_v55 = vmul.f32 %v3247_v60, %v3087_v51  ;;  %v1607_v57 = vmul.f32 %v1575_v26, %v12090_v16  ;;  %v3089_v63 = vmul.f32 %v3057_v50, %v12096_v23  ;;  %v15382_v18 = vld [vmem:[#allocation72_spill] sm:$0xff]  ;;  %v15384_v59 = vld [vmem:[#allocation109_spill] sm:$0xff] }
 0x330   :  { %v2204_v22 = vpop.permute.xlu0 %2203  ;;  %v3469_v11 = vadd.f32 %v3437_v30, %v2280_v12  ;;  %v1964_v58 = vsel %vm1655_vm4, %v15372_v40, 1.0  ;;  %v3249_v15 = vsel %vm1655_vm4, %v15373_v8, 1.0  ;;  %v3059_v5 = vsel %vm1266_vm3, %v15374_v33, 1.0 }
 0x331   :  { %3758 = vst.msk [vmem:[#allocation2 + $0x30] sm:$0xf] %vm3745_vm7, %v3725_v52  ;;  %v3361_v49 = vpop.permute.xlu1 %3360  ;;  %v2282_v7 = vmul.f32 %v2204_v22, %v1994_v37  ;;  %v15376_v54 = vsel %vm10326_vm1, %v15375_v35, 1.0  ;;  %v15378_v17 = vsel %vm10326_vm1, %v15377_v44, 1.0  ;;  %v1609_v13 = vmul.f32 %v1577_v21, %v12119_v36  ;;  %v15390_v44 = vld [vmem:[#allocation46_spill] sm:$0xff] }
 0x332   :  { %v3695_v16 = vsel %vm3678_vm6, %v3469_v11, 0.0  ;;  %v3439_v23 = vmul.f32 %v3361_v49, %v3279_v55  ;;  %v2903_v29 = vmul.f32 %v2871_v47, %v15376_v54  ;;  %v12297_v3 = vmul.f32 %v1194_v43, %v15378_v17 }
 0x333   :  { %v3727_v51 = vpack.c.bf16 %v3695_v16, %v3695_v16  ;;  %v1996_v27 = vmul.f32 %v1964_v58, %v1607_v57  ;;  %v3281_v2 = vmul.f32 %v3249_v15, %v3089_v63  ;;  %v3091_v26 = vmul.f32 %v3059_v5, %v12172_v41  ;;  %v15381_v41 = vld [vmem:[#allocation82_spill] sm:$0xff]  ;;  %v15385_v63 = vld [vmem:[#allocation108_spill] sm:$0xff] }
 0x334   :  { %v2212_v39 = vpop.permute.xlu0 %2211  ;;  %v3471_v34 = vadd.f32 %v3439_v23, %v2282_v7  ;;  %v1966_v60 = vsel %vm1655_vm4, %v15379_v19, 1.0  ;;  %v3251_v36 = vsel %vm1655_vm4, %v15380_v14, 1.0  ;;  %v5493_v31 = vsel %vm5215_vm5, %v3857_v62, 0  ;;  %v15386_v58 = vld [vmem:[#allocation98_spill] sm:$0xff]  ;;  %v3859_v23 = vld [vmem:[#allocation2 + $0x20] sm:$0xf] }
 0x335   :  { %3760 = vst.msk [vmem:[#allocation2 + $0x38] sm:$0xf] %vm3745_vm7, %v3727_v51  ;;  %v3369_v45 = vpop.permute.xlu1 %3368  ;;  %9039 = vmatmul.mubr.msk.bf16.vlgmr.msra.gmra.mrb[8].mxu0 %vm2493_vm15, %v3823_v56  ;;  %v1579_v50 = vsel %vm1266_vm3, %v15381_v41, 1.0  ;;  %v2284_v12 = vmul.f32 %v2212_v39, %v1996_v27  ;;  %v2873_v47 = vsel %vm877_vm2, %v15382_v18, 1.0  ;;  %v3061_v43 = vsel %vm1266_vm3, %v15383_v10, 1.0  ;;  %v15387_v15 = vld [vmem:[#allocation34_spill] sm:$0xff] }
 0x336   :  { %v3697_v53 = vsel %vm3678_vm6, %v3471_v34, 0.0  ;;  %v3441_v30 = vmul.f32 %v3369_v45, %v3281_v2  ;;  %9049 = vmatpush3.bf16.msra.mxu0 %v5493_v31  ;;  %9050 = vmatprep.mubr.msk.bf16.mxu0 %vm15220_vm14, %v15357_v28  ;;  %v3825_v56 = vpack.c.bf16 %v3793_v61, %v3793_v61  ;;  %v1581_v21 = vsel %vm1266_vm3, %v15384_v59, 1.0  ;;  %v15388_v62 = vld [vmem:[#allocation14_spill] sm:$0xff]  ;;  %v15391_v61 = vld [vmem:[#allocation83_spill] sm:$0xff]  ;;  %v15392_v19 = vld [vmem:[#allocation29_spill] sm:$0xff] }
 0x337   :  { %v3729_v52 = vpack.c.bf16 %v3697_v53, %v3697_v53  ;;  %9060 = vmatprep.subr.bf16.mxu0 %v15357_v28  ;;  %v1998_v37 = vmul.f32 %v1966_v60, %v1609_v13  ;;  %v3283_v55 = vmul.f32 %v3251_v36, %v3091_v26  ;;  %v1611_v57 = vmul.f32 %v1579_v50, %v12178_v38  ;;  %v15393_v14 = vld [vmem:[#allocation30_spill] sm:$0xff]  ;;  %v15394_v45 = vld [vmem:[#allocation111_spill] sm:$0xff] }
 0x338   :  { %v2220_v22 = vpop.permute.xlu0 %2219  ;;  %v3473_v11 = vadd.f32 %v3441_v30, %v2284_v12  ;;  %v3063_v40 = vsel %vm1266_vm3, %v15385_v63, 1.0  ;;  %v1968_v8 = vsel %vm1655_vm4, %v15386_v58, 1.0  ;;  %v3253_v49 = vsel %vm1655_vm4, %v15387_v15, 1.0  ;;  %v3795_v12 = vld [vmem:[%s14810_s0 + $0x10] sm:$0x3]  ;;  %v15395_v30 = vld [vmem:[#allocation58_spill] sm:$0xff] }
 0x339   :  { %3762 = vst.msk [vmem:[#allocation2 + $0x40] sm:$0xf] %vm3745_vm7, %v3729_v52  ;;  %v3377_v33 = vpop.permute.xlu1 %3376  ;;  %v3093_v5 = vmul.f32 %v3061_v43, %v12233_v46  ;;  %v2286_v16 = vmul.f32 %v2220_v22, %v1998_v37  ;;  %v15389_v35 = vsel %vm10326_vm1, %v15388_v62, 1.0  ;;  %v1196_v17 = vsel %vm877_vm2, %v15390_v44, 1.0  ;;  %v15397_v10 = vld [vmem:[#allocation19_spill] sm:$0xff] }
 0x33a   :  { %v3699_v38 = vsel %vm3678_vm6, %v3473_v11, 0.0  ;;  %v3443_v7 = vmul.f32 %v3377_v33, %v3283_v55  ;;  %v2905_v54 = vmul.f32 %v2873_v47, %v15389_v35  ;;  %v1613_v13 = vmul.f32 %v1581_v21, %v12239_v9 }
 0x33b   :  { %v3731_v51 = vpack.c.bf16 %v3699_v38, %v3699_v38  ;;  %v3095_v46 = vmul.f32 %v3063_v40, %v2903_v29  ;;  %v2000_v27 = vmul.f32 %v1968_v8, %v1611_v57  ;;  %v3285_v2 = vmul.f32 %v3253_v49, %v3093_v5  ;;  %v15398_v57 = vld [vmem:[#allocation112_spill] sm:$0xff]  ;;  %v15399_v40 = vld [vmem:[#allocation53_spill] sm:$0xff]  ;;  %v15400_v8 = vld [vmem:[#allocation55_spill] sm:$0xff] }
 0x33c   :  { %v2228_v39 = vpop.permute.xlu0 %2227  ;;  %v3475_v34 = vadd.f32 %v3443_v7, %v2286_v16  ;;  %v1583_v26 = vsel %vm1266_vm3, %v15391_v61, 1.0  ;;  %v1970_v60 = vsel %vm1655_vm4, %v15392_v19, 1.0  ;;  %v3255_v36 = vsel %vm1655_vm4, %v15393_v14, 1.0  ;;  %v3861_v7 = vld [vmem:[#allocation2 + $0x28] sm:$0xf] }
 0x33d   :  { %3764 = vst.msk [vmem:[#allocation2 + $0x48] sm:$0xf] %vm3745_vm7, %v3731_v51  ;;  %v3385_v9 = vpop.permute.xlu1 %3384  ;;  %9051 = vmatmul.mubr.msk.bf16.vlgmr.msra.gmra.mrb[12].mxu0 %vm2493_vm15, %v3825_v56  ;;  %v5585_v29 = vsel %vm5215_vm5, %v3859_v23, 0  ;;  %v3065_v31 = vsel %vm1266_vm3, %v15394_v45, 1.0  ;;  %v2288_v50 = vmul.f32 %v2228_v39, %v2000_v27  ;;  %v15396_v18 = vsel %vm10326_vm1, %v15395_v30, 1.0  ;;  %v15402_v23 = vld [vmem:[#allocation43_spill] sm:$0xff] }
 0x33e   :  { %v3701_v41 = vsel %vm3678_vm6, %v3475_v34, 0.0  ;;  %v3445_v53 = vmul.f32 %v3385_v9, %v3285_v2  ;;  %9061 = vmatpush3.bf16.msra.mxu0 %v5585_v29  ;;  %9062 = vmatprep.mubr.msk.bf16.mxu0 %vm15220_vm14, %v15357_v28  ;;  %v1228_v47 = vmul.f32 %v1196_v17, %v15396_v18  ;;  %v2875_v43 = vsel %vm877_vm2, %v15397_v10, 1.0  ;;  %v15405_v17 = vld [vmem:[#allocation101_spill] sm:$0xff] }
 0x33f   :  { %v3733_v52 = vpack.c.bf16 %v3701_v41, %v3701_v41  ;;  %9072 = vmatprep.subr.bf16.mxu0 %v15357_v28  ;;  %v3827_v56 = vpack.c.bf16 %v3795_v12, %v3795_v12  ;;  %v1615_v59 = vmul.f32 %v1583_v26, %v12297_v3  ;;  %v2002_v21 = vmul.f32 %v1970_v60, %v1613_v13  ;;  %v15401_v3 = vld [vmem:[#allocation84_spill] sm:$0xff]  ;;  %v15406_v26 = vld [vmem:[#allocation91_spill] sm:$0xff] }
 0x340   :  { %v2236_v22 = vpop.permute.xlu0 %2235  ;;  %v3287_v37 = vmul.f32 %v3255_v36, %v3095_v46  ;;  %v3477_v55 = vadd.f32 %v3445_v53, %v2288_v50  ;;  %v3097_v11 = vmul.f32 %v3065_v31, %v2905_v54  ;;  %v1585_v63 = vsel %vm1266_vm3, %v15398_v57, 1.0  ;;  %v15404_v54 = vld [vmem:[#allocation73_spill] sm:$0xff]  ;;  %v15407_v36 = vld [vmem:[#allocation50_spill] sm:$0xff] }
 0x341   :  { %v1972_v58 = vsel %vm1655_vm4, %v15399_v40, 1.0  ;;  %v3257_v15 = vsel %vm1655_vm4, %v15400_v8, 1.0  ;;  %3766 = vst.msk [vmem:[#allocation2 + $0x50] sm:$0xf] %vm3745_vm7, %v3733_v52  ;;  %v3393_v49 = vpop.permute.xlu1 %3392  ;;  %v3067_v33 = vsel %vm1266_vm3, %v15401_v3, 1.0  ;;  %v2290_v38 = vmul.f32 %v2236_v22, %v2002_v21  ;;  %v15409_v53 = vld [vmem:[#allocation113_spill] sm:$0xff] }
 0x342   :  { %v3703_v5 = vsel %vm3678_vm6, %v3477_v55, 0.0  ;;  %v3447_v16 = vmul.f32 %v3393_v49, %v3287_v37  ;;  %v15403_v62 = vsel %vm10326_vm1, %v15402_v23, 1.0  ;;  %v1198_v44 = vsel %vm877_vm2, %v15404_v54, 1.0  ;;  %v3797_v22 = vld [vmem:[%s14810_s0 + $0x14] sm:$0x3] }
 0x343   :  { %v2907_v35 = vmul.f32 %v2875_v43, %v15403_v62  ;;  %v2877_v13 = vsel %vm877_vm2, %v15405_v17, 1.0  ;;  %v3735_v51 = vpack.c.bf16 %v3703_v5, %v3703_v5  ;;  %v1617_v46 = vmul.f32 %v1585_v63, %v1228_v47  ;;  %v3865_v62 = vld [vmem:[#allocation2 + $0x38] sm:$0xf] }
 0x344   :  { %v2244_v39 = vpop.permute.xlu0 %2243  ;;  %v2004_v27 = vmul.f32 %v1972_v58, %v1615_v59  ;;  %v3289_v2 = vmul.f32 %v3257_v15, %v3097_v11  ;;  %v3479_v34 = vadd.f32 %v3447_v16, %v2290_v38  ;;  %v1974_v19 = vsel %vm1655_vm4, %v15406_v26, 1.0  ;;  %v3863_v11 = vld [vmem:[#allocation2 + $0x30] sm:$0xf]  ;;  %v3799_v38 = vld [vmem:[%s14810_s0 + $0x18] sm:$0x3] }
 0x345   :  { %v3099_v61 = vmul.f32 %v3067_v33, %v2907_v35  ;;  %v3259_v60 = vsel %vm1655_vm4, %v11974_v4, 1.0  ;;  %3768 = vst.msk [vmem:[#allocation2 + $0x58] sm:$0xf] %vm3745_vm7, %v3735_v51  ;;  %v3401_v14 = vpop.permute.xlu1 %3400  ;;  %9063 = vmatmul.mubr.msk.bf16.vlgmr.msra.gmra.mrb[16].mxu0 %vm2493_vm15, %v3827_v56  ;;  %v5677_v32 = vsel %vm5215_vm5, %v3861_v7, 0  ;;  %v1587_v9 = vsel %vm1266_vm3, %v15407_v36, 1.0  ;;  %v15408_v4 = vld [vmem:[#allocation93_spill] sm:$0xff] }
 0x346   :  { %v3705_v29 = vsel %vm3678_vm6, %v3479_v34, 0.0  ;;  %v2292_v45 = vmul.f32 %v2244_v39, %v2004_v27  ;;  %v3449_v31 = vmul.f32 %v3401_v14, %v3289_v2  ;;  %9073 = vmatpush3.bf16.msra.mxu0 %v5677_v32  ;;  %9074 = vmatprep.mubr.msk.bf16.mxu0 %vm15220_vm14, %v15357_v28  ;;  %v2717_v41 = vsel %vm10326_vm1, %v15408_v4, 1.0  ;;  %v3867_v34 = vld [vmem:[#allocation2 + $0x40] sm:$0xf]  ;;  %v12509_v32 = vld [vmem:[%s14810_s0 + $0x24] sm:$0x3] }
 0x347   :  { %v1230_v50 = vmul.f32 %v1198_v44, %v841_v48  ;;  %v3069_v12 = vsel %vm1266_vm3, %v15409_v53, 1.0  ;;  %v3737_v30 = vpack.c.bf16 %v3705_v29, %v3705_v29  ;;  %9084 = vmatprep.subr.bf16.mxu0 %v15357_v28  ;;  %v2909_v47 = vmul.f32 %v2877_v13, %v2717_v41  ;;  %v3818_v13 = vld [vmem:[%s14810_s0 + $0x3e] sm:$0x3]  ;;  %v3869_v36 = vld [vmem:[#allocation2 + $0x48] sm:$0xf] }
 0x348   :  { %v2252_v18 = vpop.permute.xlu0 %2251  ;;  %v2006_v10 = vmul.f32 %v1974_v19, %v1617_v46  ;;  %v3291_v43 = vmul.f32 %v3259_v60, %v3099_v61  ;;  %v3481_v52 = vadd.f32 %v3449_v31, %v2292_v45  ;;  %v3261_v48 = vsel %vm1655_vm4, %v12018_v25, 1.0  ;;  %v3801_v46 = vld [vmem:[%s14810_s0 + $0x1c] sm:$0x3]  ;;  %v3803_v60 = vld [vmem:[%s14810_s0 + $0x20] sm:$0x3] }
 0x349   :  { %v1619_v1 = vmul.f32 %v1587_v9, %v1230_v50  ;;  %3770 = vst.msk [vmem:[#allocation2 + $0x60] sm:$0xf] %vm3745_vm7, %v3737_v30  ;;  %v3409_v42 = vpop.permute.xlu1 %3408  ;;  %v3829_v56 = vpack.c.bf16 %v3797_v22, %v3797_v22  ;;  %v3101_v59 = vmul.f32 %v3069_v12, %v2909_v47  ;;  %v5769_v25 = vsel %vm5215_vm5, %v3863_v11, 0  ;;  %v3871_v9 = vld [vmem:[#allocation2 + $0x50] sm:$0xf] }
 0x34a   :  { %v3707_v21 = vsel %vm3678_vm6, %v3481_v52, 0.0  ;;  %v2294_v37 = vmul.f32 %v2252_v18, %v2006_v10  ;;  %v3451_v55 = vmul.f32 %v3409_v42, %v3291_v43  ;;  %v3831_v7 = vpack.c.bf16 %v3799_v38, %v3799_v38  ;;  %v15416_v38 = vld [vmem:[#allocation36_spill] sm:$0xff] }
 0x34b   :  { %v3739_v57 = vpack.c.bf16 %v3707_v21, %v3707_v21  ;;  %v2008_v40 = vmul.f32 %v1976_v20, %v1619_v1  ;;  %v3293_v58 = vmul.f32 %v3261_v48, %v3101_v59  ;;  %v5861_v17 = vsel %vm5215_vm5, %v3865_v62, 0 }
 0x34c   :  { %v2260_v63 = vpop.permute.xlu0 %2259  ;;  %v3483_v6 = vadd.f32 %v3451_v55, %v2294_v37  ;;  %v3850_v51 = vpack.c.bf16 %v3818_v13, %v3818_v13  ;;  %v3833_v2 = vpack.c.bf16 %v3801_v46, %v3801_v46  ;;  %v5953_v19 = vsel %vm5215_vm5, %v3867_v34, 0  ;;  %v15421_v46 = vld [vmem:[#allocation9_spill] sm:$0xff] }
 0x34d   :  { %3772 = vst.msk [vmem:[#allocation2 + $0x68] sm:$0xf] %vm3745_vm7, %v3739_v57  ;;  %v3417_v0 = vpop.permute.xlu1 %3416  ;;  %9075 = vmatmul.mubr.msk.bf16.vlgmr.msra.gmra.mrb[20].mxu0 %vm2493_vm15, %v3829_v56  ;;  %v2296_v15 = vmul.f32 %v2260_v63, %v2008_v40  ;;  %v3835_v45 = vpack.c.bf16 %v3803_v60, %v3803_v60  ;;  %v3837_v41 = vpack.c.bf16 %v12509_v32, %v12509_v32  ;;  %v6045_v47 = vsel %vm5215_vm5, %v3869_v36, 0 }
 0x34e   :  { %v3709_v8 = vsel %vm3678_vm6, %v3483_v6, 0.0  ;;  %v3453_v49 = vmul.f32 %v3417_v0, %v3293_v58  ;;  %9085 = vmatpush3.bf16.msra.mxu0 %v5769_v25  ;;  %9086 = vmatprep.mubr.msk.bf16.mxu0 %vm15220_vm14, %v15357_v28  ;;  %v6137_v10 = vsel %vm5215_vm5, %v3871_v9, 0  ;;  %vm15417_vm1 = vcmp.eq.s32.totalorder %v15416_v38, 1 }
 0x34f   :  { %v3741_v3 = vpack.c.bf16 %v3709_v8, %v3709_v8  ;;  %9096 = vmatprep.subr.bf16.mxu0 %v15357_v28  ;;  %9201 = vmatmul.mubr.msk.bf16.vlgmr.msra.gmra.mrb[60].mxu1 %vm2493_vm15, %v3850_v51  ;;  %vm15418_vm2 = vmmov %vm15417_vm1  ;;  %v15419_v51 = vld [vmem:[#allocation38_spill] sm:$0xff] }
 0x350   :  { %v12470_v33 = vpop.permute.xlu0 %2339  ;;  %v3485_v5 = vadd.f32 %v3453_v49, %v2296_v15  ;;  %vm15420_vm3 = vcmp.eq.s32.totalorder %v15419_v51, 1  ;;  %vm15422_vm4 = vmmov %vm15417_vm1 }
 0x351   :  { %3774 = vst.msk [vmem:[#allocation2 + $0x70] sm:$0xf] %vm3745_vm7, %v3741_v3  ;;  %v12477_v16 = vpop.permute.xlu1 %3488  ;;  %v2354_v53 = vsel %vm11135_vm9, %v12470_v33, 1.0  ;;  %v2503_v30 = vsel %vm11139_vm10, %v12470_v33, 1.0 }
 0x352   :  { %v3711_v23 = vsel %vm3678_vm6, %v3485_v5, 0.0  ;;  %v3503_v43 = vsel %vm11135_vm9, %v12477_v16, 1.0  ;;  %v3604_v42 = vsel %vm11139_vm10, %v12477_v16, 1.0  ;;  %vm15423_vm6 = vcmask 7168  }
 0x353   :  { %v3743_v35 = vpack.c.bf16 %v3711_v23, %v3711_v23 }
 0x354   :  { %v12481_v54 = vpop.permute.xlu0 %2347 }
 0x355   :  { %3776 = vst.msk [vmem:[#allocation2 + $0x78] sm:$0xf] %vm3745_vm7, %v3743_v35  ;;  %v12484_v44 = vpop.permute.xlu1 %3496  ;;  %9087 = vmatmul.mubr.msk.bf16.vlgmr.msra.gmra.mrb[24].mxu0 %vm2493_vm15, %v3831_v7  ;;  %v2356_v56 = vsel %vm11135_vm9, %v12481_v54, 1.0  ;;  %v2505_v59 = vsel %vm11139_vm10, %v12481_v54, 1.0  ;;  %vm15424_vm7 = vmmov %vm15420_vm3 }
 0x356   :  { %9097 = vmatpush3.bf16.msra.mxu0 %v5861_v17  ;;  %9098 = vmatprep.mubr.msk.bf16.mxu0 %vm15220_vm14, %v15357_v28  ;;  %v3505_v55 = vsel %vm11135_vm9, %v12484_v44, 1.0  ;;  %v3606_v11 = vsel %vm11139_vm10, %v12484_v44, 1.0  ;;  %vm15426_vm9 = vmmov %vm15420_vm3 }
 0x357   :  { %9108 = vmatprep.subr.bf16.mxu0 %v15357_v28  ;;  %vm15428_vm10 = vmmov %vm15423_vm6 }
 0x358   :  { %v2370_v39 = vpop.permute.xlu0 %2369 }
 0x359   :  { %v3509_v27 = vpop.permute.xlu1 %3508  ;;  %v2512_v4 = vsel %vm2509_vm8, %v2370_v39, 1.0  ;;  %v2387_v22 = vsel %vm2364_vm11, %v2370_v39, 1.0 }
 0x35a   :  { %v3608_v1 = vsel %vm2509_vm8, %v3509_v27, 1.0  ;;  %v2516_v21 = vmul.f32 %v2512_v4, %v2503_v30  ;;  %v2391_v40 = vmul.f32 %v2387_v22, %v2354_v53  ;;  %v3523_v8 = vsel %vm2364_vm11, %v3509_v27, 1.0  ;;  %v3807_v53 = vld [vmem:[%s14810_s0 + $0x28] sm:$0x3]  ;;  %v15427_v30 = vld [vmem:[#allocation13_spill] sm:$0xff] }
 0x35b   :  { %v3612_v58 = vmul.f32 %v3608_v1, %v3604_v42 }
 0x35c   :  { %v2380_v61 = vpop.permute.xlu0 %2379 }
 0x35d   :  { %v3517_v26 = vpop.permute.xlu1 %3516  ;;  %9099 = vmatmul.mubr.msk.bf16.vlgmr.msra.gmra.mrb[28].mxu0 %vm2493_vm15, %v3833_v2  ;;  %v2514_v57 = vsel %vm2509_vm8, %v2380_v61, 1.0  ;;  %v2389_v15 = vsel %vm2364_vm11, %v2380_v61, 1.0  ;;  %v3527_v61 = vmul.f32 %v3523_v8, %v3503_v43  ;;  %v3883_v43 = vld [vmem:[%s14811_s5] sm:$0xff]  ;;  %v3809_v8 = vld [vmem:[%s14810_s0 + $0x2c] sm:$0x3] }
 0x35e   :  { %9109 = vmatpush3.bf16.msra.mxu0 %v5953_v19  ;;  %9110 = vmatprep.mubr.msk.bf16.mxu0 %vm15220_vm14, %v15357_v28  ;;  %v3610_v6 = vsel %vm2509_vm8, %v3517_v26, 1.0  ;;  %v2518_v5 = vmul.f32 %v2514_v57, %v2505_v59  ;;  %v3525_v19 = vsel %vm2364_vm11, %v3517_v26, 1.0  ;;  %v2393_v26 = vmul.f32 %v2389_v15, %v2356_v56  ;;  %vm15425_vm8 = vmmov %vm15417_vm1 }
 0x35f   :  { %9120 = vmatprep.subr.bf16.mxu0 %v15357_v28  ;;  %v3614_v35 = vmul.f32 %v3610_v6, %v3606_v11  ;;  %v3529_v52 = vmul.f32 %v3525_v19, %v3505_v55  ;;  %vm15429_vm11 = vmmov %vm15420_vm3  ;;  %v3839_v56 = vpack.c.bf16 %v3807_v53, %v3807_v53  ;;  %v3873_v55 = vld [vmem:[#allocation2 + $0x58] sm:$0xf]  ;;  %v15430_v11 = vld [vmem:[#allocation8_spill] sm:$0xff]  ;;  %v3841_v38 = vpack.c.bf16 %v3809_v8, %v3809_v8 }
 0x360   :  { %v2407_v14 = vpop.permute.xlu0 %2406  ;;  %v12613_v57 = vrot.slane %v3883_v43, %v15430_v11  ;;  %v3879_v53 = vld [vmem:[#allocation2 + $0x70] sm:$0xf]  ;;  %v3886_v8 = vld [vmem:[%s14811_s5 + $0x18] sm:$0xff] }
 0x361   :  { %v3533_v29 = vpop.permute.xlu1 %3532  ;;  %v2525_v48 = vsel %vm2522_vm13, %v2407_v14, 1.0  ;;  %v2424_v16 = vsel %vm15417_vm1, %v2407_v14, 1.0  ;;  %vm8312_vm1 = vcmask 1041409  }
 0x362   :  { %v3616_v63 = vsel %vm2522_vm13, %v3533_v29, 1.0  ;;  %v2529_v0 = vmul.f32 %v2525_v48, %v2516_v21  ;;  %v3547_v54 = vsel %vm15418_vm2, %v3533_v29, 1.0  ;;  %v2428_v60 = vmul.f32 %v2424_v16, %v2391_v40  ;;  %v3875_v16 = vld [vmem:[#allocation2 + $0x60] sm:$0xf] }
 0x363   :  { %v3620_v7 = vmul.f32 %v3616_v63, %v3612_v58  ;;  %v3551_v31 = vmul.f32 %v3547_v54, %v3527_v61  ;;  %v3906_v15 = vcombine.high %v12613_v57, %v12613_v57  ;;  %vm8314_vm2 = vcmask 1042434  }
 0x364   :  { %v2417_v18 = vpop.permute.xlu0 %2416 }
 0x365   :  { %v3541_v37 = vpop.permute.xlu1 %3540  ;;  %9111 = vmatmul.mubr.msk.bf16.vlgmr.msra.gmra.mrb[32].mxu0 %vm2493_vm15, %v3835_v45  ;;  %v2527_v49 = vsel %vm2522_vm13, %v2417_v18, 1.0  ;;  %v2426_v32 = vsel %vm15422_vm4, %v2417_v18, 1.0  ;;  %vm8318_vm4 = vcmask 1044484  }
 0x366   :  { %9121 = vmatpush3.bf16.msra.mxu0 %v6045_v47  ;;  %9122 = vmatprep.mubr.msk.bf16.mxu0 %vm15220_vm14, %v15357_v28  ;;  %v3618_v44 = vsel %vm2522_vm13, %v3541_v37, 1.0  ;;  %v2531_v13 = vmul.f32 %v2527_v49, %v2518_v5  ;;  %v3549_v12 = vsel %vm15425_vm8, %v3541_v37, 1.0  ;;  %v2430_v22 = vmul.f32 %v2426_v32, %v2393_v26 }
 0x367   :  { %9132 = vmatprep.subr.bf16.mxu0 %v15357_v28  ;;  %v3622_v36 = vmul.f32 %v3618_v44, %v3614_v35  ;;  %v3553_v59 = vmul.f32 %v3549_v12, %v3529_v52  ;;  %v3891_v49 = vcombine.high %v3883_v43, %v3883_v43  ;;  %v15432_v35 = vld [vmem:[#allocation17_spill] sm:$0xff]  ;;  %v6321_v44 = vsel %vm5215_vm5, %v3875_v16, 0 }
 0x368   :  { %v2444_v25 = vpop.permute.xlu0 %2443  ;;  %v3885_v52 = vld [vmem:[%s14811_s5 + $0x10] sm:$0xff]  ;;  %vm8324_vm8 = vcmask 1047559  }
 0x369   :  { %v2538_v33 = vsel %vm2535_vm0, %v2444_v25, 1.0  ;;  %v3557_v62 = vpop.permute.xlu1 %3556  ;;  %v2461_v39 = vsel %vm15420_vm3, %v2444_v25, 1.0  ;;  %vm8316_vm3 = vcmask 1043459  }
 0x36a   :  { %v2542_v23 = vmul.f32 %v2538_v33, %v2529_v0  ;;  %v3624_v17 = vsel %vm2535_vm0, %v3557_v62, 1.0  ;;  %v3571_v9 = vsel %vm15424_vm7, %v3557_v62, 1.0  ;;  %v2465_v50 = vmul.f32 %v2461_v39, %v2428_v60  ;;  %v15431_v33 = vld [vmem:[#allocation11_spill] sm:$0xff]  ;;  %v3884_v39 = vld [vmem:[%s14811_s5 + $0x8] sm:$0xff] }
 0x36b   :  { %v3628_v2 = vmul.f32 %v3624_v17, %v3620_v7  ;;  %v3575_v20 = vmul.f32 %v3571_v9, %v3551_v31  ;;  %v6229_v0 = vsel %vm5215_vm5, %v3873_v55, 0  ;;  %v12631_v7 = vrot.slane %v3906_v15, %v15430_v11  ;;  %v15433_v17 = vld [vmem:[#allocation10_spill] sm:$0xff] }
 0x36c   :  { %2546 = vst.msk [vmem:[#allocation4] sm:$0xff] %vm2493_vm15, %v2542_v23  ;;  %v2550_v27 = vmul.f32 %v2542_v23, %v15421_v46  ;;  %v2454_v34 = vpop.permute.xlu0 %2453  ;;  %v12634_v23 = vrot.slane %v3891_v49, %v15430_v11  ;;  %v12655_v60 = vrot.slane %v3884_v39, %v15430_v11  ;;  %v3940_v31 = vcombine.high %v3884_v39, %v3884_v39 }
 0x36d   :  { %v2540_v14 = vsel %vm2535_vm0, %v2454_v34, 1.0  ;;  %3633 = vst.msk [vmem:[#allocation4 + $0x20] sm:$0xff] %vm2493_vm15, %v3628_v2  ;;  %3641 = vrot.lane.b32.xlu1 %v3628_v2, %s9455_s27  ;;  %v3565_v45 = vpop.permute.xlu1 %3564  ;;  %9123 = vmatmul.mubr.msk.bf16.vlgmr.msra.gmra.mrb[36].mxu0 %vm2493_vm15, %v3837_v41  ;;  %v2463_v41 = vsel %vm15426_vm9, %v2454_v34, 1.0  ;;  %v3877_v34 = vld [vmem:[#allocation2 + $0x68] sm:$0xf]  ;;  %v3989_v55 = vcombine.high %v3885_v52, %v3885_v52  ;;  %vm8322_vm7 = vcmask 1046534  }
 0x36e   :  { %2555 = vst.msk [vmem:[#allocation5] sm:$0xff] %vm15423_vm6, %v2550_v27  ;;  %v2544_v29 = vmul.f32 %v2540_v14, %v2531_v13  ;;  %v3626_v4 = vsel %vm2535_vm0, %v3565_v45, 1.0  ;;  %9133 = vmatpush3.bf16.msra.mxu0 %v6137_v10  ;;  %9134 = vmatprep.mubr.msk.bf16.mxu0 %vm15220_vm14, %v15357_v28  ;;  %v3573_v48 = vsel %vm15429_vm11, %v3565_v45, 1.0  ;;  %v2467_v37 = vmul.f32 %v2463_v41, %v2430_v22  ;;  %v3811_v27 = vld [vmem:[%s14810_s0 + $0x30] sm:$0x3]  ;;  %v12657_v14 = vpop.f32.mrb[0].mxu1 }
 0x36f   :  { %v3630_v47 = vmul.f32 %v3626_v4, %v3622_v36  ;;  %9144 = vmatprep.subr.bf16.mxu0 %v15357_v28  ;;  %v3577_v58 = vmul.f32 %v3573_v48, %v3553_v59  ;;  %v4930_v13 = vrot.slane %v12631_v7, %v15433_v17  ;;  %v3921_v51 = vrot.slane %v12634_v23, %v15430_v11  ;;  %v9022_v32 = vpop.f32.mrb[1].mxu1  ;;  %v3813_v4 = vld [vmem:[%s14810_s0 + $0x34] sm:$0x3]  ;;  %v3815_v22 = vld [vmem:[%s14810_s0 + $0x38] sm:$0x3] }
 0x370   :  { %2548 = vst.msk [vmem:[#allocation4 + $0x10] sm:$0xff] %vm2493_vm15, %v2544_v29  ;;  %v2552_v18 = vmul.f32 %v2544_v29, %v15427_v30  ;;  %v2472_v10 = vpop.permute.xlu0 %2471  ;;  %v3843_v2 = vpack.c.bf16 %v3811_v27, %v3811_v27  ;;  %15434 = vst [vmem:[#allocation92_spill] sm:$0xff] %v12657_v14  ;;  %v5302_v36 = vpop.f32.mrb[2].mxu1  ;;  %v6413_v9 = vsel %vm5215_vm5, %v3877_v34, 0  ;;  %v3963_v26 = vrot.slane %v12655_v60, %v15430_v11  ;;  %v12729_v27 = vld [vmem:[#allocation6] sm:$0xff] }
 0x371   :  { %v2489_v1 = vmul.f32 %v2472_v10, %v2465_v50  ;;  %3635 = vst.msk [vmem:[#allocation4 + $0x30] sm:$0xff] %vm2493_vm15, %v3630_v47  ;;  %3645 = vrot.lane.b32.xlu1 %v3630_v47, %s9455_s27  ;;  %v3581_v42 = vpop.permute.xlu1 %3580  ;;  %v4942_v61 = vrot.slane %v3921_v51, %v15433_v17  ;;  %v3937_v19 = vcombine.high %v3921_v51, %v3921_v51  ;;  %v9023_v29 = vpop.f32.mrb[3].mxu1  ;;  %v6505_v47 = vsel %vm5215_vm5, %v3879_v53, 0  ;;  %v15435_v34 = vld [vmem:[#allocation7_spill] sm:$0xff]  ;;  %v12758_v53 = vld [vmem:[#allocation6 + $0x10] sm:$0xff] }
 0x372   :  { %2557 = vst.msk [vmem:[#allocation5 + $0x10] sm:$0xff] %vm15428_vm10, %v2552_v18  ;;  %v3595_v21 = vmul.f32 %v3581_v42, %v3575_v20  ;;  %v3845_v50 = vpack.c.bf16 %v3813_v4, %v3813_v4  ;;  %v4958_v12 = vrot.slane %v3963_v26, %v15433_v17  ;;  %v3985_v41 = vcombine.high %v3963_v26, %v3963_v26  ;;  %v3881_v20 = vld [vmem:[#allocation2 + $0x78] sm:$0xf] }
 0x373   :  { %2494 = vst.msk [vmem:[#allocation3] sm:$0xff] %vm2493_vm15, %v2489_v1  ;;  %v4950_v45 = vrot.slane %v3937_v19, %v15433_v17  ;;  %v12672_v18 = vrot.slane %v3940_v31, %v15430_v11  ;;  %v3847_v1 = vpack.c.bf16 %v3815_v22, %v3815_v22  ;;  %v6597_v59 = vsel %vm5215_vm5, %v3881_v20, 0  ;;  %vm15436_vm5 = vmmov %vm15423_vm6 }
 0x374   :  { %v2482_v63 = vpop.permute.xlu0 %2481  ;;  %3600 = vst.msk [vmem:[#allocation3 + $0x20] sm:$0xff] %vm2493_vm15, %v3595_v21  ;;  %v4966_v10 = vrot.slane %v3985_v41, %v15433_v17  ;;  %v12739_v32 = vsub.s32 4, %v15435_v34  ;;  %vm15437_vm13 = vmmov %vm15436_vm5  ;;  %vm8320_vm6 = vcmask 1045509  }
 0x375   :  { %v2491_v40 = vmul.f32 %v2482_v63, %v2467_v37  ;;  %v3589_v6 = vpop.permute.xlu1 %3588  ;;  %9135 = vmatmul.mubr.msk.bf16.vlgmr.msra.gmra.mrb[40].mxu0 %vm2493_vm15, %v3839_v56  ;;  %v3970_v43 = vrot.slane %v12672_v18, %v15430_v11  ;;  %v12690_v56 = vrot.slane %v3885_v52, %v15430_v11  ;;  %v3817_v63 = vld [vmem:[%s14810_s0 + $0x3c] sm:$0x3]  ;;  %v3914_v52 = vrot.slane %v12613_v57, %v15430_v11  ;;  %vm15490_vm0 = vmmov %vm15436_vm5 }
 0x376   :  { %v3597_v25 = vmul.f32 %v3589_v6, %v3577_v58  ;;  %9145 = vmatpush3.bf16.msra.mxu0 %v6229_v0  ;;  %9146 = vmatprep.mubr.msk.bf16.mxu0 %vm15220_vm14, %v15357_v28  ;;  %v12704_v0 = vrot.slane %v3989_v55, %v15430_v11  ;;  %v6716_v36 = vrot.slane %v12729_v27, %v12739_v32 }
 0x377   :  { %2496 = vst.msk [vmem:[#allocation3 + $0x10] sm:$0xff] %vm2493_vm15, %v2491_v40  ;;  %9156 = vmatprep.subr.bf16.mxu0 %v15357_v28  ;;  %v4974_v48 = vrot.slane %v3970_v43, %v15433_v17  ;;  %v3986_v42 = vcombine.high %v3970_v43, %v3970_v43  ;;  %v4012_v37 = vrot.slane %v12690_v56, %v15430_v11 }
 0x378   :  { %v3644_v3 = vpop.permute.xlu0 %3643  ;;  %3602 = vst.msk [vmem:[#allocation3 + $0x30] sm:$0xff] %vm2493_vm15, %v3597_v25  ;;  %v3849_v40 = vpack.c.bf16 %v3817_v63, %v3817_v63  ;;  %v6828_v43 = vrot.slane %v12758_v53, %v12739_v32 }
 0x379   :  { %v3654_v5 = vmul.f32 %v3644_v3, %v15431_v33  ;;  %v4982_v21 = vrot.slane %v3986_v42, %v15433_v17  ;;  %v4990_v58 = vrot.slane %v4012_v37, %v15433_v17  ;;  %v4034_v6 = vcombine.high %v4012_v37, %v4012_v37 }
 0x37a   :  { %v12715_v3 = vrot.slane %v3886_v8, %v15430_v11  ;;  %v3936_v42 = vcombine.high %v3914_v52, %v3914_v52 }
 0x37b   :  { %3663 = vrot.lane.b32.xlu0 %v3654_v5, %s9456_s28  ;;  %v4998_v25 = vrot.slane %v4034_v6, %v15433_v17 }
 0x37c   :  { %v3648_v62 = vpop.permute.xlu0 %3647  ;;  %v4061_v5 = vrot.slane %v12715_v3, %v15430_v11  ;;  %v4934_v57 = vrot.slane %v3936_v42, %v15433_v17  ;;  %v4004_v42 = vcombine.high %v12690_v56, %v12690_v56 }
 0x37d   :  { %v3656_v54 = vmul.f32 %v3648_v62, %v15432_v35  ;;  %9147 = vmatmul.mubr.msk.bf16.vlgmr.msra.gmra.mrb[44].mxu0 %vm2493_vm15, %v3841_v38  ;;  %v4038_v38 = vcombine.high %v3886_v8, %v3886_v8 }
 0x37e   :  { %9157 = vmatpush3.bf16.msra.mxu0 %v6321_v44  ;;  %9158 = vmatprep.mubr.msk.bf16.mxu0 %vm15220_vm14, %v15357_v28  ;;  %v5022_v16 = vrot.slane %v4061_v5, %v15433_v17  ;;  %v4083_v62 = vcombine.high %v4061_v5, %v4061_v5 }
 0x37f   :  { %3667 = vrot.lane.b32.xlu0 %v3656_v54, %s9456_s28  ;;  %9168 = vmatprep.subr.bf16.mxu0 %v15357_v28  ;;  %v12722_v35 = vrot.slane %v4038_v38, %v15430_v11 }
 0x380   :  { %v5030_v54 = vrot.slane %v4083_v62, %v15433_v17 }
 0x381   :  { %v4068_v44 = vrot.slane %v12722_v35, %v15430_v11 }
 0x383   :  { %5056 = vperm.xlu0 %9214, %v4930_v13   ;;  %v5038_v13 = vrot.slane %v4068_v44, %v15433_v17  ;;  %v4084_v51 = vcombine.high %v4068_v44, %v4068_v44 }
 0x385   :  { %9159 = vmatmul.mubr.msk.bf16.vlgmr.msra.gmra.mrb[48].mxu0 %vm2493_vm15, %v3843_v2  ;;  %v5046_v39 = vrot.slane %v4084_v51, %v15433_v17  ;;  %v6688_v2 = vrot.slane %v12729_v27, %v15433_v17 }
 0x386   :  { %9169 = vmatpush3.bf16.msra.mxu0 %v6413_v9  ;;  %9170 = vmatprep.mubr.msk.bf16.mxu0 %vm15220_vm14, %v15357_v28  ;;  %v12744_v9 = vsub.s32 6, %v15435_v34 }
 0x387   :  { %5068 = vperm.xlu0 %9214, %v4942_v61   ;;  %9180 = vmatprep.subr.bf16.mxu0 %v15357_v28  ;;  %v12734_v61 = vsub.s32 2, %v15435_v34 }
 0x388   :  { %v6730_v29 = vrot.slane %v12729_v27, %v12744_v9  ;;  %v6842_v20 = vrot.slane %v12758_v53, %v12744_v9 }
 0x389   :  { %v6702_v19 = vrot.slane %v12729_v27, %v12734_v61  ;;  %v6814_v41 = vrot.slane %v12758_v53, %v12734_v61 }
 0x38b   :  { %5076 = vperm.xlu0 %9214, %v4950_v45   ;;  %v12748_v45 = vld [vmem:[#allocation6 + $0x8] sm:$0xff] }
 0x38c   :  { %v6744_v26 = vrot.slane %v12748_v45, %v15433_v17  ;;  %v6758_v31 = vrot.slane %v12748_v45, %v12734_v61  ;;  %v6772_v4 = vrot.slane %v12748_v45, %v12739_v32 }
 0x38d   :  { %9171 = vmatmul.mubr.msk.bf16.vlgmr.msra.gmra.mrb[52].mxu0 %vm2493_vm15, %v3845_v50  ;;  %v6786_v50 = vrot.slane %v12748_v45, %v12744_v9 }
 0x38e   :  { %9181 = vmatpush3.bf16.msra.mxu0 %v6505_v47  ;;  %9182 = vmatprep.mubr.msk.bf16.mxu0 %vm15220_vm14, %v15357_v28 }
 0x38f   :  { %5084 = vperm.xlu0 %9214, %v4958_v12   ;;  %9192 = vmatprep.subr.bf16.mxu0 %v15357_v28  ;;  %v6800_v12 = vrot.slane %v12758_v53, %v15433_v17 }
 0x393   :  { %5092 = vperm.xlu0 %9214, %v4966_v10  }
 0x395   :  { %9183 = vmatmul.mubr.msk.bf16.vlgmr.msra.gmra.mrb[56].mxu0 %vm2493_vm15, %v3847_v1 }
 0x396   :  { %9193 = vmatpush3.bf16.msra.mxu0 %v6597_v59  ;;  %9194 = vmatprep.mubr.msk.bf16.mxu0 %vm15220_vm14, %v15357_v28  ;;  %v4019_v28 = vrot.slane %v12704_v0, %v15430_v11  ;;  %vm7805_vm14 = vcmask 58368  }
 0x397   :  { %5100 = vperm.xlu0 %9214, %v4974_v48   ;;  %v12775_v48 = vld [vmem:[#allocation6 + $0x18] sm:$0xff] }
 0x398   :  { %v5006_v15 = vrot.slane %v4019_v28, %v15433_v17  ;;  %v4035_v49 = vcombine.high %v4019_v28, %v4019_v28  ;;  %v6856_v59 = vrot.slane %v12775_v48, %v15433_v17  ;;  %v6870_v55 = vrot.slane %v12775_v48, %v12734_v61  ;;  %v12795_v28 = vpop.f32.mrb[4].mxu1 }
 0x399   :  { %15438 = vst [vmem:[#allocation32_spill] sm:$0xff] %v12795_v28  ;;  %v9034_v8 = vpop.f32.mrb[5].mxu1 }
 0x39a   :  { %v5014_v33 = vrot.slane %v4035_v49, %v15433_v17  ;;  %v5394_v38 = vpop.f32.mrb[6].mxu1 }
 0x39b   :  { %5108 = vperm.xlu0 %9214, %v4982_v21   ;;  %v3907_v21 = vcombine.high %v12634_v23, %v12634_v23 }
 0x39d   :  { %9195 = vmatmul.mubr.msk.bf16.vlgmr.msra.gmra.mrb[60].mxu0 %vm2493_vm15, %v3849_v40  ;;  %v3935_v40 = vrot.slane %v3907_v21, %v15430_v11  ;;  %vm15483_vm15 = vmmov %vm15436_vm5 }
 0x39f   :  { %5116 = vperm.xlu0 %9214, %v4990_v58   ;;  %v4946_v23 = vrot.slane %v3935_v40, %v15433_v17  ;;  %v3939_v6 = vcombine.high %v3935_v40, %v3935_v40 }
 0x3a1   :  { %v4954_v49 = vrot.slane %v3939_v6, %v15433_v17 }
 0x3a3   :  { %5124 = vperm.xlu0 %9214, %v4998_v25   ;;  %v3955_v25 = vcombine.high %v12655_v60, %v12655_v60 }
 0x3a5   :  { %v3977_v5 = vrot.slane %v3955_v25, %v15430_v11  ;;  %v4005_v25 = vcombine.high %v12704_v0, %v12704_v0 }
 0x3a7   :  { %5132 = vperm.xlu0 %9214, %v5006_v15   ;;  %v6898_v15 = vrot.slane %v12775_v48, %v12744_v9  ;;  %v4962_v51 = vrot.slane %v3977_v5, %v15433_v17 }
 0x3ab   :  { %5140 = vperm.xlu0 %9214, %v5014_v33   ;;  %v12800_v33 = vld [vmem:[#allocation6 + $0x20] sm:$0xff] }
 0x3ac   :  { %v7136_v60 = vrot.slane %v12800_v33, %v15433_v17 }
 0x3af   :  { %5148 = vperm.xlu0 %9214, %v5022_v16   ;;  %v9035_v16 = vpop.f32.mrb[7].mxu1 }
 0x3b3   :  { %5156 = vperm.xlu0 %9214, %v5030_v54   ;;  %v12805_v54 = vpop.f32.mrb[8].mxu1 }
 0x3b4   :  { %15439 = vst [vmem:[#allocation33_spill] sm:$0xff] %v12805_v54 }
 0x3b7   :  { %5164 = vperm.xlu0 %9214, %v5038_v13   ;;  %v9046_v13 = vpop.f32.mrb[9].mxu1 }
 0x3bb   :  { %5172 = vperm.xlu0 %9214, %v5046_v39   ;;  %v3987_v39 = vcombine.high %v3977_v5, %v3977_v5 }
 0x3bf   :  { %6690 = vbcast.lane.b32.xlu0 %v6688_v2, 256 }
 0x3c3   :  { %6704 = vbcast.lane.b32.xlu0 %v6702_v19, 256  ;;  %v3956_v19 = vcombine.high %v12672_v18, %v12672_v18 }
 0x3c7   :  { %6718 = vbcast.lane.b32.xlu0 %v6716_v36, 256  ;;  %v5486_v36 = vpop.f32.mrb[10].mxu1 }
 0x3cb   :  { %6732 = vbcast.lane.b32.xlu0 %v6730_v29, 256 }
 0x3cf   :  { %6746 = vbcast.lane.b32.xlu0 %v6744_v26, 256  ;;  %v9047_v26 = vpop.f32.mrb[11].mxu1 }
 0x3d3   :  { %6760 = vbcast.lane.b32.xlu0 %v6758_v31, 256  ;;  %v12812_v31 = vpop.f32.mrb[12].mxu1 }
 0x3d4   :  { %15440 = vst [vmem:[#allocation44_spill] sm:$0xff] %v12812_v31 }
 0x3d7   :  { %6774 = vbcast.lane.b32.xlu0 %v6772_v4, 256  ;;  %v9058_v4 = vpop.f32.mrb[13].mxu1 }
 0x3d8   :  { %v4053_v4 = vcombine.high %v12715_v3, %v12715_v3 }
 0x3db   :  { %6788 = vbcast.lane.b32.xlu0 %v6786_v50, 256  ;;  %v7150_v50 = vrot.slane %v12800_v33, %v12734_v61 }
 0x3df   :  { %6802 = vbcast.lane.b32.xlu0 %v6800_v12, 256  ;;  %v3642_v47 = vpop.permute.xlu1 %3641  ;;  %v4970_v12 = vrot.slane %v3987_v39, %v15433_v17 }
 0x3e0   :  { %v3653_v10 = vmul.f32 %v3642_v47, %v15421_v46  ;;  %v4926_v46 = vrot.slane %v3914_v52, %v15433_v17  ;;  %v5578_v47 = vpop.f32.mrb[14].mxu1 }
 0x3e2   :  { %3661 = vrot.lane.b32.xlu1 %v3653_v10, %s9456_s28  ;;  %v9059_v10 = vpop.f32.mrb[15].mxu1 }
 0x3e3   :  { %6816 = vbcast.lane.b32.xlu0 %v6814_v41, 256  ;;  %v3646_v22 = vpop.permute.xlu1 %3645  ;;  %v3984_v41 = vrot.slane %v3956_v19, %v15430_v11 }
 0x3e4   :  { %v3655_v1 = vmul.f32 %v3646_v22, %v15427_v30  ;;  %v3938_v30 = vcombine.high %v12631_v7, %v12631_v7  ;;  %v6884_v7 = vrot.slane %v12775_v48, %v12739_v32  ;;  %v7164_v22 = vrot.slane %v12800_v33, %v12739_v32 }
 0x3e6   :  { %3665 = vrot.lane.b32.xlu1 %v3655_v1, %s9456_s28  ;;  %v4938_v63 = vrot.slane %v3938_v30, %v15433_v17  ;;  %v4978_v1 = vrot.slane %v3984_v41, %v15433_v17  ;;  %v7178_v30 = vrot.slane %v12800_v33, %v12744_v9 }
 0x3e7   :  { %6830 = vbcast.lane.b32.xlu0 %v6828_v43, 256 }
 0x3ea   :  { %5052 = vperm.xlu1 %9215, %v4926_v46   ;;  %v3988_v46 = vcombine.high %v3984_v41, %v3984_v41 }
 0x3eb   :  { %6844 = vbcast.lane.b32.xlu0 %v6842_v20, 256 }
 0x3ec   :  { %v4986_v21 = vrot.slane %v3988_v46, %v15433_v17 }
 0x3ed   :  { %v3664_v37 = vpop.permute.xlu0 %3663 }
 0x3ee   :  { %3675 = vst.msk [vmem:[#allocation5 + $0x28] sm:$0xff] %vm15436_vm5, %v3664_v37  ;;  %5060 = vperm.xlu1 %9215, %v4934_v57   ;;  %v12832_v37 = vld [vmem:[#allocation6 + $0x28] sm:$0xff] }
 0x3ef   :  { %6858 = vbcast.lane.b32.xlu0 %v6856_v59, 256  ;;  %v7192_v56 = vrot.slane %v12832_v37, %v15433_v17  ;;  %v7206_v16 = vrot.slane %v12832_v37, %v12734_v61  ;;  %v7220_v19 = vrot.slane %v12832_v37, %v12739_v32 }
 0x3f1   :  { %v3668_v58 = vpop.permute.xlu0 %3667 }
 0x3f2   :  { %3677 = vst.msk [vmem:[#allocation5 + $0x38] sm:$0xff] %vm15437_vm13, %v3668_v58  ;;  %5064 = vperm.xlu1 %9215, %v4938_v63  }
 0x3f3   :  { %6872 = vbcast.lane.b32.xlu0 %v6870_v55, 256  ;;  %v4026_v55 = vrot.slane %v4004_v42, %v15430_v11 }
 0x3f5   :  { %v4036_v6 = vcombine.high %v4026_v55, %v4026_v55 }
 0x3f6   :  { %5072 = vperm.xlu1 %9215, %v4946_v23  }
 0x3f7   :  { %6886 = vbcast.lane.b32.xlu0 %v6884_v7, 256  ;;  %v4994_v7 = vrot.slane %v4026_v55, %v15433_v17 }
 0x3f8   :  { %v12803_v62 = vpop.f32.mrb[0].mxu0 }
 0x3f9   :  { %v9016_v44 = vpop.f32.mrb[1].mxu0 }
 0x3fa   :  { %5080 = vperm.xlu1 %9215, %v4954_v49   ;;  %v5256_v2 = vpop.f32.mrb[2].mxu0  ;;  %v4033_v44 = vrot.slane %v4005_v25, %v15430_v11 }
 0x3fb   :  { %6900 = vbcast.lane.b32.xlu0 %v6898_v15, 256  ;;  %v9017_v29 = vpop.f32.mrb[3].mxu0  ;;  %v12844_v15 = vpop.f32.mrb[16].mxu1 }
 0x3fc   :  { %15442 = vst [vmem:[#allocation54_spill] sm:$0xff] %v12844_v15  ;;  %v9070_v49 = vpop.f32.mrb[17].mxu1  ;;  %v5010_v36 = vrot.slane %v4033_v44, %v15433_v17  ;;  %v4037_v26 = vcombine.high %v4033_v44, %v4033_v44 }
 0x3fd   :  { %v5670_v38 = vpop.f32.mrb[18].mxu1 }
 0x3fe   :  { %5088 = vperm.xlu1 %9215, %v4962_v51   ;;  %v9071_v13 = vpop.f32.mrb[19].mxu1 }
 0x3ff   :  { %7138 = vbcast.lane.b32.xlu0 %v7136_v60, 256  ;;  %v5002_v60 = vrot.slane %v4036_v6, %v15433_v17  ;;  %v12854_v0 = vpop.f32.mrb[20].mxu1 }
 0x400   :  { %v12818_v43 = vpop.f32.mrb[4].mxu0  ;;  %15443 = vst [vmem:[#allocation59_spill] sm:$0xff] %v12854_v0 }
 0x401   :  { %v9028_v52 = vpop.f32.mrb[5].mxu0 }
 0x402   :  { %v12820_v18 = vpop.permute.xlu0 %5056  ;;  %5096 = vperm.xlu1 %9215, %v4970_v12   ;;  %v5348_v20 = vpop.f32.mrb[6].mxu0  ;;  %v7234_v52 = vrot.slane %v12832_v37, %v12744_v9 }
 0x403   :  { %15441 = vst [vmem:[#allocation49_spill] sm:$0xff] %v12820_v18  ;;  %7152 = vbcast.lane.b32.xlu0 %v7150_v50, 256  ;;  %v9029_v59 = vpop.f32.mrb[7].mxu0  ;;  %v9082_v50 = vpop.f32.mrb[21].mxu1  ;;  %v4075_v20 = vrot.slane %v4053_v4, %v15430_v11 }
 0x404   :  { %v5762_v41 = vpop.f32.mrb[22].mxu1 }
 0x405   :  { %v9083_v47 = vpop.f32.mrb[23].mxu1 }
 0x406   :  { %v12827_v57 = vpop.permute.xlu0 %5068  ;;  %5104 = vperm.xlu1 %9215, %v4978_v1   ;;  %v12868_v1 = vld [vmem:[#allocation6 + $0x30] sm:$0xff]  ;;  %v12871_v46 = vpop.f32.mrb[24].mxu1 }
 0x407   :  { %7166 = vbcast.lane.b32.xlu0 %v7164_v22, 256  ;;  %v5018_v22 = vrot.slane %v4037_v26, %v15433_v17  ;;  %15445 = vst [vmem:[#allocation69_spill] sm:$0xff] %v12871_v46  ;;  %v9094_v3 = vpop.f32.mrb[25].mxu1  ;;  %v7248_v55 = vrot.slane %v12868_v1, %v15433_v17  ;;  %v7276_v26 = vrot.slane %v12868_v1, %v12739_v32  ;;  %v4088_v46 = vld [vmem:[#allocation3 + $0x8] sm:$0xff] }
 0x408   :  { %v12835_v63 = vpop.f32.mrb[8].mxu0  ;;  %v5854_v59 = vpop.f32.mrb[26].mxu1 }
 0x409   :  { %v9040_v58 = vpop.f32.mrb[9].mxu0  ;;  %v9095_v6 = vpop.f32.mrb[27].mxu1  ;;  %v7290_v59 = vrot.slane %v12868_v1, %v12744_v9 }
 0x40a   :  { %v12837_v40 = vpop.permute.xlu0 %5076  ;;  %5112 = vperm.xlu1 %9215, %v4986_v21   ;;  %v5440_v23 = vpop.f32.mrb[10].mxu0  ;;  %v5026_v58 = vrot.slane %v4075_v20, %v15433_v17 }
 0x40b   :  { %7180 = vbcast.lane.b32.xlu0 %v7178_v30, 256  ;;  %v9041_v8 = vpop.f32.mrb[11].mxu0  ;;  %v4054_v23 = vcombine.high %v12722_v35, %v12722_v35 }
 0x40c   :  { %v12882_v8 = vpop.f32.mrb[28].mxu1 }
 0x40d   :  { %15447 = vst [vmem:[#allocation79_spill] sm:$0xff] %v12882_v8  ;;  %v9106_v38 = vpop.f32.mrb[29].mxu1  ;;  %v4082_v44 = vrot.slane %v4054_v23, %v15430_v11 }
 0x40e   :  { %v12846_v5 = vpop.permute.xlu0 %5084  ;;  %5120 = vperm.xlu1 %9215, %v4994_v7   ;;  %v4085_v7 = vcombine.high %v4075_v20, %v4075_v20  ;;  %v5946_v13 = vpop.f32.mrb[30].mxu1 }
 0x40f   :  { %7194 = vbcast.lane.b32.xlu0 %v7192_v56, 256  ;;  %v5042_v4 = vrot.slane %v4082_v44, %v15433_v17  ;;  %v12920_v13 = vsub.s32 3, %v15435_v34 }
 0x410   :  { %v12852_v51 = vpop.f32.mrb[12].mxu0 }
 0x411   :  { %v9052_v2 = vpop.f32.mrb[13].mxu0 }
 0x412   :  { %v12856_v39 = vpop.permute.xlu0 %5092  ;;  %5128 = vperm.xlu1 %9215, %v5002_v60   ;;  %v5532_v29 = vpop.f32.mrb[14].mxu0  ;;  %v5034_v60 = vrot.slane %v4085_v7, %v15433_v17 }
 0x413   :  { %7208 = vbcast.lane.b32.xlu0 %v7206_v16, 256  ;;  %v9053_v12 = vpop.f32.mrb[15].mxu0  ;;  %v7262_v16 = vrot.slane %v12868_v1, %v12734_v61  ;;  %v9107_v2 = vpop.f32.mrb[31].mxu1 }
 0x414   :  { %v12892_v35 = vpop.f32.mrb[32].mxu1  ;;  %v4086_v12 = vcombine.high %v4082_v44, %v4082_v44 }
 0x415   :  { %15450 = vst [vmem:[#allocation20_spill] sm:$0xff] %v12892_v35  ;;  %v9118_v41 = vpop.f32.mrb[33].mxu1 }
 0x416   :  { %v12863_v10 = vpop.permute.xlu0 %5100  ;;  %5136 = vperm.xlu1 %9215, %v5010_v36  }
 0x417   :  { %15444 = vst [vmem:[#allocation64_spill] sm:$0xff] %v12863_v10  ;;  %7222 = vbcast.lane.b32.xlu0 %v7220_v19, 256 }
 0x418   :  { %v12873_v42 = vpop.f32.mrb[16].mxu0 }
 0x419   :  { %v9064_v21 = vpop.f32.mrb[17].mxu0 }
 0x41a   :  { %v12875_v30 = vpop.permute.xlu0 %5108  ;;  %5144 = vperm.xlu1 %9215, %v5018_v22   ;;  %v5624_v56 = vpop.f32.mrb[18].mxu0  ;;  %v5050_v21 = vrot.slane %v4086_v12, %v15433_v17 }
 0x41b   :  { %15446 = vst [vmem:[#allocation74_spill] sm:$0xff] %v12875_v30  ;;  %7236 = vbcast.lane.b32.xlu0 %v7234_v52, 256  ;;  %v9065_v25 = vpop.f32.mrb[19].mxu0  ;;  %v6038_v52 = vpop.f32.mrb[34].mxu1  ;;  %v12909_v56 = vld [vmem:[#allocation6 + $0x38] sm:$0xff] }
 0x41c   :  { %v9119_v22 = vpop.f32.mrb[35].mxu1  ;;  %15454 = vst [vmem:[#allocation16_spill] sm:$0xff] %v12909_v56  ;;  %v7318_v41 = vrot.slane %v12909_v56, %v12734_v61  ;;  %v12931_v52 = vsub.s32 5, %v15435_v34  ;;  %v7332_v61 = vrot.slane %v12909_v56, %v12739_v32 }
 0x41d   :  { %v12901_v3 = vpop.f32.mrb[36].mxu1 }
 0x41e   :  { %v12884_v49 = vpop.permute.xlu0 %5116  ;;  %5152 = vperm.xlu1 %9215, %v5026_v58   ;;  %15453 = vst [vmem:[#allocation62_spill] sm:$0xff] %v12901_v3  ;;  %v9130_v58 = vpop.f32.mrb[37].mxu1 }
 0x41f   :  { %15448 = vst [vmem:[#allocation41_spill] sm:$0xff] %v12884_v49  ;;  %7250 = vbcast.lane.b32.xlu0 %v7248_v55, 256  ;;  %v12907_v55 = vsub.s32 1, %v15435_v34  ;;  %v6130_v7 = vpop.f32.mrb[38].mxu1 }
 0x420   :  { %v12890_v19 = vpop.f32.mrb[20].mxu0  ;;  %v9131_v6 = vpop.f32.mrb[39].mxu1 }
 0x421   :  { %15449 = vst [vmem:[#allocation61_spill] sm:$0xff] %v12890_v19  ;;  %v9076_v29 = vpop.f32.mrb[21].mxu0  ;;  %v12922_v2 = vpop.f32.mrb[40].mxu1 }
 0x422   :  { %v12894_v36 = vpop.permute.xlu0 %5124  ;;  %5160 = vperm.xlu1 %9215, %v5034_v60   ;;  %v5716_v50 = vpop.f32.mrb[22].mxu0  ;;  %v6695_v60 = vrot.slane %v12729_v27, %v12907_v55  ;;  %15457 = vst [vmem:[#allocation94_spill] sm:$0xff] %v12922_v2 }
 0x423   :  { %15451 = vst [vmem:[#allocation21_spill] sm:$0xff] %v12894_v36  ;;  %7264 = vbcast.lane.b32.xlu0 %v7262_v16, 256  ;;  %v9077_v47 = vpop.f32.mrb[23].mxu0  ;;  %v7304_v16 = vrot.slane %v12909_v56, %v15433_v17 }
 0x424   :  { %v6709_v47 = vrot.slane %v12729_v27, %v12920_v13 }
 0x426   :  { %v12899_v20 = vpop.permute.xlu0 %5132  ;;  %5168 = vperm.xlu1 %9215, %v5042_v4  }
 0x427   :  { %15452 = vst [vmem:[#allocation60_spill] sm:$0xff] %v12899_v20  ;;  %7278 = vbcast.lane.b32.xlu0 %v7276_v26, 256  ;;  %v9142_v26 = vpop.f32.mrb[41].mxu1 }
 0x428   :  { %v12911_v23 = vpop.f32.mrb[24].mxu0  ;;  %v6222_v4 = vpop.f32.mrb[42].mxu1 }
 0x429   :  { %15455 = vst [vmem:[#allocation63_spill] sm:$0xff] %v12911_v23  ;;  %v9088_v38 = vpop.f32.mrb[25].mxu0  ;;  %v9143_v12 = vpop.f32.mrb[43].mxu1  ;;  %v7346_v4 = vrot.slane %v12909_v56, %v12744_v9 }
 0x42a   :  { %v12913_v25 = vpop.permute.xlu0 %5140  ;;  %5176 = vperm.xlu1 %9215, %v5050_v21   ;;  %v5808_v44 = vpop.f32.mrb[26].mxu0  ;;  %v6723_v38 = vrot.slane %v12729_v27, %v12931_v52 }
 0x42b   :  { %15456 = vst [vmem:[#allocation110_spill] sm:$0xff] %v12913_v25  ;;  %7292 = vbcast.lane.b32.xlu0 %v7290_v59, 256  ;;  %v9089_v29 = vpop.f32.mrb[27].mxu0  ;;  %v12933_v22 = vpop.f32.mrb[44].mxu1 }
 0x42c   :  { %15459 = vst [vmem:[#allocation117_spill] sm:$0xff] %v12933_v22  ;;  %v9154_v59 = vpop.f32.mrb[45].mxu1 }
 0x42d   :  { %v6314_v58 = vpop.f32.mrb[46].mxu1  ;;  %v6751_v59 = vrot.slane %v12748_v45, %v12907_v55 }
 0x42e   :  { %v12924_v50 = vpop.permute.xlu0 %5148  ;;  %6697 = vbcast.lane.b32.xlu1 %v6695_v60, 256  ;;  %v12944_v60 = vsub.s32 7, %v15435_v34  ;;  %v9155_v44 = vpop.f32.mrb[47].mxu1 }
 0x42f   :  { %15458 = vst [vmem:[#allocation95_spill] sm:$0xff] %v12924_v50  ;;  %7306 = vbcast.lane.b32.xlu0 %v7304_v16, 256  ;;  %v6765_v44 = vrot.slane %v12748_v45, %v12920_v13 }
 0x430   :  { %v12935_v21 = vpop.f32.mrb[28].mxu0  ;;  %v6737_v12 = vrot.slane %v12729_v27, %v12944_v60  ;;  %v6849_v20 = vrot.slane %v12758_v53, %v12944_v60 }
 0x431   :  { %15460 = vst [vmem:[#allocation65_spill] sm:$0xff] %v12935_v21  ;;  %v9100_v6 = vpop.f32.mrb[29].mxu0 }
 0x432   :  { %v12937_v7 = vpop.permute.xlu0 %5156  ;;  %6711 = vbcast.lane.b32.xlu1 %v6709_v47, 256  ;;  %v5900_v16 = vpop.f32.mrb[30].mxu0 }
 0x433   :  { %15461 = vst [vmem:[#allocation85_spill] sm:$0xff] %v12937_v7  ;;  %7320 = vbcast.lane.b32.xlu0 %v7318_v41, 256  ;;  %v9101_v29 = vpop.f32.mrb[31].mxu0  ;;  %v12954_v41 = vpop.f32.mrb[48].mxu1 }
 0x434   :  { %15464 = vst [vmem:[#allocation66_spill] sm:$0xff] %v12954_v41  ;;  %v9166_v6 = vpop.f32.mrb[49].mxu1  ;;  %v4496_v41 = vld [vmem:[#allocation4] sm:$0xff] }
 0x435   :  { %v6779_v6 = vrot.slane %v12748_v45, %v12931_v52  ;;  %v4504_v15 = vcombine.high %v4496_v41, %v4496_v41 }
 0x436   :  { %v12946_v26 = vpop.permute.xlu0 %5164  ;;  %6725 = vbcast.lane.b32.xlu1 %v6723_v38, 256  ;;  %v6406_v38 = vpop.f32.mrb[50].mxu1 }
 0x437   :  { %15462 = vst [vmem:[#allocation114_spill] sm:$0xff] %v12946_v26  ;;  %7334 = vbcast.lane.b32.xlu0 %v7332_v61, 256  ;;  %v9167_v9 = vpop.f32.mrb[51].mxu1  ;;  %v4497_v38 = vld [vmem:[#allocation4 + $0x8] sm:$0xff] }
 0x438   :  { %v12952_v32 = vpop.f32.mrb[32].mxu0  ;;  %v12962_v27 = vpop.f32.mrb[52].mxu1 }
 0x439   :  { %15463 = vst [vmem:[#allocation75_spill] sm:$0xff] %v12952_v32  ;;  %v9112_v34 = vpop.f32.mrb[33].mxu0  ;;  %15466 = vst [vmem:[#allocation67_spill] sm:$0xff] %v12962_v27  ;;  %v9178_v29 = vpop.f32.mrb[53].mxu1  ;;  %v13111_v32 = vld [vmem:[%s14810_s0 + $0x4] sm:$0x3] }
 0x43a   :  { %v12956_v47 = vpop.permute.xlu0 %5172  ;;  %6739 = vbcast.lane.b32.xlu1 %v6737_v12, 256  ;;  %v5992_v58 = vpop.f32.mrb[34].mxu0  ;;  %v12977_v29 = vrot.slane %v4497_v38, %v15430_v11 }
 0x43b   :  { %15465 = vst [vmem:[#allocation96_spill] sm:$0xff] %v12956_v47  ;;  %7348 = vbcast.lane.b32.xlu0 %v7346_v4, 256  ;;  %v9113_v61 = vpop.f32.mrb[35].mxu0  ;;  %v6498_v34 = vpop.f32.mrb[54].mxu1  ;;  %v4499_v47 = vld [vmem:[#allocation4 + $0x18] sm:$0xff] }
 0x43c   :  { %v9179_v12 = vpop.f32.mrb[55].mxu1  ;;  %15469 = vst [vmem:[#allocation86_spill] sm:$0xff] %v12977_v29  ;;  %v4568_v35 = vcombine.high %v12977_v29, %v12977_v29  ;;  %v13055_v18 = vrot.slane %v4499_v47, %v15430_v11 }
 0x43d   :  { %v12972_v27 = vpop.f32.mrb[56].mxu1  ;;  %v6793_v12 = vrot.slane %v12748_v45, %v12944_v60  ;;  %v6807_v45 = vrot.slane %v12758_v53, %v12907_v55 }
 0x43e   :  { %v12960_v16 = vpop.permute.xlu0 %6690  ;;  %6753 = vbcast.lane.b32.xlu1 %v6751_v59, 256  ;;  %15468 = vst [vmem:[#allocation115_spill] sm:$0xff] %v12972_v27  ;;  %v9190_v34 = vpop.f32.mrb[57].mxu1  ;;  %15482 = vst [vmem:[#allocation12_spill] sm:$0xff] %v13055_v18 }
 0x43f   :  { %v4553_v34 = vcombine.high %v4497_v38, %v4497_v38  ;;  %v12999_v38 = vrot.slane %v4568_v35, %v15430_v11 }
 0x440   :  { %v12966_v4 = vpop.f32.mrb[36].mxu0 }
 0x441   :  { %15467 = vst [vmem:[#allocation23_spill] sm:$0xff] %v12966_v4  ;;  %v9124_v58 = vpop.f32.mrb[37].mxu0 }
 0x442   :  { %v12968_v24 = vpop.permute.xlu0 %6704  ;;  %6767 = vbcast.lane.b32.xlu1 %v6765_v44, 256  ;;  %v6084_v61 = vpop.f32.mrb[38].mxu0  ;;  %v4702_v58 = vld [vmem:[#allocation4 + $0x28] sm:$0xff] }
 0x443   :  { %v9125_v9 = vpop.f32.mrb[39].mxu0  ;;  %v6590_v44 = vpop.f32.mrb[58].mxu1  ;;  %v4511_v61 = vrot.slane %v4496_v41, %v15430_v11  ;;  %v4144_v41 = vcombine.high %v4088_v46, %v4088_v46 }
 0x444   :  { %v9191_v22 = vpop.f32.mrb[59].mxu1  ;;  %v4758_v44 = vcombine.high %v4702_v58, %v4702_v58 }
 0x445   :  { %v12984_v9 = vpop.f32.mrb[60].mxu1  ;;  %v4519_v31 = vcombine.high %v4511_v61, %v4511_v61 }
 0x446   :  { %v12974_v59 = vpop.permute.xlu0 %6718  ;;  %6781 = vbcast.lane.b32.xlu1 %v6779_v6, 256  ;;  %15471 = vst [vmem:[#allocation45_spill] sm:$0xff] %v12984_v9  ;;  %v12991_v6 = vrot.slane %v4702_v58, %v15430_v11  ;;  %v9202_v8 = vpop.f32.mrb[61].mxu1 }
 0x447   :  { %v6682_v9 = vpop.f32.mrb[62].mxu1  ;;  %v13007_v8 = vrot.slane %v4088_v46, %v15430_v11 }
 0x448   :  { %v12981_v2 = vpop.f32.mrb[40].mxu0  ;;  %15472 = vst [vmem:[#allocation26_spill] sm:$0xff] %v12991_v6  ;;  %v9203_v54 = vpop.f32.mrb[63].mxu1  ;;  %v4773_v58 = vcombine.high %v12991_v6, %v12991_v6  ;;  %v4090_v6 = vld [vmem:[#allocation3 + $0x18] sm:$0xff] }
 0x449   :  { %15470 = vst [vmem:[#allocation76_spill] sm:$0xff] %v12981_v2  ;;  %v9136_v3 = vpop.f32.mrb[41].mxu0  ;;  %v13011_v54 = vld [vmem:[#allocation4 + $0x38] sm:$0xff]  ;;  %v13050_v50 = vrot.slane %v4090_v6, %v15430_v11 }
 0x44a   :  { %v12986_v27 = vpop.permute.xlu0 %6732  ;;  %6795 = vbcast.lane.b32.xlu1 %v6793_v12, 256  ;;  %v6176_v22 = vpop.f32.mrb[42].mxu0  ;;  %v4527_v3 = vrot.slane %v4511_v61, %v15430_v11  ;;  %v13002_v12 = vrot.slane %v4553_v34, %v15430_v11  ;;  %15474 = vst [vmem:[#allocation102_spill] sm:$0xff] %v13011_v54  ;;  %v13014_v61 = vrot.slane %v4758_v44, %v15430_v11 }
 0x44b   :  { %v9137_v0 = vpop.f32.mrb[43].mxu0  ;;  %v13020_v22 = vrot.slane %v4519_v31, %v15430_v11  ;;  %v7877_v44 = vrot.slane %v12999_v38, %v15433_v17  ;;  %v13032_v7 = vrot.slane %v4773_v58, %v15430_v11  ;;  %v13036_v31 = vrot.slane %v13011_v54, %v15430_v11  ;;  %15481 = vst [vmem:[#allocation68_spill] sm:$0xff] %v13050_v50 }
 0x44c   :  { %15473 = vst [vmem:[#allocation116_spill] sm:$0xff] %v13002_v12  ;;  %v6821_v0 = vrot.slane %v12758_v53, %v12920_v13  ;;  %15475 = vst [vmem:[#allocation18_spill] sm:$0xff] %v13014_v61  ;;  %v7841_v9 = vrot.slane %v4527_v3, %v15433_v17  ;;  %v4549_v34 = vcombine.high %v4527_v3, %v4527_v3 }
 0x44d   :  { %15477 = vst [vmem:[#allocation77_spill] sm:$0xff] %v13020_v22  ;;  %v4569_v26 = vcombine.high %v13002_v12, %v13002_v12  ;;  %15479 = vst [vmem:[#allocation87_spill] sm:$0xff] %v13036_v31  ;;  %v6835_v3 = vrot.slane %v12758_v53, %v12931_v52  ;;  %v4551_v61 = vcombine.high %v13020_v22, %v13020_v22 }
 0x44e   :  { %v12996_v29 = vpop.permute.xlu0 %6746  ;;  %6809 = vbcast.lane.b32.xlu1 %v6807_v45, 256  ;;  %v13023_v45 = vrot.slane %v4504_v15, %v15430_v11  ;;  %v13040_v15 = vrot.slane %v13007_v8, %v15430_v11  ;;  %v7849_v58 = vrot.slane %v4549_v34, %v15433_v17  ;;  %v4242_v34 = vcombine.high %v4090_v6, %v4090_v6 }
 0x44f   :  { %v4597_v22 = vrot.slane %v4569_v26, %v15430_v11  ;;  %v13096_v6 = vrot.slane %v13050_v50, %v15430_v11  ;;  %v4666_v26 = vcombine.high %v13055_v18, %v13055_v18  ;;  %v7853_v18 = vrot.slane %v4551_v61, %v15433_v17 }
 0x450   :  { %v13016_v35 = vpop.f32.mrb[44].mxu0  ;;  %15478 = vst [vmem:[#allocation47_spill] sm:$0xff] %v13023_v45  ;;  %v4520_v2 = vcombine.high %v13023_v45, %v13023_v45  ;;  %v4189_v45 = vcombine.high %v13040_v15, %v13040_v15  ;;  %v8000_v50 = vmul.f32 %v13111_v32, %v7849_v58  ;;  %v13124_v49 = vrot.slane %v4242_v34, %v15430_v11 }
 0x451   :  { %15476 = vst [vmem:[#allocation103_spill] sm:$0xff] %v13016_v35  ;;  %v9148_v28 = vpop.f32.mrb[45].mxu0  ;;  %v13052_v35 = vld [vmem:[#allocation3 + $0x28] sm:$0xff]  ;;  %15487 = vst [vmem:[#allocation97_spill] sm:$0xff] %v13096_v6  ;;  %v7893_v58 = vrot.slane %v4597_v22, %v15433_v17  ;;  %v4287_v34 = vcombine.high %v13096_v6, %v13096_v6  ;;  %v4688_v21 = vrot.slane %v4666_v26, %v15430_v11 }
 0x452   :  { %v13025_v46 = vpop.permute.xlu0 %6760  ;;  %6823 = vbcast.lane.b32.xlu1 %v6821_v0, 256  ;;  %v13043_v28 = vrot.slane %v4144_v41, %v15430_v11  ;;  %v6268_v14 = vpop.f32.mrb[46].mxu0  ;;  %v4651_v0 = vcombine.high %v4499_v47, %v4499_v47  ;;  %v13076_v41 = vld [vmem:[%s14810_s0 + $0x12] sm:$0x3]  ;;  %v4548_v56 = vrot.slane %v4520_v2, %v15430_v11  ;;  %15492 = vst [vmem:[#allocation105_spill] sm:$0xff] %v13124_v49 }
 0x453   :  { %v9149_v12 = vpop.f32.mrb[47].mxu0  ;;  %v13062_v14 = vld [vmem:[%s14810_s0] sm:$0x3]  ;;  %v8007_v54 = vmul.f32 %v13076_v41, %v7877_v44  ;;  %v13092_v44 = vrot.slane %v13052_v35, %v15430_v11  ;;  %v13130_v2 = vrot.slane %v4189_v45, %v15433_v17  ;;  %v8036_v45 = vsel %vm7805_vm14, %v8000_v50, 0.0  ;;  %v13156_v50 = vld [vmem:[%s14810_s0 + $0x16] sm:$0x3] }
 0x454   :  { %15480 = vst [vmem:[#allocation22_spill] sm:$0xff] %v13043_v28  ;;  %v3662_v25 = vpop.permute.xlu1 %3661  ;;  %v7998_v12 = vmul.f32 %v13062_v14, %v7841_v9  ;;  %v4600_v9 = vcombine.high %v12999_v38, %v12999_v38  ;;  %v4349_v38 = vcombine.high %v13052_v35, %v13052_v35  ;;  %v13103_v4 = vrot.slane %v4651_v0, %v15430_v11 }
 0x455   :  { %3674 = vst.msk [vmem:[#allocation5 + $0x20] sm:$0xff] %vm15483_vm15, %v3662_v25  ;;  %v13086_v25 = vrot.slane %v13043_v28, %v15430_v11  ;;  %15486 = vst [vmem:[#allocation78_spill] sm:$0xff] %v13092_v44 }
 0x456   :  { %v13071_v47 = vpop.permute.xlu0 %6774  ;;  %6837 = vbcast.lane.b32.xlu1 %v6835_v3, 256  ;;  %15488 = vst [vmem:[#allocation51_spill] sm:$0xff] %v13103_v4  ;;  %v8030_v53 = vsel %vm7805_vm14, %v7998_v12, 0.0  ;;  %v7885_v12 = vrot.slane %v4600_v9, %v15433_v17  ;;  %v4667_v61 = vcombine.high %v13103_v4, %v13103_v4  ;;  %v13161_v4 = vrot.slane %v13124_v49, %v15430_v11 }
 0x457   :  { %15484 = vst [vmem:[#allocation31_spill] sm:$0xff] %v13071_v47  ;;  %15485 = vst [vmem:[#allocation88_spill] sm:$0xff] %v13086_v25 }
 0x458   :  { %v3666_v3 = vpop.permute.xlu1 %3665  ;;  %v13105_v36 = vpop.f32.mrb[48].mxu0  ;;  %v8009_v26 = vmul.f32 %v13156_v50, %v7885_v12  ;;  %15495 = vst [vmem:[#allocation52_spill] sm:$0xff] %v13161_v4  ;;  %v13175_v12 = vrot.slane %v4349_v38, %v15430_v11  ;;  %v13193_v38 = vld [vmem:[%s14810_s0 + $0xa] sm:$0x3] }
 0x459   :  { %15489 = vst [vmem:[#allocation104_spill] sm:$0xff] %v13105_v36  ;;  %3676 = vst.msk [vmem:[#allocation5 + $0x30] sm:$0xff] %vm15490_vm0, %v3666_v3  ;;  %v9160_v0 = vpop.f32.mrb[49].mxu0  ;;  %v13120_v36 = vsel %vm7805_vm14, %v8007_v54, 0.0  ;;  %v4190_v3 = vcombine.high %v13086_v25, %v13086_v25  ;;  %v6863_v54 = vrot.slane %v12775_v48, %v12907_v55 }
 0x45a   :  { %v13117_v35 = vpop.permute.xlu0 %6788  ;;  %8031 = vadd.xlane.f32.xlu0 %v8030_v53  ;;  %6851 = vbcast.lane.b32.xlu1 %v6849_v20, 256  ;;  %v6360_v53 = vpop.f32.mrb[50].mxu0  ;;  %v4601_v0 = vcombine.high %v4597_v22, %v4597_v22  ;;  %v13145_v20 = vld [vmem:[%s14810_s0 + $0x6] sm:$0x3]  ;;  %15496 = vst [vmem:[#allocation48_spill] sm:$0xff] %v13175_v12  ;;  %15500 = vst [vmem:[#allocation106_spill] sm:$0xff] %v13193_v38 }
 0x45b   :  { %15491 = vst [vmem:[#allocation70_spill] sm:$0xff] %v13117_v35  ;;  %v9161_v9 = vpop.f32.mrb[51].mxu0  ;;  %15493 = vst [vmem:[#allocation80_spill] sm:$0xff] %v13145_v20  ;;  %v8001_v35 = vmul.f32 %v13145_v20, %v7853_v18  ;;  %v7861_v53 = vrot.slane %v4548_v56, %v15433_v17  ;;  %v9392_v18 = vld [vmem:[%s14810_s0 + $0x1a] sm:$0x3]  ;;  %v13178_v49 = vrot.slane %v4190_v3, %v15433_v17 }
 0x45c   :  { %v4552_v9 = vcombine.high %v4548_v56, %v4548_v56  ;;  %v8011_v56 = vmul.f32 %v9392_v18, %v7893_v58  ;;  %v13181_v20 = vrot.slane %v4287_v34, %v15433_v17  ;;  %v7901_v58 = vrot.slane %v4601_v0, %v15433_v17  ;;  %v4295_v18 = vld [vmem:[#allocation3 + $0x38] sm:$0xff] }
 0x45d   :  { %15497 = vst [vmem:[#allocation81_spill] sm:$0xff] %v13178_v49  ;;  %v8003_v3 = vmul.f32 %v13193_v38, %v7861_v53  ;;  %v13200_v0 = vsel %vm7805_vm14, %v8009_v26, 0.0  ;;  %v7941_v49 = vrot.slane %v4688_v21, %v15433_v17  ;;  %v6891_v53 = vrot.slane %v12775_v48, %v12931_v52 }
 0x45e   :  { %v13151_v30 = vpop.permute.xlu0 %6802  ;;  %8037 = vadd.xlane.f32.xlu0 %v8036_v45  ;;  %6865 = vbcast.lane.b32.xlu1 %v6863_v54, 256  ;;  %v6877_v45 = vrot.slane %v12775_v48, %v12920_v13  ;;  %15498 = vst [vmem:[#allocation71_spill] sm:$0xff] %v13181_v20  ;;  %v13185_v54 = vrot.slane %v4667_v61, %v15430_v11 }
 0x45f   :  { %15494 = vst [vmem:[#allocation24_spill] sm:$0xff] %v13151_v30  ;;  %v13172_v30 = vrot.slane %v13092_v44, %v15430_v11  ;;  %v8039_v44 = vsel %vm7805_vm14, %v8001_v35, 0.0  ;;  %v7869_v34 = vrot.slane %v4552_v9, %v15433_v17  ;;  %v4698_v20 = vcombine.high %v4688_v21, %v4688_v21  ;;  %v9394_v21 = vld [vmem:[%s14810_s0 + $0x1e] sm:$0x3] }
 0x460   :  { %v13187_v22 = vpop.f32.mrb[52].mxu0  ;;  %v4288_v35 = vcombine.high %v13161_v4, %v13161_v4  ;;  %v13214_v26 = vrot.slane %v13175_v12, %v15430_v11  ;;  %v4699_v38 = vcombine.high %v13185_v54, %v13185_v54  ;;  %v8045_v12 = vsel %vm7805_vm14, %v8003_v3, 0.0  ;;  %v13235_v4 = vld [vmem:[#allocation4 + $0x10] sm:$0xff] }
 0x461   :  { %15499 = vst [vmem:[#allocation99_spill] sm:$0xff] %v13187_v22  ;;  %v9172_v61 = vpop.f32.mrb[53].mxu0  ;;  %v13203_v22 = vsel %vm7805_vm14, %v8011_v56, 0.0  ;;  %v13217_v56 = vrot.slane %v4295_v18, %v15430_v11  ;;  %v7949_v23 = vrot.slane %v4698_v20, %v15433_v17  ;;  %v13246_v3 = vld [vmem:[%s14810_s0 + $0x32] sm:$0x3]  ;;  %v4871_v20 = vcombine.high %v13036_v31, %v13036_v31 }
 0x462   :  { %v13197_v6 = vpop.permute.xlu0 %6816  ;;  %8040 = vadd.xlane.f32.xlu0 %v8039_v44  ;;  %6879 = vbcast.lane.b32.xlu1 %v6877_v45, 256  ;;  %v6452_v9 = vpop.f32.mrb[54].mxu0  ;;  %v4394_v44 = vcombine.high %v13172_v30, %v13172_v30  ;;  %15502 = vst [vmem:[#allocation27_spill] sm:$0xff] %v13214_v26  ;;  %v8013_v45 = vmul.f32 %v9394_v21, %v7901_v58 }
 0x463   :  { %15501 = vst [vmem:[#allocation89_spill] sm:$0xff] %v13197_v6  ;;  %15503 = vst [vmem:[#allocation107_spill] sm:$0xff] %v13217_v56  ;;  %v9173_v61 = vpop.f32.mrb[55].mxu0  ;;  %v4447_v58 = vcombine.high %v4295_v18, %v4295_v18  ;;  %v13241_v9 = vrot.slane %v4288_v35, %v15433_v17  ;;  %v8023_v25 = vmul.f32 %v13246_v3, %v7941_v49  ;;  %v4087_v18 = vld [vmem:[#allocation3] sm:$0xff] }
 0x464   :  { %v13232_v61 = vld [vmem:[%s14810_s0 + $0xe] sm:$0x3]  ;;  %v13256_v35 = vrot.slane %v4394_v44, %v15433_v17  ;;  %v13262_v49 = vrot.slane %v13217_v56, %v15430_v11  ;;  %v13269_v31 = vrot.slane %v13235_v4, %v15430_v11  ;;  %v13280_v56 = vld [vmem:[%s14810_s0 + $0x36] sm:$0x3] }
 0x465   :  { %15504 = vst [vmem:[#allocation57_spill] sm:$0xff] %v13232_v61  ;;  %v8005_v6 = vmul.f32 %v13232_v61, %v7869_v34  ;;  %15506 = vst [vmem:[#allocation90_spill] sm:$0xff] %v13241_v9  ;;  %v7957_v34 = vrot.slane %v13185_v54, %v15433_v17  ;;  %v4395_v9 = vcombine.high %v13214_v26, %v13214_v26  ;;  %v13265_v54 = vsel %vm7805_vm14, %v8013_v45, 0.0  ;;  %v4089_v26 = vld [vmem:[#allocation3 + $0x10] sm:$0xff] }
 0x466   :  { %v13238_v21 = vpop.permute.xlu0 %6830  ;;  %8046 = vadd.xlane.f32.xlu0 %v8045_v12  ;;  %6893 = vbcast.lane.b32.xlu1 %v6891_v53, 256  ;;  %v6905_v12 = vrot.slane %v12775_v48, %v12944_v60  ;;  %15507 = vst [vmem:[#allocation28_spill] sm:$0xff] %v13256_v35  ;;  %15508 = vst [vmem:[#allocation82_spill] sm:$0xff] %v13262_v49  ;;  %v7965_v53 = vrot.slane %v4699_v38, %v15433_v17 }
 0x467   :  { %15505 = vst [vmem:[#allocation42_spill] sm:$0xff] %v13238_v21  ;;  %15509 = vst [vmem:[#allocation72_spill] sm:$0xff] %v13269_v31  ;;  %v8394_v48 = vrot.slane %v13032_v7, %v15433_v17  ;;  %v8051_v61 = vsel %vm7805_vm14, %v8005_v6, 0.0  ;;  %v8025_v45 = vmul.f32 %v13280_v56, %v7949_v23  ;;  %v13286_v35 = vrot.slane %v4447_v58, %v15430_v11 }
 0x468   :  { %v13274_v44 = vpop.f32.mrb[56].mxu0  ;;  %15511 = vst [vmem:[#allocation109_spill] sm:$0xff] %v13280_v56  ;;  %v4095_v38 = vcombine.high %v4087_v18, %v4087_v18  ;;  %v13293_v6 = vsel %vm7805_vm14, %v8023_v25, 0.0  ;;  %v13299_v56 = vrot.slane %v4871_v20, %v15430_v11  ;;  %v7143_v21 = vrot.slane %v12800_v33, %v12907_v55 }
 0x469   :  { %15510 = vst [vmem:[#allocation25_spill] sm:$0xff] %v13274_v44  ;;  %15512 = vst [vmem:[#allocation108_spill] sm:$0xff] %v13286_v35  ;;  %v13290_v10 = vpop.permute.xlu1 %5052  ;;  %v9398_v44 = vld [vmem:[%s14810_s0 + $0x3a] sm:$0x3]  ;;  %v9184_v58 = vpop.f32.mrb[57].mxu0  ;;  %v4492_v25 = vcombine.high %v13262_v49, %v13262_v49  ;;  %v4602_v20 = vcombine.high %v13235_v4, %v13235_v4  ;;  %v4805_v4 = vcombine.high %v13032_v7, %v13032_v7 }
 0x46a   :  { %v13288_v47 = vpop.permute.xlu0 %6844  ;;  %8052 = vadd.xlane.f32.xlu0 %v8051_v61  ;;  %v8027_v23 = vmul.f32 %v9398_v44, %v7957_v34  ;;  %15514 = vst [vmem:[#allocation34_spill] sm:$0xff] %v13299_v56  ;;  %6907 = vbcast.lane.b32.xlu1 %v6905_v12, 256  ;;  %v4159_v61 = vcombine.high %v13007_v8, %v13007_v8  ;;  %v6544_v19 = vpop.f32.mrb[58].mxu0  ;;  %v9399_v12 = vld [vmem:[%s14810_s0 + $0x3e] sm:$0x3]  ;;  %v13322_v8 = vsel %vm7805_vm14, %v8025_v45, 0.0 }
 0x46b   :  { %15513 = vst [vmem:[#allocation98_spill] sm:$0xff] %v13288_v47  ;;  %v13304_v47 = vrot.slane %v4395_v9, %v15433_v17  ;;  %v4617_v34 = vcombine.high %v13269_v31, %v13269_v31  ;;  %v8029_v9 = vmul.f32 %v9399_v12, %v7965_v53  ;;  %v8524_v44 = vmul.f32 %v13076_v41, %v8394_v48 }
 0x46c   :  { %v13319_v58 = vrot.slane %v4087_v18, %v15430_v11  ;;  %v13326_v19 = vrot.slane %v13286_v35, %v15430_v11  ;;  %v13331_v31 = vrot.slane %v4095_v38, %v15430_v11  ;;  %v8458_v48 = vrot.slane %v13299_v56, %v15433_v17  ;;  %v4292_v38 = vld [vmem:[#allocation3 + $0x20] sm:$0xff] }
 0x46d   :  { %15515 = vst [vmem:[#allocation14_spill] sm:$0xff] %v13304_v47  ;;  %v9185_v47 = vpop.f32.mrb[59].mxu0  ;;  %v13335_v41 = vpop.permute.xlu1 %5060  ;;  %v13346_v7 = vrot.slane %v4089_v26, %v15430_v11  ;;  %v7157_v45 = vrot.slane %v12800_v33, %v12920_v13  ;;  %v13351_v12 = vrot.slane %v4492_v25, %v15433_v17  ;;  %v13358_v18 = vrot.slane %v4602_v20, %v15430_v11 }
 0x46e   :  { %15516 = vst [vmem:[#allocation46_spill] sm:$0xff] %v13326_v19  ;;  %v13333_v53 = vpop.permute.xlu0 %6858  ;;  %8058 = vadd.xlane.f32.xlu0 %v13120_v36  ;;  %v13339_v47 = vsel %vm7805_vm14, %v8027_v23, 0.0  ;;  %7145 = vbcast.lane.b32.xlu1 %v7143_v21, 256  ;;  %v13354_v36 = vrot.slane %v4159_v61, %v15430_v11  ;;  %v4639_v23 = vrot.slane %v4617_v34, %v15430_v11  ;;  %v13361_v35 = vsel %vm7805_vm14, %v8029_v9, 0.0 }
 0x46f   :  { %15517 = vst [vmem:[#allocation83_spill] sm:$0xff] %v13333_v53  ;;  %15518 = vst [vmem:[#allocation29_spill] sm:$0xff] %v13339_v47  ;;  %v13364_v21 = vsel %vm7805_vm14, %v8524_v44, 0.0  ;;  %v13368_v49 = vrot.slane %v13319_v58, %v15430_v11  ;;  %v4493_v61 = vcombine.high %v13326_v19, %v13326_v19  ;;  %v8402_v34 = vrot.slane %v4805_v4, %v15433_v17  ;;  %v13407_v47 = vld [vmem:[#allocation4 + $0x20] sm:$0xff]  ;;  %v13511_v19 = vld [vmem:[%s14810_s0 + $0x2a] sm:$0x3] }
 0x470   :  { %15519 = vst [vmem:[#allocation30_spill] sm:$0xff] %v13346_v7  ;;  %15520 = vst [vmem:[#allocation111_spill] sm:$0xff] %v13351_v12  ;;  %v13370_v25 = vpop.f32.mrb[60].mxu0  ;;  %v13379_v9 = vrot.slane %v13331_v31, %v15430_v11  ;;  %v4193_v44 = vcombine.high %v4089_v26, %v4089_v26  ;;  %v8540_v53 = vmul.f32 %v13246_v3, %v8458_v48 }
 0x471   :  { %15521 = vst [vmem:[#allocation58_spill] sm:$0xff] %v13354_v36  ;;  %15522 = vst [vmem:[#allocation19_spill] sm:$0xff] %v13358_v18  ;;  %v13392_v4 = vrot.slane %v13346_v7, %v15430_v11  ;;  %v7171_v20 = vrot.slane %v12800_v33, %v12931_v52  ;;  %v4618_v3 = vcombine.high %v13358_v18, %v13358_v18 }
 0x472   :  { %15523 = vst [vmem:[#allocation112_spill] sm:$0xff] %v13361_v35  ;;  %15524 = vst [vmem:[#allocation53_spill] sm:$0xff] %v13364_v21  ;;  %v13381_v12 = vpop.permute.xlu0 %6872  ;;  %v13383_v21 = vpop.permute.xlu1 %5064  ;;  %8064 = vadd.xlane.f32.xlu0 %v13200_v0  ;;  %7159 = vbcast.lane.b32.xlu1 %v7157_v45, 256  ;;  %v4140_v45 = vcombine.high %v13368_v49, %v13368_v49  ;;  %v7909_v35 = vrot.slane %v4639_v23, %v15433_v17 }
 0x473   :  { %15525 = vst [vmem:[#allocation55_spill] sm:$0xff] %v13370_v25  ;;  %15526 = vst [vmem:[#allocation84_spill] sm:$0xff] %v13381_v12  ;;  %v13387_v25 = vrot.slane %v4292_v38, %v15430_v11  ;;  %v9196_v0 = vpop.f32.mrb[61].mxu0  ;;  %v4300_v12 = vcombine.high %v4292_v38, %v4292_v38  ;;  %v13410_v26 = vrot.slane %v4493_v61, %v15433_v17  ;;  %v13428_v61 = vsel %vm7805_vm14, %v8540_v53, 0.0 }
 0x474   :  { %15527 = vst [vmem:[#allocation43_spill] sm:$0xff] %v13383_v21  ;;  %v4649_v21 = vcombine.high %v4639_v23, %v4639_v23  ;;  %v6636_v7 = vpop.f32.mrb[62].mxu0  ;;  %v13413_v0 = vmul.f32 %v13156_v50, %v8402_v34  ;;  %v4141_v28 = vcombine.high %v13379_v9, %v13379_v9  ;;  %v13418_v48 = vrot.slane %v4193_v44, %v15430_v11 }
 0x475   :  { %15528 = vst [vmem:[#allocation73_spill] sm:$0xff] %v13387_v25  ;;  %15529 = vst [vmem:[#allocation101_spill] sm:$0xff] %v13410_v26  ;;  %v9197_v38 = vpop.f32.mrb[63].mxu0  ;;  %v4323_v23 = vrot.slane %v13387_v25, %v15430_v11  ;;  %v4238_v50 = vcombine.high %v13392_v4, %v13392_v4  ;;  %v5179_v34 = vmul.f32 %v13062_v14, %v13290_v10  ;;  %v13481_v26 = vld [vmem:[%s14810_s0 + $0x26] sm:$0x3] }
 0x476   :  { %15530 = vst [vmem:[#allocation91_spill] sm:$0xff] %v13413_v0  ;;  %15531 = vst [vmem:[#allocation50_spill] sm:$0xff] %v13418_v48  ;;  %v13420_v7 = vpop.permute.xlu0 %6886  ;;  %v13422_v18 = vpop.permute.xlu1 %5072  ;;  %8070 = vadd.xlane.f32.xlu0 %v13203_v22  ;;  %7173 = vbcast.lane.b32.xlu1 %v7171_v20, 256  ;;  %v7185_v44 = vrot.slane %v12800_v33, %v12944_v60  ;;  %v7917_v22 = vrot.slane %v4649_v21, %v15433_v17  ;;  %v13453_v21 = vld [vmem:[%s14810_s0 + $0x22] sm:$0x3] }
 0x477   :  { %15532 = vst [vmem:[#allocation93_spill] sm:$0xff] %v13428_v61  ;;  %v13440_v25 = vrot.slane %v4300_v12, %v15430_v11  ;;  %v4646_v53 = vrot.slane %v4618_v3, %v15430_v11  ;;  %v6912_v10 = vrot.slane %v13368_v49, %v15433_v17  ;;  %v6920_v20 = vrot.slane %v4140_v45, %v15433_v17 }
 0x478   :  { %v6928_v33 = vrot.slane %v13379_v9, %v15433_v17  ;;  %v8015_v12 = vmul.f32 %v13453_v21, %v7909_v35  ;;  %v13457_v3 = vrot.slane %v4141_v28, %v15433_v17  ;;  %v13463_v49 = vrot.slane %v13418_v48, %v15430_v11  ;;  %v4294_v48 = vld [vmem:[#allocation3 + $0x30] sm:$0xff]  ;;  %15536 = vst [vmem:[#allocation56_spill] sm:$0xff] %v13481_v26 }
 0x479   :  { %15533 = vst [vmem:[#allocation113_spill] sm:$0xff] %v13440_v25  ;;  %v4345_v0 = vcombine.high %v4323_v23, %v4323_v23  ;;  %v13471_v36 = vrot.slane %v4238_v50, %v15433_v17  ;;  %v5254_v28 = vadd.f32 %v12803_v62, %v5179_v34  ;;  %v5181_v35 = vmul.f32 %v13111_v32, %v13335_v41 }
 0x47a   :  { %v13465_v45 = vpop.permute.xlu0 %6900  ;;  %v13467_v9 = vpop.permute.xlu1 %5080  ;;  %8076 = vadd.xlane.f32.xlu0 %v13265_v54  ;;  %7187 = vbcast.lane.b32.xlu1 %v7185_v44, 256  ;;  %v7199_v38 = vrot.slane %v12832_v37, %v12907_v55  ;;  %v8017_v54 = vmul.f32 %v13481_v26, %v7917_v22  ;;  %v4330_v50 = vrot.slane %v13440_v25, %v15430_v11  ;;  %v8081_v56 = vsel %vm7805_vm14, %v8015_v12, 0.0 }
 0x47b   :  { %15534 = vst [vmem:[#allocation35_spill] sm:$0xff] %v13465_v45  ;;  %15535 = vst [vmem:[#allocation40_spill] sm:$0xff] %v13467_v9  ;;  %v7925_v62 = vrot.slane %v4646_v53, %v15433_v17  ;;  %v13489_v41 = vrot.slane %v13407_v47, %v15430_v11  ;;  %v7069_v34 = vmul.f32 %v6912_v10, %v12960_v16 }
 0x47c   :  { %v7360_v44 = vrot.slane %v4323_v23, %v15433_v17  ;;  %v4650_v61 = vcombine.high %v4646_v53, %v4646_v53  ;;  %v4239_v22 = vcombine.high %v13463_v49, %v13463_v49  ;;  %v7368_v9 = vrot.slane %v4345_v0, %v15433_v17  ;;  %15539 = vst [vmem:[#allocation39_spill] sm:$0xff] %v13511_v19 }
 0x47d   :  { %v13502_v45 = vrot.slane %v4294_v48, %v15430_v11  ;;  %v5346_v16 = vadd.f32 %v12818_v43, %v5181_v35  ;;  %v7101_v23 = vadd.f32 %v7069_v34, %v5254_v28  ;;  %v7213_v53 = vrot.slane %v12832_v37, %v12920_v13  ;;  %v13519_v43 = vld [vmem:[%s14810_s0 + $0x8] sm:$0x3] }
 0x47e   :  { %v7139_v25 = vpop.permute.xlu0 %7138  ;;  %v13498_v26 = vpop.permute.xlu1 %5088  ;;  %8082 = vadd.xlane.f32.xlu0 %v8081_v56  ;;  %7201 = vbcast.lane.b32.xlu1 %v7199_v38, 256  ;;  %v8087_v12 = vsel %vm7805_vm14, %v8017_v54, 0.0  ;;  %v8019_v56 = vmul.f32 %v13511_v19, %v7925_v62  ;;  %v4346_v0 = vcombine.high %v4330_v50, %v4330_v50  ;;  %15540 = vst [vmem:[#allocation36_spill] sm:$0xff] %v13519_v43 }
 0x47f   :  { %15537 = vst [vmem:[#allocation15_spill] sm:$0xff] %v13498_v26  ;;  %15538 = vst [vmem:[#allocation37_spill] sm:$0xff] %v13502_v45  ;;  %v7517_v10 = vmul.f32 %v7360_v44, %v7139_v25  ;;  %v4732_v26 = vrot.slane %v13489_v41, %v15430_v11  ;;  %v5183_v25 = vmul.f32 %v13519_v43, %v12827_v57 }
 0x480   :  { %v7071_v38 = vmul.f32 %v6920_v20, %v12968_v24  ;;  %v7933_v35 = vrot.slane %v4650_v61, %v15433_v17  ;;  %v13528_v54 = vrot.slane %v4239_v22, %v15433_v17  ;;  %v7227_v44 = vrot.slane %v12832_v37, %v12931_v52 }
 0x481   :  { %v13524_v28 = vadd.f32 %v7517_v10, %v7101_v23  ;;  %v13536_v19 = vrot.slane %v13502_v45, %v15430_v11  ;;  %v4398_v57 = vcombine.high %v4294_v48, %v4294_v48  ;;  %v7073_v24 = vmul.f32 %v6928_v33, %v12974_v59  ;;  %v13550_v59 = vld [vmem:[%s14810_s0 + $0x2e] sm:$0x3]  ;;  %v13556_v33 = vld [vmem:[%s14810_s0 + $0xc] sm:$0x3] }
 0x482   :  { %v7153_v62 = vpop.permute.xlu0 %7152  ;;  %v13530_v34 = vpop.permute.xlu1 %5096  ;;  %8088 = vadd.xlane.f32.xlu0 %v8087_v12  ;;  %v7103_v61 = vadd.f32 %v7071_v38, %v5346_v16  ;;  %7215 = vbcast.lane.b32.xlu1 %v7213_v53, 256  ;;  %v7376_v22 = vrot.slane %v4330_v50, %v15433_v17  ;;  %v8093_v10 = vsel %vm7805_vm14, %v8019_v56, 0.0  ;;  %v7384_v12 = vrot.slane %v4346_v0, %v15433_v17 }
 0x483   :  { %15541 = vst [vmem:[#allocation38_spill] sm:$0xff] %v13530_v34  ;;  %v8916_v20 = vmul.f32 -1.442695, %v13524_v28  ;;  %v7519_v23 = vmul.f32 %v7368_v9, %v7153_v62  ;;  %v8358_v43 = vrot.slane %v4732_v26, %v15433_v17  ;;  %v5438_v34 = vadd.f32 %v12835_v63, %v5183_v25 }
 0x484   :  { %v8021_v48 = vmul.f32 %v13550_v59, %v7933_v35  ;;  %v5185_v9 = vmul.f32 %v13556_v33, %v12837_v40  ;;  %v7241_v16 = vrot.slane %v12832_v37, %v12944_v60  ;;  %v4754_v53 = vcombine.high %v4732_v26, %v4732_v26 }
 0x485   :  { %9259 = vpow2.f32 %v8916_v20  ;;  %v13545_v45 = vadd.f32 %v7519_v23, %v7103_v61  ;;  %v13565_v56 = vrot.slane %v4398_v57, %v15430_v11  ;;  %v7105_v0 = vadd.f32 %v7073_v24, %v5438_v34 }
 0x486   :  { %v7167_v50 = vpop.permute.xlu0 %7166  ;;  %v13560_v63 = vpop.permute.xlu1 %5104  ;;  %8094 = vadd.xlane.f32.xlu0 %v8093_v10  ;;  %v7075_v25 = vmul.f32 %v13457_v3, %v12986_v27  ;;  %7229 = vbcast.lane.b32.xlu1 %v7227_v44, 256  ;;  %v8515_v40 = vmul.f32 %v13062_v14, %v8358_v43  ;;  %v4443_v62 = vcombine.high %v13536_v19, %v13536_v19  ;;  %v8099_v44 = vsel %vm7805_vm14, %v8021_v48, 0.0  ;;  %v13588_v14 = vld [vmem:[%s14810_s0 + $0x10] sm:$0x3] }
 0x487   :  { %15542 = vst [vmem:[#allocation9_spill] sm:$0xff] %v13565_v56  ;;  %v8918_v38 = vmul.f32 -1.442695, %v13545_v45  ;;  %v7521_v35 = vmul.f32 %v7376_v22, %v7167_v50  ;;  %v4724_v37 = vcombine.high %v13489_v41, %v13489_v41  ;;  %v15543_v26 = vcombine.high %v13407_v47, %v13407_v47 }
 0x488   :  { %v5530_v27 = vadd.f32 %v12852_v51, %v5185_v9  ;;  %v5187_v41 = vmul.f32 %v13588_v14, %v12846_v5  ;;  %v7255_v51 = vrot.slane %v12868_v1, %v12907_v55  ;;  %v8366_v47 = vrot.slane %v4754_v53, %v15433_v17 }
 0x489   :  { %v13579_v34 = vrot.slane %v15543_v26, %v15430_v11  ;;  %9261 = vpow2.f32 %v8918_v38  ;;  %v13582_v3 = vadd.f32 %v7521_v35, %v7105_v0  ;;  %v13599_v24 = vrot.slane %v13565_v56, %v15430_v11  ;;  %v15561_v35 = vld [vmem:[#allocation27_spill] sm:$0xff]  ;;  %v15570_v56 = vld [vmem:[#allocation24_spill] sm:$0xff] }
 0x48a   :  { %v7181_v43 = vpop.permute.xlu0 %7180  ;;  %v13592_v57 = vpop.permute.xlu1 %5112  ;;  %8100 = vadd.xlane.f32.xlu0 %v8099_v44  ;;  %v7107_v20 = vadd.f32 %v7075_v25, %v5530_v27  ;;  %v15545_v61 = vrot.slane %v13040_v15, %v15433_v17  ;;  %7243 = vbcast.lane.b32.xlu1 %v7241_v16, 256  ;;  %v13609_v48 = vrot.slane %v4443_v62, %v15433_v17  ;;  %v13620_v15 = vsel %vm7805_vm14, %v8515_v40, 0.0 }
 0x48b   :  { %15544 = vst [vmem:[#allocation13_spill] sm:$0xff] %v13579_v34  ;;  %v8920_v5 = vmul.f32 -1.442695, %v13582_v3  ;;  %v7523_v22 = vmul.f32 %v7384_v12, %v7181_v43  ;;  %v13612_v9 = vrot.slane %v4724_v37, %v15430_v11  ;;  %v4725_v50 = vcombine.high %v13579_v34, %v13579_v34  ;;  %v13625_v12 = vld [vmem:[%s14810_s0 + $0x14] sm:$0x3] }
 0x48c   :  { %v7077_v23 = vmul.f32 %v15545_v61, %v12996_v29  ;;  %v5622_v53 = vadd.f32 %v12873_v42, %v5187_v41  ;;  %v5189_v16 = vmul.f32 %v13625_v12, %v12856_v39  ;;  %v7269_v42 = vrot.slane %v12868_v1, %v12920_v13  ;;  %v15548_v41 = vld [vmem:[#allocation61_spill] sm:$0xff] }
 0x48d   :  { %15546 = vst [vmem:[#allocation8_spill] sm:$0xff] %v13612_v9  ;;  %9263 = vpow2.f32 %v8920_v5  ;;  %v13617_v29 = vadd.f32 %v7523_v22, %v7107_v20  ;;  %v8517_v38 = vmul.f32 %v13111_v32, %v8366_v47  ;;  %v7079_v37 = vmul.f32 %v13130_v2, %v13025_v46  ;;  %v13658_v2 = vld [vmem:[%s14810_s0 + $0x18] sm:$0x3] }
 0x48e   :  { %v7195_v0 = vpop.permute.xlu0 %7194  ;;  %v13629_v25 = vpop.permute.xlu1 %5120  ;;  %8106 = vadd.xlane.f32.xlu0 %v13293_v6  ;;  %v7109_v62 = vadd.f32 %v7077_v23, %v5622_v53  ;;  %v15547_v26 = vrot.slane %v13172_v30, %v15433_v17  ;;  %7257 = vbcast.lane.b32.xlu1 %v7255_v51, 256  ;;  %v4756_v1 = vcombine.high %v13612_v9, %v13612_v9  ;;  %v15550_v51 = vld [vmem:[#allocation64_spill] sm:$0xff]  ;;  %v9409_v23 = vld [vmem:[#allocation6 + $0x30] sm:$0xff]  ;;  %v15551_v53 = vld [vmem:[#allocation31_spill] sm:$0xff] }
 0x48f   :  { %v9260_v40 = vpop.eup %9259  ;;  %v8922_v39 = vmul.f32 -1.442695, %v13617_v29  ;;  %v4444_v32 = vcombine.high %v13599_v24, %v13599_v24  ;;  %v13648_v44 = vrot.slane %v4725_v50, %v15430_v11  ;;  %v5714_v43 = vadd.f32 %v15548_v41, %v5189_v16  ;;  %15549 = vst [vmem:[#allocation11_spill] sm:$0xff] %v13658_v2  ;;  %v15552_v16 = vld [vmem:[#allocation88_spill] sm:$0xff] }
 0x490   :  { %v7525_v27 = vmul.f32 %v15547_v26, %v7195_v0  ;;  %v7677_v6 = vadd.f32 1.0, %v9260_v40  ;;  %v4110_v30 = vcombine.high %v13319_v58, %v13319_v58  ;;  %v5191_v47 = vmul.f32 %v13658_v2, %v15550_v51 }
 0x491   :  { %9265 = vpow2.f32 %v8922_v39  ;;  %v7283_v5 = vrot.slane %v9409_v23, %v12931_v52  ;;  %v4111_v58 = vcombine.high %v13331_v31, %v13331_v31  ;;  %v7111_v50 = vadd.f32 %v7079_v37, %v5714_v43  ;;  %v15554_v39 = vld [vmem:[#allocation28_spill] sm:$0xff]  ;;  %v15555_v37 = vld [vmem:[#allocation63_spill] sm:$0xff] }
 0x492   :  { %v13651_v46 = vadd.f32 %v7525_v27, %v7109_v62  ;;  %9267 = vrcp.f32 %v7677_v6  ;;  %v7209_v20 = vpop.permute.xlu0 %7208  ;;  %v13662_v61 = vpop.permute.xlu1 %5128  ;;  %8112 = vadd.xlane.f32.xlu0 %v13322_v8  ;;  %v15553_v0 = vrot.slane %v15552_v16, %v15433_v17  ;;  %7271 = vbcast.lane.b32.xlu1 %v7269_v42, 256  ;;  %v13675_v8 = vsel %vm7805_vm14, %v8517_v38, 0.0  ;;  %v13691_v42 = vld [vmem:[%s14810_s0 + $0x1c] sm:$0x3] }
 0x493   :  { %v9262_v22 = vpop.eup %9261  ;;  %v7527_v26 = vmul.f32 %v15554_v39, %v7209_v20  ;;  %v8370_v6 = vrot.slane %v4756_v1, %v15433_v17  ;;  %v13679_v31 = vrot.slane %v4444_v32, %v15433_v17  ;;  %v5806_v41 = vadd.f32 %v15555_v37, %v5191_v47  ;;  %15556 = vst [vmem:[#allocation17_spill] sm:$0xff] %v13691_v42  ;;  %v15557_v38 = vld [vmem:[#allocation74_spill] sm:$0xff]  ;;  %v15558_v47 = vld [vmem:[#allocation29_spill] sm:$0xff] }
 0x494   :  { %v7081_v40 = vmul.f32 %v15553_v0, %v15551_v53  ;;  %v8924_v62 = vmul.f32 -1.442695, %v13651_v46  ;;  %v7679_v27 = vadd.f32 1.0, %v9262_v22  ;;  %v8378_v51 = vrot.slane %v13648_v44, %v15433_v17  ;;  %v13686_v53 = vld [vmem:[#allocation4 + $0x30] sm:$0xff] }
 0x495   :  { %v13682_v43 = vadd.f32 %v7527_v26, %v7111_v50  ;;  %v5193_v1 = vmul.f32 %v13691_v42, %v15557_v38  ;;  %v7297_v22 = vrot.slane %v9409_v23, %v12944_v60  ;;  %v13700_v50 = vrot.slane %v4110_v30, %v15430_v11  ;;  %v15560_v39 = vld [vmem:[#allocation81_spill] sm:$0xff] }
 0x496   :  { %9269 = vpow2.f32 %v8924_v62  ;;  %v7223_v32 = vpop.permute.xlu0 %7222  ;;  %v13695_v20 = vpop.permute.xlu1 %5136  ;;  %8118 = vadd.xlane.f32.xlu0 %v15558_v47  ;;  %v7113_v0 = vadd.f32 %v7081_v40, %v5806_v41  ;;  %v15559_v62 = vld [vmem:[#allocation70_spill] sm:$0xff]  ;;  %7285 = vbcast.lane.b32.xlu1 %v7283_v5, 256  ;;  %v4757_v47 = vcombine.high %v13648_v44, %v13648_v44  ;;  %v13711_v23 = vrot.slane %v4111_v58, %v15430_v11  ;;  %v15563_v40 = vld [vmem:[#allocation65_spill] sm:$0xff]  ;;  %v13724_v5 = vld [vmem:[%s14810_s0 + $0x20] sm:$0x3] }
 0x497   :  { %9271 = vrcp.f32 %v7679_v27  ;;  %v9264_v16 = vpop.eup %9263  ;;  %v7083_v26 = vmul.f32 %v15560_v39, %v15559_v62  ;;  %v8926_v37 = vmul.f32 -1.442695, %v13682_v43  ;;  %v15562_v27 = vrot.slane %v15561_v35, %v15433_v17  ;;  %v15564_v39 = vld [vmem:[#allocation80_spill] sm:$0xff]  ;;  %15565 = vst [vmem:[#allocation10_spill] sm:$0xff] %v13724_v5  ;;  %v15566_v44 = vld [vmem:[#allocation41_spill] sm:$0xff] }
 0x498   :  { %v7681_v10 = vadd.f32 1.0, %v9264_v16  ;;  %v13715_v30 = vrot.slane %v13686_v53, %v15430_v11  ;;  %v5898_v41 = vadd.f32 %v15563_v40, %v5193_v1  ;;  %v8518_v35 = vmul.f32 %v15564_v39, %v8370_v6  ;;  %v15568_v1 = vld [vmem:[#allocation16_spill] sm:$0xff] }
 0x499   :  { %v7529_v38 = vmul.f32 %v15562_v27, %v7223_v32  ;;  %9273 = vpow2.f32 %v8926_v37  ;;  %v5195_v58 = vmul.f32 %v13724_v5, %v15566_v44  ;;  %v15567_v27 = vld [vmem:[#allocation112_spill] sm:$0xff]  ;;  %v15569_v37 = vld [vmem:[#allocation106_spill] sm:$0xff]  ;;  %v15571_v34 = vrot.slane %v13392_v4, %v15433_v17 }
 0x49a   :  { %9275 = vrcp.f32 %v7681_v10  ;;  %v7237_v32 = vpop.permute.xlu0 %7236  ;;  %v13728_v16 = vpop.permute.xlu1 %5144  ;;  %8124 = vadd.xlane.f32.xlu0 %v15567_v27  ;;  %v7115_v40 = vadd.f32 %v7083_v26, %v5898_v41  ;;  %v15572_v10 = vld [vmem:[#allocation14_spill] sm:$0xff]  ;;  %7299 = vbcast.lane.b32.xlu1 %v7297_v22, 256  ;;  %v15573_v26 = vld [vmem:[#allocation75_spill] sm:$0xff]  ;;  %v15574_v22 = vld [vmem:[#allocation21_spill] sm:$0xff] }
 0x49b   :  { %v13718_v62 = vadd.f32 %v7529_v38, %v7113_v0  ;;  %v7311_v0 = vrot.slane %v15568_v1, %v12907_v55  ;;  %v8520_v38 = vmul.f32 %v15569_v37, %v8378_v51  ;;  %v9266_v6 = vpop.eup %9265  ;;  %v7085_v9 = vmul.f32 %v15571_v34, %v15570_v56  ;;  %v13752_v34 = vld [vmem:[%s14810_s0 + $0x24] sm:$0x3] }
 0x49c   :  { %v7531_v5 = vmul.f32 %v15572_v10, %v7237_v32  ;;  %v9268_v42 = vpop.eup %9267  ;;  %v7683_v2 = vadd.f32 1.0, %v9266_v6  ;;  %v8386_v55 = vrot.slane %v4757_v47, %v15433_v17  ;;  %v4142_v51 = vcombine.high %v13700_v50, %v13700_v50 }
 0x49d   :  { %v8928_v44 = vmul.f32 -1.442695, %v13718_v62  ;;  %v5990_v41 = vadd.f32 %v15573_v26, %v5195_v58  ;;  %v7773_v4 = vmul.f32 %v9268_v42, %v13524_v28  ;;  %v5197_v32 = vmul.f32 %v13752_v34, %v15574_v22  ;;  %v13759_v58 = vld [vmem:[#allocation6 + $0x38] sm:$0xff] }
 0x49e   :  { %v13747_v56 = vadd.f32 %v7531_v5, %v7115_v40  ;;  %v7251_v47 = vpop.permute.xlu0 %7250  ;;  %v13756_v1 = vpop.permute.xlu1 %5152  ;;  %8548 = vadd.xlane.f32.xlu0 %v13620_v15  ;;  %v7325_v28 = vrot.slane %v13759_v58, %v12920_v13  ;;  %v15575_v40 = vld [vmem:[#allocation89_spill] sm:$0xff]  ;;  %7313 = vbcast.lane.b32.xlu1 %v7311_v0, 256  ;;  %v8556_v22 = vsel %vm7805_vm14, %v8518_v35, 0.0  ;;  %v15578_v0 = vld [vmem:[#allocation60_spill] sm:$0xff] }
 0x49f   :  { %9277 = vpow2.f32 %v8928_v44  ;;  %v7117_v6 = vadd.f32 %v7085_v9, %v5990_v41  ;;  %v7087_v44 = vmul.f32 %v13471_v36, %v15575_v40  ;;  %7806 = vst.msk [vmem:[%s14812_s6] sm:$0x3] %vm7805_vm14, %v7773_v4  ;;  %v8562_v9 = vsel %vm7805_vm14, %v8520_v38, 0.0  ;;  %v15577_v41 = vld [vmem:[#allocation23_spill] sm:$0xff] }
 0x4a0   :  { %9279 = vrcp.f32 %v7683_v2  ;;  %v9270_v5 = vpop.eup %9269  ;;  %v8930_v15 = vmul.f32 -1.442695, %v13747_v56  ;;  %v15576_v2 = vrot.slane %v13536_v19, %v15433_v17  ;;  %v4822_v36 = vcombine.high %v13715_v30, %v13715_v30  ;;  %v13786_v19 = vld [vmem:[%s14810_s0 + $0x28] sm:$0x3] }
 0x4a1   :  { %v9272_v13 = vpop.eup %9271  ;;  %v7685_v26 = vadd.f32 1.0, %v9270_v5  ;;  %v6082_v40 = vadd.f32 %v15577_v41, %v5197_v32  ;;  %v5199_v35 = vmul.f32 %v13786_v19, %v15578_v0  ;;  %v13796_v32 = vrot.slane %v4142_v51, %v15433_v17 }
 0x4a2   :  { %v7533_v10 = vmul.f32 %v15576_v2, %v7251_v47  ;;  %v7775_v4 = vmul.f32 %v9272_v13, %v13545_v45  ;;  %9281 = vpow2.f32 %v8930_v15  ;;  %v7265_v38 = vpop.permute.xlu0 %7264  ;;  %v13790_v47 = vpop.permute.xlu1 %5160  ;;  %8554 = vadd.xlane.f32.xlu0 %v13675_v8  ;;  %v7339_v45 = vrot.slane %v13759_v58, %v12931_v52  ;;  %v15579_v15 = vld [vmem:[#allocation42_spill] sm:$0xff]  ;;  %7327 = vbcast.lane.b32.xlu1 %v7325_v28, 256 }
 0x4a3   :  { %9283 = vrcp.f32 %v7685_v26  ;;  %v9274_v5 = vpop.eup %9273  ;;  %v15580_v2 = vrot.slane %v13463_v49, %v15433_v17  ;;  %v7535_v13 = vmul.f32 %v13609_v48, %v7265_v38  ;;  %v15581_v26 = vld [vmem:[#allocation57_spill] sm:$0xff]  ;;  %v4143_v49 = vcombine.high %v13711_v23, %v13711_v23  ;;  %v13821_v48 = vld [vmem:[%s14810_s0 + $0x2c] sm:$0x3]  ;;  %v15584_v28 = vld [vmem:[#allocation110_spill] sm:$0xff] }
 0x4a4   :  { %v13781_v42 = vadd.f32 %v7533_v10, %v7117_v6  ;;  %v7119_v6 = vadd.f32 %v7087_v44, %v6082_v40  ;;  %7808 = vst.msk [vmem:[%s14812_s6 + $0x4] sm:$0x3] %vm7805_vm14, %v7775_v4  ;;  %v9276_v52 = vpop.eup %9275  ;;  %v7687_v51 = vadd.f32 1.0, %v9274_v5  ;;  %v8522_v41 = vmul.f32 %v15581_v26, %v8386_v55  ;;  %v15583_v40 = vld [vmem:[#allocation76_spill] sm:$0xff] }
 0x4a5   :  { %v7089_v10 = vmul.f32 %v15580_v2, %v15579_v15  ;;  %v13810_v44 = vrot.slane %v4822_v36, %v15430_v11  ;;  %v6174_v0 = vadd.f32 %v15583_v40, %v5199_v35  ;;  %v7777_v15 = vmul.f32 %v9276_v52, %v13582_v3  ;;  %v15586_v2 = vld [vmem:[#allocation98_spill] sm:$0xff] }
 0x4a6   :  { %v8932_v8 = vmul.f32 -1.442695, %v13781_v42  ;;  %v13816_v4 = vadd.f32 %v7535_v13, %v7119_v6  ;;  %v5201_v55 = vmul.f32 %v13821_v48, %v15584_v28  ;;  %v7279_v36 = vpop.permute.xlu0 %7278  ;;  %v13825_v38 = vpop.permute.xlu1 %5168  ;;  %8557 = vadd.xlane.f32.xlu0 %v8556_v22  ;;  %v7353_v35 = vrot.slane %v13759_v58, %v12944_v60  ;;  %7341 = vbcast.lane.b32.xlu1 %v7339_v45, 256  ;;  %v13861_v28 = vld [vmem:[%s14810_s0 + $0x30] sm:$0x3] }
 0x4a7   :  { %15582 = vst [vmem:[#allocation7_spill] sm:$0xff] %v13810_v44  ;;  %v13831_v3 = vrot.slane %v13715_v30, %v15430_v11  ;;  %v7121_v6 = vadd.f32 %v7089_v10, %v6174_v0  ;;  %7810 = vst.msk [vmem:[%s14812_s6 + $0x8] sm:$0x3] %vm7805_vm14, %v7777_v15  ;;  %v15587_v22 = vrot.slane %v13599_v24, %v15433_v17  ;;  %v13846_v30 = vld [vmem:[%s14810_s0 + $0x2] sm:$0x3]  ;;  %v15588_v10 = vld [vmem:[#allocation49_spill] sm:$0xff] }
 0x4a8   :  { %9285 = vpow2.f32 %v8932_v8  ;;  %v7091_v8 = vmul.f32 %v13528_v54, %v15586_v2  ;;  %v8934_v13 = vmul.f32 -1.442695, %v13816_v4  ;;  %v5180_v54 = vmul.f32 %v13846_v30, %v15588_v10  ;;  %v15589_v0 = vld [vmem:[#allocation103_spill] sm:$0xff] }
 0x4a9   :  { %9287 = vrcp.f32 %v7687_v51  ;;  %15585 = vst [vmem:[#allocation61_spill] sm:$0xff] %v13831_v3  ;;  %v9278_v5 = vpop.eup %9277  ;;  %v7537_v60 = vmul.f32 %v15587_v22, %v7279_v36  ;;  %v8426_v51 = vrot.slane %v13810_v44, %v15433_v17  ;;  %v6266_v24 = vadd.f32 %v15589_v0, %v5201_v55  ;;  %v15590_v36 = vld [vmem:[#allocation95_spill] sm:$0xff] }
 0x4aa   :  { %v9280_v58 = vpop.eup %9279  ;;  %v7689_v52 = vadd.f32 1.0, %v9278_v5  ;;  %9289 = vpow2.f32 %v8934_v13  ;;  %v5203_v5 = vmul.f32 %v13861_v28, %v15590_v36  ;;  %v7293_v2 = vpop.permute.xlu0 %7292  ;;  %8563 = vadd.xlane.f32.xlu0 %v8562_v9  ;;  %v8568_v55 = vsel %vm7805_vm14, %v8522_v41, 0.0  ;;  %7355 = vbcast.lane.b32.xlu1 %v7353_v35, 256  ;;  %v15597_v35 = vld [vmem:[#allocation85_spill] sm:$0xff] }
 0x4ab   :  { %v7779_v45 = vmul.f32 %v9280_v58, %v13617_v29  ;;  %v13856_v15 = vadd.f32 %v7537_v60, %v7121_v6  ;;  %v13865_v22 = vpop.permute.xlu1 %5176  ;;  %v13869_v29 = vrot.slane %v4143_v49, %v15433_v17  ;;  %v7123_v13 = vadd.f32 %v7091_v8, %v6266_v24  ;;  %v15591_v60 = vld [vmem:[#allocation83_spill] sm:$0xff]  ;;  %v15592_v58 = vld [vmem:[#allocation97_spill] sm:$0xff]  ;;  %v15594_v49 = vld [vmem:[#allocation92_spill] sm:$0xff] }
 0x4ac   :  { %9291 = vrcp.f32 %v7689_v52  ;;  %v9282_v6 = vpop.eup %9281  ;;  %v15593_v10 = vrot.slane %v15592_v58, %v15433_v17  ;;  %v7539_v9 = vmul.f32 %v13679_v31, %v7293_v2  ;;  %v5300_v36 = vadd.f32 %v15594_v49, %v5180_v54  ;;  %v13892_v31 = vld [vmem:[%s14810_s0 + $0x34] sm:$0x3]  ;;  %v15598_v2 = vld [vmem:[#allocation84_spill] sm:$0xff]  ;;  %v15600_v49 = vld [vmem:[#allocation43_spill] sm:$0xff] }
 0x4ad   :  { %7812 = vst.msk [vmem:[%s14812_s6 + $0xc] sm:$0x3] %vm7805_vm14, %v7779_v45  ;;  %v8936_v52 = vmul.f32 -1.442695, %v13856_v15  ;;  %v9284_v41 = vpop.eup %9283  ;;  %v7691_v40 = vadd.f32 1.0, %v9282_v6  ;;  %v8532_v8 = vmul.f32 %v13453_v21, %v8426_v51  ;;  %v4852_v24 = vcombine.high %v13831_v3, %v13831_v3  ;;  %15596 = vst [vmem:[#allocation64_spill] sm:$0xff] %v13892_v31 }
 0x4ae   :  { %v7093_v0 = vmul.f32 %v15593_v10, %v15591_v60  ;;  %v15595_v60 = vld [vmem:[#allocation104_spill] sm:$0xff]  ;;  %v7781_v10 = vmul.f32 %v9284_v41, %v13651_v46  ;;  %v13887_v45 = vadd.f32 %v7539_v9, %v7123_v13  ;;  %v5205_v54 = vmul.f32 %v13892_v31, %v15597_v35  ;;  %v15599_v51 = vld [vmem:[#allocation71_spill] sm:$0xff]  ;;  %8569 = vadd.xlane.f32.xlu0 %v8568_v55  ;;  %v15601_v41 = vld [vmem:[#allocation82_spill] sm:$0xff] }
 0x4af   :  { %v6358_v58 = vadd.f32 %v15595_v60, %v5203_v5  ;;  %9293 = vpow2.f32 %v8936_v52  ;;  %v7095_v6 = vmul.f32 %v15599_v51, %v15598_v2  ;;  %v5182_v27 = vmul.f32 %v15564_v39, %v15600_v49  ;;  %v7307_v5 = vpop.permute.xlu0 %7306  ;;  %v6698_v46 = vpop.permute.xlu1 %6697  ;;  %v13914_v55 = vld [vmem:[%s14810_s0 + $0x38] sm:$0x3]  ;;  %v15607_v3 = vld [vmem:[#allocation52_spill] sm:$0xff] }
 0x4b0   :  { %9295 = vrcp.f32 %v7691_v40  ;;  %7814 = vst.msk [vmem:[%s14812_s6 + $0x10] sm:$0x3] %vm7805_vm14, %v7781_v10  ;;  %v8938_v9 = vmul.f32 -1.442695, %v13887_v45  ;;  %v15602_v60 = vrot.slane %v15601_v41, %v15433_v17  ;;  %v15603_v39 = vrot.slane %v13700_v50, %v15433_v17  ;;  %v15605_v10 = vld [vmem:[#allocation99_spill] sm:$0xff] }
 0x4b1   :  { %v7125_v52 = vadd.f32 %v7093_v0, %v6358_v58  ;;  %v15604_v0 = vld [vmem:[#allocation114_spill] sm:$0xff]  ;;  %v6450_v51 = vadd.f32 %v15605_v10, %v5205_v54  ;;  %v8430_v44 = vrot.slane %v4852_v24, %v15433_v17  ;;  %v15608_v31 = vrot.slane %v15607_v3, %v15433_v17  ;;  %v15609_v10 = vld [vmem:[#allocation53_spill] sm:$0xff] }
 0x4b2   :  { %v9286_v13 = vpop.eup %9285  ;;  %v7541_v35 = vmul.f32 %v15602_v60, %v7307_v5  ;;  %v7070_v40 = vmul.f32 %v15603_v39, %v6698_v46  ;;  %v5207_v58 = vmul.f32 %v13914_v55, %v15604_v0  ;;  %9297 = vpow2.f32 %v8938_v9  ;;  %v15606_v60 = vld [vmem:[#allocation32_spill] sm:$0xff]  ;;  %8575 = vadd.xlane.f32.xlu0 %v15609_v10 }
 0x4b3   :  { %v9288_v2 = vpop.eup %9287  ;;  %v7693_v49 = vadd.f32 1.0, %v9286_v13  ;;  %v7127_v46 = vadd.f32 %v7095_v6, %v6450_v51  ;;  %v5392_v39 = vadd.f32 %v15606_v60, %v5182_v27  ;;  %v7097_v0 = vmul.f32 %v15608_v31, %v13420_v7  ;;  %v7321_v54 = vpop.permute.xlu0 %7320  ;;  %v13943_v31 = vld [vmem:[%s14810_s0 + $0x3c] sm:$0x3] }
 0x4b4   :  { %v7783_v5 = vmul.f32 %v9288_v2, %v13682_v43  ;;  %v13921_v41 = vadd.f32 %v7541_v35, %v7125_v52  ;;  %v13923_v50 = vadd.f32 %v7070_v40, %v5300_v36  ;;  %v6712_v13 = vpop.permute.xlu1 %6711  ;;  %v9290_v24 = vpop.eup %9289  ;;  %v5184_v43 = vmul.f32 %v15569_v37, %v13422_v18  ;;  %v15610_v36 = vld [vmem:[#allocation111_spill] sm:$0xff]  ;;  %v15611_v52 = vld [vmem:[#allocation96_spill] sm:$0xff]  ;;  %v15612_v37 = vld [vmem:[#allocation25_spill] sm:$0xff] }
 0x4b5   :  { %9299 = vrcp.f32 %v7693_v49  ;;  %v7543_v6 = vmul.f32 %v15610_v36, %v7321_v54  ;;  %v7072_v7 = vmul.f32 %v13796_v32, %v6712_v13  ;;  %v5209_v18 = vmul.f32 %v13943_v31, %v15611_v52  ;;  %v15614_v60 = vld [vmem:[#allocation90_spill] sm:$0xff]  ;;  %v15615_v13 = vld [vmem:[#allocation40_spill] sm:$0xff] }
 0x4b6   :  { %7816 = vst.msk [vmem:[%s14812_s6 + $0x14] sm:$0x3] %vm7805_vm14, %v7783_v5  ;;  %v8940_v27 = vmul.f32 -1.442695, %v13921_v41  ;;  %v9292_v3 = vpop.eup %9291  ;;  %v6542_v9 = vadd.f32 %v15612_v37, %v5207_v58  ;;  %v7695_v35 = vadd.f32 1.0, %v9290_v24  ;;  %v8598_v40 = vsel %vm7805_vm14, %v8532_v8, 0.0 }
 0x4b7   :  { %v7785_v2 = vmul.f32 %v9292_v3, %v13718_v62  ;;  %v13950_v51 = vadd.f32 %v7543_v6, %v7127_v46  ;;  %v13952_v32 = vadd.f32 %v7072_v7, %v5392_v39  ;;  %v15613_v5 = vld [vmem:[#allocation35_spill] sm:$0xff]  ;;  %v5186_v10 = vmul.f32 %v15581_v26, %v15615_v13  ;;  %v7335_v36 = vpop.permute.xlu0 %7334  ;;  %8599 = vadd.xlane.f32.xlu0 %v8598_v40  ;;  %v15616_v8 = vld [vmem:[#allocation33_spill] sm:$0xff]  ;;  %v15617_v46 = vld [vmem:[#allocation46_spill] sm:$0xff] }
 0x4b8   :  { %9301 = vpow2.f32 %v8940_v27  ;;  %v7129_v49 = vadd.f32 %v7097_v0, %v6542_v9  ;;  %v7099_v54 = vmul.f32 %v15614_v60, %v15613_v5  ;;  %v6726_v58 = vpop.permute.xlu1 %6725  ;;  %v5484_v52 = vadd.f32 %v15616_v8, %v5184_v43  ;;  %v15620_v7 = vld [vmem:[#allocation55_spill] sm:$0xff]  ;;  %v15623_v60 = vld [vmem:[#allocation44_spill] sm:$0xff] }
 0x4b9   :  { %9303 = vrcp.f32 %v7695_v35  ;;  %v9294_v24 = vpop.eup %9293  ;;  %7818 = vst.msk [vmem:[%s14812_s6 + $0x18] sm:$0x3] %vm7805_vm14, %v7785_v2  ;;  %v8942_v62 = vmul.f32 -1.442695, %v13950_v51  ;;  %v15618_v39 = vrot.slane %v15617_v46, %v15433_v17  ;;  %v15619_v26 = vrot.slane %v13711_v23, %v15433_v17 }
 0x4ba   :  { %v9296_v6 = vpop.eup %9295  ;;  %v6634_v3 = vadd.f32 %v15620_v7, %v5209_v18  ;;  %v7697_v37 = vadd.f32 1.0, %v9294_v24  ;;  %v8533_v43 = vmul.f32 %v13752_v34, %v8430_v44  ;;  %v15621_v9 = vcombine.high %v13686_v53, %v13686_v53  ;;  %v15624_v44 = vld [vmem:[#allocation93_spill] sm:$0xff] }
 0x4bb   :  { %v7545_v0 = vmul.f32 %v15618_v39, %v7335_v36  ;;  %v7074_v27 = vmul.f32 %v15619_v26, %v6726_v58  ;;  %v7787_v40 = vmul.f32 %v9296_v6, %v13747_v56  ;;  %9305 = vpow2.f32 %v8942_v62  ;;  %v7349_v18 = vpop.permute.xlu0 %7348  ;;  %8623 = vadd.xlane.f32.xlu0 %v15624_v44  ;;  %v15625_v58 = vld [vmem:[#allocation34_spill] sm:$0xff]  ;;  %v9421_v56 = vld [vmem:[%s14810_s0 + $0x12] sm:$0x3] }
 0x4bc   :  { %v13976_v35 = vrot.slane %v15621_v9, %v15430_v11  ;;  %v7131_v23 = vadd.f32 %v7099_v54, %v6634_v3  ;;  %v5576_v13 = vadd.f32 %v15623_v60, %v5186_v10  ;;  %9307 = vrcp.f32 %v7697_v37  ;;  %v6740_v36 = vpop.permute.xlu1 %6739  ;;  %v9298_v8 = vpop.eup %9297  ;;  %v15628_v10 = vld [vmem:[#allocation101_spill] sm:$0xff]  ;;  %v15629_v6 = vld [vmem:[#allocation102_spill] sm:$0xff] }
 0x4bd   :  { %v13979_v2 = vadd.f32 %v7545_v0, %v7129_v49  ;;  %v13981_v5 = vadd.f32 %v7074_v27, %v5484_v52  ;;  %v15626_v53 = vcombine.high %v15625_v58, %v15625_v58  ;;  %v15627_v49 = vld [vmem:[#allocation15_spill] sm:$0xff]  ;;  %7820 = vst.msk [vmem:[%s14812_s6 + $0x1c] sm:$0x3] %vm7805_vm14, %v7787_v40  ;;  %v7547_v62 = vmul.f32 %v15628_v10, %v7349_v18 }
 0x4be   :  { %15622 = vst [vmem:[#allocation31_spill] sm:$0xff] %v13976_v35  ;;  %v5188_v52 = vmul.f32 %v9421_v56, %v15627_v49  ;;  %v7076_v46 = vmul.f32 %v13869_v29, %v6740_v36  ;;  %v7699_v0 = vadd.f32 1.0, %v9298_v8  ;;  %v8601_v26 = vsel %vm7805_vm14, %v8533_v43, 0.0  ;;  %v15632_v43 = vld [vmem:[#allocation58_spill] sm:$0xff]  ;;  %v9422_v49 = vld [vmem:[%s14810_s0 + $0x16] sm:$0x3] }
 0x4bf   :  { %v8466_v24 = vrot.slane %v15626_v53, %v15433_v17  ;;  %v8944_v54 = vmul.f32 -1.442695, %v13979_v2  ;;  %v9300_v39 = vpop.eup %9299  ;;  %v14003_v27 = vrot.slane %v13976_v35, %v15430_v11  ;;  %v15630_v7 = vcombine.high %v15629_v6, %v15629_v6  ;;  %8602 = vadd.xlane.f32.xlu0 %v8601_v26  ;;  %v15634_v36 = vld [vmem:[#allocation22_spill] sm:$0xff]  ;;  %v15648_v35 = vld [vmem:[#allocation69_spill] sm:$0xff] }
 0x4c0   :  { %v7789_v37 = vmul.f32 %v9300_v39, %v13781_v42  ;;  %v14012_v9 = vadd.f32 %v7547_v62, %v7131_v23  ;;  %v14014_v29 = vadd.f32 %v7076_v46, %v5576_v13  ;;  %v6754_v40 = vpop.permute.xlu1 %6753  ;;  %v15633_v60 = vcombine.high %v15632_v43, %v15632_v43  ;;  %v15636_v42 = vld [vmem:[#allocation18_spill] sm:$0xff] }
 0x4c1   :  { %v14009_v3 = vrot.slane %v15630_v7, %v15430_v11  ;;  %9309 = vpow2.f32 %v8944_v54  ;;  %v15635_v44 = vcombine.high %v15634_v36, %v15634_v36  ;;  %v15637_v23 = vcombine.high %v15636_v42, %v15636_v42  ;;  %v15638_v8 = vld [vmem:[#allocation54_spill] sm:$0xff]  ;;  %v15642_v7 = vld [vmem:[#allocation109_spill] sm:$0xff] }
 0x4c2   :  { %9311 = vrcp.f32 %v7699_v0  ;;  %v6956_v18 = vrot.slane %v15633_v60, %v15433_v17  ;;  %v9302_v13 = vpop.eup %9301  ;;  %v5668_v56 = vadd.f32 %v15638_v8, %v5188_v52  ;;  %v15639_v54 = vld [vmem:[#allocation38_spill] sm:$0xff]  ;;  %7822 = vst.msk [vmem:[%s14812_s6 + $0x20] sm:$0x3] %vm7805_vm14, %v7789_v37  ;;  %v8946_v62 = vmul.f32 -1.442695, %v14012_v9  ;;  %v15641_v52 = vld [vmem:[#allocation91_spill] sm:$0xff] }
 0x4c3   :  { %15631 = vst [vmem:[#allocation88_spill] sm:$0xff] %v14009_v3  ;;  %v4188_v58 = vrot.slane %v15635_v44, %v15430_v11  ;;  %v14028_v53 = vrot.slane %v15637_v23, %v15430_v11  ;;  %v5190_v10 = vmul.f32 %v9422_v49, %v15639_v54  ;;  %v15640_v46 = vrot.slane %v15632_v43, %v15433_v17  ;;  %v9304_v0 = vpop.eup %9303  ;;  %v15644_v49 = vld [vmem:[#allocation59_spill] sm:$0xff] }
 0x4c4   :  { %v7701_v26 = vadd.f32 1.0, %v9302_v13  ;;  %v8580_v6 = vsel %vm7805_vm14, %v15641_v52, 0.0  ;;  %v8542_v60 = vmul.f32 %v15642_v7, %v8466_v24  ;;  %v4872_v36 = vcombine.high %v14009_v3, %v14009_v3  ;;  %v15643_v13 = vld [vmem:[#allocation86_spill] sm:$0xff] }
 0x4c5   :  { %v7078_v39 = vmul.f32 %v15640_v46, %v6754_v40  ;;  %v7791_v44 = vmul.f32 %v9304_v0, %v13816_v4  ;;  %9313 = vpow2.f32 %v8946_v62  ;;  %v8438_v23 = vrot.slane %v14003_v27, %v15433_v17  ;;  %v6768_v40 = vpop.permute.xlu1 %6767  ;;  %8581 = vadd.xlane.f32.xlu0 %v8580_v6  ;;  %v9306_v24 = vpop.eup %9305  ;;  %v9423_v4 = vld [vmem:[%s14810_s0 + $0x1a] sm:$0x3] }
 0x4c6   :  { %9315 = vrcp.f32 %v7701_v26  ;;  %v4192_v43 = vcombine.high %v4188_v58, %v4188_v58  ;;  %v14055_v8 = vrot.slane %v15643_v13, %v15430_v11  ;;  %v5760_v54 = vadd.f32 %v15644_v49, %v5190_v10  ;;  %v15645_v10 = vld [vmem:[#allocation30_spill] sm:$0xff]  ;;  %v15647_v49 = vld [vmem:[#allocation47_spill] sm:$0xff] }
 0x4c7   :  { %v14049_v37 = vadd.f32 %v7078_v39, %v5668_v56  ;;  %v5192_v56 = vmul.f32 %v9423_v4, %v13560_v63  ;;  %7824 = vst.msk [vmem:[%s14812_s6 + $0x24] sm:$0x3] %vm7805_vm14, %v7791_v44  ;;  %v7080_v62 = vmul.f32 %v6956_v18, %v6768_v40  ;;  %v8410_v46 = vrot.slane %v14028_v53, %v15433_v17  ;;  %v9308_v39 = vpop.eup %9307 }
 0x4c8   :  { %v7703_v0 = vadd.f32 1.0, %v9306_v24  ;;  %v6964_v26 = vrot.slane %v4188_v58, %v15433_v17  ;;  %v4208_v52 = vcombine.high %v15645_v10, %v15645_v10  ;;  %v14072_v6 = vrot.slane %v4872_v36, %v15430_v11  ;;  %v15646_v58 = vld [vmem:[#allocation77_spill] sm:$0xff] }
 0x4c9   :  { %v7793_v63 = vmul.f32 %v9308_v39, %v13856_v15  ;;  %v14075_v7 = vadd.f32 %v7080_v62, %v5760_v54  ;;  %v8628_v44 = vsel %vm7805_vm14, %v8542_v60, 0.0  ;;  %v8535_v18 = vmul.f32 %v13786_v19, %v8438_v23  ;;  %v6782_v40 = vpop.permute.xlu1 %6781  ;;  %v14088_v60 = vld [vmem:[%s14810_s0 + $0x1e] sm:$0x3] }
 0x4ca   :  { %9317 = vrcp.f32 %v7703_v0  ;;  %8629 = vadd.xlane.f32.xlu0 %v8628_v44  ;;  %v6972_v13 = vrot.slane %v4192_v43, %v15433_v17  ;;  %v7845_v24 = vrot.slane %v15646_v58, %v15433_v17  ;;  %v4534_v36 = vrot.slane %v15647_v49, %v15430_v11  ;;  %v15649_v49 = vld [vmem:[#allocation79_spill] sm:$0xff] }
 0x4cb   :  { %v9310_v10 = vpop.eup %9309  ;;  %v5852_v15 = vadd.f32 %v15648_v35, %v5192_v56  ;;  %v5194_v23 = vmul.f32 %v14088_v60, %v13592_v57  ;;  %7826 = vst.msk [vmem:[%s14812_s6 + $0x28] sm:$0x3] %vm7805_vm14, %v7793_v63  ;;  %v7082_v43 = vmul.f32 %v6964_v26, %v6782_v40  ;;  %v8528_v54 = vmul.f32 %v9423_v4, %v8410_v46 }
 0x4cc   :  { %v9312_v62 = vpop.eup %9311  ;;  %v7705_v39 = vadd.f32 1.0, %v9310_v10  ;;  %v4230_v0 = vrot.slane %v4208_v52, %v15430_v11  ;;  %v8474_v35 = vrot.slane %v14072_v6, %v15433_v17  ;;  %v4806_v56 = vcombine.high %v14028_v53, %v14028_v53 }
 0x4cd   :  { %v7795_v44 = vmul.f32 %v9312_v62, %v13887_v45  ;;  %v14102_v57 = vadd.f32 %v7082_v43, %v5852_v15  ;;  %v8607_v58 = vsel %vm7805_vm14, %v8535_v18, 0.0  ;;  %v4853_v26 = vcombine.high %v14003_v27, %v14003_v27  ;;  %v6796_v4 = vpop.permute.xlu1 %6795 }
 0x4ce   :  { %9319 = vrcp.f32 %v7705_v39  ;;  %8608 = vadd.xlane.f32.xlu0 %v8607_v58  ;;  %v7999_v46 = vmul.f32 %v13846_v30, %v7845_v24  ;;  %v7857_v52 = vrot.slane %v4534_v36, %v15433_v17  ;;  %v4550_v63 = vcombine.high %v4534_v36, %v4534_v36  ;;  %v14121_v36 = vld [vmem:[%s14810_s0 + $0x3a] sm:$0x3]  ;;  %v15651_v58 = vld [vmem:[#allocation36_spill] sm:$0xff] }
 0x4cf   :  { %v9314_v40 = vpop.eup %9313  ;;  %v5944_v53 = vadd.f32 %v15649_v49, %v5194_v23  ;;  %v5196_v45 = vmul.f32 %v13453_v21, %v13629_v25  ;;  %7828 = vst.msk [vmem:[%s14812_s6 + $0x2c] sm:$0x3] %vm7805_vm14, %v7795_v44  ;;  %v7084_v27 = vmul.f32 %v6972_v13, %v6796_v4  ;;  %v8586_v18 = vsel %vm7805_vm14, %v8528_v54, 0.0  ;;  %v15650_v21 = vld [vmem:[#allocation50_spill] sm:$0xff] }
 0x4d0   :  { %v9316_v10 = vpop.eup %9315  ;;  %v7707_v15 = vadd.f32 1.0, %v9314_v40  ;;  %v6980_v24 = vrot.slane %v4230_v0, %v15433_v17  ;;  %v8544_v23 = vmul.f32 %v14121_v36, %v8474_v35  ;;  %v4209_v25 = vcombine.high %v15650_v21, %v15650_v21  ;;  %v15652_v35 = vld [vmem:[#allocation20_spill] sm:$0xff] }
 0x4d1   :  { %v7797_v43 = vmul.f32 %v9316_v10, %v13921_v41  ;;  %v14127_v62 = vadd.f32 %v7084_v27, %v5944_v53  ;;  %v4240_v13 = vcombine.high %v4230_v0, %v4230_v0  ;;  %v8446_v54 = vrot.slane %v4853_v26, %v15433_v17  ;;  %v6810_v39 = vpop.permute.xlu1 %6809  ;;  %v15653_v21 = vld [vmem:[#allocation56_spill] sm:$0xff] }
 0x4d2   :  { %9321 = vrcp.f32 %v7707_v15  ;;  %8587 = vadd.xlane.f32.xlu0 %v8586_v18  ;;  %v8033_v44 = vsel %vm7805_vm14, %v7999_v46, 0.0  ;;  %v8002_v4 = vmul.f32 %v15651_v58, %v7857_v52  ;;  %v7865_v40 = vrot.slane %v4550_v63, %v15433_v17 }
 0x4d3   :  { %v6036_v49 = vadd.f32 %v15652_v35, %v5196_v45  ;;  %v5198_v3 = vmul.f32 %v15653_v21, %v13662_v61  ;;  %7830 = vst.msk [vmem:[%s14812_s6 + $0x30] sm:$0x3] %vm7805_vm14, %v7797_v43  ;;  %v7086_v41 = vmul.f32 %v6980_v24, %v6810_v39  ;;  %8034 = vadd.xlane.f32.xlu1 %v8033_v44  ;;  %v8634_v26 = vsel %vm7805_vm14, %v8544_v23, 0.0  ;;  %v15654_v24 = vld [vmem:[#allocation62_spill] sm:$0xff]  ;;  %v15655_v23 = vld [vmem:[#allocation39_spill] sm:$0xff]  ;;  %v15656_v39 = vld [vmem:[#allocation68_spill] sm:$0xff] }
 0x4d4   :  { %v9318_v0 = vpop.eup %9317  ;;  %v4237_v46 = vrot.slane %v4209_v25, %v15430_v11  ;;  %v8418_v52 = vrot.slane %v4806_v56, %v15433_v17  ;;  %v4904_v63 = vcombine.high %v14072_v6, %v14072_v6  ;;  %v6988_v45 = vrot.slane %v4240_v13, %v15433_v17  ;;  %v15657_v21 = vld [vmem:[#allocation116_spill] sm:$0xff] }
 0x4d5   :  { %v7799_v53 = vmul.f32 %v9318_v0, %v13950_v51  ;;  %v14146_v61 = vadd.f32 %v7086_v41, %v6036_v49  ;;  %v8537_v27 = vmul.f32 %v13821_v48, %v8446_v54  ;;  %v6824_v18 = vpop.permute.xlu1 %6823  ;;  %v8042_v10 = vsel %vm7805_vm14, %v8002_v4, 0.0  ;;  %v15658_v0 = vld [vmem:[#allocation94_spill] sm:$0xff] }
 0x4d6   :  { %8635 = vadd.xlane.f32.xlu0 %v8634_v26  ;;  %v8004_v15 = vmul.f32 %v13556_v33, %v7865_v40  ;;  %v7873_v56 = vrot.slane %v14055_v8, %v15433_v17  ;;  %v4598_v6 = vcombine.high %v14055_v8, %v14055_v8  ;;  %v6128_v51 = vadd.f32 %v15654_v24, %v5198_v3  ;;  %v15659_v24 = vld [vmem:[#allocation117_spill] sm:$0xff] }
 0x4d7   :  { %v5200_v25 = vmul.f32 %v15655_v23, %v13695_v20  ;;  %7832 = vst.msk [vmem:[%s14812_s6 + $0x34] sm:$0x3] %vm7805_vm14, %v7799_v53  ;;  %v7088_v43 = vmul.f32 %v6988_v45, %v6824_v18  ;;  %8043 = vadd.xlane.f32.xlu1 %v8042_v10  ;;  %v6996_v33 = vrot.slane %v4237_v46, %v15433_v17  ;;  %v8613_v58 = vsel %vm7805_vm14, %v8537_v27, 0.0 }
 0x4d8   :  { %v9320_v13 = vpop.eup %9319  ;;  %v8530_v54 = vmul.f32 %v14088_v60, %v8418_v52  ;;  %v4257_v8 = vcombine.high %v15656_v39, %v15656_v39  ;;  %v8482_v3 = vrot.slane %v4904_v63, %v15433_v17  ;;  %v4241_v4 = vcombine.high %v4237_v46, %v4237_v46 }
 0x4d9   :  { %v7801_v44 = vmul.f32 %v9320_v13, %v13979_v2  ;;  %v14169_v20 = vadd.f32 %v7088_v43, %v6128_v51  ;;  %v6838_v40 = vpop.permute.xlu1 %6837  ;;  %v8048_v35 = vsel %vm7805_vm14, %v8004_v15, 0.0  ;;  %v8006_v49 = vmul.f32 %v13588_v14, %v7873_v56  ;;  %v9427_v51 = vld [vmem:[%s14810_s0 + $0x32] sm:$0x3] }
 0x4da   :  { %8614 = vadd.xlane.f32.xlu0 %v8613_v58  ;;  %v7881_v60 = vrot.slane %v4598_v6, %v15433_v17  ;;  %v4583_v41 = vrot.slane %v15657_v21, %v15430_v11  ;;  %v6220_v26 = vadd.f32 %v15658_v0, %v5200_v25  ;;  %v5202_v2 = vmul.f32 %v13550_v59, %v13728_v16  ;;  %v9426_v59 = vld [vmem:[%s14810_s0 + $0x3e] sm:$0x3] }
 0x4db   :  { %7834 = vst.msk [vmem:[%s14812_s6 + $0x38] sm:$0x3] %vm7805_vm14, %v7801_v44  ;;  %v7090_v46 = vmul.f32 %v6996_v33, %v6838_v40  ;;  %8049 = vadd.xlane.f32.xlu1 %v8048_v35  ;;  %v8592_v14 = vsel %vm7805_vm14, %v8530_v54, 0.0  ;;  %v4279_v63 = vrot.slane %v4257_v8, %v15430_v11  ;;  %v7004_v27 = vrot.slane %v4241_v4, %v15433_v17  ;;  %v15660_v54 = vld [vmem:[#allocation105_spill] sm:$0xff]  ;;  %v15662_v4 = vld [vmem:[#allocation72_spill] sm:$0xff]  ;;  %v15663_v35 = vld [vmem:[#allocation66_spill] sm:$0xff] }
 0x4dc   :  { %v9322_v52 = vpop.eup %9321  ;;  %v8546_v16 = vmul.f32 %v9426_v59, %v8482_v3  ;;  %v8054_v10 = vsel %vm7805_vm14, %v8006_v49, 0.0  ;;  %v8008_v15 = vmul.f32 %v13625_v12, %v7881_v60  ;;  %v7889_v56 = vrot.slane %v4583_v41, %v15433_v17  ;;  %v15661_v3 = vld [vmem:[#allocation11_spill] sm:$0xff]  ;;  %v9428_v60 = vld [vmem:[%s14810_s0 + $0x36] sm:$0x3] }
 0x4dd   :  { %v7803_v53 = vmul.f32 %v9322_v52, %v14012_v9  ;;  %v14187_v45 = vadd.f32 %v7090_v46, %v6220_v26  ;;  %v6852_v18 = vpop.permute.xlu1 %6851  ;;  %v4599_v6 = vcombine.high %v4583_v41, %v4583_v41  ;;  %v6312_v9 = vadd.f32 %v15659_v24, %v5202_v2  ;;  %v15666_v24 = vld [vmem:[#allocation73_spill] sm:$0xff] }
 0x4de   :  { %8593 = vadd.xlane.f32.xlu0 %v8592_v14  ;;  %v5204_v23 = vmul.f32 %v9427_v51, %v13756_v1  ;;  %v7092_v25 = vmul.f32 %v7004_v27, %v6852_v18  ;;  %v7012_v12 = vrot.slane %v4279_v63, %v15433_v17  ;;  %v8640_v13 = vsel %vm7805_vm14, %v8546_v16, 0.0  ;;  %v15664_v14 = vld [vmem:[#allocation17_spill] sm:$0xff]  ;;  %v15665_v16 = vld [vmem:[#allocation67_spill] sm:$0xff] }
 0x4df   :  { %7836 = vst.msk [vmem:[%s14812_s6 + $0x3c] sm:$0x3] %vm7805_vm14, %v7803_v53  ;;  %8055 = vadd.xlane.f32.xlu1 %v8054_v10  ;;  %v4289_v33 = vcombine.high %v4279_v63, %v4279_v63  ;;  %v4258_v39 = vcombine.high %v15660_v54, %v15660_v54  ;;  %v8060_v1 = vsel %vm7805_vm14, %v8008_v15, 0.0  ;;  %v8010_v44 = vmul.f32 %v15661_v3, %v7889_v56 }
 0x4e0   :  { %v14206_v43 = vadd.f32 %v7092_v25, %v6312_v9  ;;  %v7897_v58 = vrot.slane %v4599_v6, %v15433_v17  ;;  %v4625_v40 = vrot.slane %v15662_v4, %v15430_v11  ;;  %v6404_v49 = vadd.f32 %v15663_v35, %v5204_v23  ;;  %v15667_v25 = vld [vmem:[#allocation10_spill] sm:$0xff] }
 0x4e1   :  { %v6866_v8 = vpop.permute.xlu1 %6865  ;;  %v5206_v21 = vmul.f32 %v9428_v60, %v13790_v47  ;;  %v7020_v26 = vrot.slane %v4289_v33, %v15433_v17  ;;  %v4286_v2 = vrot.slane %v4258_v39, %v15430_v11  ;;  %v8066_v52 = vsel %vm7805_vm14, %v8010_v44, 0.0  ;;  %v15668_v33 = vld [vmem:[#allocation19_spill] sm:$0xff] }
 0x4e2   :  { %8641 = vadd.xlane.f32.xlu0 %v8640_v13  ;;  %v7094_v41 = vmul.f32 %v7012_v12, %v6866_v8  ;;  %v8012_v63 = vmul.f32 %v15664_v14, %v7897_v58  ;;  %v7905_v53 = vrot.slane %v4625_v40, %v15433_v17  ;;  %v4647_v27 = vcombine.high %v4625_v40, %v4625_v40 }
 0x4e3   :  { %8061 = vadd.xlane.f32.xlu1 %v8060_v1  ;;  %v6496_v18 = vadd.f32 %v15665_v16, %v5206_v21  ;;  %v5208_v47 = vmul.f32 %v14121_v36, %v13825_v38  ;;  %v7028_v56 = vrot.slane %v4286_v2, %v15433_v17  ;;  %v4290_v6 = vcombine.high %v4286_v2, %v4286_v2  ;;  %v15669_v36 = vld [vmem:[#allocation115_spill] sm:$0xff]  ;;  %v15670_v21 = vld [vmem:[#allocation45_spill] sm:$0xff]  ;;  %v15672_v16 = vld [vmem:[#allocation12_spill] sm:$0xff] }
 0x4e4   :  { %v14221_v0 = vadd.f32 %v7094_v41, %v6404_v49  ;;  %v4315_v9 = vcombine.high %v15666_v24, %v15666_v24  ;;  %v8072_v23 = vsel %vm7805_vm14, %v8012_v63, 0.0  ;;  %v8014_v12 = vmul.f32 %v15667_v25, %v7905_v53 }
 0x4e5   :  { %v6880_v46 = vpop.permute.xlu1 %6879  ;;  %v7913_v13 = vrot.slane %v4647_v27, %v15433_v17  ;;  %v4632_v38 = vrot.slane %v15668_v33, %v15430_v11  ;;  %v6588_v54 = vadd.f32 %v15669_v36, %v5208_v47  ;;  %v5210_v39 = vmul.f32 %v9426_v59, %v13865_v22 }
 0x4e6   :  { %v7096_v10 = vmul.f32 %v7020_v26, %v6880_v46  ;;  %v7036_v44 = vrot.slane %v4290_v6, %v15433_v17  ;;  %v4337_v58 = vrot.slane %v4315_v9, %v15430_v11  ;;  %v8078_v40 = vsel %vm7805_vm14, %v8014_v12, 0.0 }
 0x4e7   :  { %8067 = vadd.xlane.f32.xlu1 %v8066_v52  ;;  %v14243_v1 = vpop.xlane.xlu0 %8031  ;;  %v8016_v35 = vmul.f32 %v13752_v34, %v7913_v13  ;;  %v7921_v49 = vrot.slane %v4632_v38, %v15433_v17  ;;  %v4648_v60 = vcombine.high %v4632_v38, %v4632_v38  ;;  %v6680_v22 = vadd.f32 %v15670_v21, %v5210_v39  ;;  %v15671_v52 = vld [vmem:[#allocation113_spill] sm:$0xff]  ;;  %v15673_v38 = vld [vmem:[#allocation78_spill] sm:$0xff] }
 0x4e8   :  { %v14231_v15 = vadd.f32 %v7096_v10, %v6496_v18  ;;  %v7364_v2 = vrot.slane %v4337_v58, %v15433_v17  ;;  %v4347_v46 = vcombine.high %v4337_v58, %v4337_v58  ;;  %v4316_v14 = vcombine.high %v15671_v52, %v15671_v52 }
 0x4e9   :  { %v6894_v51 = vpop.permute.xlu1 %6893  ;;  %v8084_v34 = vsel %vm7805_vm14, %v8016_v35, 0.0  ;;  %v8018_v53 = vmul.f32 %v13786_v19, %v7921_v49  ;;  %v7929_v27 = vrot.slane %v4648_v60, %v15433_v17  ;;  %v4674_v18 = vrot.slane %v15672_v16, %v15430_v11 }
 0x4ea   :  { %v7098_v8 = vmul.f32 %v7028_v56, %v6894_v51  ;;  %v7372_v6 = vrot.slane %v4347_v46, %v15433_v17  ;;  %v4344_v24 = vrot.slane %v4316_v14, %v15430_v11  ;;  %v4364_v36 = vcombine.high %v15673_v38, %v15673_v38 }
 0x4eb   :  { %8073 = vadd.xlane.f32.xlu1 %v8072_v23  ;;  %v14253_v41 = vpop.xlane.xlu0 %8037  ;;  %v8090_v51 = vsel %vm7805_vm14, %v8018_v53, 0.0  ;;  %v8020_v19 = vmul.f32 %v13821_v48, %v7929_v27  ;;  %v7937_v23 = vrot.slane %v4674_v18, %v15433_v17  ;;  %v4696_v25 = vcombine.high %v4674_v18, %v4674_v18 }
 0x4ec   :  { %v14245_v3 = vadd.f32 %v7098_v8, %v6588_v54  ;;  %v15674_v54 = vld [vmem:[#allocation51_spill] sm:$0xff]  ;;  %v7380_v8 = vrot.slane %v4344_v24, %v15433_v17 }
 0x4ed   :  { %v6908_v4 = vpop.permute.xlu1 %6907  ;;  %v4681_v39 = vrot.slane %v15674_v54, %v15430_v11  ;;  %v7945_v35 = vrot.slane %v4696_v25, %v15433_v17 }
 0x4ee   :  { %v7100_v59 = vmul.f32 %v7036_v44, %v6908_v4  ;;  %v4348_v44 = vcombine.high %v4344_v24, %v4344_v24  ;;  %v8096_v4 = vsel %vm7805_vm14, %v8020_v19, 0.0 }
 0x4ef   :  { %8079 = vadd.xlane.f32.xlu1 %v8078_v40  ;;  %v14265_v10 = vpop.xlane.xlu0 %8040  ;;  %v8022_v40 = vmul.f32 %v13861_v28, %v7937_v23  ;;  %v4697_v46 = vcombine.high %v4681_v39, %v4681_v39  ;;  %v7953_v53 = vrot.slane %v4681_v39, %v15433_v17 }
 0x4f0   :  { %v14255_v26 = vadd.f32 %v7100_v59, %v6680_v22  ;;  %v4911_v22 = vld [vmem:[#allocation5 + $0x28] sm:$0xff] }
 0x4f1   :  { %v7146_v63 = vpop.permute.xlu1 %7145  ;;  %v8102_v14 = vsel %vm7805_vm14, %v8022_v40, 0.0  ;;  %v8026_v25 = vmul.f32 %v13914_v55, %v7953_v53  ;;  %v15678_v40 = vld [vmem:[#allocation13_spill] sm:$0xff] }
 0x4f2   :  { %v7518_v47 = vmul.f32 %v7364_v2, %v7146_v63  ;;  %v7388_v2 = vrot.slane %v4348_v44, %v15433_v17  ;;  %v15675_v63 = vld [vmem:[#allocation64_spill] sm:$0xff] }
 0x4f3   :  { %8085 = vadd.xlane.f32.xlu1 %v8084_v34  ;;  %v14276_v33 = vpop.xlane.xlu0 %8046  ;;  %v8024_v34 = vmul.f32 %v15675_v63, %v7945_v35  ;;  %v8114_v44 = vsel %vm7805_vm14, %v8026_v25, 0.0  ;;  %v4739_v35 = vrot.slane %v15678_v40, %v15430_v11  ;;  %v15681_v40 = vld [vmem:[#allocation9_spill] sm:$0xff] }
 0x4f4   :  { %v14268_v56 = vadd.f32 %v7518_v47, %v13923_v50  ;;  %v4906_v50 = vld [vmem:[#allocation5 + $0x8] sm:$0xff] }
 0x4f5   :  { %v7160_v9 = vpop.permute.xlu1 %7159  ;;  %v8108_v23 = vsel %vm7805_vm14, %v8024_v34, 0.0 }
 0x4f6   :  { %v8917_v12 = vmul.f32 -1.442695, %v14268_v56  ;;  %v7520_v13 = vmul.f32 %v7372_v6, %v7160_v9 }
 0x4f7   :  { %8091 = vadd.xlane.f32.xlu1 %v8090_v51  ;;  %v14290_v21 = vpop.xlane.xlu0 %8052  ;;  %v7961_v51 = vrot.slane %v4697_v46, %v15433_v17 }
 0x4f8   :  { %8133 = vperm.xlu0 %9214, %v4906_v50   ;;  %9323 = vpow2.f32 %v8917_v12  ;;  %v14283_v48 = vadd.f32 %v7520_v13, %v13952_v32  ;;  %v4386_v32 = vrot.slane %v4364_v36, %v15430_v11 }
 0x4f9   :  { %v7174_v58 = vpop.permute.xlu1 %7173 }
 0x4fa   :  { %v8919_v49 = vmul.f32 -1.442695, %v14283_v48  ;;  %v7522_v60 = vmul.f32 %v7380_v8, %v7174_v58  ;;  %v7396_v47 = vrot.slane %v4386_v32, %v15433_v17  ;;  %v4396_v9 = vcombine.high %v4386_v32, %v4386_v32  ;;  %v15677_v58 = vld [vmem:[#allocation8_spill] sm:$0xff] }
 0x4fb   :  { %8097 = vadd.xlane.f32.xlu1 %v8096_v4  ;;  %v14301_v18 = vpop.xlane.xlu0 %8058  ;;  %v8028_v8 = vmul.f32 %v13943_v31, %v7961_v51  ;;  %v8362_v4 = vrot.slane %v15677_v58, %v15433_v17 }
 0x4fc   :  { %8650 = vperm.xlu0 %9214, %v4911_v22   ;;  %9325 = vpow2.f32 %v8919_v49  ;;  %v14294_v59 = vadd.f32 %v7522_v60, %v13981_v5  ;;  %v15676_v5 = vld [vmem:[#allocation48_spill] sm:$0xff]  ;;  %v7404_v39 = vrot.slane %v4396_v9, %v15433_v17 }
 0x4fd   :  { %v7188_v52 = vpop.permute.xlu1 %7187  ;;  %v4365_v6 = vcombine.high %v15676_v5, %v15676_v5  ;;  %v8516_v53 = vmul.f32 %v13846_v30, %v8362_v4  ;;  %v15680_v30 = vld [vmem:[#allocation26_spill] sm:$0xff] }
 0x4fe   :  { %v8921_v27 = vmul.f32 -1.442695, %v14294_v59  ;;  %v7524_v16 = vmul.f32 %v7388_v2, %v7188_v52  ;;  %v15679_v2 = vld [vmem:[#allocation37_spill] sm:$0xff]  ;;  %v14348_v25 = vrot.slane %v15680_v30, %v15430_v11 }
 0x4ff   :  { %8103 = vadd.xlane.f32.xlu1 %v8102_v14  ;;  %v14313_v38 = vpop.xlane.xlu0 %8064  ;;  %v4393_v54 = vrot.slane %v4365_v6, %v15430_v11  ;;  %v4413_v46 = vcombine.high %v15679_v2, %v15679_v2  ;;  %v8120_v14 = vsel %vm7805_vm14, %v8028_v8, 0.0  ;;  %v9430_v2 = vld [vmem:[%s14810_s0 + $0xc] sm:$0x3] }
 0x500   :  { %9327 = vpow2.f32 %v8921_v27  ;;  %v14307_v24 = vadd.f32 %v7524_v16, %v14014_v29  ;;  %v8374_v27 = vrot.slane %v4739_v35, %v15433_v17  ;;  %v4755_v16 = vcombine.high %v4739_v35, %v4739_v35 }
 0x501   :  { %v7202_v19 = vpop.permute.xlu1 %7201  ;;  %v7412_v31 = vrot.slane %v4393_v54, %v15433_v17  ;;  %v4397_v63 = vcombine.high %v4393_v54, %v4393_v54  ;;  %v4414_v35 = vcombine.high %v15681_v40, %v15681_v40 }
 0x502   :  { %v9324_v12 = vpop.eup %9323  ;;  %v8923_v13 = vmul.f32 -1.442695, %v14307_v24  ;;  %v7526_v50 = vmul.f32 %v7396_v47, %v7202_v19  ;;  %v8382_v54 = vrot.slane %v4755_v16, %v15433_v17 }
 0x503   :  { %8109 = vadd.xlane.f32.xlu1 %v8108_v23  ;;  %v7678_v36 = vadd.f32 1.0, %v9324_v12  ;;  %v7420_v23 = vrot.slane %v4397_v63, %v15433_v17  ;;  %v4442_v16 = vrot.slane %v4414_v35, %v15430_v11 }
 0x504   :  { %9329 = vpow2.f32 %v8923_v13  ;;  %v14317_v29 = vadd.f32 %v7526_v50, %v14049_v37  ;;  %v14327_v37 = vpop.xlane.xlu0 %8070  ;;  %v8550_v13 = vsel %vm7805_vm14, %v8516_v53, 0.0  ;;  %v9429_v50 = vld [vmem:[%s14810_s0 + $0x8] sm:$0x3] }
 0x505   :  { %9331 = vrcp.f32 %v7678_v36  ;;  %v7216_v55 = vpop.permute.xlu1 %7215  ;;  %v8519_v36 = vmul.f32 %v9429_v50, %v8374_v27  ;;  %v15683_v50 = vld [vmem:[#allocation61_spill] sm:$0xff] }
 0x506   :  { %v9326_v49 = vpop.eup %9325  ;;  %v8925_v60 = vmul.f32 -1.442695, %v14317_v29  ;;  %v7528_v22 = vmul.f32 %v7404_v39, %v7216_v55 }
 0x507   :  { %8115 = vadd.xlane.f32.xlu1 %v8114_v44  ;;  %v7680_v32 = vadd.f32 1.0, %v9326_v49 }
 0x508   :  { %9333 = vpow2.f32 %v8925_v60  ;;  %v14333_v52 = vadd.f32 %v7528_v22, %v14075_v7  ;;  %v14339_v9 = vpop.xlane.xlu0 %8076  ;;  %v4435_v7 = vrot.slane %v4413_v46, %v15430_v11  ;;  %v8521_v46 = vmul.f32 %v9430_v2, %v8382_v54  ;;  %v9432_v2 = vld [vmem:[%s14810_s0 + $0x20] sm:$0x3] }
 0x509   :  { %9335 = vrcp.f32 %v7680_v32  ;;  %v7230_v34 = vpop.permute.xlu1 %7229 }
 0x50a   :  { %v9328_v47 = vpop.eup %9327  ;;  %v8927_v5 = vmul.f32 -1.442695, %v14333_v52  ;;  %v7530_v6 = vmul.f32 %v7412_v31, %v7230_v34  ;;  %v7428_v4 = vrot.slane %v4435_v7, %v15433_v17  ;;  %v4445_v22 = vcombine.high %v4435_v7, %v4435_v7 }
 0x50b   :  { %8121 = vadd.xlane.f32.xlu1 %v8120_v14  ;;  %v7682_v51 = vadd.f32 1.0, %v9328_v47  ;;  %v8559_v31 = vsel %vm7805_vm14, %v8519_v36, 0.0  ;;  %v8390_v14 = vrot.slane %v14348_v25, %v15433_v17  ;;  %v15682_v47 = vld [vmem:[#allocation87_spill] sm:$0xff]  ;;  %v8565_v30 = vsel %vm7805_vm14, %v8521_v46, 0.0 }
 0x50c   :  { %9337 = vpow2.f32 %v8927_v5  ;;  %v14343_v19 = vadd.f32 %v7530_v6, %v14102_v57  ;;  %v14356_v55 = vpop.xlane.xlu0 %8082  ;;  %v14381_v5 = vrot.slane %v15682_v47, %v15430_v11  ;;  %v7436_v7 = vrot.slane %v4445_v22, %v15433_v17 }
 0x50d   :  { %9339 = vrcp.f32 %v7682_v51  ;;  %v7244_v12 = vpop.permute.xlu1 %7243  ;;  %v8422_v36 = vrot.slane %v15683_v50, %v15433_v17  ;;  %v4446_v22 = vcombine.high %v4442_v16, %v4442_v16 }
 0x50e   :  { %v9330_v39 = vpop.eup %9329  ;;  %v8929_v57 = vmul.f32 -1.442695, %v14343_v19  ;;  %v7532_v8 = vmul.f32 %v7420_v23, %v7244_v12  ;;  %v9431_v12 = vld [vmem:[%s14810_s0 + $0x10] sm:$0x3]  ;;  %v8454_v40 = vrot.slane %v14381_v5, %v15433_v17 }
 0x50f   :  { %8551 = vadd.xlane.f32.xlu1 %v8550_v13  ;;  %v9332_v44 = vpop.eup %9331  ;;  %v7684_v58 = vadd.f32 1.0, %v9330_v39  ;;  %v8523_v13 = vmul.f32 %v9431_v12, %v8390_v14  ;;  %v8531_v46 = vmul.f32 %v9432_v2, %v8422_v36  ;;  %v4803_v14 = vcombine.high %v14348_v25, %v14348_v25 }
 0x510   :  { %v7774_v49 = vmul.f32 %v9332_v44, %v14268_v56  ;;  %9341 = vpow2.f32 %v8929_v57  ;;  %v14363_v60 = vadd.f32 %v7532_v8, %v14127_v62  ;;  %v14376_v34 = vpop.xlane.xlu0 %8088  ;;  %v7444_v44 = vrot.slane %v4442_v16, %v15433_v17 }
 0x511   :  { %9343 = vrcp.f32 %v7684_v58  ;;  %v7258_v32 = vpop.permute.xlu1 %7257  ;;  %v15684_v58 = vld [vmem:[#allocation107_spill] sm:$0xff]  ;;  %v8539_v16 = vmul.f32 %v13861_v28, %v8454_v40  ;;  %v4901_v12 = vcombine.high %v14381_v5, %v14381_v5 }
 0x512   :  { %v9334_v63 = vpop.eup %9333  ;;  %7807 = vst.msk [vmem:[%s14812_s6 + $0x2] sm:$0x3] %vm7805_vm14, %v7774_v49  ;;  %v8931_v62 = vmul.f32 -1.442695, %v14363_v60  ;;  %v7534_v56 = vmul.f32 %v7428_v4, %v7258_v32  ;;  %v4462_v4 = vcombine.high %v15684_v58, %v15684_v58 }
 0x513   :  { %8560 = vadd.xlane.f32.xlu1 %v8559_v31  ;;  %v9336_v53 = vpop.eup %9335  ;;  %v7686_v27 = vadd.f32 1.0, %v9334_v63  ;;  %v8571_v31 = vsel %vm7805_vm14, %v8523_v13, 0.0 }
 0x514   :  { %v7776_v6 = vmul.f32 %v9336_v53, %v14283_v48  ;;  %9345 = vpow2.f32 %v8931_v62  ;;  %v14385_v51 = vadd.f32 %v7534_v56, %v14146_v61  ;;  %v14399_v39 = vpop.xlane.xlu0 %8094 }
 0x515   :  { %9347 = vrcp.f32 %v7686_v27  ;;  %v7272_v23 = vpop.permute.xlu1 %7271  ;;  %v4484_v27 = vrot.slane %v4462_v4, %v15430_v11  ;;  %v9433_v4 = vld [vmem:[%s14810_s0 + $0x14] sm:$0x3] }
 0x516   :  { %v9338_v54 = vpop.eup %9337  ;;  %7809 = vst.msk [vmem:[%s14812_s6 + $0x6] sm:$0x3] %vm7805_vm14, %v7776_v6  ;;  %v8933_v61 = vmul.f32 -1.442695, %v14385_v51  ;;  %v7536_v48 = vmul.f32 %v7436_v7, %v7272_v23  ;;  %v7452_v6 = vrot.slane %v4446_v22, %v15433_v17  ;;  %v8595_v23 = vsel %vm7805_vm14, %v8531_v46, 0.0  ;;  %v15686_v22 = vld [vmem:[#allocation7_spill] sm:$0xff] }
 0x517   :  { %8566 = vadd.xlane.f32.xlu1 %v8565_v30  ;;  %v9340_v57 = vpop.eup %9339  ;;  %v7688_v8 = vadd.f32 1.0, %v9338_v54  ;;  %v8398_v30 = vrot.slane %v4803_v14, %v15433_v17  ;;  %v7460_v54 = vrot.slane %v4484_v27, %v15433_v17 }
 0x518   :  { %v7778_v35 = vmul.f32 %v9340_v57, %v14294_v59  ;;  %9349 = vpow2.f32 %v8933_v61  ;;  %v14408_v49 = vadd.f32 %v7536_v48, %v14169_v20  ;;  %v14421_v62 = vpop.xlane.xlu0 %8100  ;;  %v4494_v61 = vcombine.high %v4484_v27, %v4484_v27  ;;  %v15685_v48 = vld [vmem:[#allocation108_spill] sm:$0xff] }
 0x519   :  { %9351 = vrcp.f32 %v7688_v8  ;;  %v7286_v32 = vpop.permute.xlu1 %7285  ;;  %v4463_v5 = vcombine.high %v15685_v48, %v15685_v48  ;;  %v8525_v40 = vmul.f32 %v9433_v4, %v8398_v30 }
 0x51a   :  { %v9342_v63 = vpop.eup %9341  ;;  %7811 = vst.msk [vmem:[%s14812_s6 + $0xa] sm:$0x3] %vm7805_vm14, %v7778_v35  ;;  %v8935_v20 = vmul.f32 -1.442695, %v14408_v49  ;;  %v7538_v59 = vmul.f32 %v7444_v44, %v7286_v32  ;;  %v8619_v44 = vsel %vm7805_vm14, %v8539_v16, 0.0  ;;  %v8462_v35 = vrot.slane %v4901_v12, %v15433_v17 }
 0x51b   :  { %8572 = vadd.xlane.f32.xlu1 %v8571_v31  ;;  %v9344_v56 = vpop.eup %9343  ;;  %v7690_v53 = vadd.f32 1.0, %v9342_v63  ;;  %v4854_v32 = vcombine.high %v15686_v22, %v15686_v22  ;;  %v4491_v63 = vrot.slane %v4463_v5, %v15430_v11  ;;  %v8577_v16 = vsel %vm7805_vm14, %v8525_v40, 0.0 }
 0x51c   :  { %v7780_v25 = vmul.f32 %v9344_v56, %v14307_v24  ;;  %9353 = vpow2.f32 %v8935_v20  ;;  %v14427_v47 = vadd.f32 %v7538_v59, %v14187_v45  ;;  %v14439_v24 = vpop.xlane.xlu0 %8106  ;;  %v14465_v20 = vrot.slane %v15636_v42, %v15430_v11 }
 0x51d   :  { %9355 = vrcp.f32 %v7690_v53  ;;  %v7300_v7 = vpop.permute.xlu1 %7299  ;;  %v7468_v53 = vrot.slane %v4494_v61, %v15433_v17  ;;  %v8434_v42 = vrot.slane %v4854_v32, %v15433_v17  ;;  %v4495_v61 = vcombine.high %v4491_v63, %v4491_v63 }
 0x51e   :  { %v9346_v13 = vpop.eup %9345  ;;  %7813 = vst.msk [vmem:[%s14812_s6 + $0xe] sm:$0x3] %vm7805_vm14, %v7780_v25  ;;  %v8937_v28 = vmul.f32 -1.442695, %v14427_v47  ;;  %v7540_v45 = vmul.f32 %v7452_v6, %v7300_v7  ;;  %v9434_v25 = vld [vmem:[%s14810_s0 + $0x34] sm:$0x3] }
 0x51f   :  { %8596 = vadd.xlane.f32.xlu1 %v8595_v23  ;;  %v9348_v50 = vpop.eup %9347  ;;  %v7692_v36 = vadd.f32 1.0, %v9346_v13  ;;  %v8541_v6 = vmul.f32 %v9434_v25, %v8462_v35  ;;  %v7476_v13 = vrot.slane %v4491_v63, %v15433_v17 }
 0x520   :  { %v7782_v57 = vmul.f32 %v9348_v50, %v14317_v29  ;;  %9357 = vpow2.f32 %v8937_v28  ;;  %v14446_v8 = vadd.f32 %v7540_v45, %v14206_v43  ;;  %v14460_v2 = vpop.xlane.xlu0 %8112  ;;  %v8406_v28 = vrot.slane %v14465_v20, %v15433_v17  ;;  %v15687_v45 = vld [vmem:[#allocation88_spill] sm:$0xff] }
 0x521   :  { %9359 = vrcp.f32 %v7692_v36  ;;  %v7314_v58 = vpop.permute.xlu1 %7313  ;;  %v14489_v50 = vrot.slane %v15687_v45, %v15430_v11  ;;  %v8625_v5 = vsel %vm7805_vm14, %v8541_v6, 0.0 }
 0x522   :  { %v9350_v31 = vpop.eup %9349  ;;  %7815 = vst.msk [vmem:[%s14812_s6 + $0x12] sm:$0x3] %vm7805_vm14, %v7782_v57  ;;  %v8939_v43 = vmul.f32 -1.442695, %v14446_v8  ;;  %v7542_v29 = vmul.f32 %v7460_v54, %v7314_v58  ;;  %v9435_v57 = vld [vmem:[%s14810_s0 + $0x26] sm:$0x3] }
 0x523   :  { %8620 = vadd.xlane.f32.xlu1 %v8619_v44  ;;  %v9352_v46 = vpop.eup %9351  ;;  %v7694_v14 = vadd.f32 1.0, %v9350_v31  ;;  %v8534_v44 = vmul.f32 %v9435_v57, %v8434_v42  ;;  %v15688_v58 = vld [vmem:[#allocation31_spill] sm:$0xff]  ;;  %v9436_v31 = vld [vmem:[%s14810_s0 + $0x18] sm:$0x3] }
 0x524   :  { %v7784_v59 = vmul.f32 %v9352_v46, %v14333_v52  ;;  %9361 = vpow2.f32 %v8939_v43  ;;  %v14469_v56 = vadd.f32 %v7542_v29, %v14221_v0  ;;  %v14482_v23 = vpop.xlane.xlu0 %8118  ;;  %v4823_v4 = vcombine.high %v15688_v58, %v15688_v58 }
 0x525   :  { %9363 = vrcp.f32 %v7694_v14  ;;  %v7328_v27 = vpop.permute.xlu1 %7327  ;;  %v8527_v43 = vmul.f32 %v9436_v31, %v8406_v28  ;;  %v7484_v14 = vrot.slane %v4495_v61, %v15433_v17 }
 0x526   :  { %v9354_v7 = vpop.eup %9353  ;;  %7817 = vst.msk [vmem:[%s14812_s6 + $0x16] sm:$0x3] %vm7805_vm14, %v7784_v59  ;;  %v8941_v0 = vmul.f32 -1.442695, %v14469_v56  ;;  %v7544_v52 = vmul.f32 %v7468_v53, %v7328_v27  ;;  %v8604_v59 = vsel %vm7805_vm14, %v8534_v44, 0.0  ;;  %v8470_v53 = vrot.slane %v14489_v50, %v15433_v17 }
 0x527   :  { %8578 = vadd.xlane.f32.xlu1 %v8577_v16  ;;  %v9356_v30 = vpop.eup %9355  ;;  %v7696_v12 = vadd.f32 1.0, %v9354_v7  ;;  %v4851_v27 = vrot.slane %v4823_v4, %v15430_v11  ;;  %v4804_v11 = vcombine.high %v14465_v20, %v14465_v20  ;;  %v4902_v44 = vcombine.high %v14489_v50, %v14489_v50 }
 0x528   :  { %v7786_v36 = vmul.f32 %v9356_v30, %v14343_v19  ;;  %9365 = vpow2.f32 %v8941_v0  ;;  %v14493_v54 = vadd.f32 %v7544_v52, %v14231_v15  ;;  %v14506_v35 = vpop.xlane.xlu0 %8124  ;;  %v8583_v52 = vsel %vm7805_vm14, %v8527_v43, 0.0  ;;  %v9437_v30 = vld [vmem:[%s14810_s0 + $0x38] sm:$0x3] }
 0x529   :  { %9367 = vrcp.f32 %v7696_v12  ;;  %v7342_v48 = vpop.permute.xlu1 %7341  ;;  %v8543_v12 = vmul.f32 %v9437_v30, %v8470_v53  ;;  %v8414_v61 = vrot.slane %v4804_v11, %v15433_v17  ;;  %v4855_v31 = vcombine.high %v4851_v27, %v4851_v27  ;;  %v9440_v53 = vld [vmem:[%s14810_s0 + $0x3c] sm:$0x3] }
 0x52a   :  { %v9358_v40 = vpop.eup %9357  ;;  %7819 = vst.msk [vmem:[%s14812_s6 + $0x1a] sm:$0x3] %vm7805_vm14, %v7786_v36  ;;  %v8943_v15 = vmul.f32 -1.442695, %v14493_v54  ;;  %v7546_v19 = vmul.f32 %v7476_v13, %v7342_v48  ;;  %v8442_v13 = vrot.slane %v4851_v27, %v15433_v17 }
 0x52b   :  { %8626 = vadd.xlane.f32.xlu1 %v8625_v5  ;;  %v9360_v22 = vpop.eup %9359  ;;  %v7698_v32 = vadd.f32 1.0, %v9358_v40  ;;  %v8631_v48 = vsel %vm7805_vm14, %v8543_v12, 0.0  ;;  %v9438_v5 = vld [vmem:[%s14810_s0 + $0x2a] sm:$0x3] }
 0x52c   :  { %v7788_v29 = vmul.f32 %v9360_v22, %v14363_v60  ;;  %9369 = vpow2.f32 %v8943_v15  ;;  %v14513_v46 = vadd.f32 %v7546_v19, %v14245_v3  ;;  %v14525_v25 = vpop.xlane.xlu0 %8548  ;;  %v8536_v57 = vmul.f32 %v9438_v5, %v8442_v13  ;;  %v9439_v19 = vld [vmem:[%s14810_s0 + $0x1c] sm:$0x3] }
 0x52d   :  { %9371 = vrcp.f32 %v7698_v32  ;;  %v7356_v63 = vpop.permute.xlu1 %7355  ;;  %v8529_v22 = vmul.f32 %v9439_v19, %v8414_v61  ;;  %v8478_v32 = vrot.slane %v4902_v44, %v15433_v17 }
 0x52e   :  { %v9362_v16 = vpop.eup %9361  ;;  %7821 = vst.msk [vmem:[%s14812_s6 + $0x1e] sm:$0x3] %vm7805_vm14, %v7788_v29  ;;  %v8945_v3 = vmul.f32 -1.442695, %v14513_v46  ;;  %v7548_v60 = vmul.f32 %v7484_v14, %v7356_v63  ;;  %v8610_v50 = vsel %vm7805_vm14, %v8536_v57, 0.0  ;;  %v4907_v57 = vld [vmem:[#allocation5 + $0x10] sm:$0xff] }
 0x52f   :  { %8605 = vadd.xlane.f32.xlu1 %v8604_v59  ;;  %v9364_v6 = vpop.eup %9363  ;;  %v7700_v42 = vadd.f32 1.0, %v9362_v16  ;;  %v8589_v59 = vsel %vm7805_vm14, %v8529_v22, 0.0  ;;  %v8545_v27 = vmul.f32 %v9440_v53, %v8478_v32  ;;  %v8450_v16 = vrot.slane %v4855_v31, %v15433_v17  ;;  %v9441_v17 = vld [vmem:[%s14810_s0 + $0x2e] sm:$0x3]  ;;  %v4910_v31 = vld [vmem:[#allocation5 + $0x20] sm:$0xff] }
 0x530   :  { %v7790_v7 = vmul.f32 %v9364_v6, %v14385_v51  ;;  %9373 = vpow2.f32 %v8945_v3  ;;  %v14529_v0 = vadd.f32 %v7548_v60, %v14255_v26  ;;  %v14543_v51 = vpop.xlane.xlu0 %8554 }
 0x531   :  { %9375 = vrcp.f32 %v7700_v42  ;;  %v8538_v11 = vmul.f32 %v9441_v17, %v8450_v16 }
 0x532   :  { %v9366_v28 = vpop.eup %9365  ;;  %7823 = vst.msk [vmem:[%s14812_s6 + $0x22] sm:$0x3] %vm7805_vm14, %v7790_v7  ;;  %v8947_v26 = vmul.f32 -1.442695, %v14529_v0  ;;  %v8637_v7 = vsel %vm7805_vm14, %v8545_v27, 0.0 }
 0x533   :  { %8584 = vadd.xlane.f32.xlu1 %v8583_v52  ;;  %v9368_v20 = vpop.eup %9367  ;;  %v7702_v45 = vadd.f32 1.0, %v9366_v28 }
 0x534   :  { %v7792_v36 = vmul.f32 %v9368_v20, %v14408_v49  ;;  %9377 = vpow2.f32 %v8947_v26  ;;  %v14557_v49 = vpop.xlane.xlu0 %8557 }
 0x535   :  { %9379 = vrcp.f32 %v7702_v45 }
 0x536   :  { %v9370_v58 = vpop.eup %9369  ;;  %7825 = vst.msk [vmem:[%s14812_s6 + $0x26] sm:$0x3] %vm7805_vm14, %v7792_v36 }
 0x537   :  { %8632 = vadd.xlane.f32.xlu1 %v8631_v48  ;;  %v9372_v4 = vpop.eup %9371  ;;  %v7704_v40 = vadd.f32 1.0, %v9370_v58  ;;  %v4905_v48 = vld [vmem:[#allocation5] sm:$0xff] }
 0x538   :  { %v7794_v15 = vmul.f32 %v9372_v4, %v14427_v47  ;;  %v14569_v29 = vpop.xlane.xlu0 %8563  ;;  %v15689_v4 = vld [vmem:[#allocation100_spill] sm:$0xff] }
 0x539   :  { %9381 = vrcp.f32 %v7704_v40  ;;  %v8187_v40 = vrot.slane %v14243_v1, %v15689_v4  ;;  %v8195_v19 = vrot.slane %v14253_v41, %v15689_v4  ;;  %v8199_v22 = vrot.slane %v14265_v10, %v15689_v4 }
 0x53a   :  { %v9374_v43 = vpop.eup %9373  ;;  %7827 = vst.msk [vmem:[%s14812_s6 + $0x2a] sm:$0x3] %vm7805_vm14, %v7794_v15  ;;  %v8207_v41 = vrot.slane %v14276_v33, %v15689_v4 }
 0x53b   :  { %8611 = vadd.xlane.f32.xlu1 %v8610_v50  ;;  %v9376_v47 = vpop.eup %9375  ;;  %v7706_v14 = vadd.f32 1.0, %v9374_v43 }
 0x53c   :  { %v7796_v63 = vmul.f32 %v9376_v47, %v14446_v8  ;;  %v14581_v60 = vpop.xlane.xlu0 %8569 }
 0x53d   :  { %9383 = vrcp.f32 %v7706_v14 }
 0x53e   :  { %v9378_v3 = vpop.eup %9377  ;;  %7829 = vst.msk [vmem:[%s14812_s6 + $0x2e] sm:$0x3] %vm7805_vm14, %v7796_v63  ;;  %v4912_v63 = vld [vmem:[#allocation5 + $0x30] sm:$0xff] }
 0x53f   :  { %8590 = vadd.xlane.f32.xlu1 %v8589_v59  ;;  %v9380_v8 = vpop.eup %9379  ;;  %v7708_v6 = vadd.f32 1.0, %v9378_v3  ;;  %v8215_v3 = vrot.slane %v14290_v21, %v15689_v4  ;;  %v8231_v21 = vrot.slane %v14313_v38, %v15689_v4 }
 0x540   :  { %v7798_v42 = vmul.f32 %v9380_v8, %v14469_v56  ;;  %v14592_v52 = vpop.xlane.xlu0 %8575  ;;  %v8616_v56 = vsel %vm7805_vm14, %v8538_v11, 0.0  ;;  %v8223_v11 = vrot.slane %v14301_v18, %v15689_v4  ;;  %v8239_v18 = vrot.slane %v14327_v37, %v15689_v4 }
 0x541   :  { %9385 = vrcp.f32 %v7708_v6  ;;  %v4913_v6 = vld [vmem:[#allocation5 + $0x38] sm:$0xff]  ;;  %v8255_v37 = vrot.slane %v14356_v55, %v15689_v4 }
 0x542   :  { %7831 = vst.msk [vmem:[%s14812_s6 + $0x32] sm:$0x3] %vm7805_vm14, %v7798_v42 }
 0x543   :  { %8638 = vadd.xlane.f32.xlu1 %v8637_v7  ;;  %v9382_v30 = vpop.eup %9381 }
 0x544   :  { %v7800_v12 = vmul.f32 %v9382_v30, %v14493_v54  ;;  %v14600_v13 = vpop.xlane.xlu0 %8599 }
 0x546   :  { %7833 = vst.msk [vmem:[%s14812_s6 + $0x36] sm:$0x3] %vm7805_vm14, %v7800_v12 }
 0x547   :  { %8617 = vadd.xlane.f32.xlu1 %v8616_v56  ;;  %v9384_v28 = vpop.eup %9383 }
 0x548   :  { %v7802_v26 = vmul.f32 %v9384_v28, %v14513_v46  ;;  %v14607_v20 = vpop.xlane.xlu0 %8623 }
 0x54a   :  { %7835 = vst.msk [vmem:[%s14812_s6 + $0x3a] sm:$0x3] %vm7805_vm14, %v7802_v26 }
 0x54b   :  { %v9386_v54 = vpop.eup %9385 }
 0x54c   :  { %v7804_v45 = vmul.f32 %v9386_v54, %v14529_v0  ;;  %v14614_v36 = vpop.xlane.xlu0 %8602  ;;  %v4908_v0 = vld [vmem:[#allocation5 + $0x18] sm:$0xff] }
 0x54e   :  { %7837 = vst.msk [vmem:[%s14812_s6 + $0x3e] sm:$0x3] %vm7805_vm14, %v7804_v45 }
 0x552   :  { %v14616_v61 = vpop.xlane.xlu0 %8581 }
 0x557   :  { %v14618_v46 = vpop.xlane.xlu0 %8629 }
 0x558   :  { %8128 = vperm.xlu1 %9215, %v4905_v48  }
 0x55b   :  { %v14620_v5 = vpop.xlane.xlu0 %8608 }
 0x55c   :  { %8138 = vperm.xlu1 %9215, %v4907_v57  }
 0x55f   :  { %v14622_v44 = vpop.xlane.xlu0 %8587 }
 0x560   :  { %8143 = vperm.xlu1 %9215, %v4908_v0   ;;  %v8035_v58 = vpop.xlane.xlu1 %8034 }
 0x561   :  { %v8191_v15 = vrot.slane %v8035_v58, %v15689_v4 }
 0x563   :  { %v8313_v50 = vsel %vm8312_vm1, %v8191_v15, %v8187_v40  ;;  %v14632_v32 = vpop.xlane.xlu0 %8635  ;;  %v8247_v15 = vrot.slane %v14339_v9, %v15689_v4 }
 0x564   :  { %v8315_v43 = vsel %vm8314_vm2, %v8195_v19, %v8313_v50  ;;  %8645 = vperm.xlu1 %9215, %v4910_v31   ;;  %v8044_v1 = vpop.xlane.xlu1 %8043  ;;  %v9442_v19 = vld [vmem:[#allocation6 + $0x8] sm:$0xff] }
 0x565   :  { %v8203_v47 = vrot.slane %v8044_v1, %v15689_v4  ;;  %v8317_v14 = vsel %vm8316_vm3, %v8199_v22, %v8315_v43 }
 0x567   :  { %v8319_v10 = vsel %vm8318_vm4, %v8203_v47, %v8317_v14  ;;  %v14640_v59 = vpop.xlane.xlu0 %8614 }
 0x568   :  { %8655 = vperm.xlu1 %9215, %v4912_v63   ;;  %v8050_v53 = vpop.xlane.xlu1 %8049  ;;  %v8321_v27 = vsel %vm8320_vm6, %v8207_v41, %v8319_v10  ;;  %v8263_v10 = vrot.slane %v14376_v34, %v15689_v4  ;;  %v8279_v34 = vrot.slane %v14421_v62, %v15689_v4 }
 0x569   :  { %v8211_v16 = vrot.slane %v8050_v53, %v15689_v4 }
 0x56b   :  { %v8323_v8 = vsel %vm8322_vm7, %v8211_v16, %v8321_v27  ;;  %v14650_v7 = vpop.xlane.xlu0 %8593  ;;  %v8271_v16 = vrot.slane %v14399_v39, %v15689_v4 }
 0x56c   :  { %8660 = vperm.xlu1 %9215, %v4913_v6   ;;  %v8056_v33 = vpop.xlane.xlu1 %8055  ;;  %v14648_v42 = vsel %vm8324_vm8, %v8215_v3, %v8323_v8 }
 0x56d   :  { %v8219_v17 = vrot.slane %v8056_v33, %v15689_v4 }
 0x56f   :  { %v8326_v56 = vsel %vm8312_vm1, %v8223_v11, %v8219_v17  ;;  %v14660_v26 = vpop.xlane.xlu0 %8641 }
 0x570   :  { %v8062_v30 = vpop.xlane.xlu1 %8061 }
 0x571   :  { %v8227_v12 = vrot.slane %v8062_v30, %v15689_v4 }
 0x573   :  { %v8327_v28 = vsel %vm8314_vm2, %v8227_v12, %v8326_v56  ;;  %v8287_v12 = vrot.slane %v14439_v24, %v15689_v4  ;;  %v8303_v24 = vrot.slane %v14482_v23, %v15689_v4 }
 0x574   :  { %v8068_v54 = vpop.xlane.xlu1 %8067  ;;  %v8328_v45 = vsel %vm8316_vm3, %v8231_v21, %v8327_v28 }
 0x575   :  { %v8235_v48 = vrot.slane %v8068_v54, %v15689_v4  ;;  %v8295_v54 = vrot.slane %v14460_v2, %v15689_v4  ;;  %v8311_v2 = vrot.slane %v14506_v35, %v15689_v4 }
 0x577   :  { %v8329_v57 = vsel %vm8318_vm4, %v8235_v48, %v8328_v45  ;;  %v8134_v0 = vpop.permute.xlu0 %8133 }
 0x578   :  { %v8074_v58 = vpop.xlane.xlu1 %8073  ;;  %v8330_v38 = vsel %vm8320_vm6, %v8239_v18, %v8329_v57  ;;  %v8147_v22 = vmul.f32 %v9442_v19, %v8134_v0 }
 0x579   :  { %v8243_v40 = vrot.slane %v8074_v58, %v15689_v4 }
 0x57b   :  { %v8331_v50 = vsel %vm8322_vm7, %v8243_v40, %v8330_v38 }
 0x57c   :  { %v8332_v31 = vsel %vm8324_vm8, %v8247_v15, %v8331_v50  ;;  %v8080_v43 = vpop.xlane.xlu1 %8079  ;;  %v8710_v50 = vrot.slane %v14543_v51, %v15689_v4 }
 0x57d   :  { %v8352_v1 = vadd.f32 %v8332_v31, %v8147_v22  ;;  %v8251_v47 = vrot.slane %v8080_v43, %v15689_v4  ;;  %v8702_v22 = vrot.slane %v14525_v25, %v15689_v4  ;;  %v8714_v31 = vrot.slane %v14557_v49, %v15689_v4 }
 0x57e   :  { %v8722_v25 = vrot.slane %v14569_v29, %v15689_v4  ;;  %v8730_v49 = vrot.slane %v14581_v60, %v15689_v4  ;;  %v8770_v29 = vrot.slane %v14600_v13, %v15689_v4  ;;  %v8746_v13 = vrot.slane %v14616_v61, %v15689_v4 }
 0x57f   :  { %8865 = vst.msk [vmem:[#allocation6 + $0x8] sm:$0xff] %vm3778_vm12, %v8352_v1  ;;  %v8333_v14 = vsel %vm8312_vm1, %v8255_v37, %v8251_v47 }
 0x580   :  { %v8086_v41 = vpop.xlane.xlu1 %8085 }
 0x581   :  { %v8259_v9 = vrot.slane %v8086_v41, %v15689_v4 }
 0x583   :  { %v8334_v63 = vsel %vm8314_vm2, %v8259_v9, %v8333_v14 }
 0x584   :  { %v8092_v53 = vpop.xlane.xlu1 %8091  ;;  %v8335_v27 = vsel %vm8316_vm3, %v8263_v10, %v8334_v63 }
 0x585   :  { %v8267_v55 = vrot.slane %v8092_v53, %v15689_v4 }
 0x587   :  { %v8336_v3 = vsel %vm8318_vm4, %v8267_v55, %v8335_v27 }
 0x588   :  { %v8098_v8 = vpop.xlane.xlu1 %8097  ;;  %v8337_v6 = vsel %vm8320_vm6, %v8271_v16, %v8336_v3  ;;  %v8774_v16 = vrot.slane %v14614_v36, %v15689_v4 }
 0x589   :  { %v8275_v33 = vrot.slane %v8098_v8, %v15689_v4 }
 0x58b   :  { %v8338_v17 = vsel %vm8322_vm7, %v8275_v33, %v8337_v6  ;;  %v8738_v33 = vrot.slane %v14592_v52, %v15689_v4 }
 0x58c   :  { %v8104_v11 = vpop.xlane.xlu1 %8103  ;;  %v14693_v30 = vsel %vm8324_vm8, %v8279_v34, %v8338_v17 }
 0x58d   :  { %v8283_v39 = vrot.slane %v8104_v11, %v15689_v4 }
 0x58f   :  { %v8340_v21 = vsel %vm8312_vm1, %v8287_v12, %v8283_v39  ;;  %v8802_v39 = vrot.slane %v14607_v20, %v15689_v4  ;;  %v8782_v20 = vrot.slane %v14620_v5, %v15689_v4  ;;  %v8818_v5 = vrot.slane %v14632_v32, %v15689_v4 }
 0x590   :  { %v8110_v56 = vpop.xlane.xlu1 %8109  ;;  %v8762_v32 = vrot.slane %v14650_v7, %v15689_v4 }
 0x591   :  { %v8291_v28 = vrot.slane %v8110_v56, %v15689_v4 }
 0x593   :  { %v8341_v62 = vsel %vm8314_vm2, %v8291_v28, %v8340_v21  ;;  %v8810_v28 = vrot.slane %v14618_v46, %v15689_v4  ;;  %v8754_v46 = vrot.slane %v14622_v44, %v15689_v4  ;;  %v8790_v44 = vrot.slane %v14640_v59, %v15689_v4 }
 0x594   :  { %v8116_v45 = vpop.xlane.xlu1 %8115  ;;  %v8342_v48 = vsel %vm8316_vm3, %v8295_v54, %v8341_v62 }
 0x595   :  { %v8299_v18 = vrot.slane %v8116_v45, %v15689_v4 }
 0x597   :  { %v8343_v57 = vsel %vm8318_vm4, %v8299_v18, %v8342_v48 }
 0x598   :  { %v8122_v0 = vpop.xlane.xlu1 %8121  ;;  %v8344_v58 = vsel %vm8320_vm6, %v8303_v24, %v8343_v57 }
 0x599   :  { %v8307_v38 = vrot.slane %v8122_v0, %v15689_v4 }
 0x59b   :  { %v8345_v40 = vsel %vm8322_vm7, %v8307_v38, %v8344_v58 }
 0x59c   :  { %v8552_v15 = vpop.xlane.xlu1 %8551  ;;  %v14714_v19 = vsel %vm8324_vm8, %v8311_v2, %v8345_v40 }
 0x59d   :  { %v8706_v23 = vrot.slane %v8552_v15, %v15689_v4 }
 0x59f   :  { %v8827_v43 = vsel %vm8312_vm1, %v8706_v23, %v8702_v22 }
 0x5a0   :  { %v8828_v35 = vsel %vm8314_vm2, %v8710_v50, %v8827_v43  ;;  %v8561_v37 = vpop.xlane.xlu1 %8560  ;;  %v8651_v43 = vpop.permute.xlu0 %8650 }
 0x5a1   :  { %v8718_v1 = vrot.slane %v8561_v37, %v15689_v4  ;;  %v8829_v47 = vsel %vm8316_vm3, %v8714_v31, %v8828_v35 }
 0x5a3   :  { %v8830_v14 = vsel %vm8318_vm4, %v8718_v1, %v8829_v47  ;;  %v9443_v47 = vld [vmem:[#allocation6 + $0x28] sm:$0xff] }
 0x5a4   :  { %v8567_v41 = vpop.xlane.xlu1 %8566  ;;  %v8831_v51 = vsel %vm8320_vm6, %v8722_v25, %v8830_v14  ;;  %v8664_v25 = vmul.f32 %v9443_v47, %v8651_v43 }
 0x5a5   :  { %v8726_v9 = vrot.slane %v8567_v41, %v15689_v4 }
 0x5a7   :  { %v8832_v10 = vsel %vm8322_vm7, %v8726_v9, %v8831_v51 }
 0x5a8   :  { %v8573_v63 = vpop.xlane.xlu1 %8572  ;;  %v14736_v53 = vsel %vm8324_vm8, %v8730_v49, %v8832_v10  ;;  %v8826_v49 = vrot.slane %v14660_v26, %v15689_v4 }
 0x5a9   :  { %v8734_v6 = vrot.slane %v8573_v63, %v15689_v4 }
 0x5ab   :  { %v8834_v11 = vsel %vm8312_vm1, %v8738_v33, %v8734_v6  ;;  %v9446_v33 = vld [vmem:[#allocation6 + $0x18] sm:$0xff] }
 0x5ac   :  { %v8597_v27 = vpop.xlane.xlu1 %8596 }
 0x5ad   :  { %v8766_v55 = vrot.slane %v8597_v27, %v15689_v4 }
 0x5af   :  { %v8841_v3 = vsel %vm8312_vm1, %v8770_v29, %v8766_v55  ;;  %v9444_v29 = vld [vmem:[#allocation6] sm:$0xff] }
 0x5b0   :  { %v8621_v8 = vpop.xlane.xlu1 %8620  ;;  %v8842_v60 = vsel %vm8314_vm2, %v8774_v16, %v8841_v3 }
 0x5b1   :  { %v8798_v36 = vrot.slane %v8621_v8, %v15689_v4  ;;  %v9445_v8 = vld [vmem:[#allocation6 + $0x10] sm:$0xff] }
 0x5b3   :  { %v8848_v54 = vsel %vm8312_vm1, %v8802_v39, %v8798_v36 }
 0x5b4   :  { %v8579_v34 = vpop.xlane.xlu1 %8578 }
 0x5b5   :  { %v8742_v17 = vrot.slane %v8579_v34, %v15689_v4 }
 0x5b7   :  { %v8835_v12 = vsel %vm8314_vm2, %v8742_v17, %v8834_v11  ;;  %v9447_v11 = vld [vmem:[#allocation6 + $0x20] sm:$0xff] }
 0x5b8   :  { %v8627_v21 = vpop.xlane.xlu1 %8626  ;;  %v8836_v56 = vsel %vm8316_vm3, %v8746_v13, %v8835_v12 }
 0x5b9   :  { %v8806_v52 = vrot.slane %v8627_v21, %v15689_v4 }
 0x5bb   :  { %v8849_v61 = vsel %vm8314_vm2, %v8806_v52, %v8848_v54 }
 0x5bc   :  { %v8606_v62 = vpop.xlane.xlu1 %8605  ;;  %v8850_v45 = vsel %vm8316_vm3, %v8810_v28, %v8849_v61 }
 0x5bd   :  { %v8778_v48 = vrot.slane %v8606_v62, %v15689_v4 }
 0x5bf   :  { %v8843_v18 = vsel %vm8316_vm3, %v8778_v48, %v8842_v60 }
 0x5c0   :  { %v8585_v24 = vpop.xlane.xlu1 %8584  ;;  %v8844_v57 = vsel %vm8318_vm4, %v8782_v20, %v8843_v18 }
 0x5c1   :  { %v8750_v0 = vrot.slane %v8585_v24, %v15689_v4 }
 0x5c3   :  { %v8837_v58 = vsel %vm8318_vm4, %v8750_v0, %v8836_v56 }
 0x5c4   :  { %v8633_v38 = vpop.xlane.xlu1 %8632  ;;  %v8838_v2 = vsel %vm8320_vm6, %v8754_v46, %v8837_v58 }
 0x5c5   :  { %v8814_v40 = vrot.slane %v8633_v38, %v15689_v4 }
 0x5c7   :  { %v8851_v15 = vsel %vm8318_vm4, %v8814_v40, %v8850_v45 }
 0x5c8   :  { %v8612_v22 = vpop.xlane.xlu1 %8611  ;;  %v8852_v23 = vsel %vm8320_vm6, %v8818_v5, %v8851_v15 }
 0x5c9   :  { %v8786_v50 = vrot.slane %v8612_v22, %v15689_v4 }
 0x5cb   :  { %v8845_v31 = vsel %vm8320_vm6, %v8786_v50, %v8844_v57 }
 0x5cc   :  { %v8591_v35 = vpop.xlane.xlu1 %8590  ;;  %v8846_v37 = vsel %vm8322_vm7, %v8790_v44, %v8845_v31 }
 0x5cd   :  { %v8758_v1 = vrot.slane %v8591_v35, %v15689_v4 }
 0x5cf   :  { %v8839_v14 = vsel %vm8322_vm7, %v8758_v1, %v8838_v2 }
 0x5d0   :  { %v8840_v41 = vsel %vm8324_vm8, %v8762_v32, %v8839_v14  ;;  %v8639_v51 = vpop.xlane.xlu1 %8638 }
 0x5d1   :  { %v8860_v9 = vadd.f32 %v8840_v41, %v8664_v25  ;;  %v8822_v59 = vrot.slane %v8639_v51, %v15689_v4 }
 0x5d3   :  { %8869 = vst.msk [vmem:[#allocation6 + $0x28] sm:$0xff] %vm3778_vm12, %v8860_v9  ;;  %v8853_v10 = vsel %vm8322_vm7, %v8822_v59, %v8852_v23 }
 0x5d4   :  { %v8618_v63 = vpop.xlane.xlu1 %8617  ;;  %v8854_v7 = vsel %vm8324_vm8, %v8826_v49, %v8853_v10 }
 0x5d8   :  { %v8129_v27 = vpop.permute.xlu1 %8128 }
 0x5d9   :  { %v8146_v55 = vmul.f32 %v9444_v29, %v8129_v27 }
 0x5db   :  { %v8351_v16 = vadd.f32 %v14648_v42, %v8146_v55  ;;  %v8794_v42 = vrot.slane %v8618_v63, %v15689_v4 }
 0x5dc   :  { %v8139_v3 = vpop.permute.xlu1 %8138 }
 0x5dd   :  { %8864 = vst.msk [vmem:[#allocation6] sm:$0xff] %vm3778_vm12, %v8351_v16  ;;  %v8148_v60 = vmul.f32 %v9445_v8, %v8139_v3  ;;  %v8847_v56 = vsel %vm8324_vm8, %v8794_v42, %v8846_v37 }
 0x5df   :  { %v8353_v6 = vadd.f32 %v14693_v30, %v8148_v60  ;;  %v9448_v30 = vld [vmem:[#allocation6 + $0x30] sm:$0xff] }
 0x5e0   :  { %v8144_v26 = vpop.permute.xlu1 %8143 }
 0x5e1   :  { %8866 = vst.msk [vmem:[#allocation6 + $0x10] sm:$0xff] %vm3778_vm12, %v8353_v6  ;;  %v8149_v34 = vmul.f32 %v9446_v33, %v8144_v26 }
 0x5e3   :  { %v8354_v17 = vadd.f32 %v14714_v19, %v8149_v34  ;;  %v9449_v19 = vld [vmem:[#allocation6 + $0x38] sm:$0xff] }
 0x5e4   :  { %v8646_v13 = vpop.permute.xlu1 %8645 }
 0x5e5   :  { %8867 = vst.msk [vmem:[#allocation6 + $0x18] sm:$0xff] %vm3778_vm12, %v8354_v17  ;;  %v8663_v36 = vmul.f32 %v9447_v11, %v8646_v13 }
 0x5e7   :  { %v8859_v12 = vadd.f32 %v14736_v53, %v8663_v36 }
 0x5e8   :  { %v8656_v39 = vpop.permute.xlu1 %8655 }
 0x5e9   :  { %8868 = vst.msk [vmem:[#allocation6 + $0x20] sm:$0xff] %vm3778_vm12, %v8859_v12  ;;  %v8665_v21 = vmul.f32 %v9448_v30, %v8656_v39 }
 0x5eb   :  { %v8861_v52 = vadd.f32 %v8847_v56, %v8665_v21 }
 0x5ec   :  { %v8661_v28 = vpop.permute.xlu1 %8660 }
 0x5ed   :  { %8870 = vst.msk [vmem:[#allocation6 + $0x30] sm:$0xff] %vm3778_vm12, %v8861_v52  ;;  %v8666_v54 = vmul.f32 %v9449_v19, %v8661_v28 }
 0x5ef   :  { %v8862_v61 = vadd.f32 %v8854_v7, %v8666_v54 }
 0x5f1   :  { %8871 = vst.msk [vmem:[#allocation6 + $0x38] sm:$0xff] %vm3778_vm12, %v8862_v61 }

</bundles_post_ra>
